<compile_context>
chip_gen: v6e
topology: v6e:2x2x1
jax: 0.10.0
libtpu: 0.0.40
codegen_flags: <defaults>
</compile_context>

<pallas_src>
import functools

import jax
import jax.numpy as jnp
from jax.experimental import pallas as pl
from jax.experimental.pallas import tpu as pltpu

IN2, HID, OUT = 3072, 2048, 10   # fc2: 3072->2048, fc3: 2048->10
EPS = 1e-5                       # nn.BatchNorm1d default eps

_FALLBACK_TO_PARALLEL = False    # flipped at runtime if CORE_PARALLEL is rejected


def _config():
    """Generation-aware tiling -> (hid_split, tk, core_parallel)."""
    kind = ""
    try:
        kind = jax.devices()[0].device_kind.lower()
    except Exception:
        pass
    has_core_parallel = getattr(pltpu, "CORE_PARALLEL", None) is not None
    if "v7" in kind and has_core_parallel and not _FALLBACK_TO_PARALLEL:
        # 2 TensorCores: split HID across cores, one K step per half.
        return 2, IN2, True
    # v5e / v6e (single TensorCore): no split, two K steps of 1536.
    return 1, 1536, False


def prepare_params(w2_t, b2, gamma, beta, w3_t, b3):
    """One-time parameter preparation (model load / weight update), NOT per
    forward call: the f32->bf16 cast of the 24 MiB fc2 weight lives here so
    the per-call path never re-reads/re-writes it, and b2/gamma/beta are
    packed into a single (3, HID) array (one small DMA instead of three)."""
    return dict(
        w2=jnp.asarray(w2_t, jnp.bfloat16),                              # (IN2, HID)
        bn=jnp.concatenate([b2, gamma, beta], axis=0).astype(jnp.float32),  # (3, HID)
        w3=jnp.asarray(w3_t, jnp.float32),                               # (HID, OUT)
        b3=jnp.asarray(b3, jnp.float32),                                 # (1, OUT)
    )


@functools.lru_cache(maxsize=None)
def _build_call(batch, hid_split, tk, core_parallel):
    nk = IN2 // tk
    hid2 = HID // hid_split

    def kernel(x_ref, w2_ref, bn_ref, w3_ref, o_ref, acc_ref):
        """Grid = (HID half, fc2-K tile).  Each half accumulates its
        (B, hid2) fc2 columns in f32 scratch (initialized with the fc2 bias),
        then on the last K step applies BatchNorm1d (training-mode batch
        statistics, biased variance), ReLU and its half of the fc3 matmul,
        writing a partial (B, OUT) product."""
        k = pl.program_id(1)

        @pl.when(k == 0)
        def _():
            acc_ref[...] = jnp.broadcast_to(bn_ref[0:1, :], acc_ref.shape)

        off = pl.multiple_of(k * tk, 128)
        x_blk = x_ref[:, pl.ds(off, tk)].astype(jnp.bfloat16)   # (B, tk) bf16
        acc_ref[...] += jnp.dot(x_blk, w2_ref[...],
                                preferred_element_type=jnp.float32)

        @pl.when(k == nk - 1)
        def _():
            h = acc_ref[...]                                     # fc2 + bias, f32
            mean = jnp.mean(h, axis=0, keepdims=True)
            var = jnp.mean((h - mean) ** 2, axis=0, keepdims=True)
            h = (h - mean) * jax.lax.rsqrt(var + EPS)
            h = h * bn_ref[1:2, :] + bn_ref[2:3, :]              # gamma, beta
            h = jnp.maximum(h, 0.0)                              # ReLU
            o_ref[...] = jnp.dot(h, w3_ref[...],                 # partial fc3
                                 preferred_element_type=jnp.float32
                                 ).astype(o_ref.dtype)

    if core_parallel:
        dims = (pltpu.CORE_PARALLEL, pltpu.ARBITRARY)
    else:
        dims = ("parallel", "arbitrary")

    flops = 2 * batch * IN2 * HID + 2 * batch * HID * OUT
    bytes_accessed = (IN2 * HID * 2 + batch * IN2 * 4 + 3 * HID * 4
                      + HID * OUT * 4 + hid_split * batch * OUT * 4)

    return pl.pallas_call(
        kernel,
        out_shape=jax.ShapeDtypeStruct((hid_split, batch, OUT), jnp.float32),
        grid_spec=pltpu.PrefetchScalarGridSpec(
            num_scalar_prefetch=0,
            grid=(hid_split, nk),
            in_specs=[
                pl.BlockSpec((batch, IN2), lambda p, k: (0, 0)),  # x (resident)
                pl.BlockSpec((tk, hid2),   lambda p, k: (k, p)),  # fc2 weight tile
                pl.BlockSpec((3, hid2),    lambda p, k: (0, p)),  # [b2; gamma; beta]
                pl.BlockSpec((hid2, OUT),  lambda p, k: (p, 0)),  # fc3 weight rows
            ],
            out_specs=pl.BlockSpec((None, batch, OUT), lambda p, k: (p, 0, 0)),
            scratch_shapes=[pltpu.VMEM((batch, hid2), jnp.float32)],
        ),
        compiler_params=pltpu.CompilerParams(
            dimension_semantics=dims,
            vmem_limit_bytes=32 * 1024 * 1024),
        cost_estimate=pl.CostEstimate(flops=flops, transcendentals=HID,
                                      bytes_accessed=bytes_accessed),
    )


def predictor_forward(x, params):
    B = x.shape[0]
    assert x.shape[1] == IN2
    hid_split, tk, core_parallel = _config()
    call = _build_call(B, hid_split, tk, core_parallel)
    partials = call(x, params["w2"], params["bn"], params["w3"])
    # Merge the per-half partial fc3 products (trivial <= 2 x B x 10 add) and
    # add the fc3 bias in XLA.
    return jnp.sum(partials, axis=0) + params["b3"]


def reference_forward(x, w2_t, b2, gamma, beta, w3_t, b3):
    # Reference applies the same bf16 quantization of x / fc2-weight as the
    # kernel (intentional perf tradeoff); everything else f32.  Training-mode
    # BatchNorm (batch statistics, biased variance).
    xb = x.astype(jnp.bfloat16).astype(jnp.float32)
    wb = w2_t.astype(jnp.bfloat16).astype(jnp.float32)
    h = xb @ wb + b2
    mean = jnp.mean(h, axis=0, keepdims=True)
    var = jnp.mean((h - mean) ** 2, axis=0, keepdims=True)
    h = (h - mean) / jnp.sqrt(var + EPS)
    h = h * gamma + beta
    h = jnp.maximum(h, 0.0)
    return h @ w3_t + b3


if __name__ == "__main__":
    key = jax.random.PRNGKey(0)
    k_x, k_w2, k_b2, k_w3, k_b3, k_g, k_be = jax.random.split(key, 7)

    B = 8
    x = jax.random.normal(k_x, (B, IN2), dtype=jnp.float32)

    # PyTorch-style Linear init: U(-1/sqrt(fan_in), 1/sqrt(fan_in)).
    bound2 = 1.0 / jnp.sqrt(jnp.float32(IN2))
    w2_t = jax.random.uniform(k_w2, (IN2, HID), jnp.float32, -bound2, bound2)
    b2 = jax.random.uniform(k_b2, (1, HID), jnp.float32, -bound2, bound2)
    bound3 = 1.0 / jnp.sqrt(jnp.float32(HID))
    w3_t = jax.random.uniform(k_w3, (HID, OUT), jnp.float32, -bound3, bound3)
    b3 = jax.random.uniform(k_b3, (1, OUT), jnp.float32, -bound3, bound3)

    # Non-trivial BN affine params to exercise the full BN path.
    gamma = 1.0 + 0.1 * jax.random.normal(k_g, (1, HID), jnp.float32)
    beta = 0.1 * jax.random.normal(k_be, (1, HID), jnp.float32)

    # One-time weight preparation (bf16 fc2 weight, packed BN params).
    params = jax.tree_util.tree_map(
        jax.block_until_ready, prepare_params(w2_t, b2, gamma, beta, w3_t, b3))

    try:
        out = jax.block_until_ready(predictor_forward(x, params))
    except Exception:
        # CORE_PARALLEL lowering unavailable on this chip/runtime: retry with
        # the plain single-split configuration (known-good on 1-TC chips).
        _FALLBACK_TO_PARALLEL = True
        out = jax.block_until_ready(predictor_forward(x, params))

    ref = reference_forward(x, w2_t, b2, gamma, beta, w3_t, b3)
    assert out.shape == (B, OUT)
    assert jnp.allclose(out, ref, atol=2e-3, rtol=2e-3), "mismatch vs reference"

    print("KERNEL_OK")
</pallas_src>

<mosaic_0001>
module attributes {stable_mosaic.version = 11 : i64} {
  func.func @kernel(%arg0: i32, %arg1: i32, %arg2: memref<8x3072xf32, #tpu.memory_space<vmem>>, %arg3: memref<1536x2048xbf16, #tpu.memory_space<vmem>>, %arg4: memref<3x2048xf32, #tpu.memory_space<vmem>>, %arg5: memref<2048x10xf32, #tpu.memory_space<vmem>>, %arg6: memref<1x8x10xf32, #tpu.memory_space<vmem>>, %arg7: memref<8x2048xf32, #tpu.memory_space<vmem>>) attributes {dimension_semantics = [#tpu.dimension_semantics<parallel>, #tpu.dimension_semantics<arbitrary>], iteration_bounds = array<i64: 1, 2>, scalar_prefetch = 0 : i64, scratch_operands = 1 : i64, tpu.core_type = #tpu.core_type<tc>, window_params = [{pipeline_mode = #tpu.pipeline_mode<synchronous>, transform_indices = @transform_0, window_bounds = array<i64: 8, 3072>}, {transform_indices = @transform_1, window_bounds = array<i64: 1536, 2048>}, {transform_indices = @transform_2, window_bounds = array<i64: 3, 2048>}, {transform_indices = @transform_3, window_bounds = array<i64: 2048, 10>}, {transform_indices = @transform_4, window_bounds = array<i64: 1, 8, 10>}]} {
    %c0_i32 = arith.constant 0 : i32
    %0 = arith.cmpi eq, %arg1, %c0_i32 : i32
    %1 = arith.extui %0 : i1 to i32
    %c0_i32_0 = arith.constant 0 : i32
    %2 = arith.cmpi ne, %1, %c0_i32_0 : i32
    scf.if %2 {
      %c0_8 = arith.constant 0 : index
      %c0_9 = arith.constant 0 : index
      %16 = vector.load %arg4[%c0_8, %c0_9] : memref<3x2048xf32, #tpu.memory_space<vmem>>, vector<1x2048xf32>
      %17 = vector.shape_cast %16 : vector<1x2048xf32> to vector<1x2048xf32>
      %18 = vector.broadcast %17 : vector<1x2048xf32> to vector<8x2048xf32>
      %c0_10 = arith.constant 0 : index
      %c0_11 = arith.constant 0 : index
      %19 = vector.load %arg7[%c0_10, %c0_11] : memref<8x2048xf32, #tpu.memory_space<vmem>>, vector<8x2048xf32>
      tpu.vector_store %arg7[%c0_10, %c0_11], %18 {strides = array<i32>} : memref<8x2048xf32, #tpu.memory_space<vmem>>, vector<8x2048xf32>,
    } else {
    }
    %c1536_i32 = arith.constant 1536 : i32
    %3 = arith.muli %arg1, %c1536_i32 : i32
    %4 = tpu.assume_multiple %3, 128 : i32
    %c0 = arith.constant 0 : index
    %5 = arith.index_cast %4 : i32 to index
    %6 = vector.load %arg2[%c0, %5] : memref<8x3072xf32, #tpu.memory_space<vmem>>, vector<8x1536xf32>
    %7 = arith.truncf %6 : vector<8x1536xf32> to vector<8x1536xbf16>
    %c0_1 = arith.constant 0 : index
    %c0_2 = arith.constant 0 : index
    %8 = vector.load %arg7[%c0_1, %c0_2] : memref<8x2048xf32, #tpu.memory_space<vmem>>, vector<8x2048xf32>
    %c0_3 = arith.constant 0 : index
    %c0_4 = arith.constant 0 : index
    %9 = vector.load %arg3[%c0_3, %c0_4] : memref<1536x2048xbf16, #tpu.memory_space<vmem>>, vector<1536x2048xbf16>
    %cst = arith.constant dense<0.000000e+00> : vector<8x2048xf32>
    %10 = tpu.matmul %7, %9, %cst {dimension_numbers = #tpu.dot_dimension_numbers<[1], [0], [0], [1], [0, 0, 1, 1], [], []>} : vector<8x1536xbf16>, vector<1536x2048xbf16>, vector<8x2048xf32> -> vector<8x2048xf32>
    %11 = arith.addf %8, %10 : vector<8x2048xf32>
    %c0_5 = arith.constant 0 : index
    %c0_6 = arith.constant 0 : index
    %12 = vector.load %arg7[%c0_5, %c0_6] : memref<8x2048xf32, #tpu.memory_space<vmem>>, vector<8x2048xf32>
    tpu.vector_store %arg7[%c0_5, %c0_6], %11 {strides = array<i32>} : memref<8x2048xf32, #tpu.memory_space<vmem>>, vector<8x2048xf32>,
    %c1_i32 = arith.constant 1 : i32
    %13 = arith.cmpi eq, %arg1, %c1_i32 : i32
    %14 = arith.extui %13 : i1 to i32
    %c0_i32_7 = arith.constant 0 : i32
    %15 = arith.cmpi ne, %14, %c0_i32_7 : i32
    scf.if %15 {
      %c0_8 = arith.constant 0 : index
      %c0_9 = arith.constant 0 : index
      %16 = vector.load %arg7[%c0_8, %c0_9] : memref<8x2048xf32, #tpu.memory_space<vmem>>, vector<8x2048xf32>
      %cst_10 = arith.constant dense<0.000000e+00> : vector<2048xf32>
      %17 = vector.multi_reduction <add>, %16, %cst_10 [0] : vector<8x2048xf32> to vector<2048xf32>
      %18 = vector.shape_cast %17 : vector<2048xf32> to vector<1x2048xf32>
      %cst_11 = arith.constant 8.000000e+00 : f32
      %19 = vector.broadcast %cst_11 : f32 to vector<1x2048xf32>
      %20 = arith.divf %18, %19 : vector<1x2048xf32>
      %21 = vector.broadcast %20 : vector<1x2048xf32> to vector<8x2048xf32>
      %22 = arith.subf %16, %21 : vector<8x2048xf32>
      %23 = arith.mulf %22, %22 : vector<8x2048xf32>
      %cst_12 = arith.constant dense<0.000000e+00> : vector<2048xf32>
      %24 = vector.multi_reduction <add>, %23, %cst_12 [0] : vector<8x2048xf32> to vector<2048xf32>
      %25 = vector.shape_cast %24 : vector<2048xf32> to vector<1x2048xf32>
      %cst_13 = arith.constant 8.000000e+00 : f32
      %26 = vector.broadcast %cst_13 : f32 to vector<1x2048xf32>
      %27 = arith.divf %25, %26 : vector<1x2048xf32>
      %28 = vector.broadcast %20 : vector<1x2048xf32> to vector<8x2048xf32>
      %29 = arith.subf %16, %28 : vector<8x2048xf32>
      %cst_14 = arith.constant 9.99999974E-6 : f32
      %30 = vector.broadcast %cst_14 : f32 to vector<1x2048xf32>
      %31 = arith.addf %27, %30 : vector<1x2048xf32>
      %32 = math.rsqrt %31 : vector<1x2048xf32>
      %33 = vector.broadcast %32 : vector<1x2048xf32> to vector<8x2048xf32>
      %34 = arith.mulf %29, %33 : vector<8x2048xf32>
      %c1 = arith.constant 1 : index
      %c0_15 = arith.constant 0 : index
      %35 = vector.load %arg4[%c1, %c0_15] : memref<3x2048xf32, #tpu.memory_space<vmem>>, vector<1x2048xf32>
      %36 = vector.broadcast %35 : vector<1x2048xf32> to vector<8x2048xf32>
      %37 = arith.mulf %34, %36 : vector<8x2048xf32>
      %c2 = arith.constant 2 : index
      %c0_16 = arith.constant 0 : index
      %38 = vector.load %arg4[%c2, %c0_16] : memref<3x2048xf32, #tpu.memory_space<vmem>>, vector<1x2048xf32>
      %39 = vector.broadcast %38 : vector<1x2048xf32> to vector<8x2048xf32>
      %40 = arith.addf %37, %39 : vector<8x2048xf32>
      %cst_17 = arith.constant 0.000000e+00 : f32
      %41 = vector.broadcast %cst_17 : f32 to vector<8x2048xf32>
      %42 = arith.maximumf %40, %41 : vector<8x2048xf32>
      %c0_18 = arith.constant 0 : index
      %c0_19 = arith.constant 0 : index
      %43 = vector.load %arg5[%c0_18, %c0_19] : memref<2048x10xf32, #tpu.memory_space<vmem>>, vector<2048x10xf32>
      %cst_20 = arith.constant dense<0.000000e+00> : vector<8x10xf32>
      %44 = tpu.matmul %42, %43, %cst_20 {dimension_numbers = #tpu.dot_dimension_numbers<[1], [0], [0], [1], [0, 0, 1, 1], [], []>} : vector<8x2048xf32>, vector<2048x10xf32>, vector<8x10xf32> -> vector<8x10xf32>
      %c0_21 = arith.constant 0 : index
      %c0_22 = arith.constant 0 : index
      %c0_23 = arith.constant 0 : index
      %45 = vector.load %arg6[%c0_21, %c0_22, %c0_23] : memref<1x8x10xf32, #tpu.memory_space<vmem>>, vector<1x8x10xf32>
      %46 = vector.shape_cast %45 : vector<1x8x10xf32> to vector<8x10xf32>
      %47 = vector.shape_cast %44 : vector<8x10xf32> to vector<1x8x10xf32>
      tpu.vector_store %arg6[%c0_21, %c0_22, %c0_23], %47 {strides = array<i32>} : memref<1x8x10xf32, #tpu.memory_space<vmem>>, vector<1x8x10xf32>,
    } else {
    }
    return
  }
  func.func @transform_0(%arg0: i32, %arg1: i32) -> (i32, i32) {
    %c0_i32 = arith.constant 0 : i32
    %c0_i32_0 = arith.constant 0 : i32
    %c0_i32_1 = arith.constant 0 : i32
    return %c0_i32, %c0_i32_0 : i32, i32
  }
  func.func @transform_1(%arg0: i32, %arg1: i32) -> (i32, i32) {
    %c0_i32 = arith.constant 0 : i32
    return %arg1, %arg0 : i32, i32
  }
  func.func @transform_2(%arg0: i32, %arg1: i32) -> (i32, i32) {
    %c0_i32 = arith.constant 0 : i32
    %c0_i32_0 = arith.constant 0 : i32
    return %c0_i32, %arg0 : i32, i32
  }
  func.func @transform_3(%arg0: i32, %arg1: i32) -> (i32, i32) {
    %c0_i32 = arith.constant 0 : i32
    %c0_i32_0 = arith.constant 0 : i32
    return %arg0, %c0_i32 : i32, i32
  }
  func.func @transform_4(%arg0: i32, %arg1: i32) -> (i32, i32, i32) {
    %c0_i32 = arith.constant 0 : i32
    %c0_i32_0 = arith.constant 0 : i32
    %c0_i32_1 = arith.constant 0 : i32
    return %arg0, %c0_i32, %c0_i32_0 : i32, i32, i32
  }
}

</mosaic_0001>

<bundles_post_ra>
// kernel: tpu_custom_call.1
= control target key start
LH: loop header
LB: loop body
LE: loop exit
PB: predicated region body
PF: predicated region fallthrough
CT: control target
= control target key end

     0   :  { %9 = vsyncpa [#allocation4], 0  ;;  %s18261_s0 = inlined_call_operand.hbm [shape: f32[8,3072], index: 0, kind: input, shape index: {}]   ;;  %s18262_s1 = inlined_call_operand.hbm [shape: bf16[3072,2048], index: 1, kind: input, shape index: {}]   ;;  %s18263_s2 = inlined_call_operand.hbm [shape: f32[3,2048], index: 2, kind: input, shape index: {}]   ;;  %s18264_s3 = inlined_call_operand.vmem [shape: f32[2048,10], index: 3, kind: input, shape index: {}]   ;;  %s18265_s4 = inlined_call_operand.hbm [shape: f32[1,8,10], index: 4, kind: output, shape index: {}]  }
   0x1   :  { %10 = vsyncpa [#allocation7], 0 }
   0x2   :  { %12 = vsyncpa [#allocation7 + $0x1], 0 }
   0x3   :  { %13 = vsyncpa [#allocation5], 0  ;;  %s15281_s15 = smov 0   ;;  %s15283_s16 = smov 0  }
   0x4   :  { %s15285_s17 = smov 0   ;;  %s15287_s18 = smov 0  }
   0x5   :  { %s15289_s19 = smov 0   ;;  %s15291_s20 = smov 0  }
   0x6 LB: > { %s15310_s21 = sadd.s32 4294967295, %s15248_s20   ;;  %s61_s22 = sadd.s32 1, %s15236_s17  ;;  %s15248_s20 = sphi %s15291_s20, %s19_s20   ;;  %s15244_s19 = sphi %s15289_s19, %s18283_s19   ;;  %s15240_s18 = sphi %s15287_s18, %s18282_s18   ;;  %s15236_s17 = sphi %s15285_s17, %s18281_s17   ;;  %s15232_s16 = sphi %s15283_s16, %s18280_s16   ;;  %s15228_s15 = sphi %s15281_s15, %s18279_s15  }
   0x7   : > { %p68_p0 = scmp.ne.s32.totalorder %s15236_s17, %s15232_s16  ;;  %p69_p1 = scmp.eq.s32.totalorder %s15248_s20, 0 }
   0x8   : > { %p74_p2 = scmp.ne.s32.totalorder %s15232_s16, %s15228_s15  ;;  %p18266_p3 = scmp.eq.s32.totalorder %s15310_s21, 0 }
   0x9   : > { %p70_p4 = por %p69_p1, %p68_p0  ;;  %p13127_p5 = scmp.ge.s32.totalorder %s15248_s20, 1 }
   0xa   : > { %p15321_p6 = por %p18266_p3, %p74_p2  ;;  %p163_p7 = scmp.lt.s32.totalorder %s15248_s20, 3 }
   0xb   : > { %s15250_s25 = smov [#allocation8]   ;;  %p14992_p10 = scmp.lt.s32.totalorder %s15248_s20, 2 }
   0xc   : > { %s18269_s23 = scalar_select %p15321_p6, 1, 0 }
   0xd   : > { %p15326_p8 = pnand %p13127_p5, %p163_p7  ;;  %s190_s26 = sshll.u32 %s15250_s25, 4  ;;  %s191_s26 = int_to_ptr.vmem [resolvable:$true] %s190_s26 }
   0xe   : > { %p15339_p12 = pnand %p14992_p10, %p70_p4  ;;  %s15251_s29 = smov [#allocation3]  }
   0xf   : > { %s18270_s24 = scalar_select %p15326_p8, 1, 0 }
  0x10   : > { %p14979_p9 = pneg %p15326_p8  ;;  %s176_s30 = sshll.u32 %s15251_s29, 4  ;;  %s177_s30 = int_to_ptr.vmem [resolvable:$true] %s176_s30 }
  0x11   : > { %s15093_s5 = scalar_lea.vmem %s191_s26, 1024  ;;  %p15101_p5 = scmp.lt.s32.totalorder %s191_s26, %s191_s26 }
  0x12   : > { %p15335_p11 = pnand %p14979_p9, %p18266_p3  ;;  %p15094_p0 = scmp.ne.s32.totalorder %s191_s26, %s15093_s5 }
  0x13   : > { %p15102_p7 = scmp.lt.s32.totalorder %s15093_s5, %s15093_s5 }
  0x14   : > { %p15084_p13 = pneg %p15335_p11 }
  0x15   : > { %p15103_p9 = por %p15102_p7, %p15101_p5 }
  0x16   : > { %p15096_p1 = pnand %p15094_p0, %p15084_p13 }
  0x18   : > { %p15097_p2 = pneg %p15096_p1 }
  0x1a   : > { %p15104_p3 = pnand %p15103_p9, %p15097_p2 }
  0x1c   : > { %15107 = shalt.err (!%p15104_p3)
}
  0x1d   : > { %14985 = dma.hbm_to_vmem [thread:$0]  (!%p15335_p11), %s18263_s2, 1024, %s191_s26, [#allocation7]  }
  0x1e   : > { %s15119_s8 = scalar_lea.vmem %s177_s30, 3072  ;;  %p15127_p1 = scmp.lt.s32.totalorder %s177_s30, %s177_s30 }
  0x1f   : > { %p15120_p4 = scmp.ne.s32.totalorder %s177_s30, %s15119_s8  ;;  %p15128_p6 = scmp.lt.s32.totalorder %s15119_s8, %s15119_s8 }
  0x21   : > { %p15122_p10 = pnand %p15120_p4, %p15084_p13  ;;  %p15129_p8 = por %p15128_p6, %p15127_p1 }
  0x23   : > { %p15123_p0 = pneg %p15122_p10 }
  0x25   : > { %p15130_p5 = pnand %p15129_p8, %p15123_p0 }
  0x27   : > { %15133 = shalt.err (!%p15130_p5)
}
  0x28   : > { %14982 = dma.hbm_to_vmem [thread:$0]  (!%p15335_p11), %s18261_s0, 3072, %s177_s30, [#allocation4]  }
  0x29   : > { %s210_s11 = sand.u32 1, %s15248_s20   ;;  %s28_s12 = sadd.s32 1, %s15244_s19 }
  0x2a   : > { %p29_p3 = scmp.ge.s32.totalorder %s28_s12, 2  ;;  %s212_s13 = sand.u32 1, %s15236_s17  }
  0x2b   : > { %s14963_s14 = smul.u32 12288, %s212_s13  ;;  %s211_s7 = scalar_lea.sflag [#allocation7], %s210_s11 }
  0x2c   : > { %s18285_s12 = smov (%p29_p3, %s28_s12), 0  ;;  %s14682_s15 = smul.u32 196608, %s15244_s19 }
  0x2d   : > { %s56_s25 = ssub.s32 %s15244_s19, %s18285_s12  ;;  %s214_s26 = scalar_lea.vmem [#allocation6], %s14963_s14 }
  0x2e   : > { %s224_s27 = sshll.u32 %s214_s26, 4  ;;  %p59_p6 = scmp.eq.s32.totalorder %s56_s25, 0  ;;  %s225_s27 = int_to_ptr.vmem [resolvable:$true] %s224_s27 }
  0x2f   : > { %s223_s6 = scalar_lea.hbm %s18262_s1, %s14682_s15  ;;  %p15136_p8 = pneg %p15339_p12 }
  0x30   : > { %s15375_s30 = scalar_select %p59_p6, %s15236_s17, %s61_s22  }
  0x31   : > { %s15147_s8 = scalar_lea.vmem %s225_s27, 196608  ;;  %s15252_s9 = smov [#allocation6]  }
  0x32   : > { %p15148_p11 = scmp.ne.s32.totalorder %s225_s27, %s15147_s8  ;;  %s15152_s10 = sshll.u32 %s15252_s9, 4  ;;  %s15153_s10 = int_to_ptr.vmem [resolvable:$false] %s15152_s10 }
  0x33   : > { %s15154_s13 = scalar_lea.vmem %s15153_s10, 393216  ;;  %p15155_p7 = scmp.lt.s32.totalorder %s225_s27, %s15153_s10 }
  0x34   : > { %p15150_p13 = pnand %p15148_p11, %p15136_p8  ;;  %p15156_p9 = scmp.lt.s32.totalorder %s15154_s13, %s15147_s8 }
  0x36   : > { %p15151_p2 = pneg %p15150_p13  ;;  %p15157_p4 = por %p15156_p9, %p15155_p7 }
  0x38   : > { %p15158_p10 = pnand %p15157_p4, %p15151_p2 }
  0x3a   : > { %15161 = shalt.err (!%p15158_p10)
}
  0x3b   : > { %s15253_s14 = smov 1024   ;;  %s15254_s22 = smov 64  }
  0x3c   : > { %14989 = dma.hbm_to_vmem [thread:$0]  (!%p15339_p12), %s223_s6, 196608, %s225_s27, %s211_s7, %s15253_s14, %s15253_s14, %s15254_s22  }
  0x3d   : > { %p18273_p0 = scmp.ne.s32.totalorder %s18270_s24, 0 }
  0x3e   : > { %p18274_p1 = scmp.eq.s32.totalorder (!%p18273_p0), %s15310_s21, 0 }
  0x3f   : > { %236 = sbr.rel (%p18273_p0) target bundleno = 2241 (0x8c1), region = 36 }
  0x44   : > { %15211 = dma.done.wait (%p18274_p1), [#allocation4], 3072   ;;  %p18275_p5 = pmov %p18274_p1 }
  0x45   : > { %s242_s11 = sand.u32 1, %s15310_s21   ;;  %s244_s15 = sand.u32 1, %s15232_s16  }
  0x46   : > { %15213 = vsyncadd (%p18275_p5), [#allocation4], 4294964224  ;;  %s14964_s25 = smul.u32 12288, %s244_s15  ;;  %s243_s26 = scalar_lea.sflag [#allocation7], %s242_s11 }
  0x47   : > { %p18276_p3 = scmp.ne.s32.totalorder %s18269_s23, 0 }
  0x48   : > { %s15389_s29 = scalar_lea.vmem [#allocation6], %s14964_s25 }
  0x49   : > { %15215 = dma.done.wait (%p18276_p3), %s243_s26, 196608  }
  0x4a   : > { %15217 = vsyncadd (%p18276_p3), %s243_s26, 4294770688  ;;  %p18277_p12 = pmov %p18274_p1 }
  0x4b   : > { %p18278_p6 = pmov %p18274_p1 }
  0x4c   : > { %15219 = dma.done.wait (%p18277_p12), [#allocation7], 1024  }
  0x4d   : > { %15221 = vsyncadd (%p18278_p6), [#allocation7], 4294966272  ;;  %p13137_p8 = scmp.ne.s32.totalorder %s15240_s18, 0 }
  0x4f   : > { %287 = sbr.rel (%p13137_p8) target bundleno = 100 (0x64), region = 52 }
  0x54   : > { %v293_v0 = vlaneseq  ;;  %v288_v2 = vld [vmem:[#allocation8] ss:$4 sm:$0xff] }
  0x55   : > { %v290_v11 = vld [vmem:[#allocation8 + $0x20] ss:$4 sm:$0xff] }
  0x56   : > { %v294_v1 = vshrl.u32 %v293_v0, 7 }
  0x58   : > { %v295_v3 = vsub.s32 0, %v294_v1  ;;  %v299_v4 = vsub.s32 1, %v294_v1  ;;  %v303_v5 = vsub.s32 2, %v294_v1  ;;  %v307_v6 = vsub.s32 3, %v294_v1 }
  0x59   : > { %v311_v7 = vsub.s32 4, %v294_v1  ;;  %v315_v8 = vsub.s32 5, %v294_v1  ;;  %v319_v9 = vsub.s32 6, %v294_v1  ;;  %v323_v10 = vsub.s32 7, %v294_v1 }
  0x5a   : > { %v296_v12 = vrot.slane %v288_v2, %v295_v3  ;;  %v300_v13 = vrot.slane %v288_v2, %v299_v4  ;;  %v304_v14 = vrot.slane %v288_v2, %v303_v5  ;;  %v308_v15 = vrot.slane %v288_v2, %v307_v6 }
  0x5b   : > { %v312_v16 = vrot.slane %v288_v2, %v311_v7  ;;  %v316_v17 = vrot.slane %v288_v2, %v315_v8  ;;  %v320_v18 = vrot.slane %v288_v2, %v319_v9  ;;  %v324_v19 = vrot.slane %v288_v2, %v323_v10 }
  0x5c   : > { %373 = vst [vmem:[#allocation2 + $0x30] sm:$0xff] %v296_v12  ;;  %374 = vst [vmem:[#allocation2] sm:$0xff] %v300_v13  ;;  %v328_v20 = vrot.slane %v290_v11, %v295_v3  ;;  %v332_v21 = vrot.slane %v290_v11, %v299_v4  ;;  %v336_v22 = vrot.slane %v290_v11, %v303_v5 }
  0x5d   : > { %375 = vst [vmem:[#allocation2 + $0x58] sm:$0xff] %v304_v14  ;;  %376 = vst [vmem:[#allocation2 + $0x18] sm:$0xff] %v308_v15  ;;  %v340_v23 = vrot.slane %v290_v11, %v307_v6  ;;  %v344_v24 = vrot.slane %v290_v11, %v311_v7  ;;  %v348_v25 = vrot.slane %v290_v11, %v315_v8 }
  0x5e   : > { %377 = vst [vmem:[#allocation2 + $0x50] sm:$0xff] %v312_v16  ;;  %378 = vst [vmem:[#allocation2 + $0x68] sm:$0xff] %v316_v17  ;;  %v352_v26 = vrot.slane %v290_v11, %v319_v9  ;;  %v356_v27 = vrot.slane %v290_v11, %v323_v10 }
  0x5f   : > { %379 = vst [vmem:[#allocation2 + $0x8] sm:$0xff] %v320_v18  ;;  %380 = vst [vmem:[#allocation2 + $0x48] sm:$0xff] %v324_v19 }
  0x60   : > { %381 = vst [vmem:[#allocation2 + $0x40] sm:$0xff] %v328_v20  ;;  %382 = vst [vmem:[#allocation2 + $0x20] sm:$0xff] %v332_v21 }
  0x61   : > { %383 = vst [vmem:[#allocation2 + $0x10] sm:$0xff] %v336_v22  ;;  %384 = vst [vmem:[#allocation2 + $0x38] sm:$0xff] %v340_v23 }
  0x62   : > { %385 = vst [vmem:[#allocation2 + $0x60] sm:$0xff] %v344_v24  ;;  %386 = vst [vmem:[#allocation2 + $0x70] sm:$0xff] %v348_v25 }
  0x63   : > { %387 = vst [vmem:[#allocation2 + $0x78] sm:$0xff] %v352_v26  ;;  %388 = vst [vmem:[#allocation2 + $0x28] sm:$0xff] %v356_v27 }
  0x64 PF: > { %v546_v28 = vld [vmem:[%s15389_s29 + $0x380] sm:$0xff]  ;;  %s389_s23 = smul.u32 1536, %s15240_s18  ;;  %p14675_p11 = scmp.ne.s32.totalorder %s15240_s18, 1 }
  0x65   : > { %v554_v29 = vld [vmem:[%s15389_s29 + $0x3c0] sm:$0xff] }
  0x66   : > { %v802_v30 = vld [vmem:[%s15389_s29 + $0xb80] sm:$0xff]  ;;  %v13252_v31 = vcombine.high %v546_v28, %v554_v29  ;;  %v13251_v33 = vcombine.low %v546_v28, %v554_v29  ;;  %s15421_s24 = sshra.s32 %s389_s23, 7 }
  0x67   : > { %v810_v32 = vld [vmem:[%s15389_s29 + $0xbc0] sm:$0xff]  ;;  %s13138_s28 = sshll.u32 %s15421_s24, 3 }
  0x68   : > { %v530_v34 = vld [vmem:[%s15389_s29 + $0x300] sm:$0xff]  ;;  %v13508_v36 = vcombine.high %v802_v30, %v810_v32  ;;  %v13507_v37 = vcombine.low %v802_v30, %v810_v32  ;;  %9650 = vmatprep.subr.bf16.mxu0 %v13252_v31  ;;  %s15432_s27 = scalar_lea.vmem [#allocation3], %s13138_s28 }
  0x69   : > { %v538_v35 = vld [vmem:[%s15389_s29 + $0x340] sm:$0xff]  ;;  %9651 = vmatpush1.bf16.msra.mxu0 %v13251_v33  ;;  %v395_v17 = vld [vmem:[%s15432_s27 + $0x8] sm:$0xff]  ;;  %v397_v18 = vld [vmem:[%s15432_s27 + $0x18] sm:$0xff] }
  0x6a   : > { %v13236_v38 = vcombine.high %v530_v34, %v538_v35  ;;  %v786_v39 = vld [vmem:[%s15389_s29 + $0xb00] sm:$0xff]  ;;  %9691 = vmatprep.subr.bf16.mxu1 %v13508_v36  ;;  %v13235_v46 = vcombine.low %v530_v34, %v538_v35  ;;  %v15438_v22 = vpack.c.bf16 %v395_v17, %v395_v17  ;;  %v15440_v23 = vpack.c.bf16 %v397_v18, %v397_v18 }
  0x6b   : > { %v794_v40 = vld [vmem:[%s15389_s29 + $0xb40] sm:$0xff]  ;;  %9692 = vmatpush1.bf16.msra.mxu1 %v13507_v37 }
  0x6c   : > { %v514_v41 = vld [vmem:[%s15389_s29 + $0x280] sm:$0xff]  ;;  %v13492_v42 = vcombine.high %v786_v39, %v794_v40  ;;  %9652 = vmatprep.subr.bf16.mxu0 %v13236_v38  ;;  %v13491_v47 = vcombine.low %v786_v39, %v794_v40  ;;  %9682 = vmatprep.mubr.bf16.mxu0 %v15438_v22 }
  0x6d   : > { %v522_v43 = vld [vmem:[%s15389_s29 + $0x2c0] sm:$0xff]  ;;  %9653 = vmatpush1.bf16.msra.mxu0 %v13235_v46  ;;  %9723 = vmatprep.mubr.bf16.mxu1 %v15440_v23 }
  0x6e   : > { %v770_v44 = vld [vmem:[%s15389_s29 + $0xa80] sm:$0xff]  ;;  %v13220_v48 = vcombine.high %v514_v41, %v522_v43  ;;  %9693 = vmatprep.subr.bf16.mxu1 %v13492_v42  ;;  %v13219_v54 = vcombine.low %v514_v41, %v522_v43 }
  0x6f   : > { %v778_v45 = vld [vmem:[%s15389_s29 + $0xac0] sm:$0xff]  ;;  %9694 = vmatpush1.bf16.msra.mxu1 %v13491_v47 }
  0x70   : > { %v13476_v49 = vcombine.high %v770_v44, %v778_v45  ;;  %v498_v50 = vld [vmem:[%s15389_s29 + $0x200] sm:$0xff]  ;;  %9654 = vmatprep.subr.bf16.mxu0 %v13220_v48  ;;  %v13475_v55 = vcombine.low %v770_v44, %v778_v45 }
  0x71   : > { %v506_v51 = vld [vmem:[%s15389_s29 + $0x240] sm:$0xff]  ;;  %9655 = vmatpush1.bf16.msra.mxu0 %v13219_v54 }
  0x72   : > { %v754_v52 = vld [vmem:[%s15389_s29 + $0xa00] sm:$0xff]  ;;  %v13204_v56 = vcombine.high %v498_v50, %v506_v51  ;;  %9695 = vmatprep.subr.bf16.mxu1 %v13476_v49  ;;  %v13203_v62 = vcombine.low %v498_v50, %v506_v51 }
  0x73   : > { %v762_v53 = vld [vmem:[%s15389_s29 + $0xa40] sm:$0xff]  ;;  %9696 = vmatpush1.bf16.msra.mxu1 %v13475_v55 }
  0x74   : > { %v13460_v57 = vcombine.high %v754_v52, %v762_v53  ;;  %v482_v58 = vld [vmem:[%s15389_s29 + $0x180] sm:$0xff]  ;;  %9656 = vmatprep.subr.bf16.mxu0 %v13204_v56  ;;  %v13459_v63 = vcombine.low %v754_v52, %v762_v53 }
  0x75   : > { %v490_v59 = vld [vmem:[%s15389_s29 + $0x1c0] sm:$0xff]  ;;  %9657 = vmatpush1.bf16.msra.mxu0 %v13203_v62 }
  0x76   : > { %v738_v60 = vld [vmem:[%s15389_s29 + $0x980] sm:$0xff]  ;;  %v13188_v0 = vcombine.high %v482_v58, %v490_v59  ;;  %9697 = vmatprep.subr.bf16.mxu1 %v13460_v57  ;;  %v13187_v6 = vcombine.low %v482_v58, %v490_v59 }
  0x77   : > { %v746_v61 = vld [vmem:[%s15389_s29 + $0x9c0] sm:$0xff]  ;;  %9698 = vmatpush1.bf16.msra.mxu1 %v13459_v63 }
  0x78   : > { %v13444_v1 = vcombine.high %v738_v60, %v746_v61  ;;  %v466_v2 = vld [vmem:[%s15389_s29 + $0x100] sm:$0xff]  ;;  %9658 = vmatprep.subr.bf16.mxu0 %v13188_v0  ;;  %v13443_v7 = vcombine.low %v738_v60, %v746_v61 }
  0x79   : > { %v474_v3 = vld [vmem:[%s15389_s29 + $0x140] sm:$0xff]  ;;  %9659 = vmatpush1.bf16.msra.mxu0 %v13187_v6 }
  0x7a   : > { %v722_v4 = vld [vmem:[%s15389_s29 + $0x900] sm:$0xff]  ;;  %v13172_v8 = vcombine.high %v466_v2, %v474_v3  ;;  %9699 = vmatprep.subr.bf16.mxu1 %v13444_v1  ;;  %v13171_v14 = vcombine.low %v466_v2, %v474_v3 }
  0x7b   : > { %v730_v5 = vld [vmem:[%s15389_s29 + $0x940] sm:$0xff]  ;;  %9700 = vmatpush1.bf16.msra.mxu1 %v13443_v7 }
  0x7c   : > { %v13428_v9 = vcombine.high %v722_v4, %v730_v5  ;;  %v450_v10 = vld [vmem:[%s15389_s29 + $0x80] sm:$0xff]  ;;  %9660 = vmatprep.subr.bf16.mxu0 %v13172_v8  ;;  %v13427_v15 = vcombine.low %v722_v4, %v730_v5 }
  0x7d   : > { %v458_v11 = vld [vmem:[%s15389_s29 + $0xc0] sm:$0xff]  ;;  %9661 = vmatpush1.bf16.msra.mxu0 %v13171_v14 }
  0x7e   : > { %v706_v12 = vld [vmem:[%s15389_s29 + $0x880] sm:$0xff]  ;;  %v13156_v16 = vcombine.high %v450_v10, %v458_v11  ;;  %9701 = vmatprep.subr.bf16.mxu1 %v13428_v9  ;;  %v13155_v26 = vcombine.low %v450_v10, %v458_v11 }
  0x7f   : > { %v714_v13 = vld [vmem:[%s15389_s29 + $0x8c0] sm:$0xff]  ;;  %9702 = vmatpush1.bf16.msra.mxu1 %v13427_v15 }
  0x80   : > { %v13412_v19 = vcombine.high %v706_v12, %v714_v13  ;;  %v434_v20 = vld [vmem:[%s15389_s29] sm:$0xff]  ;;  %9662 = vmatprep.subr.bf16.mxu0 %v13156_v16  ;;  %v13411_v27 = vcombine.low %v706_v12, %v714_v13 }
  0x81   : > { %v442_v21 = vld [vmem:[%s15389_s29 + $0x40] sm:$0xff]  ;;  %9663 = vmatpush1.bf16.msra.mxu0 %v13155_v26 }
  0x82   : > { %v690_v24 = vld [vmem:[%s15389_s29 + $0x800] sm:$0xff]  ;;  %v13140_v28 = vcombine.high %v434_v20, %v442_v21  ;;  %9703 = vmatprep.subr.bf16.mxu1 %v13412_v19  ;;  %v13139_v34 = vcombine.low %v434_v20, %v442_v21 }
  0x83   : > { %v698_v25 = vld [vmem:[%s15389_s29 + $0x840] sm:$0xff]  ;;  %9704 = vmatpush1.bf16.msra.mxu1 %v13411_v27 }
  0x84   : > { %v13396_v29 = vcombine.high %v690_v24, %v698_v25  ;;  %v674_v30 = vld [vmem:[%s15389_s29 + $0x780] sm:$0xff]  ;;  %9664 = vmatprep.subr.bf16.mxu0 %v13140_v28  ;;  %v13395_v35 = vcombine.low %v690_v24, %v698_v25 }
  0x85   : > { %v682_v31 = vld [vmem:[%s15389_s29 + $0x7c0] sm:$0xff]  ;;  %9665 = vmatpush1.bf16.msra.mxu0 %v13139_v34 }
  0x86   : > { %v930_v32 = vld [vmem:[%s15389_s29 + $0xf80] sm:$0xff]  ;;  %v13380_v36 = vcombine.high %v674_v30, %v682_v31  ;;  %9705 = vmatprep.subr.bf16.mxu1 %v13396_v29  ;;  %v13379_v42 = vcombine.low %v674_v30, %v682_v31 }
  0x87   : > { %v938_v33 = vld [vmem:[%s15389_s29 + $0xfc0] sm:$0xff]  ;;  %9706 = vmatpush1.bf16.msra.mxu1 %v13395_v35 }
  0x88   : > { %v13636_v37 = vcombine.high %v930_v32, %v938_v33  ;;  %v658_v38 = vld [vmem:[%s15389_s29 + $0x700] sm:$0xff]  ;;  %9666 = vmatprep.subr.bf16.mxu0 %v13380_v36  ;;  %v13635_v43 = vcombine.low %v930_v32, %v938_v33 }
  0x89   : > { %v666_v39 = vld [vmem:[%s15389_s29 + $0x740] sm:$0xff]  ;;  %9667 = vmatpush2.bf16.msra.mxu0 %v13379_v42 }
  0x8a   : > { %v914_v40 = vld [vmem:[%s15389_s29 + $0xf00] sm:$0xff]  ;;  %v13364_v44 = vcombine.high %v658_v38, %v666_v39  ;;  %9707 = vmatprep.subr.bf16.mxu1 %v13636_v37  ;;  %v13363_v50 = vcombine.low %v658_v38, %v666_v39  ;;  %v396_v39 = vld [vmem:[%s15432_s27 + $0x10] sm:$0xff] }
  0x8b   : > { %v922_v41 = vld [vmem:[%s15389_s29 + $0xf40] sm:$0xff]  ;;  %9708 = vmatpush2.bf16.msra.mxu1 %v13635_v43 }
  0x8c   : > { %v13620_v45 = vcombine.high %v914_v40, %v922_v41  ;;  %v642_v46 = vld [vmem:[%s15389_s29 + $0x680] sm:$0xff]  ;;  %9668 = vmatprep.subr.bf16.mxu0 %v13364_v44  ;;  %v13619_v51 = vcombine.low %v914_v40, %v922_v41 }
  0x8d   : > { %v650_v47 = vld [vmem:[%s15389_s29 + $0x6c0] sm:$0xff]  ;;  %9669 = vmatpush2.bf16.msra.mxu0 %v13363_v50  ;;  %v401_v50 = vld [vmem:[%s15432_s27 + $0x38] sm:$0xff] }
  0x8e   : > { %v898_v48 = vld [vmem:[%s15389_s29 + $0xe80] sm:$0xff]  ;;  %v13348_v52 = vcombine.high %v642_v46, %v650_v47  ;;  %9709 = vmatprep.subr.bf16.mxu1 %v13620_v45  ;;  %v13347_v58 = vcombine.low %v642_v46, %v650_v47  ;;  %v399_v47 = vld [vmem:[%s15432_s27 + $0x28] sm:$0xff] }
  0x8f   : > { %v906_v49 = vld [vmem:[%s15389_s29 + $0xec0] sm:$0xff]  ;;  %9710 = vmatpush2.bf16.msra.mxu1 %v13619_v51 }
  0x90   : > { %v13604_v53 = vcombine.high %v898_v48, %v906_v49  ;;  %v626_v54 = vld [vmem:[%s15389_s29 + $0x600] sm:$0xff]  ;;  %9670 = vmatprep.subr.bf16.mxu0 %v13348_v52  ;;  %v13603_v59 = vcombine.low %v898_v48, %v906_v49  ;;  %v15491_v48 = vpack.c.bf16 %v396_v39, %v396_v39 }
  0x91   : > { %v634_v55 = vld [vmem:[%s15389_s29 + $0x640] sm:$0xff]  ;;  %9671 = vmatpush2.bf16.msra.mxu0 %v13347_v58 }
  0x92   : > { %v882_v56 = vld [vmem:[%s15389_s29 + $0xe00] sm:$0xff]  ;;  %v13332_v60 = vcombine.high %v626_v54, %v634_v55  ;;  %9711 = vmatprep.subr.bf16.mxu1 %v13604_v53  ;;  %v13331_v2 = vcombine.low %v626_v54, %v634_v55 }
  0x93   : > { %v890_v57 = vld [vmem:[%s15389_s29 + $0xe40] sm:$0xff]  ;;  %9712 = vmatpush2.bf16.msra.mxu1 %v13603_v59  ;;  %v15501_v59 = vpack.c.bf16 %v401_v50, %v401_v50 }
  0x94   : > { %v13588_v61 = vcombine.high %v882_v56, %v890_v57  ;;  %v610_v62 = vld [vmem:[%s15389_s29 + $0x580] sm:$0xff]  ;;  %9672 = vmatprep.subr.bf16.mxu0 %v13332_v60  ;;  %v13587_v3 = vcombine.low %v882_v56, %v890_v57  ;;  %v15496_v56 = vpack.c.bf16 %v399_v47, %v399_v47 }
  0x95   : > { %v618_v63 = vld [vmem:[%s15389_s29 + $0x5c0] sm:$0xff]  ;;  %9673 = vmatpush2.bf16.msra.mxu0 %v13331_v2 }
  0x96   : > { %v866_v0 = vld [vmem:[%s15389_s29 + $0xd80] sm:$0xff]  ;;  %v13316_v4 = vcombine.high %v610_v62, %v618_v63  ;;  %9713 = vmatprep.subr.bf16.mxu1 %v13588_v61  ;;  %v13315_v10 = vcombine.low %v610_v62, %v618_v63 }
  0x97   : > { %v874_v1 = vld [vmem:[%s15389_s29 + $0xdc0] sm:$0xff]  ;;  %9714 = vmatpush2.bf16.msra.mxu1 %v13587_v3 }
  0x98   : > { %v13572_v5 = vcombine.high %v866_v0, %v874_v1  ;;  %v594_v6 = vld [vmem:[%s15389_s29 + $0x500] sm:$0xff]  ;;  %9674 = vmatprep.subr.bf16.mxu0 %v13316_v4  ;;  %v13571_v11 = vcombine.low %v866_v0, %v874_v1 }
  0x99   : > { %v602_v7 = vld [vmem:[%s15389_s29 + $0x540] sm:$0xff]  ;;  %9675 = vmatpush2.bf16.msra.mxu0 %v13315_v10 }
  0x9a   : > { %v850_v8 = vld [vmem:[%s15389_s29 + $0xd00] sm:$0xff]  ;;  %v13300_v12 = vcombine.high %v594_v6, %v602_v7  ;;  %9715 = vmatprep.subr.bf16.mxu1 %v13572_v5  ;;  %v13299_v18 = vcombine.low %v594_v6, %v602_v7 }
  0x9b   : > { %v858_v9 = vld [vmem:[%s15389_s29 + $0xd40] sm:$0xff]  ;;  %9716 = vmatpush2.bf16.msra.mxu1 %v13571_v11 }
  0x9c   : > { %v13556_v13 = vcombine.high %v850_v8, %v858_v9  ;;  %v578_v14 = vld [vmem:[%s15389_s29 + $0x480] sm:$0xff]  ;;  %9676 = vmatprep.subr.bf16.mxu0 %v13300_v12  ;;  %v13555_v19 = vcombine.low %v850_v8, %v858_v9 }
  0x9d   : > { %v586_v15 = vld [vmem:[%s15389_s29 + $0x4c0] sm:$0xff]  ;;  %9677 = vmatpush2.bf16.msra.mxu0 %v13299_v18 }
  0x9e   : > { %v834_v16 = vld [vmem:[%s15389_s29 + $0xc80] sm:$0xff]  ;;  %v13284_v20 = vcombine.high %v578_v14, %v586_v15  ;;  %9717 = vmatprep.subr.bf16.mxu1 %v13556_v13  ;;  %v13283_v28 = vcombine.low %v578_v14, %v586_v15 }
  0x9f   : > { %v842_v17 = vld [vmem:[%s15389_s29 + $0xcc0] sm:$0xff]  ;;  %9718 = vmatpush2.bf16.msra.mxu1 %v13555_v19 }
  0xa0   : > { %v13540_v21 = vcombine.high %v834_v16, %v842_v17  ;;  %v562_v24 = vld [vmem:[%s15389_s29 + $0x400] sm:$0xff]  ;;  %9678 = vmatprep.subr.bf16.mxu0 %v13284_v20  ;;  %v13539_v29 = vcombine.low %v834_v16, %v842_v17 }
  0xa1   : > { %v570_v25 = vld [vmem:[%s15389_s29 + $0x440] sm:$0xff]  ;;  %9679 = vmatpush2.bf16.msra.mxu0 %v13283_v28 }
  0xa2   : > { %v818_v26 = vld [vmem:[%s15389_s29 + $0xc00] sm:$0xff]  ;;  %v13268_v30 = vcombine.high %v562_v24, %v570_v25  ;;  %9719 = vmatprep.subr.bf16.mxu1 %v13540_v21  ;;  %v13267_v36 = vcombine.low %v562_v24, %v570_v25 }
  0xa3   : > { %v826_v27 = vld [vmem:[%s15389_s29 + $0xc40] sm:$0xff]  ;;  %9720 = vmatpush2.bf16.msra.mxu1 %v13539_v29 }
  0xa4   : > { %v13524_v31 = vcombine.high %v818_v26, %v826_v27  ;;  %v1058_v32 = vld [vmem:[%s15389_s29 + $0x1380] sm:$0xff]  ;;  %9680 = vmatprep.subr.bf16.mxu0 %v13268_v30  ;;  %v13523_v38 = vcombine.low %v818_v26, %v826_v27 }
  0xa5   : > { %v1066_v33 = vld [vmem:[%s15389_s29 + $0x13c0] sm:$0xff]  ;;  %9681 = vmatpush2.bf16.msra.mxu0 %v13267_v36 }
  0xa6   : > { %v1314_v34 = vld [vmem:[%s15389_s29 + $0x1b80] sm:$0xff]  ;;  %v13764_v40 = vcombine.high %v1058_v32, %v1066_v33  ;;  %9721 = vmatprep.subr.bf16.mxu1 %v13524_v31  ;;  %v13763_v49 = vcombine.low %v1058_v32, %v1066_v33 }
  0xa7   : > { %v1322_v35 = vld [vmem:[%s15389_s29 + $0x1bc0] sm:$0xff]  ;;  %9722 = vmatpush2.bf16.msra.mxu1 %v13523_v38 }
  0xa8   : > { %v394_v37 = vld [vmem:[%s15432_s27] sm:$0xff]  ;;  %v14020_v41 = vcombine.high %v1314_v34, %v1322_v35  ;;  %9732 = vmatprep.subr.bf16.mxu0 %v13764_v40  ;;  %v14019_v51 = vcombine.low %v1314_v34, %v1322_v35 }
  0xa9   : > { %v1042_v42 = vld [vmem:[%s15389_s29 + $0x1300] sm:$0xff]  ;;  %v15486_v44 = vpack.c.bf16 %v394_v37, %v394_v37 }
  0xaa   : > { %v1050_v43 = vld [vmem:[%s15389_s29 + $0x1340] sm:$0xff]  ;;  %9773 = vmatprep.subr.bf16.mxu1 %v14020_v41  ;;  %9724 = vmatmul.mubr.bf16.vlgmr.msra.gmra.mxu1 %v15491_v48 }
  0xab   : > { %v1298_v45 = vld [vmem:[%s15389_s29 + $0x1b00] sm:$0xff]  ;;  %v13748_v52 = vcombine.high %v1042_v42, %v1050_v43  ;;  %9683 = vmatmul.mubr.bf16.vlgmr.msra.gmra.mxu0 %v15486_v44  ;;  %v13747_v60 = vcombine.low %v1042_v42, %v1050_v43  ;;  %9774 = vmatpush1.bf16.msra.mxu1 %v14019_v51 }
  0xac   : > { %v1306_v46 = vld [vmem:[%s15389_s29 + $0x1b40] sm:$0xff]  ;;  %9733 = vmatpush1.bf16.msra.mxu0 %v13763_v49  ;;  %9764 = vmatprep.mubr.bf16.mxu0 %v15496_v56 }
  0xad   : > { %v14004_v53 = vcombine.high %v1298_v45, %v1306_v46  ;;  %v1026_v54 = vld [vmem:[%s15389_s29 + $0x1280] sm:$0xff]  ;;  %9734 = vmatprep.subr.bf16.mxu0 %v13748_v52  ;;  %v14003_v61 = vcombine.low %v1298_v45, %v1306_v46  ;;  %9805 = vmatprep.mubr.bf16.mxu1 %v15501_v59 }
  0xae   : > { %v1034_v55 = vld [vmem:[%s15389_s29 + $0x12c0] sm:$0xff] }
  0xaf   : > { %v1282_v57 = vld [vmem:[%s15389_s29 + $0x1a80] sm:$0xff]  ;;  %v13732_v62 = vcombine.high %v1026_v54, %v1034_v55  ;;  %9775 = vmatprep.subr.bf16.mxu1 %v14004_v53  ;;  %v13731_v4 = vcombine.low %v1026_v54, %v1034_v55 }
  0xb0   : > { %v1290_v58 = vld [vmem:[%s15389_s29 + $0x1ac0] sm:$0xff]  ;;  %9735 = vmatpush1.bf16.msra.mxu0 %v13747_v60  ;;  %9776 = vmatpush1.bf16.msra.mxu1 %v14003_v61 }
  0xb1   : > { %v13988_v63 = vcombine.high %v1282_v57, %v1290_v58  ;;  %v1010_v0 = vld [vmem:[%s15389_s29 + $0x1200] sm:$0xff]  ;;  %9736 = vmatprep.subr.bf16.mxu0 %v13732_v62  ;;  %v13987_v5 = vcombine.low %v1282_v57, %v1290_v58 }
  0xb2   : > { %v1018_v1 = vld [vmem:[%s15389_s29 + $0x1240] sm:$0xff] }
  0xb3   : > { %v1266_v2 = vld [vmem:[%s15389_s29 + $0x1a00] sm:$0xff]  ;;  %v13716_v6 = vcombine.high %v1010_v0, %v1018_v1  ;;  %9777 = vmatprep.subr.bf16.mxu1 %v13988_v63  ;;  %v13715_v12 = vcombine.low %v1010_v0, %v1018_v1 }
  0xb4   : > { %v1274_v3 = vld [vmem:[%s15389_s29 + $0x1a40] sm:$0xff]  ;;  %9737 = vmatpush1.bf16.msra.mxu0 %v13731_v4  ;;  %9778 = vmatpush1.bf16.msra.mxu1 %v13987_v5 }
  0xb5   : > { %v13972_v7 = vcombine.high %v1266_v2, %v1274_v3  ;;  %v994_v8 = vld [vmem:[%s15389_s29 + $0x1180] sm:$0xff]  ;;  %9738 = vmatprep.subr.bf16.mxu0 %v13716_v6  ;;  %v13971_v13 = vcombine.low %v1266_v2, %v1274_v3 }
  0xb6   : > { %v1002_v9 = vld [vmem:[%s15389_s29 + $0x11c0] sm:$0xff] }
  0xb7   : > { %v1250_v10 = vld [vmem:[%s15389_s29 + $0x1980] sm:$0xff]  ;;  %v13700_v14 = vcombine.high %v994_v8, %v1002_v9  ;;  %9779 = vmatprep.subr.bf16.mxu1 %v13972_v7  ;;  %v13699_v20 = vcombine.low %v994_v8, %v1002_v9 }
  0xb8   : > { %v1258_v11 = vld [vmem:[%s15389_s29 + $0x19c0] sm:$0xff]  ;;  %9739 = vmatpush1.bf16.msra.mxu0 %v13715_v12  ;;  %9780 = vmatpush1.bf16.msra.mxu1 %v13971_v13 }
  0xb9   : > { %v13956_v15 = vcombine.high %v1250_v10, %v1258_v11  ;;  %v978_v16 = vld [vmem:[%s15389_s29 + $0x1100] sm:$0xff]  ;;  %9740 = vmatprep.subr.bf16.mxu0 %v13700_v14  ;;  %v13955_v21 = vcombine.low %v1250_v10, %v1258_v11 }
  0xba   : > { %v986_v17 = vld [vmem:[%s15389_s29 + $0x1140] sm:$0xff] }
  0xbb   : > { %v1234_v18 = vld [vmem:[%s15389_s29 + $0x1900] sm:$0xff]  ;;  %v13684_v24 = vcombine.high %v978_v16, %v986_v17  ;;  %9781 = vmatprep.subr.bf16.mxu1 %v13956_v15  ;;  %v13683_v30 = vcombine.low %v978_v16, %v986_v17 }
  0xbc   : > { %v1242_v19 = vld [vmem:[%s15389_s29 + $0x1940] sm:$0xff]  ;;  %9741 = vmatpush1.bf16.msra.mxu0 %v13699_v20  ;;  %9782 = vmatpush1.bf16.msra.mxu1 %v13955_v21 }
  0xbd   : > { %v13940_v25 = vcombine.high %v1234_v18, %v1242_v19  ;;  %v962_v26 = vld [vmem:[%s15389_s29 + $0x1080] sm:$0xff]  ;;  %9742 = vmatprep.subr.bf16.mxu0 %v13684_v24  ;;  %v13939_v31 = vcombine.low %v1234_v18, %v1242_v19 }
  0xbe   : > { %v970_v27 = vld [vmem:[%s15389_s29 + $0x10c0] sm:$0xff] }
  0xbf   : > { %v1218_v28 = vld [vmem:[%s15389_s29 + $0x1880] sm:$0xff]  ;;  %v13668_v32 = vcombine.high %v962_v26, %v970_v27  ;;  %9783 = vmatprep.subr.bf16.mxu1 %v13940_v25  ;;  %v13667_v38 = vcombine.low %v962_v26, %v970_v27 }
  0xc0   : > { %v1226_v29 = vld [vmem:[%s15389_s29 + $0x18c0] sm:$0xff]  ;;  %9743 = vmatpush1.bf16.msra.mxu0 %v13683_v30  ;;  %9784 = vmatpush1.bf16.msra.mxu1 %v13939_v31 }
  0xc1   : > { %v13924_v33 = vcombine.high %v1218_v28, %v1226_v29  ;;  %v946_v34 = vld [vmem:[%s15389_s29 + $0x1000] sm:$0xff]  ;;  %9744 = vmatprep.subr.bf16.mxu0 %v13668_v32  ;;  %v13923_v39 = vcombine.low %v1218_v28, %v1226_v29 }
  0xc2   : > { %v954_v35 = vld [vmem:[%s15389_s29 + $0x1040] sm:$0xff] }
  0xc3   : > { %v1202_v36 = vld [vmem:[%s15389_s29 + $0x1800] sm:$0xff]  ;;  %v13652_v40 = vcombine.high %v946_v34, %v954_v35  ;;  %9785 = vmatprep.subr.bf16.mxu1 %v13924_v33  ;;  %v13651_v47 = vcombine.low %v946_v34, %v954_v35 }
  0xc4   : > { %v1210_v37 = vld [vmem:[%s15389_s29 + $0x1840] sm:$0xff]  ;;  %9745 = vmatpush1.bf16.msra.mxu0 %v13667_v38  ;;  %9786 = vmatpush1.bf16.msra.mxu1 %v13923_v39 }
  0xc5   : > { %v13908_v41 = vcombine.high %v1202_v36, %v1210_v37  ;;  %v1186_v42 = vld [vmem:[%s15389_s29 + $0x1780] sm:$0xff]  ;;  %9746 = vmatprep.subr.bf16.mxu0 %v13652_v40  ;;  %v13907_v49 = vcombine.low %v1202_v36, %v1210_v37 }
  0xc6   : > { %v1194_v43 = vld [vmem:[%s15389_s29 + $0x17c0] sm:$0xff] }
  0xc7   : > { %v1442_v45 = vld [vmem:[%s15389_s29 + $0x1f80] sm:$0xff]  ;;  %v13892_v50 = vcombine.high %v1186_v42, %v1194_v43  ;;  %9787 = vmatprep.subr.bf16.mxu1 %v13908_v41  ;;  %v13891_v57 = vcombine.low %v1186_v42, %v1194_v43 }
  0xc8   : > { %v1450_v46 = vld [vmem:[%s15389_s29 + $0x1fc0] sm:$0xff]  ;;  %9747 = vmatpush1.bf16.msra.mxu0 %v13651_v47  ;;  %9788 = vmatpush1.bf16.msra.mxu1 %v13907_v49 }
  0xc9   : > { %v14148_v51 = vcombine.high %v1442_v45, %v1450_v46  ;;  %v1170_v52 = vld [vmem:[%s15389_s29 + $0x1700] sm:$0xff]  ;;  %9748 = vmatprep.subr.bf16.mxu0 %v13892_v50  ;;  %v14147_v58 = vcombine.low %v1442_v45, %v1450_v46 }
  0xca   : > { %v1178_v53 = vld [vmem:[%s15389_s29 + $0x1740] sm:$0xff] }
  0xcb   : > { %v1426_v54 = vld [vmem:[%s15389_s29 + $0x1f00] sm:$0xff]  ;;  %v13876_v60 = vcombine.high %v1170_v52, %v1178_v53  ;;  %9789 = vmatprep.subr.bf16.mxu1 %v14148_v51  ;;  %v13875_v2 = vcombine.low %v1170_v52, %v1178_v53 }
  0xcc   : > { %v1434_v55 = vld [vmem:[%s15389_s29 + $0x1f40] sm:$0xff]  ;;  %9749 = vmatpush2.bf16.msra.mxu0 %v13891_v57  ;;  %9790 = vmatpush2.bf16.msra.mxu1 %v14147_v58  ;;  %v400_v58 = vld [vmem:[%s15432_s27 + $0x30] sm:$0xff] }
  0xcd   : > { %v14132_v61 = vcombine.high %v1426_v54, %v1434_v55  ;;  %v1154_v62 = vld [vmem:[%s15389_s29 + $0x1680] sm:$0xff]  ;;  %9750 = vmatprep.subr.bf16.mxu0 %v13876_v60  ;;  %v14131_v3 = vcombine.low %v1426_v54, %v1434_v55 }
  0xce   : > { %v1162_v63 = vld [vmem:[%s15389_s29 + $0x16c0] sm:$0xff] }
  0xcf   : > { %v1410_v0 = vld [vmem:[%s15389_s29 + $0x1e80] sm:$0xff]  ;;  %v13860_v4 = vcombine.high %v1154_v62, %v1162_v63  ;;  %9791 = vmatprep.subr.bf16.mxu1 %v14132_v61  ;;  %v13859_v10 = vcombine.low %v1154_v62, %v1162_v63 }
  0xd0   : > { %v1418_v1 = vld [vmem:[%s15389_s29 + $0x1ec0] sm:$0xff]  ;;  %9751 = vmatpush2.bf16.msra.mxu0 %v13875_v2  ;;  %9792 = vmatpush2.bf16.msra.mxu1 %v14131_v3  ;;  %v403_v3 = vld [vmem:[%s15432_s27 + $0x48] sm:$0xff] }
  0xd1   : > { %v14116_v5 = vcombine.high %v1410_v0, %v1418_v1  ;;  %v1138_v6 = vld [vmem:[%s15389_s29 + $0x1600] sm:$0xff]  ;;  %9752 = vmatprep.subr.bf16.mxu0 %v13860_v4  ;;  %v14115_v11 = vcombine.low %v1410_v0, %v1418_v1  ;;  %v15571_v4 = vpack.c.bf16 %v400_v58, %v400_v58 }
  0xd2   : > { %v1146_v7 = vld [vmem:[%s15389_s29 + $0x1640] sm:$0xff] }
  0xd3   : > { %v1394_v8 = vld [vmem:[%s15389_s29 + $0x1e00] sm:$0xff]  ;;  %v13844_v12 = vcombine.high %v1138_v6, %v1146_v7  ;;  %9793 = vmatprep.subr.bf16.mxu1 %v14116_v5  ;;  %v13843_v18 = vcombine.low %v1138_v6, %v1146_v7  ;;  %v405_v6 = vld [vmem:[%s15432_s27 + $0x58] sm:$0xff] }
  0xd4   : > { %v1402_v9 = vld [vmem:[%s15389_s29 + $0x1e40] sm:$0xff]  ;;  %9753 = vmatpush2.bf16.msra.mxu0 %v13859_v10  ;;  %9794 = vmatpush2.bf16.msra.mxu1 %v14115_v11 }
  0xd5   : > { %v14100_v13 = vcombine.high %v1394_v8, %v1402_v9  ;;  %v1122_v14 = vld [vmem:[%s15389_s29 + $0x1580] sm:$0xff]  ;;  %9754 = vmatprep.subr.bf16.mxu0 %v13844_v12  ;;  %v14099_v19 = vcombine.low %v1394_v8, %v1402_v9  ;;  %v15576_v12 = vpack.c.bf16 %v403_v3, %v403_v3 }
  0xd6   : > { %v1130_v15 = vld [vmem:[%s15389_s29 + $0x15c0] sm:$0xff] }
  0xd7   : > { %v1378_v16 = vld [vmem:[%s15389_s29 + $0x1d80] sm:$0xff]  ;;  %v13828_v20 = vcombine.high %v1122_v14, %v1130_v15  ;;  %9795 = vmatprep.subr.bf16.mxu1 %v14100_v13  ;;  %v13827_v28 = vcombine.low %v1122_v14, %v1130_v15  ;;  %v15581_v15 = vpack.c.bf16 %v405_v6, %v405_v6 }
  0xd8   : > { %v1386_v17 = vld [vmem:[%s15389_s29 + $0x1dc0] sm:$0xff]  ;;  %9755 = vmatpush2.bf16.msra.mxu0 %v13843_v18  ;;  %9796 = vmatpush2.bf16.msra.mxu1 %v14099_v19 }
  0xd9   : > { %v14084_v21 = vcombine.high %v1378_v16, %v1386_v17  ;;  %v1106_v24 = vld [vmem:[%s15389_s29 + $0x1500] sm:$0xff]  ;;  %9756 = vmatprep.subr.bf16.mxu0 %v13828_v20  ;;  %v14083_v29 = vcombine.low %v1378_v16, %v1386_v17 }
  0xda   : > { %v1114_v25 = vld [vmem:[%s15389_s29 + $0x1540] sm:$0xff] }
  0xdb   : > { %v1362_v26 = vld [vmem:[%s15389_s29 + $0x1d00] sm:$0xff]  ;;  %v13812_v30 = vcombine.high %v1106_v24, %v1114_v25  ;;  %9797 = vmatprep.subr.bf16.mxu1 %v14084_v21  ;;  %v13811_v36 = vcombine.low %v1106_v24, %v1114_v25 }
  0xdc   : > { %v1370_v27 = vld [vmem:[%s15389_s29 + $0x1d40] sm:$0xff]  ;;  %9757 = vmatpush2.bf16.msra.mxu0 %v13827_v28  ;;  %9798 = vmatpush2.bf16.msra.mxu1 %v14083_v29 }
  0xdd   : > { %v14068_v31 = vcombine.high %v1362_v26, %v1370_v27  ;;  %v1090_v32 = vld [vmem:[%s15389_s29 + $0x1480] sm:$0xff]  ;;  %9758 = vmatprep.subr.bf16.mxu0 %v13812_v30  ;;  %v14067_v37 = vcombine.low %v1362_v26, %v1370_v27 }
  0xde   : > { %v1098_v33 = vld [vmem:[%s15389_s29 + $0x14c0] sm:$0xff] }
  0xdf   : > { %v1346_v34 = vld [vmem:[%s15389_s29 + $0x1c80] sm:$0xff]  ;;  %v13796_v38 = vcombine.high %v1090_v32, %v1098_v33  ;;  %9799 = vmatprep.subr.bf16.mxu1 %v14068_v31  ;;  %v13795_v45 = vcombine.low %v1090_v32, %v1098_v33 }
  0xe0   : > { %v1354_v35 = vld [vmem:[%s15389_s29 + $0x1cc0] sm:$0xff]  ;;  %9759 = vmatpush2.bf16.msra.mxu0 %v13811_v36  ;;  %9800 = vmatpush2.bf16.msra.mxu1 %v14067_v37 }
  0xe1   : > { %v14052_v39 = vcombine.high %v1346_v34, %v1354_v35  ;;  %v1074_v40 = vld [vmem:[%s15389_s29 + $0x1400] sm:$0xff]  ;;  %9760 = vmatprep.subr.bf16.mxu0 %v13796_v38  ;;  %v14051_v46 = vcombine.low %v1346_v34, %v1354_v35 }
  0xe2   : > { %v1082_v41 = vld [vmem:[%s15389_s29 + $0x1440] sm:$0xff] }
  0xe3   : > { %v1330_v42 = vld [vmem:[%s15389_s29 + $0x1c00] sm:$0xff]  ;;  %v13780_v47 = vcombine.high %v1074_v40, %v1082_v41  ;;  %9801 = vmatprep.subr.bf16.mxu1 %v14052_v39  ;;  %v13779_v54 = vcombine.low %v1074_v40, %v1082_v41 }
  0xe4   : > { %v1338_v43 = vld [vmem:[%s15389_s29 + $0x1c40] sm:$0xff]  ;;  %9761 = vmatpush2.bf16.msra.mxu0 %v13795_v45  ;;  %9802 = vmatpush2.bf16.msra.mxu1 %v14051_v46 }
  0xe5   : > { %v14036_v49 = vcombine.high %v1330_v42, %v1338_v43  ;;  %v1570_v50 = vld [vmem:[%s15389_s29 + $0x2380] sm:$0xff]  ;;  %9762 = vmatprep.subr.bf16.mxu0 %v13780_v47  ;;  %v14035_v57 = vcombine.low %v1330_v42, %v1338_v43 }
  0xe6   : > { %v1578_v51 = vld [vmem:[%s15389_s29 + $0x23c0] sm:$0xff] }
  0xe7   : > { %v1826_v52 = vld [vmem:[%s15389_s29 + $0x2b80] sm:$0xff]  ;;  %v14276_v60 = vcombine.high %v1570_v50, %v1578_v51  ;;  %9803 = vmatprep.subr.bf16.mxu1 %v14036_v49  ;;  %v14275_v5 = vcombine.low %v1570_v50, %v1578_v51 }
  0xe8   : > { %v1834_v53 = vld [vmem:[%s15389_s29 + $0x2bc0] sm:$0xff]  ;;  %9763 = vmatpush2.bf16.msra.mxu0 %v13779_v54  ;;  %9804 = vmatpush2.bf16.msra.mxu1 %v14035_v57 }
  0xe9   : > { %v398_v55 = vld [vmem:[%s15432_s27 + $0x20] sm:$0xff]  ;;  %v14532_v61 = vcombine.high %v1826_v52, %v1834_v53  ;;  %9814 = vmatprep.subr.bf16.mxu0 %v14276_v60  ;;  %v14531_v7 = vcombine.low %v1826_v52, %v1834_v53 }
  0xea   : > { %v1554_v62 = vld [vmem:[%s15389_s29 + $0x2300] sm:$0xff]  ;;  %v15566_v0 = vpack.c.bf16 %v398_v55, %v398_v55 }
  0xeb   : > { %v1562_v63 = vld [vmem:[%s15389_s29 + $0x2340] sm:$0xff]  ;;  %9855 = vmatprep.subr.bf16.mxu1 %v14532_v61  ;;  %9806 = vmatmul.mubr.bf16.vlgmr.msra.gmra.mxu1 %v15571_v4 }
  0xec   : > { %v1810_v1 = vld [vmem:[%s15389_s29 + $0x2b00] sm:$0xff]  ;;  %v14260_v8 = vcombine.high %v1554_v62, %v1562_v63  ;;  %9765 = vmatmul.mubr.bf16.vlgmr.msra.gmra.mxu0 %v15566_v0  ;;  %v14259_v16 = vcombine.low %v1554_v62, %v1562_v63  ;;  %9856 = vmatpush1.bf16.msra.mxu1 %v14531_v7 }
  0xed   : > { %v1818_v2 = vld [vmem:[%s15389_s29 + $0x2b40] sm:$0xff]  ;;  %9815 = vmatpush1.bf16.msra.mxu0 %v14275_v5  ;;  %9846 = vmatprep.mubr.bf16.mxu0 %v15576_v12 }
  0xee   : > { %v14516_v9 = vcombine.high %v1810_v1, %v1818_v2  ;;  %v1538_v10 = vld [vmem:[%s15389_s29 + $0x2280] sm:$0xff]  ;;  %9816 = vmatprep.subr.bf16.mxu0 %v14260_v8  ;;  %v14515_v17 = vcombine.low %v1810_v1, %v1818_v2  ;;  %9887 = vmatprep.mubr.bf16.mxu1 %v15581_v15 }
  0xef   : > { %v1546_v11 = vld [vmem:[%s15389_s29 + $0x22c0] sm:$0xff] }
  0xf0   : > { %v1794_v13 = vld [vmem:[%s15389_s29 + $0x2a80] sm:$0xff]  ;;  %v14244_v18 = vcombine.high %v1538_v10, %v1546_v11  ;;  %9857 = vmatprep.subr.bf16.mxu1 %v14516_v9  ;;  %v14243_v26 = vcombine.low %v1538_v10, %v1546_v11 }
  0xf1   : > { %v1802_v14 = vld [vmem:[%s15389_s29 + $0x2ac0] sm:$0xff]  ;;  %9817 = vmatpush1.bf16.msra.mxu0 %v14259_v16  ;;  %9858 = vmatpush1.bf16.msra.mxu1 %v14515_v17 }
  0xf2   : > { %v14500_v19 = vcombine.high %v1794_v13, %v1802_v14  ;;  %v1522_v20 = vld [vmem:[%s15389_s29 + $0x2200] sm:$0xff]  ;;  %9818 = vmatprep.subr.bf16.mxu0 %v14244_v18  ;;  %v14499_v27 = vcombine.low %v1794_v13, %v1802_v14 }
  0xf3   : > { %v1530_v21 = vld [vmem:[%s15389_s29 + $0x2240] sm:$0xff] }
  0xf4   : > { %v1778_v24 = vld [vmem:[%s15389_s29 + $0x2a00] sm:$0xff]  ;;  %v14228_v28 = vcombine.high %v1522_v20, %v1530_v21  ;;  %9859 = vmatprep.subr.bf16.mxu1 %v14500_v19  ;;  %v14227_v34 = vcombine.low %v1522_v20, %v1530_v21 }
  0xf5   : > { %v1786_v25 = vld [vmem:[%s15389_s29 + $0x2a40] sm:$0xff]  ;;  %9819 = vmatpush1.bf16.msra.mxu0 %v14243_v26  ;;  %9860 = vmatpush1.bf16.msra.mxu1 %v14499_v27 }
  0xf6   : > { %v14484_v29 = vcombine.high %v1778_v24, %v1786_v25  ;;  %v1506_v30 = vld [vmem:[%s15389_s29 + $0x2180] sm:$0xff]  ;;  %9820 = vmatprep.subr.bf16.mxu0 %v14228_v28  ;;  %v14483_v35 = vcombine.low %v1778_v24, %v1786_v25 }
  0xf7   : > { %v1514_v31 = vld [vmem:[%s15389_s29 + $0x21c0] sm:$0xff] }
  0xf8   : > { %v1762_v32 = vld [vmem:[%s15389_s29 + $0x2980] sm:$0xff]  ;;  %v14212_v36 = vcombine.high %v1506_v30, %v1514_v31  ;;  %9861 = vmatprep.subr.bf16.mxu1 %v14484_v29  ;;  %v14211_v42 = vcombine.low %v1506_v30, %v1514_v31 }
  0xf9   : > { %v1770_v33 = vld [vmem:[%s15389_s29 + $0x29c0] sm:$0xff]  ;;  %9821 = vmatpush1.bf16.msra.mxu0 %v14227_v34  ;;  %9862 = vmatpush1.bf16.msra.mxu1 %v14483_v35 }
  0xfa   : > { %v14468_v37 = vcombine.high %v1762_v32, %v1770_v33  ;;  %v1490_v38 = vld [vmem:[%s15389_s29 + $0x2100] sm:$0xff]  ;;  %9822 = vmatprep.subr.bf16.mxu0 %v14212_v36  ;;  %v14467_v43 = vcombine.low %v1762_v32, %v1770_v33 }
  0xfb   : > { %v1498_v39 = vld [vmem:[%s15389_s29 + $0x2140] sm:$0xff] }
  0xfc   : > { %v1746_v40 = vld [vmem:[%s15389_s29 + $0x2900] sm:$0xff]  ;;  %v14196_v45 = vcombine.high %v1490_v38, %v1498_v39  ;;  %9863 = vmatprep.subr.bf16.mxu1 %v14468_v37  ;;  %v14195_v52 = vcombine.low %v1490_v38, %v1498_v39 }
  0xfd   : > { %v1754_v41 = vld [vmem:[%s15389_s29 + $0x2940] sm:$0xff]  ;;  %9823 = vmatpush1.bf16.msra.mxu0 %v14211_v42  ;;  %9864 = vmatpush1.bf16.msra.mxu1 %v14467_v43 }
  0xfe   : > { %v14452_v46 = vcombine.high %v1746_v40, %v1754_v41  ;;  %v1474_v47 = vld [vmem:[%s15389_s29 + $0x2080] sm:$0xff]  ;;  %9824 = vmatprep.subr.bf16.mxu0 %v14196_v45  ;;  %v14451_v53 = vcombine.low %v1746_v40, %v1754_v41 }
  0xff   : > { %v1482_v49 = vld [vmem:[%s15389_s29 + $0x20c0] sm:$0xff] }
 0x100   : > { %v1730_v50 = vld [vmem:[%s15389_s29 + $0x2880] sm:$0xff]  ;;  %v14180_v54 = vcombine.high %v1474_v47, %v1482_v49  ;;  %9865 = vmatprep.subr.bf16.mxu1 %v14452_v46  ;;  %v14179_v62 = vcombine.low %v1474_v47, %v1482_v49 }
 0x101   : > { %v1738_v51 = vld [vmem:[%s15389_s29 + $0x28c0] sm:$0xff]  ;;  %9825 = vmatpush1.bf16.msra.mxu0 %v14195_v52  ;;  %9866 = vmatpush1.bf16.msra.mxu1 %v14451_v53 }
 0x102   : > { %v14436_v55 = vcombine.high %v1730_v50, %v1738_v51  ;;  %v1458_v57 = vld [vmem:[%s15389_s29 + $0x2000] sm:$0xff]  ;;  %9826 = vmatprep.subr.bf16.mxu0 %v14180_v54  ;;  %v14435_v63 = vcombine.low %v1730_v50, %v1738_v51 }
 0x103   : > { %v1466_v58 = vld [vmem:[%s15389_s29 + $0x2040] sm:$0xff] }
 0x104   : > { %v1714_v60 = vld [vmem:[%s15389_s29 + $0x2800] sm:$0xff]  ;;  %v14164_v1 = vcombine.high %v1458_v57, %v1466_v58  ;;  %9867 = vmatprep.subr.bf16.mxu1 %v14436_v55  ;;  %v14163_v8 = vcombine.low %v1458_v57, %v1466_v58 }
 0x105   : > { %v1722_v61 = vld [vmem:[%s15389_s29 + $0x2840] sm:$0xff]  ;;  %9827 = vmatpush1.bf16.msra.mxu0 %v14179_v62  ;;  %9868 = vmatpush1.bf16.msra.mxu1 %v14435_v63 }
 0x106   : > { %v14420_v2 = vcombine.high %v1714_v60, %v1722_v61  ;;  %v1698_v3 = vld [vmem:[%s15389_s29 + $0x2780] sm:$0xff]  ;;  %9828 = vmatprep.subr.bf16.mxu0 %v14164_v1  ;;  %v14419_v9 = vcombine.low %v1714_v60, %v1722_v61 }
 0x107   : > { %v1706_v5 = vld [vmem:[%s15389_s29 + $0x27c0] sm:$0xff] }
 0x108   : > { %v1954_v6 = vld [vmem:[%s15389_s29 + $0x2f80] sm:$0xff]  ;;  %v14404_v10 = vcombine.high %v1698_v3, %v1706_v5  ;;  %9869 = vmatprep.subr.bf16.mxu1 %v14420_v2  ;;  %v14403_v18 = vcombine.low %v1698_v3, %v1706_v5 }
 0x109   : > { %v1962_v7 = vld [vmem:[%s15389_s29 + $0x2fc0] sm:$0xff]  ;;  %9829 = vmatpush1.bf16.msra.mxu0 %v14163_v8  ;;  %9870 = vmatpush1.bf16.msra.mxu1 %v14419_v9 }
 0x10a   : > { %v14660_v11 = vcombine.high %v1954_v6, %v1962_v7  ;;  %v1682_v13 = vld [vmem:[%s15389_s29 + $0x2700] sm:$0xff]  ;;  %9830 = vmatprep.subr.bf16.mxu0 %v14404_v10  ;;  %v14659_v19 = vcombine.low %v1954_v6, %v1962_v7 }
 0x10b   : > { %v1690_v14 = vld [vmem:[%s15389_s29 + $0x2740] sm:$0xff] }
 0x10c   : > { %v1938_v16 = vld [vmem:[%s15389_s29 + $0x2f00] sm:$0xff]  ;;  %v14388_v20 = vcombine.high %v1682_v13, %v1690_v14  ;;  %9871 = vmatprep.subr.bf16.mxu1 %v14660_v11  ;;  %v14387_v28 = vcombine.low %v1682_v13, %v1690_v14 }
 0x10d   : > { %v1946_v17 = vld [vmem:[%s15389_s29 + $0x2f40] sm:$0xff]  ;;  %9831 = vmatpush2.bf16.msra.mxu0 %v14403_v18  ;;  %9872 = vmatpush2.bf16.msra.mxu1 %v14659_v19  ;;  %v803_v18 = vld [vmem:[%s15389_s29 + $0xb88] sm:$0xff] }
 0x10e   : > { %v14644_v21 = vcombine.high %v1938_v16, %v1946_v17  ;;  %v1666_v24 = vld [vmem:[%s15389_s29 + $0x2680] sm:$0xff]  ;;  %9832 = vmatprep.subr.bf16.mxu0 %v14388_v20  ;;  %v14643_v29 = vcombine.low %v1938_v16, %v1946_v17  ;;  %v547_v16 = vld [vmem:[%s15389_s29 + $0x388] sm:$0xff] }
 0x10f   : > { %v1674_v25 = vld [vmem:[%s15389_s29 + $0x26c0] sm:$0xff]  ;;  %v555_v17 = vld [vmem:[%s15389_s29 + $0x3c8] sm:$0xff] }
 0x110   : > { %v1922_v26 = vld [vmem:[%s15389_s29 + $0x2e80] sm:$0xff]  ;;  %v14372_v30 = vcombine.high %v1666_v24, %v1674_v25  ;;  %9873 = vmatprep.subr.bf16.mxu1 %v14644_v21  ;;  %v14371_v36 = vcombine.low %v1666_v24, %v1674_v25  ;;  %v811_v19 = vld [vmem:[%s15389_s29 + $0xbc8] sm:$0xff]  ;;  %v404_v25 = vld [vmem:[%s15432_s27 + $0x50] sm:$0xff] }
 0x111   : > { %v1930_v27 = vld [vmem:[%s15389_s29 + $0x2ec0] sm:$0xff]  ;;  %9833 = vmatpush2.bf16.msra.mxu0 %v14387_v28  ;;  %9874 = vmatpush2.bf16.msra.mxu1 %v14643_v29  ;;  %v531_v28 = vld [vmem:[%s15389_s29 + $0x308] sm:$0xff] }
 0x112   : > { %v14628_v31 = vcombine.high %v1922_v26, %v1930_v27  ;;  %v1650_v32 = vld [vmem:[%s15389_s29 + $0x2600] sm:$0xff]  ;;  %9834 = vmatprep.subr.bf16.mxu0 %v14372_v30  ;;  %v14627_v37 = vcombine.low %v1922_v26, %v1930_v27  ;;  %v13254_v26 = vcombine.high %v547_v16, %v555_v17  ;;  %v13510_v27 = vcombine.high %v803_v18, %v811_v19  ;;  %v539_v29 = vld [vmem:[%s15389_s29 + $0x348] sm:$0xff] }
 0x113   : > { %v1658_v33 = vld [vmem:[%s15389_s29 + $0x2640] sm:$0xff] }
 0x114   : > { %v1906_v34 = vld [vmem:[%s15389_s29 + $0x2e00] sm:$0xff]  ;;  %v14356_v38 = vcombine.high %v1650_v32, %v1658_v33  ;;  %9875 = vmatprep.subr.bf16.mxu1 %v14628_v31  ;;  %v14355_v45 = vcombine.low %v1650_v32, %v1658_v33  ;;  %v787_v31 = vld [vmem:[%s15389_s29 + $0xb08] sm:$0xff]  ;;  %v15650_v33 = vpack.c.bf16 %v404_v25, %v404_v25 }
 0x115   : > { %v1914_v35 = vld [vmem:[%s15389_s29 + $0x2e40] sm:$0xff]  ;;  %9835 = vmatpush2.bf16.msra.mxu0 %v14371_v36  ;;  %9876 = vmatpush2.bf16.msra.mxu1 %v14627_v37  ;;  %v795_v32 = vld [vmem:[%s15389_s29 + $0xb48] sm:$0xff]  ;;  %v13238_v36 = vcombine.high %v531_v28, %v539_v29 }
 0x116   : > { %v14612_v39 = vcombine.high %v1906_v34, %v1914_v35  ;;  %v1634_v40 = vld [vmem:[%s15389_s29 + $0x2580] sm:$0xff]  ;;  %9836 = vmatprep.subr.bf16.mxu0 %v14356_v38  ;;  %v14611_v46 = vcombine.low %v1906_v34, %v1914_v35  ;;  %v13253_v34 = vcombine.low %v547_v16, %v555_v17  ;;  %v13509_v35 = vcombine.low %v803_v18, %v811_v19  ;;  %v515_v38 = vld [vmem:[%s15389_s29 + $0x288] sm:$0xff] }
 0x117   : > { %v1642_v41 = vld [vmem:[%s15389_s29 + $0x25c0] sm:$0xff]  ;;  %v13494_v37 = vcombine.high %v787_v31, %v795_v32  ;;  %v707_v16 = vld [vmem:[%s15389_s29 + $0x888] sm:$0xff] }
 0x118   : > { %v1890_v42 = vld [vmem:[%s15389_s29 + $0x2d80] sm:$0xff]  ;;  %v14340_v47 = vcombine.high %v1634_v40, %v1642_v41  ;;  %9877 = vmatprep.subr.bf16.mxu1 %v14612_v39  ;;  %v14339_v54 = vcombine.low %v1634_v40, %v1642_v41  ;;  %v523_v39 = vld [vmem:[%s15389_s29 + $0x2c8] sm:$0xff] }
 0x119   : > { %v1898_v43 = vld [vmem:[%s15389_s29 + $0x2dc0] sm:$0xff]  ;;  %9837 = vmatpush2.bf16.msra.mxu0 %v14355_v45  ;;  %9878 = vmatpush2.bf16.msra.mxu1 %v14611_v46  ;;  %v771_v40 = vld [vmem:[%s15389_s29 + $0xa88] sm:$0xff]  ;;  %v13222_v45 = vcombine.high %v515_v38, %v523_v39 }
 0x11a   : > { %v14596_v49 = vcombine.high %v1890_v42, %v1898_v43  ;;  %v1618_v50 = vld [vmem:[%s15389_s29 + $0x2500] sm:$0xff]  ;;  %9838 = vmatprep.subr.bf16.mxu0 %v14340_v47  ;;  %v14595_v55 = vcombine.low %v1890_v42, %v1898_v43  ;;  %v779_v41 = vld [vmem:[%s15389_s29 + $0xac8] sm:$0xff]  ;;  %v13237_v42 = vcombine.low %v531_v28, %v539_v29  ;;  %v13493_v43 = vcombine.low %v787_v31, %v795_v32 }
 0x11b   : > { %v1626_v51 = vld [vmem:[%s15389_s29 + $0x2540] sm:$0xff]  ;;  %v13478_v46 = vcombine.high %v771_v40, %v779_v41  ;;  %v499_v47 = vld [vmem:[%s15389_s29 + $0x208] sm:$0xff] }
 0x11c   : > { %v1874_v52 = vld [vmem:[%s15389_s29 + $0x2d00] sm:$0xff]  ;;  %v14324_v57 = vcombine.high %v1618_v50, %v1626_v51  ;;  %9879 = vmatprep.subr.bf16.mxu1 %v14596_v49  ;;  %v14323_v1 = vcombine.low %v1618_v50, %v1626_v51  ;;  %v507_v49 = vld [vmem:[%s15389_s29 + $0x248] sm:$0xff] }
 0x11d   : > { %v1882_v53 = vld [vmem:[%s15389_s29 + $0x2d40] sm:$0xff]  ;;  %9839 = vmatpush2.bf16.msra.mxu0 %v14339_v54  ;;  %9880 = vmatpush2.bf16.msra.mxu1 %v14595_v55  ;;  %v755_v50 = vld [vmem:[%s15389_s29 + $0xa08] sm:$0xff]  ;;  %v13206_v54 = vcombine.high %v499_v47, %v507_v49 }
 0x11e   : > { %v14580_v58 = vcombine.high %v1874_v52, %v1882_v53  ;;  %v1602_v60 = vld [vmem:[%s15389_s29 + $0x2480] sm:$0xff]  ;;  %9840 = vmatprep.subr.bf16.mxu0 %v14324_v57  ;;  %v14579_v2 = vcombine.low %v1874_v52, %v1882_v53  ;;  %v763_v51 = vld [vmem:[%s15389_s29 + $0xa48] sm:$0xff]  ;;  %v13221_v52 = vcombine.low %v515_v38, %v523_v39  ;;  %v13477_v53 = vcombine.low %v771_v40, %v779_v41 }
 0x11f   : > { %v1610_v61 = vld [vmem:[%s15389_s29 + $0x24c0] sm:$0xff]  ;;  %v13462_v55 = vcombine.high %v755_v50, %v763_v51  ;;  %v483_v57 = vld [vmem:[%s15389_s29 + $0x188] sm:$0xff] }
 0x120   : > { %v1858_v62 = vld [vmem:[%s15389_s29 + $0x2c80] sm:$0xff]  ;;  %v14308_v3 = vcombine.high %v1602_v60, %v1610_v61  ;;  %9881 = vmatprep.subr.bf16.mxu1 %v14580_v58  ;;  %v14307_v10 = vcombine.low %v1602_v60, %v1610_v61  ;;  %v491_v58 = vld [vmem:[%s15389_s29 + $0x1c8] sm:$0xff] }
 0x121   : > { %v1866_v63 = vld [vmem:[%s15389_s29 + $0x2cc0] sm:$0xff]  ;;  %9841 = vmatpush2.bf16.msra.mxu0 %v14323_v1  ;;  %9882 = vmatpush2.bf16.msra.mxu1 %v14579_v2  ;;  %v739_v60 = vld [vmem:[%s15389_s29 + $0x988] sm:$0xff]  ;;  %v13190_v1 = vcombine.high %v483_v57, %v491_v58 }
 0x122   : > { %v14564_v5 = vcombine.high %v1858_v62, %v1866_v63  ;;  %v1586_v6 = vld [vmem:[%s15389_s29 + $0x2400] sm:$0xff]  ;;  %9842 = vmatprep.subr.bf16.mxu0 %v14308_v3  ;;  %v14563_v11 = vcombine.low %v1858_v62, %v1866_v63  ;;  %v747_v61 = vld [vmem:[%s15389_s29 + $0x9c8] sm:$0xff]  ;;  %v13205_v62 = vcombine.low %v499_v47, %v507_v49  ;;  %v13461_v63 = vcombine.low %v755_v50, %v763_v51 }
 0x123   : > { %v1594_v7 = vld [vmem:[%s15389_s29 + $0x2440] sm:$0xff]  ;;  %v13446_v2 = vcombine.high %v739_v60, %v747_v61  ;;  %v467_v3 = vld [vmem:[%s15389_s29 + $0x108] sm:$0xff] }
 0x124   : > { %v1842_v8 = vld [vmem:[%s15389_s29 + $0x2c00] sm:$0xff]  ;;  %v14292_v13 = vcombine.high %v1586_v6, %v1594_v7  ;;  %9883 = vmatprep.subr.bf16.mxu1 %v14564_v5  ;;  %v14291_v20 = vcombine.low %v1586_v6, %v1594_v7  ;;  %v475_v5 = vld [vmem:[%s15389_s29 + $0x148] sm:$0xff] }
 0x125   : > { %v1850_v9 = vld [vmem:[%s15389_s29 + $0x2c40] sm:$0xff]  ;;  %9843 = vmatpush2.bf16.msra.mxu0 %v14307_v10  ;;  %9884 = vmatpush2.bf16.msra.mxu1 %v14563_v11  ;;  %v723_v6 = vld [vmem:[%s15389_s29 + $0x908] sm:$0xff]  ;;  %v13174_v10 = vcombine.high %v467_v3, %v475_v5  ;;  %v13173_v18 = vcombine.low %v467_v3, %v475_v5 }
 0x126   : > { %v14548_v14 = vcombine.high %v1842_v8, %v1850_v9  ;;  %v402_v21 = vld [vmem:[%s15432_s27 + $0x40] sm:$0xff]  ;;  %9844 = vmatprep.subr.bf16.mxu0 %v14292_v13  ;;  %v14547_v24 = vcombine.low %v1842_v8, %v1850_v9  ;;  %v731_v7 = vld [vmem:[%s15389_s29 + $0x948] sm:$0xff]  ;;  %v13189_v8 = vcombine.low %v483_v57, %v491_v58  ;;  %v13445_v9 = vcombine.low %v739_v60, %v747_v61 }
 0x127   : > { %v15646_v30 = vpack.c.bf16 %v402_v21, %v402_v21  ;;  %v13430_v11 = vcombine.high %v723_v6, %v731_v7  ;;  %v451_v13 = vld [vmem:[%s15389_s29 + $0x88] sm:$0xff]  ;;  %v13429_v19 = vcombine.low %v723_v6, %v731_v7 }
 0x128   : > { %9885 = vmatprep.subr.bf16.mxu1 %v14548_v14  ;;  %v459_v14 = vld [vmem:[%s15389_s29 + $0xc8] sm:$0xff] }
 0x129   : > { %9845 = vmatpush2.bf16.msra.mxu0 %v14291_v20  ;;  %9886 = vmatpush2.bf16.msra.mxu1 %v14547_v24  ;;  %v715_v17 = vld [vmem:[%s15389_s29 + $0x8c8] sm:$0xff]  ;;  %v13158_v20 = vcombine.high %v451_v13, %v459_v14  ;;  %v13157_v28 = vcombine.low %v451_v13, %v459_v14 }
 0x12a   : > { %9896 = vmatprep.subr.bf16.mxu0 %v13254_v26  ;;  %9937 = vmatprep.subr.bf16.mxu1 %v13510_v27  ;;  %v13414_v21 = vcombine.high %v707_v16, %v715_v17  ;;  %v435_v24 = vld [vmem:[%s15389_s29 + $0x8] sm:$0xff]  ;;  %v13413_v29 = vcombine.low %v707_v16, %v715_v17 }
 0x12b   : > { %v443_v25 = vld [vmem:[%s15389_s29 + $0x48] sm:$0xff] }
 0x12c   : > { %9847 = vmatmul.mubr.bf16.vlgmr.msra.gmra.mxu0 %v15646_v30  ;;  %9888 = vmatmul.mubr.bf16.vlgmr.msra.gmra.mxu1 %v15650_v33  ;;  %v691_v26 = vld [vmem:[%s15389_s29 + $0x808] sm:$0xff]  ;;  %v13142_v31 = vcombine.high %v435_v24, %v443_v25  ;;  %v13141_v38 = vcombine.low %v435_v24, %v443_v25 }
 0x12d   : > { %9897 = vmatpush1.bf16.msra.mxu0 %v13253_v34  ;;  %9938 = vmatpush1.bf16.msra.mxu1 %v13509_v35  ;;  %v699_v27 = vld [vmem:[%s15389_s29 + $0x848] sm:$0xff] }
 0x12e   : > { %9898 = vmatprep.subr.bf16.mxu0 %v13238_v36  ;;  %9939 = vmatprep.subr.bf16.mxu1 %v13494_v37  ;;  %v13398_v32 = vcombine.high %v691_v26, %v699_v27  ;;  %v675_v34 = vld [vmem:[%s15389_s29 + $0x788] sm:$0xff]  ;;  %v13397_v39 = vcombine.low %v691_v26, %v699_v27 }
 0x12f   : > { %9928 = vmatprep.mubr.bf16.mxu0 %v15438_v22  ;;  %9969 = vmatprep.mubr.bf16.mxu1 %v15440_v23  ;;  %v683_v35 = vld [vmem:[%s15389_s29 + $0x7c8] sm:$0xff] }
 0x130   : > { %v931_v36 = vld [vmem:[%s15389_s29 + $0xf88] sm:$0xff]  ;;  %v13382_v40 = vcombine.high %v675_v34, %v683_v35  ;;  %v13381_v47 = vcombine.low %v675_v34, %v683_v35 }
 0x131   : > { %9899 = vmatpush1.bf16.msra.mxu0 %v13237_v42  ;;  %9940 = vmatpush1.bf16.msra.mxu1 %v13493_v43  ;;  %v939_v37 = vld [vmem:[%s15389_s29 + $0xfc8] sm:$0xff] }
 0x132   : > { %9900 = vmatprep.subr.bf16.mxu0 %v13222_v45  ;;  %9941 = vmatprep.subr.bf16.mxu1 %v13478_v46  ;;  %v13638_v41 = vcombine.high %v931_v36, %v939_v37  ;;  %v659_v42 = vld [vmem:[%s15389_s29 + $0x708] sm:$0xff]  ;;  %v13637_v49 = vcombine.low %v931_v36, %v939_v37 }
 0x133   : > { %v667_v43 = vld [vmem:[%s15389_s29 + $0x748] sm:$0xff] }
 0x134   : > { %v915_v45 = vld [vmem:[%s15389_s29 + $0xf08] sm:$0xff]  ;;  %v13366_v50 = vcombine.high %v659_v42, %v667_v43  ;;  %v13365_v57 = vcombine.low %v659_v42, %v667_v43 }
 0x135   : > { %9901 = vmatpush1.bf16.msra.mxu0 %v13221_v52  ;;  %9942 = vmatpush1.bf16.msra.mxu1 %v13477_v53  ;;  %v923_v46 = vld [vmem:[%s15389_s29 + $0xf48] sm:$0xff] }
 0x136   : > { %9902 = vmatprep.subr.bf16.mxu0 %v13206_v54  ;;  %9943 = vmatprep.subr.bf16.mxu1 %v13462_v55  ;;  %v13622_v51 = vcombine.high %v915_v45, %v923_v46  ;;  %v643_v52 = vld [vmem:[%s15389_s29 + $0x688] sm:$0xff]  ;;  %v13621_v58 = vcombine.low %v915_v45, %v923_v46 }
 0x137   : > { %v651_v53 = vld [vmem:[%s15389_s29 + $0x6c8] sm:$0xff] }
 0x138   : > { %v899_v54 = vld [vmem:[%s15389_s29 + $0xe88] sm:$0xff]  ;;  %v13350_v60 = vcombine.high %v643_v52, %v651_v53  ;;  %v13349_v3 = vcombine.low %v643_v52, %v651_v53 }
 0x139   : > { %9903 = vmatpush1.bf16.msra.mxu0 %v13205_v62  ;;  %9944 = vmatpush1.bf16.msra.mxu1 %v13461_v63  ;;  %v907_v55 = vld [vmem:[%s15389_s29 + $0xec8] sm:$0xff] }
 0x13a   : > { %9904 = vmatprep.subr.bf16.mxu0 %v13190_v1  ;;  %9945 = vmatprep.subr.bf16.mxu1 %v13446_v2  ;;  %v13606_v61 = vcombine.high %v899_v54, %v907_v55  ;;  %v627_v62 = vld [vmem:[%s15389_s29 + $0x608] sm:$0xff]  ;;  %v13605_v5 = vcombine.low %v899_v54, %v907_v55 }
 0x13b   : > { %v635_v63 = vld [vmem:[%s15389_s29 + $0x648] sm:$0xff] }
 0x13c   : > { %v883_v1 = vld [vmem:[%s15389_s29 + $0xe08] sm:$0xff]  ;;  %v13334_v6 = vcombine.high %v627_v62, %v635_v63  ;;  %v13333_v13 = vcombine.low %v627_v62, %v635_v63 }
 0x13d   : > { %9905 = vmatpush1.bf16.msra.mxu0 %v13189_v8  ;;  %9946 = vmatpush1.bf16.msra.mxu1 %v13445_v9  ;;  %v891_v2 = vld [vmem:[%s15389_s29 + $0xe48] sm:$0xff] }
 0x13e   : > { %9906 = vmatprep.subr.bf16.mxu0 %v13174_v10  ;;  %9947 = vmatprep.subr.bf16.mxu1 %v13430_v11  ;;  %v13590_v7 = vcombine.high %v883_v1, %v891_v2  ;;  %v611_v8 = vld [vmem:[%s15389_s29 + $0x588] sm:$0xff]  ;;  %v13589_v14 = vcombine.low %v883_v1, %v891_v2 }
 0x13f   : > { %v619_v9 = vld [vmem:[%s15389_s29 + $0x5c8] sm:$0xff] }
 0x140   : > { %v867_v10 = vld [vmem:[%s15389_s29 + $0xd88] sm:$0xff]  ;;  %v13318_v16 = vcombine.high %v611_v8, %v619_v9  ;;  %v13317_v24 = vcombine.low %v611_v8, %v619_v9 }
 0x141   : > { %9907 = vmatpush1.bf16.msra.mxu0 %v13173_v18  ;;  %9948 = vmatpush1.bf16.msra.mxu1 %v13429_v19  ;;  %v875_v11 = vld [vmem:[%s15389_s29 + $0xdc8] sm:$0xff] }
 0x142   : > { %9908 = vmatprep.subr.bf16.mxu0 %v13158_v20  ;;  %9949 = vmatprep.subr.bf16.mxu1 %v13414_v21  ;;  %v13574_v17 = vcombine.high %v867_v10, %v875_v11  ;;  %v595_v18 = vld [vmem:[%s15389_s29 + $0x508] sm:$0xff]  ;;  %v13573_v25 = vcombine.low %v867_v10, %v875_v11 }
 0x143   : > { %v603_v19 = vld [vmem:[%s15389_s29 + $0x548] sm:$0xff] }
 0x144   : > { %v851_v20 = vld [vmem:[%s15389_s29 + $0xd08] sm:$0xff]  ;;  %v13302_v26 = vcombine.high %v595_v18, %v603_v19  ;;  %v13301_v34 = vcombine.low %v595_v18, %v603_v19 }
 0x145   : > { %9909 = vmatpush1.bf16.msra.mxu0 %v13157_v28  ;;  %9950 = vmatpush1.bf16.msra.mxu1 %v13413_v29  ;;  %v859_v21 = vld [vmem:[%s15389_s29 + $0xd48] sm:$0xff] }
 0x146   : > { %9910 = vmatprep.subr.bf16.mxu0 %v13142_v31  ;;  %9951 = vmatprep.subr.bf16.mxu1 %v13398_v32  ;;  %v13558_v27 = vcombine.high %v851_v20, %v859_v21  ;;  %v579_v28 = vld [vmem:[%s15389_s29 + $0x488] sm:$0xff]  ;;  %v13557_v35 = vcombine.low %v851_v20, %v859_v21 }
 0x147   : > { %v587_v29 = vld [vmem:[%s15389_s29 + $0x4c8] sm:$0xff] }
 0x148   : > { %v835_v31 = vld [vmem:[%s15389_s29 + $0xc88] sm:$0xff]  ;;  %v13286_v36 = vcombine.high %v579_v28, %v587_v29  ;;  %v13285_v42 = vcombine.low %v579_v28, %v587_v29 }
 0x149   : > { %9911 = vmatpush1.bf16.msra.mxu0 %v13141_v38  ;;  %9952 = vmatpush1.bf16.msra.mxu1 %v13397_v39  ;;  %v843_v32 = vld [vmem:[%s15389_s29 + $0xcc8] sm:$0xff] }
 0x14a   : > { %9912 = vmatprep.subr.bf16.mxu0 %v13382_v40  ;;  %9953 = vmatprep.subr.bf16.mxu1 %v13638_v41  ;;  %v13542_v37 = vcombine.high %v835_v31, %v843_v32  ;;  %v563_v38 = vld [vmem:[%s15389_s29 + $0x408] sm:$0xff]  ;;  %v13541_v43 = vcombine.low %v835_v31, %v843_v32 }
 0x14b   : > { %v571_v39 = vld [vmem:[%s15389_s29 + $0x448] sm:$0xff] }
 0x14c   : > { %v819_v40 = vld [vmem:[%s15389_s29 + $0xc08] sm:$0xff]  ;;  %v13270_v45 = vcombine.high %v563_v38, %v571_v39  ;;  %v13269_v52 = vcombine.low %v563_v38, %v571_v39 }
 0x14d   : > { %9913 = vmatpush2.bf16.msra.mxu0 %v13381_v47  ;;  %9954 = vmatpush2.bf16.msra.mxu1 %v13637_v49  ;;  %v827_v41 = vld [vmem:[%s15389_s29 + $0xc48] sm:$0xff] }
 0x14e   : > { %9914 = vmatprep.subr.bf16.mxu0 %v13366_v50  ;;  %9955 = vmatprep.subr.bf16.mxu1 %v13622_v51  ;;  %v13526_v46 = vcombine.high %v819_v40, %v827_v41  ;;  %v1059_v47 = vld [vmem:[%s15389_s29 + $0x1388] sm:$0xff]  ;;  %v13525_v53 = vcombine.low %v819_v40, %v827_v41 }
 0x14f   : > { %v1067_v49 = vld [vmem:[%s15389_s29 + $0x13c8] sm:$0xff] }
 0x150   : > { %v1315_v50 = vld [vmem:[%s15389_s29 + $0x1b88] sm:$0xff]  ;;  %v13766_v54 = vcombine.high %v1059_v47, %v1067_v49  ;;  %v13765_v62 = vcombine.low %v1059_v47, %v1067_v49 }
 0x151   : > { %9915 = vmatpush2.bf16.msra.mxu0 %v13365_v57  ;;  %9956 = vmatpush2.bf16.msra.mxu1 %v13621_v58  ;;  %v1323_v51 = vld [vmem:[%s15389_s29 + $0x1bc8] sm:$0xff] }
 0x152   : > { %9916 = vmatprep.subr.bf16.mxu0 %v13350_v60  ;;  %9957 = vmatprep.subr.bf16.mxu1 %v13606_v61  ;;  %v14022_v55 = vcombine.high %v1315_v50, %v1323_v51  ;;  %v1043_v57 = vld [vmem:[%s15389_s29 + $0x1308] sm:$0xff]  ;;  %v14021_v63 = vcombine.low %v1315_v50, %v1323_v51 }
 0x153   : > { %v1051_v58 = vld [vmem:[%s15389_s29 + $0x1348] sm:$0xff] }
 0x154   : > { %v1299_v60 = vld [vmem:[%s15389_s29 + $0x1b08] sm:$0xff]  ;;  %v13750_v1 = vcombine.high %v1043_v57, %v1051_v58  ;;  %v13749_v10 = vcombine.low %v1043_v57, %v1051_v58 }
 0x155   : > { %9917 = vmatpush2.bf16.msra.mxu0 %v13349_v3  ;;  %9958 = vmatpush2.bf16.msra.mxu1 %v13605_v5  ;;  %v1307_v61 = vld [vmem:[%s15389_s29 + $0x1b48] sm:$0xff] }
 0x156   : > { %9918 = vmatprep.subr.bf16.mxu0 %v13334_v6  ;;  %9959 = vmatprep.subr.bf16.mxu1 %v13590_v7  ;;  %v14006_v2 = vcombine.high %v1299_v60, %v1307_v61  ;;  %v1027_v3 = vld [vmem:[%s15389_s29 + $0x1288] sm:$0xff] }
 0x157   : > { %v1035_v5 = vld [vmem:[%s15389_s29 + $0x12c8] sm:$0xff] }
 0x158   : > { %v1283_v7 = vld [vmem:[%s15389_s29 + $0x1a88] sm:$0xff]  ;;  %v13733_v28 = vcombine.low %v1027_v3, %v1035_v5 }
 0x159   : > { %9919 = vmatpush2.bf16.msra.mxu0 %v13333_v13  ;;  %9960 = vmatpush2.bf16.msra.mxu1 %v13589_v14  ;;  %v1291_v8 = vld [vmem:[%s15389_s29 + $0x1ac8] sm:$0xff]  ;;  %v14005_v14 = vcombine.low %v1299_v60, %v1307_v61 }
 0x15a   : > { %9920 = vmatprep.subr.bf16.mxu0 %v13318_v16  ;;  %9961 = vmatprep.subr.bf16.mxu1 %v13574_v17  ;;  %v13734_v16 = vcombine.high %v1027_v3, %v1035_v5  ;;  %v13990_v18 = vcombine.high %v1283_v7, %v1291_v8  ;;  %v1011_v19 = vld [vmem:[%s15389_s29 + $0x1208] sm:$0xff]  ;;  %v13989_v31 = vcombine.low %v1283_v7, %v1291_v8 }
 0x15b   : > { %v1019_v20 = vld [vmem:[%s15389_s29 + $0x1248] sm:$0xff] }
 0x15c   : > { %v13718_v32 = vcombine.high %v1011_v19, %v1019_v20  ;;  %v1251_v38 = vld [vmem:[%s15389_s29 + $0x1988] sm:$0xff]  ;;  %v13717_v40 = vcombine.low %v1011_v19, %v1019_v20 }
 0x15d   : > { %9921 = vmatpush2.bf16.msra.mxu0 %v13317_v24  ;;  %9962 = vmatpush2.bf16.msra.mxu1 %v13573_v25  ;;  %v1267_v25 = vld [vmem:[%s15389_s29 + $0x1a08] sm:$0xff] }
 0x15e   : > { %9922 = vmatprep.subr.bf16.mxu0 %v13302_v26  ;;  %9963 = vmatprep.subr.bf16.mxu1 %v13558_v27  ;;  %v1275_v26 = vld [vmem:[%s15389_s29 + $0x1a48] sm:$0xff] }
 0x15f   : > { %v1259_v39 = vld [vmem:[%s15389_s29 + $0x19c8] sm:$0xff]  ;;  %v13973_v41 = vcombine.low %v1267_v25, %v1275_v26 }
 0x160   : > { %v1235_v47 = vld [vmem:[%s15389_s29 + $0x1908] sm:$0xff]  ;;  %v13957_v51 = vcombine.low %v1251_v38, %v1259_v39 }
 0x161   : > { %9923 = vmatpush2.bf16.msra.mxu0 %v13301_v34  ;;  %9964 = vmatpush2.bf16.msra.mxu1 %v13557_v35  ;;  %v13974_v35 = vcombine.high %v1267_v25, %v1275_v26  ;;  %v1243_v49 = vld [vmem:[%s15389_s29 + $0x1948] sm:$0xff] }
 0x162   : > { %9924 = vmatprep.subr.bf16.mxu0 %v13286_v36  ;;  %9965 = vmatprep.subr.bf16.mxu1 %v13542_v37  ;;  %v995_v36 = vld [vmem:[%s15389_s29 + $0x1188] sm:$0xff]  ;;  %v13941_v61 = vcombine.low %v1235_v47, %v1243_v49 }
 0x163   : > { %v1003_v37 = vld [vmem:[%s15389_s29 + $0x11c8] sm:$0xff] }
 0x164   : > { %v13701_v50 = vcombine.low %v995_v36, %v1003_v37  ;;  %v1219_v57 = vld [vmem:[%s15389_s29 + $0x1888] sm:$0xff] }
 0x165   : > { %9925 = vmatpush2.bf16.msra.mxu0 %v13285_v42  ;;  %9966 = vmatpush2.bf16.msra.mxu1 %v13541_v43  ;;  %v13702_v42 = vcombine.high %v995_v36, %v1003_v37  ;;  %v13958_v43 = vcombine.high %v1251_v38, %v1259_v39  ;;  %v1227_v58 = vld [vmem:[%s15389_s29 + $0x18c8] sm:$0xff] }
 0x166   : > { %9926 = vmatprep.subr.bf16.mxu0 %v13270_v45  ;;  %9967 = vmatprep.subr.bf16.mxu1 %v13526_v46  ;;  %v979_v45 = vld [vmem:[%s15389_s29 + $0x1108] sm:$0xff]  ;;  %v13925_v7 = vcombine.low %v1219_v57, %v1227_v58 }
 0x167   : > { %v987_v46 = vld [vmem:[%s15389_s29 + $0x1148] sm:$0xff] }
 0x168   : > { %v13685_v60 = vcombine.low %v979_v45, %v987_v46  ;;  %v1203_v3 = vld [vmem:[%s15389_s29 + $0x1808] sm:$0xff] }
 0x169   : > { %9927 = vmatpush2.bf16.msra.mxu0 %v13269_v52  ;;  %9968 = vmatpush2.bf16.msra.mxu1 %v13525_v53  ;;  %v13686_v52 = vcombine.high %v979_v45, %v987_v46  ;;  %v13942_v53 = vcombine.high %v1235_v47, %v1243_v49  ;;  %v1211_v5 = vld [vmem:[%s15389_s29 + $0x1848] sm:$0xff] }
 0x16a   : > { %9978 = vmatprep.subr.bf16.mxu0 %v13766_v54  ;;  %10019 = vmatprep.subr.bf16.mxu1 %v14022_v55  ;;  %v9725_v9 = vpop.f32.mrf.mxu1  ;;  %v963_v54 = vld [vmem:[%s15389_s29 + $0x1088] sm:$0xff] }
 0x16b   : > { %v9684_v6 = vpop.f32.mrf.mxu0  ;;  %v971_v55 = vld [vmem:[%s15389_s29 + $0x10c8] sm:$0xff] }
 0x16c   : > { %9929 = vmatmul.mubr.bf16.vlgmr.msra.gmra.mxu0 %v15486_v44  ;;  %9970 = vmatmul.mubr.bf16.vlgmr.msra.gmra.mxu1 %v15491_v48  ;;  %v15726_v11 = vadd.f32 %v9725_v9, %v9684_v6  ;;  %v9727_v17 = vpop.f32.mrf.mxu1  ;;  %v13669_v6 = vcombine.low %v963_v54, %v971_v55  ;;  %v13910_v9 = vcombine.high %v1203_v3, %v1211_v5  ;;  %v1179_v25 = vld [vmem:[%s15389_s29 + $0x1748] sm:$0xff] }
 0x16d   : > { %9979 = vmatpush1.bf16.msra.mxu0 %v13765_v62  ;;  %10020 = vmatpush1.bf16.msra.mxu1 %v14021_v63  ;;  %v9686_v13 = vpop.f32.mrf.mxu0  ;;  %v13670_v62 = vcombine.high %v963_v54, %v971_v55  ;;  %v13926_v63 = vcombine.high %v1219_v57, %v1227_v58  ;;  %v1427_v26 = vld [vmem:[%s15389_s29 + $0x1f08] sm:$0xff] }
 0x16e   : > { %9980 = vmatprep.subr.bf16.mxu0 %v13750_v1  ;;  %10021 = vmatprep.subr.bf16.mxu1 %v14006_v2  ;;  %v15731_v21 = vadd.f32 %v9727_v17, %v9686_v13  ;;  %v9729_v27 = vpop.f32.mrf.mxu1  ;;  %v947_v1 = vld [vmem:[%s15389_s29 + $0x1008] sm:$0xff] }
 0x16f   : > { %10010 = vmatprep.mubr.bf16.mxu0 %v15496_v56  ;;  %v9688_v24 = vpop.f32.mrf.mxu0  ;;  %10051 = vmatprep.mubr.bf16.mxu1 %v15501_v59  ;;  %v955_v2 = vld [vmem:[%s15389_s29 + $0x1048] sm:$0xff] }
 0x170   : > { %v9730_v34 = vpop.f32.mrf.mxu1  ;;  %v13654_v8 = vcombine.high %v947_v1, %v955_v2  ;;  %v1195_v13 = vld [vmem:[%s15389_s29 + $0x17c8] sm:$0xff]  ;;  %v13653_v17 = vcombine.low %v947_v1, %v955_v2 }
 0x171   : > { %9981 = vmatpush1.bf16.msra.mxu0 %v13749_v10  ;;  %10022 = vmatpush1.bf16.msra.mxu1 %v14005_v14  ;;  %v9689_v29 = vpop.f32.mrf.mxu0  ;;  %v1187_v10 = vld [vmem:[%s15389_s29 + $0x1788] sm:$0xff] }
 0x172   : > { %9982 = vmatprep.subr.bf16.mxu0 %v13734_v16  ;;  %10023 = vmatprep.subr.bf16.mxu1 %v13990_v18  ;;  %v1443_v14 = vld [vmem:[%s15389_s29 + $0x1f88] sm:$0xff]  ;;  %v13909_v18 = vcombine.low %v1203_v3, %v1211_v5  ;;  %v13894_v19 = vcombine.high %v1187_v10, %v1195_v13 }
 0x173   : > { %v1451_v16 = vld [vmem:[%s15389_s29 + $0x1fc8] sm:$0xff] }
 0x174   : > { %v14150_v20 = vcombine.high %v1443_v14, %v1451_v16  ;;  %v1171_v24 = vld [vmem:[%s15389_s29 + $0x1708] sm:$0xff]  ;;  %v14149_v29 = vcombine.low %v1443_v14, %v1451_v16 }
 0x175   : > { %9983 = vmatpush1.bf16.msra.mxu0 %v13733_v28  ;;  %10024 = vmatpush1.bf16.msra.mxu1 %v13989_v31  ;;  %v1435_v27 = vld [vmem:[%s15389_s29 + $0x1f48] sm:$0xff]  ;;  %v13893_v28 = vcombine.low %v1187_v10, %v1195_v13  ;;  %v13878_v31 = vcombine.high %v1171_v24, %v1179_v25  ;;  %v13877_v38 = vcombine.low %v1171_v24, %v1179_v25 }
 0x176   : > { %9984 = vmatprep.subr.bf16.mxu0 %v13718_v32  ;;  %10025 = vmatprep.subr.bf16.mxu1 %v13974_v35  ;;  %v14134_v32 = vcombine.high %v1427_v26, %v1435_v27  ;;  %v1155_v34 = vld [vmem:[%s15389_s29 + $0x1688] sm:$0xff]  ;;  %v14133_v39 = vcombine.low %v1427_v26, %v1435_v27 }
 0x177   : > { %v1163_v35 = vld [vmem:[%s15389_s29 + $0x16c8] sm:$0xff] }
 0x178   : > { %v1411_v36 = vld [vmem:[%s15389_s29 + $0x1e88] sm:$0xff]  ;;  %v13861_v47 = vcombine.low %v1155_v34, %v1163_v35 }
 0x179   : > { %9985 = vmatpush1.bf16.msra.mxu0 %v13717_v40  ;;  %10026 = vmatpush1.bf16.msra.mxu1 %v13973_v41  ;;  %v1419_v37 = vld [vmem:[%s15389_s29 + $0x1ec8] sm:$0xff]  ;;  %v13862_v40 = vcombine.high %v1155_v34, %v1163_v35 }
 0x17a   : > { %9986 = vmatprep.subr.bf16.mxu0 %v13702_v42  ;;  %10027 = vmatprep.subr.bf16.mxu1 %v13958_v43  ;;  %v14118_v41 = vcombine.high %v1411_v36, %v1419_v37  ;;  %v1139_v42 = vld [vmem:[%s15389_s29 + $0x1608] sm:$0xff]  ;;  %v14117_v49 = vcombine.low %v1411_v36, %v1419_v37 }
 0x17b   : > { %v1147_v43 = vld [vmem:[%s15389_s29 + $0x1648] sm:$0xff] }
 0x17c   : > { %v1395_v45 = vld [vmem:[%s15389_s29 + $0x1e08] sm:$0xff]  ;;  %v13845_v57 = vcombine.low %v1139_v42, %v1147_v43 }
 0x17d   : > { %9987 = vmatpush1.bf16.msra.mxu0 %v13701_v50  ;;  %10028 = vmatpush1.bf16.msra.mxu1 %v13957_v51  ;;  %v1403_v46 = vld [vmem:[%s15389_s29 + $0x1e48] sm:$0xff]  ;;  %v13846_v50 = vcombine.high %v1139_v42, %v1147_v43 }
 0x17e   : > { %9988 = vmatprep.subr.bf16.mxu0 %v13686_v52  ;;  %10029 = vmatprep.subr.bf16.mxu1 %v13942_v53  ;;  %v14102_v51 = vcombine.high %v1395_v45, %v1403_v46  ;;  %v1123_v52 = vld [vmem:[%s15389_s29 + $0x1588] sm:$0xff]  ;;  %v14101_v58 = vcombine.low %v1395_v45, %v1403_v46 }
 0x17f   : > { %v1131_v53 = vld [vmem:[%s15389_s29 + $0x15c8] sm:$0xff] }
 0x180   : > { %v1379_v54 = vld [vmem:[%s15389_s29 + $0x1d88] sm:$0xff]  ;;  %v13829_v3 = vcombine.low %v1123_v52, %v1131_v53 }
 0x181   : > { %9989 = vmatpush1.bf16.msra.mxu0 %v13685_v60  ;;  %10030 = vmatpush1.bf16.msra.mxu1 %v13941_v61  ;;  %v1387_v55 = vld [vmem:[%s15389_s29 + $0x1dc8] sm:$0xff]  ;;  %v13830_v60 = vcombine.high %v1123_v52, %v1131_v53 }
 0x182   : > { %9990 = vmatprep.subr.bf16.mxu0 %v13670_v62  ;;  %10031 = vmatprep.subr.bf16.mxu1 %v13926_v63  ;;  %v14086_v61 = vcombine.high %v1379_v54, %v1387_v55  ;;  %v1107_v62 = vld [vmem:[%s15389_s29 + $0x1508] sm:$0xff]  ;;  %v14085_v5 = vcombine.low %v1379_v54, %v1387_v55 }
 0x183   : > { %v1115_v63 = vld [vmem:[%s15389_s29 + $0x1548] sm:$0xff] }
 0x184   : > { %v1363_v1 = vld [vmem:[%s15389_s29 + $0x1d08] sm:$0xff]  ;;  %v13813_v14 = vcombine.low %v1107_v62, %v1115_v63 }
 0x185   : > { %9991 = vmatpush1.bf16.msra.mxu0 %v13669_v6  ;;  %10032 = vmatpush1.bf16.msra.mxu1 %v13925_v7  ;;  %v1371_v2 = vld [vmem:[%s15389_s29 + $0x1d48] sm:$0xff]  ;;  %v13814_v6 = vcombine.high %v1107_v62, %v1115_v63 }
 0x186   : > { %9992 = vmatprep.subr.bf16.mxu0 %v13654_v8  ;;  %10033 = vmatprep.subr.bf16.mxu1 %v13910_v9  ;;  %v14070_v7 = vcombine.high %v1363_v1, %v1371_v2  ;;  %v1091_v8 = vld [vmem:[%s15389_s29 + $0x1488] sm:$0xff]  ;;  %v14069_v16 = vcombine.low %v1363_v1, %v1371_v2 }
 0x187   : > { %v1099_v9 = vld [vmem:[%s15389_s29 + $0x14c8] sm:$0xff] }
 0x188   : > { %v1347_v10 = vld [vmem:[%s15389_s29 + $0x1c88] sm:$0xff]  ;;  %v13797_v26 = vcombine.low %v1091_v8, %v1099_v9 }
 0x189   : > { %9993 = vmatpush1.bf16.msra.mxu0 %v13653_v17  ;;  %10034 = vmatpush1.bf16.msra.mxu1 %v13909_v18  ;;  %v1355_v13 = vld [vmem:[%s15389_s29 + $0x1cc8] sm:$0xff]  ;;  %v13798_v17 = vcombine.high %v1091_v8, %v1099_v9 }
 0x18a   : > { %9994 = vmatprep.subr.bf16.mxu0 %v13894_v19  ;;  %10035 = vmatprep.subr.bf16.mxu1 %v14150_v20  ;;  %v14054_v18 = vcombine.high %v1347_v10, %v1355_v13  ;;  %v1075_v19 = vld [vmem:[%s15389_s29 + $0x1408] sm:$0xff]  ;;  %v14053_v27 = vcombine.low %v1347_v10, %v1355_v13 }
 0x18b   : > { %v1083_v20 = vld [vmem:[%s15389_s29 + $0x1448] sm:$0xff] }
 0x18c   : > { %v1331_v24 = vld [vmem:[%s15389_s29 + $0x1c08] sm:$0xff]  ;;  %v13781_v36 = vcombine.low %v1075_v19, %v1083_v20 }
 0x18d   : > { %9995 = vmatpush2.bf16.msra.mxu0 %v13893_v28  ;;  %10036 = vmatpush2.bf16.msra.mxu1 %v14149_v29  ;;  %v1339_v25 = vld [vmem:[%s15389_s29 + $0x1c48] sm:$0xff]  ;;  %v13782_v28 = vcombine.high %v1075_v19, %v1083_v20 }
 0x18e   : > { %9996 = vmatprep.subr.bf16.mxu0 %v13878_v31  ;;  %10037 = vmatprep.subr.bf16.mxu1 %v14134_v32  ;;  %v14038_v29 = vcombine.high %v1331_v24, %v1339_v25  ;;  %v1571_v31 = vld [vmem:[%s15389_s29 + $0x2388] sm:$0xff]  ;;  %v14037_v37 = vcombine.low %v1331_v24, %v1339_v25 }
 0x18f   : > { %v1579_v32 = vld [vmem:[%s15389_s29 + $0x23c8] sm:$0xff] }
 0x190   : > { %v1827_v34 = vld [vmem:[%s15389_s29 + $0x2b88] sm:$0xff]  ;;  %v14277_v45 = vcombine.low %v1571_v31, %v1579_v32 }
 0x191   : > { %9997 = vmatpush2.bf16.msra.mxu0 %v13877_v38  ;;  %10038 = vmatpush2.bf16.msra.mxu1 %v14133_v39  ;;  %v1835_v35 = vld [vmem:[%s15389_s29 + $0x2bc8] sm:$0xff]  ;;  %v14278_v38 = vcombine.high %v1571_v31, %v1579_v32 }
 0x192   : > { %9998 = vmatprep.subr.bf16.mxu0 %v13862_v40  ;;  %10039 = vmatprep.subr.bf16.mxu1 %v14118_v41  ;;  %v14534_v39 = vcombine.high %v1827_v34, %v1835_v35  ;;  %v1555_v40 = vld [vmem:[%s15389_s29 + $0x2308] sm:$0xff]  ;;  %v14533_v46 = vcombine.low %v1827_v34, %v1835_v35 }
 0x193   : > { %v1563_v41 = vld [vmem:[%s15389_s29 + $0x2348] sm:$0xff] }
 0x194   : > { %v1811_v42 = vld [vmem:[%s15389_s29 + $0x2b08] sm:$0xff] }
 0x195   : > { %9999 = vmatpush2.bf16.msra.mxu0 %v13861_v47  ;;  %10040 = vmatpush2.bf16.msra.mxu1 %v14117_v49  ;;  %v1819_v43 = vld [vmem:[%s15389_s29 + $0x2b48] sm:$0xff]  ;;  %v14262_v47 = vcombine.high %v1555_v40, %v1563_v41 }
 0x196   : > { %10000 = vmatprep.subr.bf16.mxu0 %v13846_v50  ;;  %10041 = vmatprep.subr.bf16.mxu1 %v14102_v51  ;;  %v14518_v49 = vcombine.high %v1811_v42, %v1819_v43  ;;  %v1539_v50 = vld [vmem:[%s15389_s29 + $0x2288] sm:$0xff] }
 0x197   : > { %v1547_v51 = vld [vmem:[%s15389_s29 + $0x22c8] sm:$0xff] }
 0x198   : > { %v1795_v53 = vld [vmem:[%s15389_s29 + $0x2a88] sm:$0xff]  ;;  %v14245_v8 = vcombine.low %v1539_v50, %v1547_v51 }
 0x199   : > { %10001 = vmatpush2.bf16.msra.mxu0 %v13845_v57  ;;  %10042 = vmatpush2.bf16.msra.mxu1 %v14101_v58  ;;  %v1803_v54 = vld [vmem:[%s15389_s29 + $0x2ac8] sm:$0xff]  ;;  %v14261_v57 = vcombine.low %v1555_v40, %v1563_v41 }
 0x19a   : > { %10002 = vmatprep.subr.bf16.mxu0 %v13830_v60  ;;  %10043 = vmatprep.subr.bf16.mxu1 %v14086_v61  ;;  %v14517_v60 = vcombine.low %v1811_v42, %v1819_v43  ;;  %v14246_v61 = vcombine.high %v1539_v50, %v1547_v51  ;;  %v14502_v63 = vcombine.high %v1795_v53, %v1803_v54  ;;  %v1523_v1 = vld [vmem:[%s15389_s29 + $0x2208] sm:$0xff] }
 0x19b   : > { %v1531_v2 = vld [vmem:[%s15389_s29 + $0x2248] sm:$0xff]  ;;  %v14501_v10 = vcombine.low %v1795_v53, %v1803_v54 }
 0x19c   : > { %v14230_v13 = vcombine.high %v1523_v1, %v1531_v2  ;;  %v1763_v19 = vld [vmem:[%s15389_s29 + $0x2988] sm:$0xff]  ;;  %v14229_v24 = vcombine.low %v1523_v1, %v1531_v2 }
 0x19d   : > { %10003 = vmatpush2.bf16.msra.mxu0 %v13829_v3  ;;  %10044 = vmatpush2.bf16.msra.mxu1 %v14085_v5  ;;  %v1779_v5 = vld [vmem:[%s15389_s29 + $0x2a08] sm:$0xff] }
 0x19e   : > { %10004 = vmatprep.subr.bf16.mxu0 %v13814_v6  ;;  %10045 = vmatprep.subr.bf16.mxu1 %v14070_v7  ;;  %v1787_v6 = vld [vmem:[%s15389_s29 + $0x2a48] sm:$0xff] }
 0x19f   : > { %v1771_v20 = vld [vmem:[%s15389_s29 + $0x29c8] sm:$0xff]  ;;  %v14485_v25 = vcombine.low %v1779_v5, %v1787_v6 }
 0x1a0   : > { %v1747_v31 = vld [vmem:[%s15389_s29 + $0x2908] sm:$0xff]  ;;  %v14469_v35 = vcombine.low %v1763_v19, %v1771_v20 }
 0x1a1   : > { %10005 = vmatpush2.bf16.msra.mxu0 %v13813_v14  ;;  %10046 = vmatpush2.bf16.msra.mxu1 %v14069_v16  ;;  %v14486_v16 = vcombine.high %v1779_v5, %v1787_v6  ;;  %v1755_v32 = vld [vmem:[%s15389_s29 + $0x2948] sm:$0xff] }
 0x1a2   : > { %10006 = vmatprep.subr.bf16.mxu0 %v13798_v17  ;;  %10047 = vmatprep.subr.bf16.mxu1 %v14054_v18  ;;  %v1507_v17 = vld [vmem:[%s15389_s29 + $0x2188] sm:$0xff]  ;;  %v14453_v43 = vcombine.low %v1747_v31, %v1755_v32 }
 0x1a3   : > { %v1515_v18 = vld [vmem:[%s15389_s29 + $0x21c8] sm:$0xff] }
 0x1a4   : > { %v14213_v34 = vcombine.low %v1507_v17, %v1515_v18  ;;  %v1731_v40 = vld [vmem:[%s15389_s29 + $0x2888] sm:$0xff] }
 0x1a5   : > { %10007 = vmatpush2.bf16.msra.mxu0 %v13797_v26  ;;  %10048 = vmatpush2.bf16.msra.mxu1 %v14053_v27  ;;  %v14214_v26 = vcombine.high %v1507_v17, %v1515_v18  ;;  %v14470_v27 = vcombine.high %v1763_v19, %v1771_v20  ;;  %v1739_v41 = vld [vmem:[%s15389_s29 + $0x28c8] sm:$0xff] }
 0x1a6   : > { %10008 = vmatprep.subr.bf16.mxu0 %v13782_v28  ;;  %10049 = vmatprep.subr.bf16.mxu1 %v14038_v29  ;;  %v1491_v28 = vld [vmem:[%s15389_s29 + $0x2108] sm:$0xff]  ;;  %v14437_v54 = vcombine.low %v1731_v40, %v1739_v41 }
 0x1a7   : > { %v1499_v29 = vld [vmem:[%s15389_s29 + $0x2148] sm:$0xff] }
 0x1a8   : > { %v14197_v42 = vcombine.low %v1491_v28, %v1499_v29  ;;  %v1715_v50 = vld [vmem:[%s15389_s29 + $0x2808] sm:$0xff] }
 0x1a9   : > { %10009 = vmatpush2.bf16.msra.mxu0 %v13781_v36  ;;  %10050 = vmatpush2.bf16.msra.mxu1 %v14037_v37  ;;  %v14198_v36 = vcombine.high %v1491_v28, %v1499_v29  ;;  %v14454_v37 = vcombine.high %v1747_v31, %v1755_v32  ;;  %v1723_v51 = vld [vmem:[%s15389_s29 + $0x2848] sm:$0xff] }
 0x1aa   : > { %10060 = vmatprep.subr.bf16.mxu0 %v14278_v38  ;;  %10101 = vmatprep.subr.bf16.mxu1 %v14534_v39  ;;  %v1475_v38 = vld [vmem:[%s15389_s29 + $0x2088] sm:$0xff]  ;;  %v14421_v5 = vcombine.low %v1715_v50, %v1723_v51 }
 0x1ab   : > { %v15799_v55 = vpop.f32.mrf.mxu1  ;;  %v1483_v39 = vld [vmem:[%s15389_s29 + $0x20c8] sm:$0xff] }
 0x1ac   : > { %v15794_v52 = vpop.f32.mrf.mxu0  ;;  %10011 = vmatmul.mubr.bf16.vlgmr.msra.gmra.mxu0 %v15566_v0  ;;  %10052 = vmatmul.mubr.bf16.vlgmr.msra.gmra.mxu1 %v15571_v4  ;;  %v14181_v53 = vcombine.low %v1475_v38, %v1483_v39  ;;  %v1955_v1 = vld [vmem:[%s15389_s29 + $0x2f88] sm:$0xff] }
 0x1ad   : > { %10061 = vmatpush1.bf16.msra.mxu0 %v14277_v45  ;;  %10102 = vmatpush1.bf16.msra.mxu1 %v14533_v46  ;;  %v15804_v62 = vpop.f32.mrf.mxu1  ;;  %v14182_v45 = vcombine.high %v1475_v38, %v1483_v39  ;;  %v14438_v46 = vcombine.high %v1731_v40, %v1739_v41  ;;  %v1963_v2 = vld [vmem:[%s15389_s29 + $0x2fc8] sm:$0xff] }
 0x1ae   : > { %v15802_v58 = vpop.f32.mrf.mxu0  ;;  %10062 = vmatprep.subr.bf16.mxu0 %v14262_v47  ;;  %10103 = vmatprep.subr.bf16.mxu1 %v14518_v49  ;;  %v1459_v47 = vld [vmem:[%s15389_s29 + $0x2008] sm:$0xff] }
 0x1af   : > { %10092 = vmatprep.mubr.bf16.mxu0 %v15576_v12  ;;  %10133 = vmatprep.mubr.bf16.mxu1 %v15581_v15  ;;  %v9811_v7 = vpop.f32.mrf.mxu1  ;;  %v1467_v49 = vld [vmem:[%s15389_s29 + $0x2048] sm:$0xff] }
 0x1b0   : > { %v9770_v3 = vpop.f32.mrf.mxu0  ;;  %v14662_v7 = vcombine.high %v1955_v1, %v1963_v2  ;;  %v1667_v19 = vld [vmem:[%s15389_s29 + $0x2688] sm:$0xff] }
 0x1b1   : > { %10063 = vmatpush1.bf16.msra.mxu0 %v14261_v57  ;;  %10104 = vmatpush1.bf16.msra.mxu1 %v14517_v60  ;;  %v9812_v14 = vpop.f32.mrf.mxu1  ;;  %v14166_v57 = vcombine.high %v1459_v47, %v1467_v49  ;;  %v14422_v60 = vcombine.high %v1715_v50, %v1723_v51  ;;  %v14165_v3 = vcombine.low %v1459_v47, %v1467_v49  ;;  %v1675_v20 = vld [vmem:[%s15389_s29 + $0x26c8] sm:$0xff] }
 0x1b2   : > { %v9771_v9 = vpop.f32.mrf.mxu0  ;;  %10064 = vmatprep.subr.bf16.mxu0 %v14246_v61  ;;  %10105 = vmatprep.subr.bf16.mxu1 %v14502_v63  ;;  %v1699_v61 = vld [vmem:[%s15389_s29 + $0x2788] sm:$0xff]  ;;  %v14374_v28 = vcombine.high %v1667_v19, %v1675_v20 }
 0x1b3   : > { %v1707_v63 = vld [vmem:[%s15389_s29 + $0x27c8] sm:$0xff] }
 0x1b4   : > { %v14406_v6 = vcombine.high %v1699_v61, %v1707_v63  ;;  %v1691_v9 = vld [vmem:[%s15389_s29 + $0x2748] sm:$0xff]  ;;  %v14405_v14 = vcombine.low %v1699_v61, %v1707_v63 }
 0x1b5   : > { %10065 = vmatpush1.bf16.msra.mxu0 %v14245_v8  ;;  %10106 = vmatpush1.bf16.msra.mxu1 %v14501_v10  ;;  %v1683_v8 = vld [vmem:[%s15389_s29 + $0x2708] sm:$0xff] }
 0x1b6   : > { %10066 = vmatprep.subr.bf16.mxu0 %v14230_v13  ;;  %10107 = vmatprep.subr.bf16.mxu1 %v14486_v16  ;;  %v1939_v10 = vld [vmem:[%s15389_s29 + $0x2f08] sm:$0xff]  ;;  %v14661_v16 = vcombine.low %v1955_v1, %v1963_v2  ;;  %v14390_v17 = vcombine.high %v1683_v8, %v1691_v9 }
 0x1b7   : > { %v1947_v13 = vld [vmem:[%s15389_s29 + $0x2f48] sm:$0xff] }
 0x1b8   : > { %v14646_v18 = vcombine.high %v1939_v10, %v1947_v13  ;;  %v1651_v31 = vld [vmem:[%s15389_s29 + $0x2608] sm:$0xff] }
 0x1b9   : > { %10067 = vmatpush1.bf16.msra.mxu0 %v14229_v24  ;;  %10108 = vmatpush1.bf16.msra.mxu1 %v14485_v25  ;;  %v1923_v24 = vld [vmem:[%s15389_s29 + $0x2e88] sm:$0xff] }
 0x1ba   : > { %10068 = vmatprep.subr.bf16.mxu0 %v14214_v26  ;;  %10109 = vmatprep.subr.bf16.mxu1 %v14470_v27  ;;  %v1931_v25 = vld [vmem:[%s15389_s29 + $0x2ec8] sm:$0xff]  ;;  %v14389_v26 = vcombine.low %v1683_v8, %v1691_v9  ;;  %v14645_v27 = vcombine.low %v1939_v10, %v1947_v13 }
 0x1bb   : > { %v14630_v29 = vcombine.high %v1923_v24, %v1931_v25  ;;  %v1659_v32 = vld [vmem:[%s15389_s29 + $0x2648] sm:$0xff] }
 0x1bc   : > { %v14358_v38 = vcombine.high %v1651_v31, %v1659_v32  ;;  %v1635_v40 = vld [vmem:[%s15389_s29 + $0x2588] sm:$0xff] }
 0x1bd   : > { %10069 = vmatpush1.bf16.msra.mxu0 %v14213_v34  ;;  %10110 = vmatpush1.bf16.msra.mxu1 %v14469_v35  ;;  %v1907_v34 = vld [vmem:[%s15389_s29 + $0x2e08] sm:$0xff] }
 0x1be   : > { %10070 = vmatprep.subr.bf16.mxu0 %v14198_v36  ;;  %10111 = vmatprep.subr.bf16.mxu1 %v14454_v37  ;;  %v1915_v35 = vld [vmem:[%s15389_s29 + $0x2e48] sm:$0xff]  ;;  %v14373_v36 = vcombine.low %v1667_v19, %v1675_v20  ;;  %v14629_v37 = vcombine.low %v1923_v24, %v1931_v25  ;;  %v548_v24 = vld [vmem:[%s15389_s29 + $0x390] sm:$0xff] }
 0x1bf   : > { %v14614_v39 = vcombine.high %v1907_v34, %v1915_v35  ;;  %v1643_v41 = vld [vmem:[%s15389_s29 + $0x25c8] sm:$0xff]  ;;  %v556_v25 = vld [vmem:[%s15389_s29 + $0x3d0] sm:$0xff] }
 0x1c0   : > { %v14342_v47 = vcombine.high %v1635_v40, %v1643_v41  ;;  %v1619_v50 = vld [vmem:[%s15389_s29 + $0x2508] sm:$0xff] }
 0x1c1   : > { %10071 = vmatpush1.bf16.msra.mxu0 %v14197_v42  ;;  %10112 = vmatpush1.bf16.msra.mxu1 %v14453_v43  ;;  %v1891_v42 = vld [vmem:[%s15389_s29 + $0x2d88] sm:$0xff] }
 0x1c2   : > { %10072 = vmatprep.subr.bf16.mxu0 %v14182_v45  ;;  %10113 = vmatprep.subr.bf16.mxu1 %v14438_v46  ;;  %v1899_v43 = vld [vmem:[%s15389_s29 + $0x2dc8] sm:$0xff]  ;;  %v14357_v45 = vcombine.low %v1651_v31, %v1659_v32  ;;  %v14613_v46 = vcombine.low %v1907_v34, %v1915_v35  ;;  %v13256_v31 = vcombine.high %v548_v24, %v556_v25  ;;  %v532_v35 = vld [vmem:[%s15389_s29 + $0x310] sm:$0xff] }
 0x1c3   : > { %v14598_v49 = vcombine.high %v1891_v42, %v1899_v43  ;;  %v1627_v51 = vld [vmem:[%s15389_s29 + $0x2548] sm:$0xff]  ;;  %v9767_v32 = vadd.f32 %v15794_v52, %v15726_v11 }
 0x1c4   : > { %v14326_v61 = vcombine.high %v1619_v50, %v1627_v51  ;;  %v1603_v1 = vld [vmem:[%s15389_s29 + $0x2488] sm:$0xff] }
 0x1c5   : > { %10073 = vmatpush1.bf16.msra.mxu0 %v14181_v53  ;;  %10114 = vmatpush1.bf16.msra.mxu1 %v14437_v54  ;;  %v1875_v53 = vld [vmem:[%s15389_s29 + $0x2d08] sm:$0xff]  ;;  %v9808_v11 = vadd.f32 %v15799_v55, %v9767_v32  ;;  %v418_v55 = vld [vmem:[#allocation2 + $0x30] sm:$0xff] }
 0x1c6   : > { %10074 = vmatprep.subr.bf16.mxu0 %v14166_v57  ;;  %10115 = vmatprep.subr.bf16.mxu1 %v14422_v60  ;;  %v1883_v54 = vld [vmem:[%s15389_s29 + $0x2d48] sm:$0xff]  ;;  %v14341_v57 = vcombine.low %v1635_v40, %v1643_v41  ;;  %v14597_v60 = vcombine.low %v1891_v42, %v1899_v43  ;;  %v13255_v40 = vcombine.low %v548_v24, %v556_v25  ;;  %v516_v43 = vld [vmem:[%s15389_s29 + $0x290] sm:$0xff] }
 0x1c7   : > { %v14582_v63 = vcombine.high %v1875_v53, %v1883_v54  ;;  %v1611_v2 = vld [vmem:[%s15389_s29 + $0x24c8] sm:$0xff]  ;;  %v484_v24 = vld [vmem:[%s15389_s29 + $0x190] sm:$0xff] }
 0x1c8   : > { %v14310_v8 = vcombine.high %v1603_v1, %v1611_v2  ;;  %v1587_v10 = vld [vmem:[%s15389_s29 + $0x2408] sm:$0xff]  ;;  %v492_v25 = vld [vmem:[%s15389_s29 + $0x1d0] sm:$0xff] }
 0x1c9   : > { %10075 = vmatpush1.bf16.msra.mxu0 %v14165_v3  ;;  %10116 = vmatpush1.bf16.msra.mxu1 %v14421_v5  ;;  %v1859_v3 = vld [vmem:[%s15389_s29 + $0x2c88] sm:$0xff] }
 0x1ca   : > { %10076 = vmatprep.subr.bf16.mxu0 %v14406_v6  ;;  %10117 = vmatprep.subr.bf16.mxu1 %v14662_v7  ;;  %v1867_v5 = vld [vmem:[%s15389_s29 + $0x2cc8] sm:$0xff]  ;;  %v14325_v6 = vcombine.low %v1619_v50, %v1627_v51  ;;  %v14581_v7 = vcombine.low %v1875_v53, %v1883_v54 }
 0x1cb   : > { %v14566_v9 = vcombine.high %v1859_v3, %v1867_v5  ;;  %v1595_v13 = vld [vmem:[%s15389_s29 + $0x2448] sm:$0xff] }
 0x1cc   : > { %v14294_v19 = vcombine.high %v1587_v10, %v1595_v13 }
 0x1cd   : > { %10077 = vmatpush2.bf16.msra.mxu0 %v14405_v14  ;;  %10118 = vmatpush2.bf16.msra.mxu1 %v14661_v16  ;;  %v1843_v14 = vld [vmem:[%s15389_s29 + $0x2c08] sm:$0xff] }
 0x1ce   : > { %10078 = vmatprep.subr.bf16.mxu0 %v14390_v17  ;;  %10119 = vmatprep.subr.bf16.mxu1 %v14646_v18  ;;  %v1851_v16 = vld [vmem:[%s15389_s29 + $0x2c48] sm:$0xff]  ;;  %v14309_v17 = vcombine.low %v1603_v1, %v1611_v2  ;;  %v14565_v18 = vcombine.low %v1859_v3, %v1867_v5  ;;  %v500_v1 = vld [vmem:[%s15389_s29 + $0x210] sm:$0xff]  ;;  %v419_v3 = vld [vmem:[#allocation2] sm:$0xff] }
 0x1cf   : > { %v14550_v20 = vcombine.high %v1843_v14, %v1851_v16  ;;  %v508_v2 = vld [vmem:[%s15389_s29 + $0x250] sm:$0xff] }
 0x1d1   : > { %10079 = vmatpush2.bf16.msra.mxu0 %v14389_v26  ;;  %10120 = vmatpush2.bf16.msra.mxu1 %v14645_v27  ;;  %v804_v26 = vld [vmem:[%s15389_s29 + $0xb90] sm:$0xff] }
 0x1d2   : > { %10080 = vmatprep.subr.bf16.mxu0 %v14374_v28  ;;  %10121 = vmatprep.subr.bf16.mxu1 %v14630_v29  ;;  %v812_v27 = vld [vmem:[%s15389_s29 + $0xbd0] sm:$0xff]  ;;  %v14293_v28 = vcombine.low %v1587_v10, %v1595_v13  ;;  %v14549_v29 = vcombine.low %v1843_v14, %v1851_v16 }
 0x1d3   : > { %v13512_v34 = vcombine.high %v804_v26, %v812_v27  ;;  %v13511_v41 = vcombine.low %v804_v26, %v812_v27  ;;  %v740_v26 = vld [vmem:[%s15389_s29 + $0x990] sm:$0xff] }
 0x1d4   : > { %v748_v27 = vld [vmem:[%s15389_s29 + $0x9d0] sm:$0xff] }
 0x1d5   : > { %10081 = vmatpush2.bf16.msra.mxu0 %v14373_v36  ;;  %10122 = vmatpush2.bf16.msra.mxu1 %v14629_v37  ;;  %v540_v36 = vld [vmem:[%s15389_s29 + $0x350] sm:$0xff]  ;;  %v13448_v32 = vcombine.high %v740_v26, %v748_v27 }
 0x1d6   : > { %10082 = vmatprep.subr.bf16.mxu0 %v14358_v38  ;;  %10123 = vmatprep.subr.bf16.mxu1 %v14614_v39  ;;  %v788_v37 = vld [vmem:[%s15389_s29 + $0xb10] sm:$0xff]  ;;  %v9769_v39 = vadd.f32 %v15802_v58, %v15731_v21  ;;  %v13240_v42 = vcombine.high %v532_v35, %v540_v36  ;;  %v13239_v51 = vcombine.low %v532_v35, %v540_v36 }
 0x1d7   : > { %v796_v38 = vld [vmem:[%s15389_s29 + $0xb50] sm:$0xff] }
 0x1d8   : > { %v13496_v52 = vcombine.high %v788_v37, %v796_v38  ;;  %v9810_v50 = vadd.f32 %v15804_v62, %v9769_v39  ;;  %v13495_v54 = vcombine.low %v788_v37, %v796_v38  ;;  %v476_v35 = vld [vmem:[%s15389_s29 + $0x150] sm:$0xff]  ;;  %v13191_v38 = vcombine.low %v484_v24, %v492_v25 }
 0x1d9   : > { %10083 = vmatpush2.bf16.msra.mxu0 %v14357_v45  ;;  %10124 = vmatpush2.bf16.msra.mxu1 %v14613_v46  ;;  %v524_v45 = vld [vmem:[%s15389_s29 + $0x2d0] sm:$0xff]  ;;  %v13447_v39 = vcombine.low %v740_v26, %v748_v27 }
 0x1da   : > { %10084 = vmatprep.subr.bf16.mxu0 %v14342_v47  ;;  %10125 = vmatprep.subr.bf16.mxu1 %v14598_v49  ;;  %v772_v47 = vld [vmem:[%s15389_s29 + $0xa90] sm:$0xff]  ;;  %v13223_v13 = vcombine.low %v516_v43, %v524_v45 }
 0x1db   : > { %v780_v49 = vld [vmem:[%s15389_s29 + $0xad0] sm:$0xff] }
 0x1dc   : > { %v13480_v62 = vcombine.high %v772_v47, %v780_v49  ;;  %v13479_v16 = vcombine.low %v772_v47, %v780_v49  ;;  %v724_v36 = vld [vmem:[%s15389_s29 + $0x910] sm:$0xff] }
 0x1dd   : > { %10085 = vmatpush2.bf16.msra.mxu0 %v14341_v57  ;;  %10126 = vmatpush2.bf16.msra.mxu1 %v14597_v60  ;;  %v13224_v57 = vcombine.high %v516_v43, %v524_v45  ;;  %v732_v37 = vld [vmem:[%s15389_s29 + $0x950] sm:$0xff] }
 0x1de   : > { %10086 = vmatprep.subr.bf16.mxu0 %v14326_v61  ;;  %10127 = vmatprep.subr.bf16.mxu1 %v14582_v63  ;;  %v716_v43 = vld [vmem:[%s15389_s29 + $0x8d0] sm:$0xff] }
 0x1e1   : > { %10087 = vmatpush2.bf16.msra.mxu0 %v14325_v6  ;;  %10128 = vmatpush2.bf16.msra.mxu1 %v14581_v7  ;;  %v756_v6 = vld [vmem:[%s15389_s29 + $0xa10] sm:$0xff] }
 0x1e2   : > { %10088 = vmatprep.subr.bf16.mxu0 %v14310_v8  ;;  %10129 = vmatprep.subr.bf16.mxu1 %v14566_v9  ;;  %v764_v7 = vld [vmem:[%s15389_s29 + $0xa50] sm:$0xff] }
 0x1e5   : > { %10089 = vmatpush2.bf16.msra.mxu0 %v14309_v17  ;;  %10130 = vmatpush2.bf16.msra.mxu1 %v14565_v18  ;;  %v13208_v17 = vcombine.high %v500_v1, %v508_v2 }
 0x1e6   : > { %10090 = vmatprep.subr.bf16.mxu0 %v14294_v19  ;;  %10131 = vmatprep.subr.bf16.mxu1 %v14550_v20  ;;  %v13464_v20 = vcombine.high %v756_v6, %v764_v7 }
 0x1e9   : > { %10091 = vmatpush2.bf16.msra.mxu0 %v14293_v28  ;;  %10132 = vmatpush2.bf16.msra.mxu1 %v14549_v29  ;;  %v13207_v28 = vcombine.low %v500_v1, %v508_v2  ;;  %v13463_v29 = vcombine.low %v756_v6, %v764_v7  ;;  %v660_v6 = vld [vmem:[%s15389_s29 + $0x710] sm:$0xff] }
 0x1ea   : > { %10142 = vmatprep.subr.bf16.mxu0 %v13256_v31  ;;  %10183 = vmatprep.subr.bf16.mxu1 %v13512_v34  ;;  %v13192_v31 = vcombine.high %v484_v24, %v492_v25  ;;  %v468_v34 = vld [vmem:[%s15389_s29 + $0x110] sm:$0xff] }
 0x1eb   : > { %v13175_v45 = vcombine.low %v468_v34, %v476_v35  ;;  %v668_v7 = vld [vmem:[%s15389_s29 + $0x750] sm:$0xff] }
 0x1ec   : > { %v9848_v46 = vpop.f32.mrf.mxu0  ;;  %10093 = vmatmul.mubr.bf16.vlgmr.msra.gmra.mxu0 %v15646_v30  ;;  %v9889_v58 = vpop.f32.mrf.mxu1  ;;  %10134 = vmatmul.mubr.bf16.vlgmr.msra.gmra.mxu1 %v15650_v33  ;;  %v13367_v24 = vcombine.low %v660_v6, %v668_v7 }
 0x1ed   : > { %v9849_v21 = vadd.f32 %v9848_v46, %v9808_v11  ;;  %10143 = vmatpush1.bf16.msra.mxu0 %v13255_v40  ;;  %10184 = vmatpush1.bf16.msra.mxu1 %v13511_v41  ;;  %v13176_v40 = vcombine.high %v468_v34, %v476_v35  ;;  %v13432_v41 = vcombine.high %v724_v36, %v732_v37  ;;  %v460_v11 = vld [vmem:[%s15389_s29 + $0xd0] sm:$0xff] }
 0x1ee   : > { %v9850_v53 = vpop.f32.mrf.mxu0  ;;  %10144 = vmatprep.subr.bf16.mxu0 %v13240_v42  ;;  %v9891_v63 = vpop.f32.mrf.mxu1  ;;  %10185 = vmatprep.subr.bf16.mxu1 %v13496_v52  ;;  %v452_v42 = vld [vmem:[%s15389_s29 + $0x90] sm:$0xff]  ;;  %v13431_v46 = vcombine.low %v724_v36, %v732_v37 }
 0x1ef   : > { %v9890_v60 = vadd.f32 %v9889_v58, %v9849_v21  ;;  %v9851_v61 = vadd.f32 %v9850_v53, %v9810_v50  ;;  %10174 = vmatprep.mubr.bf16.mxu0 %v15438_v22  ;;  %10215 = vmatprep.mubr.bf16.mxu1 %v15440_v23  ;;  %v708_v52 = vld [vmem:[%s15389_s29 + $0x890] sm:$0xff]  ;;  %v13160_v47 = vcombine.high %v452_v42, %v460_v11 }
 0x1f0   : > { %v9852_v5 = vpop.f32.mrf.mxu0  ;;  %v9893_v10 = vpop.f32.mrf.mxu1  ;;  %v13416_v49 = vcombine.high %v708_v52, %v716_v43  ;;  %v436_v50 = vld [vmem:[%s15389_s29 + $0x10] sm:$0xff]  ;;  %v13415_v53 = vcombine.low %v708_v52, %v716_v43 }
 0x1f1   : > { %v11618_v8 = vadd.f32 %v9890_v60, %v418_v55  ;;  %v9892_v9 = vadd.f32 %v9891_v63, %v9851_v61  ;;  %10145 = vmatpush1.bf16.msra.mxu0 %v13239_v51  ;;  %10186 = vmatpush1.bf16.msra.mxu1 %v13495_v54  ;;  %v444_v21 = vld [vmem:[%s15389_s29 + $0x50] sm:$0xff]  ;;  %v13159_v55 = vcombine.low %v452_v42, %v460_v11 }
 0x1f2   : > { %v9853_v14 = vpop.f32.mrf.mxu0  ;;  %10146 = vmatprep.subr.bf16.mxu0 %v13224_v57  ;;  %v9894_v19 = vpop.f32.mrf.mxu1  ;;  %10187 = vmatprep.subr.bf16.mxu1 %v13480_v62  ;;  %v692_v58 = vld [vmem:[%s15389_s29 + $0x810] sm:$0xff]  ;;  %v13144_v54 = vcombine.high %v436_v50, %v444_v21  ;;  %v13143_v1 = vcombine.low %v436_v50, %v444_v21 }
 0x1f3   : > { %11634 = vst [vmem:[#allocation2 + $0x30] sm:$0xff] %v11618_v8  ;;  %v11619_v18 = vadd.f32 %v9892_v9, %v419_v3  ;;  %v700_v51 = vld [vmem:[%s15389_s29 + $0x850] sm:$0xff]  ;;  %v13368_v14 = vcombine.high %v660_v6, %v668_v7 }
 0x1f4   : > { %v13400_v57 = vcombine.high %v692_v58, %v700_v51  ;;  %v676_v60 = vld [vmem:[%s15389_s29 + $0x790] sm:$0xff]  ;;  %v13399_v2 = vcombine.low %v692_v58, %v700_v51 }
 0x1f5   : > { %11635 = vst [vmem:[#allocation2] sm:$0xff] %v11619_v18  ;;  %10147 = vmatpush1.bf16.msra.mxu0 %v13223_v13  ;;  %10188 = vmatpush1.bf16.msra.mxu1 %v13479_v16  ;;  %v684_v61 = vld [vmem:[%s15389_s29 + $0x7d0] sm:$0xff] }
 0x1f6   : > { %10148 = vmatprep.subr.bf16.mxu0 %v13208_v17  ;;  %10189 = vmatprep.subr.bf16.mxu1 %v13464_v20  ;;  %v932_v63 = vld [vmem:[%s15389_s29 + $0xf90] sm:$0xff]  ;;  %v13384_v3 = vcombine.high %v676_v60, %v684_v61  ;;  %v13383_v10 = vcombine.low %v676_v60, %v684_v61 }
 0x1f7   : > { %v940_v62 = vld [vmem:[%s15389_s29 + $0xfd0] sm:$0xff] }
 0x1f8   : > { %v13640_v5 = vcombine.high %v932_v63, %v940_v62  ;;  %v916_v8 = vld [vmem:[%s15389_s29 + $0xf10] sm:$0xff]  ;;  %v13639_v13 = vcombine.low %v932_v63, %v940_v62 }
 0x1f9   : > { %10149 = vmatpush1.bf16.msra.mxu0 %v13207_v28  ;;  %10190 = vmatpush1.bf16.msra.mxu1 %v13463_v29  ;;  %v924_v9 = vld [vmem:[%s15389_s29 + $0xf50] sm:$0xff] }
 0x1fa   : > { %10150 = vmatprep.subr.bf16.mxu0 %v13192_v31  ;;  %10191 = vmatprep.subr.bf16.mxu1 %v13448_v32  ;;  %v13624_v16 = vcombine.high %v916_v8, %v924_v9  ;;  %v644_v17 = vld [vmem:[%s15389_s29 + $0x690] sm:$0xff]  ;;  %v13623_v25 = vcombine.low %v916_v8, %v924_v9 }
 0x1fb   : > { %v652_v18 = vld [vmem:[%s15389_s29 + $0x6d0] sm:$0xff] }
 0x1fc   : > { %v900_v19 = vld [vmem:[%s15389_s29 + $0xe90] sm:$0xff]  ;;  %v13352_v26 = vcombine.high %v644_v17, %v652_v18  ;;  %v13351_v34 = vcombine.low %v644_v17, %v652_v18 }
 0x1fd   : > { %10151 = vmatpush1.bf16.msra.mxu0 %v13191_v38  ;;  %10192 = vmatpush1.bf16.msra.mxu1 %v13447_v39  ;;  %v908_v20 = vld [vmem:[%s15389_s29 + $0xed0] sm:$0xff] }
 0x1fe   : > { %10152 = vmatprep.subr.bf16.mxu0 %v13176_v40  ;;  %10193 = vmatprep.subr.bf16.mxu1 %v13432_v41  ;;  %v13608_v27 = vcombine.high %v900_v19, %v908_v20  ;;  %v628_v28 = vld [vmem:[%s15389_s29 + $0x610] sm:$0xff]  ;;  %v13607_v35 = vcombine.low %v900_v19, %v908_v20 }
 0x1ff   : > { %v636_v29 = vld [vmem:[%s15389_s29 + $0x650] sm:$0xff] }
 0x200   : > { %v884_v31 = vld [vmem:[%s15389_s29 + $0xe10] sm:$0xff]  ;;  %v13336_v36 = vcombine.high %v628_v28, %v636_v29  ;;  %v13335_v42 = vcombine.low %v628_v28, %v636_v29 }
 0x201   : > { %10153 = vmatpush1.bf16.msra.mxu0 %v13175_v45  ;;  %10194 = vmatpush1.bf16.msra.mxu1 %v13431_v46  ;;  %v892_v32 = vld [vmem:[%s15389_s29 + $0xe50] sm:$0xff] }
 0x202   : > { %10154 = vmatprep.subr.bf16.mxu0 %v13160_v47  ;;  %10195 = vmatprep.subr.bf16.mxu1 %v13416_v49  ;;  %v13592_v37 = vcombine.high %v884_v31, %v892_v32  ;;  %v612_v38 = vld [vmem:[%s15389_s29 + $0x590] sm:$0xff]  ;;  %v13591_v11 = vcombine.low %v884_v31, %v892_v32 }
 0x203   : > { %v620_v39 = vld [vmem:[%s15389_s29 + $0x5d0] sm:$0xff] }
 0x204   : > { %v868_v40 = vld [vmem:[%s15389_s29 + $0xd90] sm:$0xff]  ;;  %v13320_v52 = vcombine.high %v612_v38, %v620_v39  ;;  %v13319_v50 = vcombine.low %v612_v38, %v620_v39 }
 0x205   : > { %10155 = vmatpush1.bf16.msra.mxu0 %v13159_v55  ;;  %10196 = vmatpush1.bf16.msra.mxu1 %v13415_v53  ;;  %v876_v41 = vld [vmem:[%s15389_s29 + $0xdd0] sm:$0xff] }
 0x206   : > { %10156 = vmatprep.subr.bf16.mxu0 %v13144_v54  ;;  %10197 = vmatprep.subr.bf16.mxu1 %v13400_v57  ;;  %v13576_v43 = vcombine.high %v868_v40, %v876_v41  ;;  %v596_v45 = vld [vmem:[%s15389_s29 + $0x510] sm:$0xff]  ;;  %v13575_v21 = vcombine.low %v868_v40, %v876_v41 }
 0x207   : > { %v604_v46 = vld [vmem:[%s15389_s29 + $0x550] sm:$0xff] }
 0x208   : > { %v852_v47 = vld [vmem:[%s15389_s29 + $0xd10] sm:$0xff]  ;;  %v13304_v58 = vcombine.high %v596_v45, %v604_v46  ;;  %v13303_v60 = vcombine.low %v596_v45, %v604_v46 }
 0x209   : > { %10157 = vmatpush1.bf16.msra.mxu0 %v13143_v1  ;;  %10198 = vmatpush1.bf16.msra.mxu1 %v13399_v2  ;;  %v860_v49 = vld [vmem:[%s15389_s29 + $0xd50] sm:$0xff] }
 0x20a   : > { %10158 = vmatprep.subr.bf16.mxu0 %v13384_v3  ;;  %10199 = vmatprep.subr.bf16.mxu1 %v13640_v5  ;;  %v13560_v51 = vcombine.high %v852_v47, %v860_v49  ;;  %v580_v55 = vld [vmem:[%s15389_s29 + $0x490] sm:$0xff]  ;;  %v13559_v61 = vcombine.low %v852_v47, %v860_v49 }
 0x20b   : > { %v588_v53 = vld [vmem:[%s15389_s29 + $0x4d0] sm:$0xff] }
 0x20c   : > { %v836_v54 = vld [vmem:[%s15389_s29 + $0xc90] sm:$0xff]  ;;  %v13288_v63 = vcombine.high %v580_v55, %v588_v53  ;;  %v13287_v6 = vcombine.low %v580_v55, %v588_v53 }
 0x20d   : > { %10159 = vmatpush2.bf16.msra.mxu0 %v13383_v10  ;;  %10200 = vmatpush2.bf16.msra.mxu1 %v13639_v13  ;;  %v844_v57 = vld [vmem:[%s15389_s29 + $0xcd0] sm:$0xff] }
 0x20e   : > { %10160 = vmatprep.subr.bf16.mxu0 %v13368_v14  ;;  %10201 = vmatprep.subr.bf16.mxu1 %v13624_v16  ;;  %v13544_v62 = vcombine.high %v836_v54, %v844_v57  ;;  %v564_v1 = vld [vmem:[%s15389_s29 + $0x410] sm:$0xff]  ;;  %v13543_v7 = vcombine.low %v836_v54, %v844_v57 }
 0x20f   : > { %v572_v2 = vld [vmem:[%s15389_s29 + $0x450] sm:$0xff] }
 0x210   : > { %v820_v3 = vld [vmem:[%s15389_s29 + $0xc10] sm:$0xff]  ;;  %v13272_v8 = vcombine.high %v564_v1, %v572_v2  ;;  %v13271_v17 = vcombine.low %v564_v1, %v572_v2 }
 0x211   : > { %10161 = vmatpush2.bf16.msra.mxu0 %v13367_v24  ;;  %10202 = vmatpush2.bf16.msra.mxu1 %v13623_v25  ;;  %v828_v5 = vld [vmem:[%s15389_s29 + $0xc50] sm:$0xff] }
 0x212   : > { %10162 = vmatprep.subr.bf16.mxu0 %v13352_v26  ;;  %10203 = vmatprep.subr.bf16.mxu1 %v13608_v27  ;;  %v13528_v9 = vcombine.high %v820_v3, %v828_v5  ;;  %v1060_v10 = vld [vmem:[%s15389_s29 + $0x1390] sm:$0xff]  ;;  %v13527_v18 = vcombine.low %v820_v3, %v828_v5 }
 0x213   : > { %v1068_v13 = vld [vmem:[%s15389_s29 + $0x13d0] sm:$0xff] }
 0x214   : > { %v1316_v14 = vld [vmem:[%s15389_s29 + $0x1b90] sm:$0xff]  ;;  %v13768_v19 = vcombine.high %v1060_v10, %v1068_v13  ;;  %v13767_v28 = vcombine.low %v1060_v10, %v1068_v13 }
 0x215   : > { %10163 = vmatpush2.bf16.msra.mxu0 %v13351_v34  ;;  %10204 = vmatpush2.bf16.msra.mxu1 %v13607_v35  ;;  %v1324_v16 = vld [vmem:[%s15389_s29 + $0x1bd0] sm:$0xff] }
 0x216   : > { %10164 = vmatprep.subr.bf16.mxu0 %v13336_v36  ;;  %10205 = vmatprep.subr.bf16.mxu1 %v13592_v37  ;;  %v14024_v20 = vcombine.high %v1316_v14, %v1324_v16  ;;  %v1044_v24 = vld [vmem:[%s15389_s29 + $0x1310] sm:$0xff]  ;;  %v14023_v29 = vcombine.low %v1316_v14, %v1324_v16 }
 0x217   : > { %v1052_v25 = vld [vmem:[%s15389_s29 + $0x1350] sm:$0xff] }
 0x218   : > { %v1300_v26 = vld [vmem:[%s15389_s29 + $0x1b10] sm:$0xff]  ;;  %v13752_v31 = vcombine.high %v1044_v24, %v1052_v25  ;;  %v13751_v40 = vcombine.low %v1044_v24, %v1052_v25 }
 0x219   : > { %10165 = vmatpush2.bf16.msra.mxu0 %v13335_v42  ;;  %10206 = vmatpush2.bf16.msra.mxu1 %v13591_v11  ;;  %v1308_v27 = vld [vmem:[%s15389_s29 + $0x1b50] sm:$0xff] }
 0x21a   : > { %10166 = vmatprep.subr.bf16.mxu0 %v13320_v52  ;;  %10207 = vmatprep.subr.bf16.mxu1 %v13576_v43  ;;  %v14008_v32 = vcombine.high %v1300_v26, %v1308_v27  ;;  %v1028_v34 = vld [vmem:[%s15389_s29 + $0x1290] sm:$0xff]  ;;  %v14007_v11 = vcombine.low %v1300_v26, %v1308_v27 }
 0x21b   : > { %v1036_v35 = vld [vmem:[%s15389_s29 + $0x12d0] sm:$0xff] }
 0x21c   : > { %v1284_v37 = vld [vmem:[%s15389_s29 + $0x1a90] sm:$0xff]  ;;  %v13736_v52 = vcombine.high %v1028_v34, %v1036_v35  ;;  %v13735_v55 = vcombine.low %v1028_v34, %v1036_v35 }
 0x21d   : > { %10167 = vmatpush2.bf16.msra.mxu0 %v13319_v50  ;;  %10208 = vmatpush2.bf16.msra.mxu1 %v13575_v21  ;;  %v1292_v38 = vld [vmem:[%s15389_s29 + $0x1ad0] sm:$0xff] }
 0x21e   : > { %10168 = vmatprep.subr.bf16.mxu0 %v13304_v58  ;;  %10209 = vmatprep.subr.bf16.mxu1 %v13560_v51  ;;  %v13992_v45 = vcombine.high %v1284_v37, %v1292_v38  ;;  %v1012_v46 = vld [vmem:[%s15389_s29 + $0x1210] sm:$0xff]  ;;  %v13991_v54 = vcombine.low %v1284_v37, %v1292_v38 }
 0x21f   : > { %v1020_v47 = vld [vmem:[%s15389_s29 + $0x1250] sm:$0xff] }
 0x220   : > { %v1268_v21 = vld [vmem:[%s15389_s29 + $0x1a10] sm:$0xff]  ;;  %v13720_v57 = vcombine.high %v1012_v46, %v1020_v47  ;;  %v13719_v3 = vcombine.low %v1012_v46, %v1020_v47 }
 0x221   : > { %10169 = vmatpush2.bf16.msra.mxu0 %v13303_v60  ;;  %10210 = vmatpush2.bf16.msra.mxu1 %v13559_v61  ;;  %v1276_v58 = vld [vmem:[%s15389_s29 + $0x1a50] sm:$0xff] }
 0x222   : > { %10170 = vmatprep.subr.bf16.mxu0 %v13288_v63  ;;  %10211 = vmatprep.subr.bf16.mxu1 %v13544_v62  ;;  %v13976_v61 = vcombine.high %v1268_v21, %v1276_v58  ;;  %v996_v63 = vld [vmem:[%s15389_s29 + $0x1190] sm:$0xff]  ;;  %v13975_v5 = vcombine.low %v1268_v21, %v1276_v58 }
 0x223   : > { %v1004_v62 = vld [vmem:[%s15389_s29 + $0x11d0] sm:$0xff] }
 0x224   : > { %v1252_v1 = vld [vmem:[%s15389_s29 + $0x1990] sm:$0xff]  ;;  %v13703_v14 = vcombine.low %v996_v63, %v1004_v62 }
 0x225   : > { %10171 = vmatpush2.bf16.msra.mxu0 %v13287_v6  ;;  %10212 = vmatpush2.bf16.msra.mxu1 %v13543_v7  ;;  %v1260_v2 = vld [vmem:[%s15389_s29 + $0x19d0] sm:$0xff]  ;;  %v13704_v6 = vcombine.high %v996_v63, %v1004_v62 }
 0x226   : > { %10172 = vmatprep.subr.bf16.mxu0 %v13272_v8  ;;  %10213 = vmatprep.subr.bf16.mxu1 %v13528_v9  ;;  %v13960_v7 = vcombine.high %v1252_v1, %v1260_v2  ;;  %v980_v8 = vld [vmem:[%s15389_s29 + $0x1110] sm:$0xff]  ;;  %v13959_v16 = vcombine.low %v1252_v1, %v1260_v2 }
 0x227   : > { %v988_v9 = vld [vmem:[%s15389_s29 + $0x1150] sm:$0xff] }
 0x228   : > { %v1236_v10 = vld [vmem:[%s15389_s29 + $0x1910] sm:$0xff]  ;;  %v13687_v26 = vcombine.low %v980_v8, %v988_v9 }
 0x229   : > { %10173 = vmatpush2.bf16.msra.mxu0 %v13271_v17  ;;  %10214 = vmatpush2.bf16.msra.mxu1 %v13527_v18  ;;  %v1244_v13 = vld [vmem:[%s15389_s29 + $0x1950] sm:$0xff]  ;;  %v13688_v17 = vcombine.high %v980_v8, %v988_v9 }
 0x22a   : > { %10224 = vmatprep.subr.bf16.mxu0 %v13768_v19  ;;  %10265 = vmatprep.subr.bf16.mxu1 %v14024_v20  ;;  %v13944_v18 = vcombine.high %v1236_v10, %v1244_v13  ;;  %v964_v19 = vld [vmem:[%s15389_s29 + $0x1090] sm:$0xff]  ;;  %v13943_v27 = vcombine.low %v1236_v10, %v1244_v13 }
 0x22b   : > { %v972_v20 = vld [vmem:[%s15389_s29 + $0x10d0] sm:$0xff] }
 0x22c   : > { %v9930_v36 = vpop.f32.mrf.mxu0  ;;  %10175 = vmatmul.mubr.bf16.vlgmr.msra.gmra.mxu0 %v15486_v44  ;;  %v9971_v39 = vpop.f32.mrf.mxu1  ;;  %10216 = vmatmul.mubr.bf16.vlgmr.msra.gmra.mxu1 %v15491_v48  ;;  %v1220_v24 = vld [vmem:[%s15389_s29 + $0x1890] sm:$0xff] }
 0x22d   : > { %10225 = vmatpush1.bf16.msra.mxu0 %v13767_v28  ;;  %v15948_v41 = vadd.f32 %v9971_v39, %v9930_v36  ;;  %10266 = vmatpush1.bf16.msra.mxu1 %v14023_v29  ;;  %v1228_v25 = vld [vmem:[%s15389_s29 + $0x18d0] sm:$0xff]  ;;  %v13672_v28 = vcombine.high %v964_v19, %v972_v20  ;;  %v13671_v36 = vcombine.low %v964_v19, %v972_v20 }
 0x22e   : > { %v9932_v42 = vpop.f32.mrf.mxu0  ;;  %10226 = vmatprep.subr.bf16.mxu0 %v13752_v31  ;;  %v9973_v43 = vpop.f32.mrf.mxu1  ;;  %10267 = vmatprep.subr.bf16.mxu1 %v14008_v32  ;;  %v13928_v29 = vcombine.high %v1220_v24, %v1228_v25  ;;  %v948_v31 = vld [vmem:[%s15389_s29 + $0x1010] sm:$0xff]  ;;  %v13927_v37 = vcombine.low %v1220_v24, %v1228_v25 }
 0x22f   : > { %10256 = vmatprep.mubr.bf16.mxu0 %v15496_v56  ;;  %v15953_v49 = vadd.f32 %v9973_v43, %v9932_v42  ;;  %10297 = vmatprep.mubr.bf16.mxu1 %v15501_v59  ;;  %v956_v32 = vld [vmem:[%s15389_s29 + $0x1050] sm:$0xff] }
 0x230   : > { %v9934_v50 = vpop.f32.mrf.mxu0  ;;  %v9975_v51 = vpop.f32.mrf.mxu1  ;;  %v1204_v34 = vld [vmem:[%s15389_s29 + $0x1810] sm:$0xff]  ;;  %v13656_v38 = vcombine.high %v948_v31, %v956_v32  ;;  %v13655_v43 = vcombine.low %v948_v31, %v956_v32 }
 0x231   : > { %10227 = vmatpush1.bf16.msra.mxu0 %v13751_v40  ;;  %10268 = vmatpush1.bf16.msra.mxu1 %v14007_v11  ;;  %v1212_v35 = vld [vmem:[%s15389_s29 + $0x1850] sm:$0xff] }
 0x232   : > { %v9935_v53 = vpop.f32.mrf.mxu0  ;;  %10228 = vmatprep.subr.bf16.mxu0 %v13736_v52  ;;  %v9976_v60 = vpop.f32.mrf.mxu1  ;;  %10269 = vmatprep.subr.bf16.mxu1 %v13992_v45  ;;  %v13912_v39 = vcombine.high %v1204_v34, %v1212_v35  ;;  %v1188_v40 = vld [vmem:[%s15389_s29 + $0x1790] sm:$0xff]  ;;  %v13911_v45 = vcombine.low %v1204_v34, %v1212_v35 }
 0x233   : > { %v1196_v42 = vld [vmem:[%s15389_s29 + $0x17d0] sm:$0xff] }
 0x234   : > { %v1444_v11 = vld [vmem:[%s15389_s29 + $0x1f90] sm:$0xff]  ;;  %v13896_v46 = vcombine.high %v1188_v40, %v1196_v42 }
 0x235   : > { %10229 = vmatpush1.bf16.msra.mxu0 %v13735_v55  ;;  %10270 = vmatpush1.bf16.msra.mxu1 %v13991_v54  ;;  %v1452_v52 = vld [vmem:[%s15389_s29 + $0x1fd0] sm:$0xff]  ;;  %v13895_v55 = vcombine.low %v1188_v40, %v1196_v42 }
 0x236   : > { %10230 = vmatprep.subr.bf16.mxu0 %v13720_v57  ;;  %10271 = vmatprep.subr.bf16.mxu1 %v13976_v61  ;;  %v14152_v47 = vcombine.high %v1444_v11, %v1452_v52  ;;  %v1172_v50 = vld [vmem:[%s15389_s29 + $0x1710] sm:$0xff]  ;;  %v14151_v53 = vcombine.low %v1444_v11, %v1452_v52 }
 0x237   : > { %v1180_v21 = vld [vmem:[%s15389_s29 + $0x1750] sm:$0xff] }
 0x238   : > { %v1428_v58 = vld [vmem:[%s15389_s29 + $0x1f10] sm:$0xff]  ;;  %v13880_v54 = vcombine.high %v1172_v50, %v1180_v21  ;;  %v13879_v1 = vcombine.low %v1172_v50, %v1180_v21 }
 0x239   : > { %10231 = vmatpush1.bf16.msra.mxu0 %v13719_v3  ;;  %10272 = vmatpush1.bf16.msra.mxu1 %v13975_v5  ;;  %v1436_v51 = vld [vmem:[%s15389_s29 + $0x1f50] sm:$0xff] }
 0x23a   : > { %10232 = vmatprep.subr.bf16.mxu0 %v13704_v6  ;;  %10273 = vmatprep.subr.bf16.mxu1 %v13960_v7  ;;  %v14136_v57 = vcombine.high %v1428_v58, %v1436_v51  ;;  %v1156_v60 = vld [vmem:[%s15389_s29 + $0x1690] sm:$0xff]  ;;  %v14135_v2 = vcombine.low %v1428_v58, %v1436_v51 }
 0x23b   : > { %v1164_v61 = vld [vmem:[%s15389_s29 + $0x16d0] sm:$0xff] }
 0x23c   : > { %v1412_v63 = vld [vmem:[%s15389_s29 + $0x1e90] sm:$0xff]  ;;  %v13864_v3 = vcombine.high %v1156_v60, %v1164_v61  ;;  %v13863_v10 = vcombine.low %v1156_v60, %v1164_v61 }
 0x23d   : > { %10233 = vmatpush1.bf16.msra.mxu0 %v13703_v14  ;;  %10274 = vmatpush1.bf16.msra.mxu1 %v13959_v16  ;;  %v1420_v62 = vld [vmem:[%s15389_s29 + $0x1ed0] sm:$0xff] }
 0x23e   : > { %10234 = vmatprep.subr.bf16.mxu0 %v13688_v17  ;;  %10275 = vmatprep.subr.bf16.mxu1 %v13944_v18  ;;  %v14120_v5 = vcombine.high %v1412_v63, %v1420_v62  ;;  %v1140_v6 = vld [vmem:[%s15389_s29 + $0x1610] sm:$0xff]  ;;  %v14119_v13 = vcombine.low %v1412_v63, %v1420_v62 }
 0x23f   : > { %v1148_v7 = vld [vmem:[%s15389_s29 + $0x1650] sm:$0xff] }
 0x240   : > { %v1396_v8 = vld [vmem:[%s15389_s29 + $0x1e10] sm:$0xff]  ;;  %v13848_v14 = vcombine.high %v1140_v6, %v1148_v7  ;;  %v13847_v24 = vcombine.low %v1140_v6, %v1148_v7 }
 0x241   : > { %10235 = vmatpush1.bf16.msra.mxu0 %v13687_v26  ;;  %10276 = vmatpush1.bf16.msra.mxu1 %v13943_v27  ;;  %v1404_v9 = vld [vmem:[%s15389_s29 + $0x1e50] sm:$0xff] }
 0x242   : > { %10236 = vmatprep.subr.bf16.mxu0 %v13672_v28  ;;  %10277 = vmatprep.subr.bf16.mxu1 %v13928_v29  ;;  %v14104_v16 = vcombine.high %v1396_v8, %v1404_v9  ;;  %v1124_v17 = vld [vmem:[%s15389_s29 + $0x1590] sm:$0xff]  ;;  %v14103_v25 = vcombine.low %v1396_v8, %v1404_v9 }
 0x243   : > { %v1132_v18 = vld [vmem:[%s15389_s29 + $0x15d0] sm:$0xff] }
 0x244   : > { %v1380_v19 = vld [vmem:[%s15389_s29 + $0x1d90] sm:$0xff]  ;;  %v13832_v26 = vcombine.high %v1124_v17, %v1132_v18  ;;  %v13831_v34 = vcombine.low %v1124_v17, %v1132_v18 }
 0x245   : > { %10237 = vmatpush1.bf16.msra.mxu0 %v13671_v36  ;;  %10278 = vmatpush1.bf16.msra.mxu1 %v13927_v37  ;;  %v1388_v20 = vld [vmem:[%s15389_s29 + $0x1dd0] sm:$0xff] }
 0x246   : > { %10238 = vmatprep.subr.bf16.mxu0 %v13656_v38  ;;  %10279 = vmatprep.subr.bf16.mxu1 %v13912_v39  ;;  %v14088_v27 = vcombine.high %v1380_v19, %v1388_v20  ;;  %v1108_v28 = vld [vmem:[%s15389_s29 + $0x1510] sm:$0xff]  ;;  %v14087_v35 = vcombine.low %v1380_v19, %v1388_v20 }
 0x247   : > { %v1116_v29 = vld [vmem:[%s15389_s29 + $0x1550] sm:$0xff] }
 0x248   : > { %v1364_v31 = vld [vmem:[%s15389_s29 + $0x1d10] sm:$0xff]  ;;  %v13816_v36 = vcombine.high %v1108_v28, %v1116_v29  ;;  %v13815_v11 = vcombine.low %v1108_v28, %v1116_v29 }
 0x249   : > { %10239 = vmatpush1.bf16.msra.mxu0 %v13655_v43  ;;  %10280 = vmatpush1.bf16.msra.mxu1 %v13911_v45  ;;  %v1372_v32 = vld [vmem:[%s15389_s29 + $0x1d50] sm:$0xff] }
 0x24a   : > { %10240 = vmatprep.subr.bf16.mxu0 %v13896_v46  ;;  %10281 = vmatprep.subr.bf16.mxu1 %v14152_v47  ;;  %v14072_v37 = vcombine.high %v1364_v31, %v1372_v32  ;;  %v1092_v38 = vld [vmem:[%s15389_s29 + $0x1490] sm:$0xff]  ;;  %v14071_v52 = vcombine.low %v1364_v31, %v1372_v32 }
 0x24b   : > { %v1100_v39 = vld [vmem:[%s15389_s29 + $0x14d0] sm:$0xff] }
 0x24c   : > { %v1348_v40 = vld [vmem:[%s15389_s29 + $0x1c90] sm:$0xff]  ;;  %v13800_v43 = vcombine.high %v1092_v38, %v1100_v39  ;;  %v13799_v58 = vcombine.low %v1092_v38, %v1100_v39 }
 0x24d   : > { %10241 = vmatpush2.bf16.msra.mxu0 %v13895_v55  ;;  %10282 = vmatpush2.bf16.msra.mxu1 %v14151_v53  ;;  %v1356_v42 = vld [vmem:[%s15389_s29 + $0x1cd0] sm:$0xff] }
 0x24e   : > { %10242 = vmatprep.subr.bf16.mxu0 %v13880_v54  ;;  %10283 = vmatprep.subr.bf16.mxu1 %v14136_v57  ;;  %v14056_v45 = vcombine.high %v1348_v40, %v1356_v42  ;;  %v1076_v46 = vld [vmem:[%s15389_s29 + $0x1410] sm:$0xff]  ;;  %v14055_v51 = vcombine.low %v1348_v40, %v1356_v42 }
 0x24f   : > { %v1084_v47 = vld [vmem:[%s15389_s29 + $0x1450] sm:$0xff] }
 0x250   : > { %v1332_v50 = vld [vmem:[%s15389_s29 + $0x1c10] sm:$0xff]  ;;  %v13784_v55 = vcombine.high %v1076_v46, %v1084_v47  ;;  %v13783_v63 = vcombine.low %v1076_v46, %v1084_v47 }
 0x251   : > { %10243 = vmatpush2.bf16.msra.mxu0 %v13879_v1  ;;  %10284 = vmatpush2.bf16.msra.mxu1 %v14135_v2  ;;  %v1340_v21 = vld [vmem:[%s15389_s29 + $0x1c50] sm:$0xff] }
 0x252   : > { %10244 = vmatprep.subr.bf16.mxu0 %v13864_v3  ;;  %10285 = vmatprep.subr.bf16.mxu1 %v14120_v5  ;;  %v14040_v53 = vcombine.high %v1332_v50, %v1340_v21  ;;  %v1572_v54 = vld [vmem:[%s15389_s29 + $0x2390] sm:$0xff]  ;;  %v14039_v62 = vcombine.low %v1332_v50, %v1340_v21 }
 0x253   : > { %v1580_v57 = vld [vmem:[%s15389_s29 + $0x23d0] sm:$0xff] }
 0x254   : > { %v1828_v60 = vld [vmem:[%s15389_s29 + $0x2b90] sm:$0xff]  ;;  %v14280_v1 = vcombine.high %v1572_v54, %v1580_v57  ;;  %v14279_v8 = vcombine.low %v1572_v54, %v1580_v57 }
 0x255   : > { %10245 = vmatpush2.bf16.msra.mxu0 %v13863_v10  ;;  %10286 = vmatpush2.bf16.msra.mxu1 %v14119_v13  ;;  %v1836_v61 = vld [vmem:[%s15389_s29 + $0x2bd0] sm:$0xff] }
 0x256   : > { %10246 = vmatprep.subr.bf16.mxu0 %v13848_v14  ;;  %10287 = vmatprep.subr.bf16.mxu1 %v14104_v16  ;;  %v14536_v2 = vcombine.high %v1828_v60, %v1836_v61  ;;  %v1556_v3 = vld [vmem:[%s15389_s29 + $0x2310] sm:$0xff]  ;;  %v14535_v9 = vcombine.low %v1828_v60, %v1836_v61 }
 0x257   : > { %v1564_v5 = vld [vmem:[%s15389_s29 + $0x2350] sm:$0xff] }
 0x258   : > { %v1812_v6 = vld [vmem:[%s15389_s29 + $0x2b10] sm:$0xff]  ;;  %v14264_v10 = vcombine.high %v1556_v3, %v1564_v5 }
 0x259   : > { %10247 = vmatpush2.bf16.msra.mxu0 %v13847_v24  ;;  %10288 = vmatpush2.bf16.msra.mxu1 %v14103_v25  ;;  %v1820_v7 = vld [vmem:[%s15389_s29 + $0x2b50] sm:$0xff]  ;;  %v14263_v24 = vcombine.low %v1556_v3, %v1564_v5 }
 0x25a   : > { %10248 = vmatprep.subr.bf16.mxu0 %v13832_v26  ;;  %10289 = vmatprep.subr.bf16.mxu1 %v14088_v27  ;;  %v14520_v13 = vcombine.high %v1812_v6, %v1820_v7  ;;  %v1540_v14 = vld [vmem:[%s15389_s29 + $0x2290] sm:$0xff]  ;;  %v14519_v26 = vcombine.low %v1812_v6, %v1820_v7 }
 0x25b   : > { %v1548_v16 = vld [vmem:[%s15389_s29 + $0x22d0] sm:$0xff] }
 0x25c   : > { %v1796_v18 = vld [vmem:[%s15389_s29 + $0x2a90] sm:$0xff]  ;;  %v14248_v27 = vcombine.high %v1540_v14, %v1548_v16  ;;  %v14247_v38 = vcombine.low %v1540_v14, %v1548_v16 }
 0x25d   : > { %10249 = vmatpush2.bf16.msra.mxu0 %v13831_v34  ;;  %10290 = vmatpush2.bf16.msra.mxu1 %v14087_v35  ;;  %v1804_v19 = vld [vmem:[%s15389_s29 + $0x2ad0] sm:$0xff] }
 0x25e   : > { %10250 = vmatprep.subr.bf16.mxu0 %v13816_v36  ;;  %10291 = vmatprep.subr.bf16.mxu1 %v14072_v37  ;;  %v14504_v29 = vcombine.high %v1796_v18, %v1804_v19  ;;  %v1524_v31 = vld [vmem:[%s15389_s29 + $0x2210] sm:$0xff]  ;;  %v14503_v40 = vcombine.low %v1796_v18, %v1804_v19 }
 0x25f   : > { %v1532_v32 = vld [vmem:[%s15389_s29 + $0x2250] sm:$0xff] }
 0x260   : > { %v1780_v35 = vld [vmem:[%s15389_s29 + $0x2a10] sm:$0xff]  ;;  %v14232_v42 = vcombine.high %v1524_v31, %v1532_v32  ;;  %v14231_v50 = vcombine.low %v1524_v31, %v1532_v32 }
 0x261   : > { %10251 = vmatpush2.bf16.msra.mxu0 %v13815_v11  ;;  %10292 = vmatpush2.bf16.msra.mxu1 %v14071_v52  ;;  %v1788_v36 = vld [vmem:[%s15389_s29 + $0x2a50] sm:$0xff] }
 0x262   : > { %10252 = vmatprep.subr.bf16.mxu0 %v13800_v43  ;;  %10293 = vmatprep.subr.bf16.mxu1 %v14056_v45  ;;  %v14488_v52 = vcombine.high %v1780_v35, %v1788_v36  ;;  %v1508_v43 = vld [vmem:[%s15389_s29 + $0x2190] sm:$0xff]  ;;  %v14487_v21 = vcombine.low %v1780_v35, %v1788_v36 }
 0x263   : > { %v1516_v45 = vld [vmem:[%s15389_s29 + $0x21d0] sm:$0xff] }
 0x264   : > { %v1764_v46 = vld [vmem:[%s15389_s29 + $0x2990] sm:$0xff]  ;;  %v14215_v60 = vcombine.low %v1508_v43, %v1516_v45 }
 0x265   : > { %10253 = vmatpush2.bf16.msra.mxu0 %v13799_v58  ;;  %10294 = vmatpush2.bf16.msra.mxu1 %v14055_v51  ;;  %v1772_v47 = vld [vmem:[%s15389_s29 + $0x29d0] sm:$0xff]  ;;  %v14216_v58 = vcombine.high %v1508_v43, %v1516_v45 }
 0x266   : > { %10254 = vmatprep.subr.bf16.mxu0 %v13784_v55  ;;  %10295 = vmatprep.subr.bf16.mxu1 %v14040_v53  ;;  %v14472_v51 = vcombine.high %v1764_v46, %v1772_v47  ;;  %v1492_v55 = vld [vmem:[%s15389_s29 + $0x2110] sm:$0xff]  ;;  %v14471_v61 = vcombine.low %v1764_v46, %v1772_v47 }
 0x267   : > { %v1500_v53 = vld [vmem:[%s15389_s29 + $0x2150] sm:$0xff] }
 0x268   : > { %v1748_v54 = vld [vmem:[%s15389_s29 + $0x2910] sm:$0xff]  ;;  %v14199_v6 = vcombine.low %v1492_v55, %v1500_v53 }
 0x269   : > { %10255 = vmatpush2.bf16.msra.mxu0 %v13783_v63  ;;  %10296 = vmatpush2.bf16.msra.mxu1 %v14039_v62  ;;  %v1756_v57 = vld [vmem:[%s15389_s29 + $0x2950] sm:$0xff]  ;;  %v14200_v63 = vcombine.high %v1492_v55, %v1500_v53 }
 0x26a   : > { %10306 = vmatprep.subr.bf16.mxu0 %v14280_v1  ;;  %10347 = vmatprep.subr.bf16.mxu1 %v14536_v2  ;;  %v14456_v62 = vcombine.high %v1748_v54, %v1756_v57  ;;  %v1476_v1 = vld [vmem:[%s15389_s29 + $0x2090] sm:$0xff]  ;;  %v14455_v7 = vcombine.low %v1748_v54, %v1756_v57 }
 0x26b   : > { %v1484_v2 = vld [vmem:[%s15389_s29 + $0x20d0] sm:$0xff] }
 0x26c   : > { %v16016_v17 = vpop.f32.mrf.mxu0  ;;  %10257 = vmatmul.mubr.bf16.vlgmr.msra.gmra.mxu0 %v15566_v0  ;;  %v16021_v20 = vpop.f32.mrf.mxu1  ;;  %10298 = vmatmul.mubr.bf16.vlgmr.msra.gmra.mxu1 %v15571_v4  ;;  %v1732_v3 = vld [vmem:[%s15389_s29 + $0x2890] sm:$0xff]  ;;  %v14183_v18 = vcombine.low %v1476_v1, %v1484_v2 }
 0x26d   : > { %10307 = vmatpush1.bf16.msra.mxu0 %v14279_v8  ;;  %10348 = vmatpush1.bf16.msra.mxu1 %v14535_v9  ;;  %v1740_v5 = vld [vmem:[%s15389_s29 + $0x28d0] sm:$0xff]  ;;  %v14184_v8 = vcombine.high %v1476_v1, %v1484_v2 }
 0x26e   : > { %v16024_v25 = vpop.f32.mrf.mxu0  ;;  %10308 = vmatprep.subr.bf16.mxu0 %v14264_v10  ;;  %v16026_v28 = vpop.f32.mrf.mxu1  ;;  %10349 = vmatprep.subr.bf16.mxu1 %v14520_v13  ;;  %v14440_v9 = vcombine.high %v1732_v3, %v1740_v5  ;;  %v1460_v10 = vld [vmem:[%s15389_s29 + $0x2010] sm:$0xff]  ;;  %v14439_v19 = vcombine.low %v1732_v3, %v1740_v5 }
 0x26f   : > { %10338 = vmatprep.mubr.bf16.mxu0 %v15576_v12  ;;  %10379 = vmatprep.mubr.bf16.mxu1 %v15581_v15  ;;  %v1468_v13 = vld [vmem:[%s15389_s29 + $0x2050] sm:$0xff] }
 0x270   : > { %v10016_v34 = vpop.f32.mrf.mxu0  ;;  %v10057_v37 = vpop.f32.mrf.mxu1  ;;  %v1716_v14 = vld [vmem:[%s15389_s29 + $0x2810] sm:$0xff] }
 0x271   : > { %10309 = vmatpush1.bf16.msra.mxu0 %v14263_v24  ;;  %10350 = vmatpush1.bf16.msra.mxu1 %v14519_v26  ;;  %v1724_v16 = vld [vmem:[%s15389_s29 + $0x2850] sm:$0xff]  ;;  %v14168_v24 = vcombine.high %v1460_v10, %v1468_v13  ;;  %v14167_v34 = vcombine.low %v1460_v10, %v1468_v13 }
 0x272   : > { %v10017_v39 = vpop.f32.mrf.mxu0  ;;  %10310 = vmatprep.subr.bf16.mxu0 %v14248_v27  ;;  %v10058_v11 = vpop.f32.mrf.mxu1  ;;  %10351 = vmatprep.subr.bf16.mxu1 %v14504_v29  ;;  %v14424_v26 = vcombine.high %v1716_v14, %v1724_v16  ;;  %v1700_v27 = vld [vmem:[%s15389_s29 + $0x2790] sm:$0xff]  ;;  %v14423_v35 = vcombine.low %v1716_v14, %v1724_v16 }
 0x273   : > { %v1708_v29 = vld [vmem:[%s15389_s29 + $0x27d0] sm:$0xff] }
 0x274   : > { %v1956_v31 = vld [vmem:[%s15389_s29 + $0x2f90] sm:$0xff]  ;;  %v14408_v36 = vcombine.high %v1700_v27, %v1708_v29  ;;  %v14407_v11 = vcombine.low %v1700_v27, %v1708_v29 }
 0x275   : > { %10311 = vmatpush1.bf16.msra.mxu0 %v14247_v38  ;;  %10352 = vmatpush1.bf16.msra.mxu1 %v14503_v40  ;;  %v1964_v32 = vld [vmem:[%s15389_s29 + $0x2fd0] sm:$0xff] }
 0x276   : > { %10312 = vmatprep.subr.bf16.mxu0 %v14232_v42  ;;  %10353 = vmatprep.subr.bf16.mxu1 %v14488_v52  ;;  %v14664_v37 = vcombine.high %v1956_v31, %v1964_v32  ;;  %v1684_v38 = vld [vmem:[%s15389_s29 + $0x2710] sm:$0xff]  ;;  %v14663_v52 = vcombine.low %v1956_v31, %v1964_v32 }
 0x277   : > { %v1692_v39 = vld [vmem:[%s15389_s29 + $0x2750] sm:$0xff] }
 0x278   : > { %v1940_v40 = vld [vmem:[%s15389_s29 + $0x2f10] sm:$0xff]  ;;  %v14392_v43 = vcombine.high %v1684_v38, %v1692_v39 }
 0x279   : > { %10313 = vmatpush1.bf16.msra.mxu0 %v14231_v50  ;;  %10354 = vmatpush1.bf16.msra.mxu1 %v14487_v21  ;;  %v1948_v42 = vld [vmem:[%s15389_s29 + $0x2f50] sm:$0xff] }
 0x27a   : > { %10314 = vmatprep.subr.bf16.mxu0 %v14216_v58  ;;  %10355 = vmatprep.subr.bf16.mxu1 %v14472_v51  ;;  %v14648_v45 = vcombine.high %v1940_v40, %v1948_v42  ;;  %v1668_v46 = vld [vmem:[%s15389_s29 + $0x2690] sm:$0xff]  ;;  %v14391_v58 = vcombine.low %v1684_v38, %v1692_v39  ;;  %v14647_v51 = vcombine.low %v1940_v40, %v1948_v42 }
 0x27b   : > { %v1676_v47 = vld [vmem:[%s15389_s29 + $0x26d0] sm:$0xff] }
 0x27c   : > { %v1924_v50 = vld [vmem:[%s15389_s29 + $0x2e90] sm:$0xff]  ;;  %v14376_v55 = vcombine.high %v1668_v46, %v1676_v47 }
 0x27d   : > { %10315 = vmatpush1.bf16.msra.mxu0 %v14215_v60  ;;  %10356 = vmatpush1.bf16.msra.mxu1 %v14471_v61  ;;  %v1932_v21 = vld [vmem:[%s15389_s29 + $0x2ed0] sm:$0xff] }
 0x27e   : > { %10316 = vmatprep.subr.bf16.mxu0 %v14200_v63  ;;  %10357 = vmatprep.subr.bf16.mxu1 %v14456_v62  ;;  %v14632_v53 = vcombine.high %v1924_v50, %v1932_v21  ;;  %v1652_v54 = vld [vmem:[%s15389_s29 + $0x2610] sm:$0xff]  ;;  %v14375_v63 = vcombine.low %v1668_v46, %v1676_v47  ;;  %v14631_v62 = vcombine.low %v1924_v50, %v1932_v21  ;;  %v549_v50 = vld [vmem:[%s15389_s29 + $0x398] sm:$0xff] }
 0x27f   : > { %v1660_v57 = vld [vmem:[%s15389_s29 + $0x2650] sm:$0xff]  ;;  %v557_v21 = vld [vmem:[%s15389_s29 + $0x3d8] sm:$0xff] }
 0x280   : > { %v1908_v60 = vld [vmem:[%s15389_s29 + $0x2e10] sm:$0xff]  ;;  %v14360_v1 = vcombine.high %v1652_v54, %v1660_v57 }
 0x281   : > { %10317 = vmatpush1.bf16.msra.mxu0 %v14199_v6  ;;  %10358 = vmatpush1.bf16.msra.mxu1 %v14455_v7  ;;  %v1916_v61 = vld [vmem:[%s15389_s29 + $0x2e50] sm:$0xff] }
 0x282   : > { %10318 = vmatprep.subr.bf16.mxu0 %v14184_v8  ;;  %10359 = vmatprep.subr.bf16.mxu1 %v14440_v9  ;;  %v14616_v2 = vcombine.high %v1908_v60, %v1916_v61  ;;  %v1636_v3 = vld [vmem:[%s15389_s29 + $0x2590] sm:$0xff]  ;;  %v14359_v8 = vcombine.low %v1652_v54, %v1660_v57  ;;  %v14615_v9 = vcombine.low %v1908_v60, %v1916_v61  ;;  %v533_v61 = vld [vmem:[%s15389_s29 + $0x318] sm:$0xff] }
 0x283   : > { %v1644_v5 = vld [vmem:[%s15389_s29 + $0x25d0] sm:$0xff]  ;;  %v13258_v54 = vcombine.high %v549_v50, %v557_v21  ;;  %v10013_v57 = vadd.f32 %v16016_v17, %v15948_v41 }
 0x284   : > { %v1892_v6 = vld [vmem:[%s15389_s29 + $0x2d90] sm:$0xff]  ;;  %v14344_v10 = vcombine.high %v1636_v3, %v1644_v5 }
 0x285   : > { %10319 = vmatpush1.bf16.msra.mxu0 %v14183_v18  ;;  %10360 = vmatpush1.bf16.msra.mxu1 %v14439_v19  ;;  %v1900_v7 = vld [vmem:[%s15389_s29 + $0x2dd0] sm:$0xff]  ;;  %v10054_v41 = vadd.f32 %v16021_v20, %v10013_v57  ;;  %v420_v20 = vld [vmem:[#allocation2 + $0x58] sm:$0xff] }
 0x286   : > { %10320 = vmatprep.subr.bf16.mxu0 %v14168_v24  ;;  %10361 = vmatprep.subr.bf16.mxu1 %v14424_v26  ;;  %v14600_v13 = vcombine.high %v1892_v6, %v1900_v7  ;;  %v1620_v14 = vld [vmem:[%s15389_s29 + $0x2510] sm:$0xff]  ;;  %v14343_v24 = vcombine.low %v1636_v3, %v1644_v5  ;;  %v14599_v26 = vcombine.low %v1892_v6, %v1900_v7  ;;  %v517_v7 = vld [vmem:[%s15389_s29 + $0x298] sm:$0xff] }
 0x287   : > { %v1628_v16 = vld [vmem:[%s15389_s29 + $0x2550] sm:$0xff]  ;;  %v13257_v3 = vcombine.low %v549_v50, %v557_v21  ;;  %v485_v50 = vld [vmem:[%s15389_s29 + $0x198] sm:$0xff] }
 0x288   : > { %v1876_v18 = vld [vmem:[%s15389_s29 + $0x2d10] sm:$0xff]  ;;  %v14328_v27 = vcombine.high %v1620_v14, %v1628_v16  ;;  %v493_v21 = vld [vmem:[%s15389_s29 + $0x1d8] sm:$0xff] }
 0x289   : > { %10321 = vmatpush1.bf16.msra.mxu0 %v14167_v34  ;;  %10362 = vmatpush1.bf16.msra.mxu1 %v14423_v35  ;;  %v1884_v19 = vld [vmem:[%s15389_s29 + $0x2d50] sm:$0xff] }
 0x28a   : > { %10322 = vmatprep.subr.bf16.mxu0 %v14408_v36  ;;  %10363 = vmatprep.subr.bf16.mxu1 %v14664_v37  ;;  %v14584_v29 = vcombine.high %v1876_v18, %v1884_v19  ;;  %v1604_v31 = vld [vmem:[%s15389_s29 + $0x2490] sm:$0xff]  ;;  %v14327_v36 = vcombine.low %v1620_v14, %v1628_v16  ;;  %v14583_v37 = vcombine.low %v1876_v18, %v1884_v19 }
 0x28b   : > { %v1612_v32 = vld [vmem:[%s15389_s29 + $0x24d0] sm:$0xff] }
 0x28c   : > { %v1860_v34 = vld [vmem:[%s15389_s29 + $0x2c90] sm:$0xff]  ;;  %v14312_v38 = vcombine.high %v1604_v31, %v1612_v32 }
 0x28d   : > { %10323 = vmatpush2.bf16.msra.mxu0 %v14407_v11  ;;  %10364 = vmatpush2.bf16.msra.mxu1 %v14663_v52  ;;  %v1868_v35 = vld [vmem:[%s15389_s29 + $0x2cd0] sm:$0xff] }
 0x28e   : > { %10324 = vmatprep.subr.bf16.mxu0 %v14392_v43  ;;  %10365 = vmatprep.subr.bf16.mxu1 %v14648_v45  ;;  %v14568_v39 = vcombine.high %v1860_v34, %v1868_v35  ;;  %v1588_v40 = vld [vmem:[%s15389_s29 + $0x2410] sm:$0xff]  ;;  %v14311_v43 = vcombine.low %v1604_v31, %v1612_v32  ;;  %v14567_v45 = vcombine.low %v1860_v34, %v1868_v35  ;;  %v501_v31 = vld [vmem:[%s15389_s29 + $0x218] sm:$0xff] }
 0x28f   : > { %v1596_v42 = vld [vmem:[%s15389_s29 + $0x2450] sm:$0xff]  ;;  %v509_v32 = vld [vmem:[%s15389_s29 + $0x258] sm:$0xff] }
 0x290   : > { %v1844_v11 = vld [vmem:[%s15389_s29 + $0x2c10] sm:$0xff]  ;;  %v14296_v46 = vcombine.high %v1588_v40, %v1596_v42  ;;  %v421_v34 = vld [vmem:[#allocation2 + $0x18] sm:$0xff] }
 0x291   : > { %10325 = vmatpush2.bf16.msra.mxu0 %v14391_v58  ;;  %10366 = vmatpush2.bf16.msra.mxu1 %v14647_v51  ;;  %v1852_v52 = vld [vmem:[%s15389_s29 + $0x2c50] sm:$0xff]  ;;  %v805_v58 = vld [vmem:[%s15389_s29 + $0xb98] sm:$0xff] }
 0x292   : > { %10326 = vmatprep.subr.bf16.mxu0 %v14376_v55  ;;  %10367 = vmatprep.subr.bf16.mxu1 %v14632_v53  ;;  %v14552_v47 = vcombine.high %v1844_v11, %v1852_v52  ;;  %v813_v51 = vld [vmem:[%s15389_s29 + $0xbd8] sm:$0xff]  ;;  %v14295_v55 = vcombine.low %v1588_v40, %v1596_v42  ;;  %v14551_v53 = vcombine.low %v1844_v11, %v1852_v52 }
 0x293   : > { %v13514_v60 = vcombine.high %v805_v58, %v813_v51  ;;  %v13513_v5 = vcombine.low %v805_v58, %v813_v51  ;;  %v741_v58 = vld [vmem:[%s15389_s29 + $0x998] sm:$0xff] }
 0x294   : > { %v749_v51 = vld [vmem:[%s15389_s29 + $0x9d8] sm:$0xff] }
 0x295   : > { %10327 = vmatpush2.bf16.msra.mxu0 %v14375_v63  ;;  %10368 = vmatpush2.bf16.msra.mxu1 %v14631_v62  ;;  %v541_v63 = vld [vmem:[%s15389_s29 + $0x358] sm:$0xff]  ;;  %v13450_v57 = vcombine.high %v741_v58, %v749_v51 }
 0x296   : > { %10328 = vmatprep.subr.bf16.mxu0 %v14360_v1  ;;  %10369 = vmatprep.subr.bf16.mxu1 %v14616_v2  ;;  %v789_v62 = vld [vmem:[%s15389_s29 + $0xb18] sm:$0xff]  ;;  %v10015_v2 = vadd.f32 %v16024_v25, %v15953_v49  ;;  %v13242_v6 = vcombine.high %v533_v61, %v541_v63  ;;  %v13241_v16 = vcombine.low %v533_v61, %v541_v63 }
 0x297   : > { %v797_v1 = vld [vmem:[%s15389_s29 + $0xb58] sm:$0xff] }
 0x298   : > { %v13498_v17 = vcombine.high %v789_v62, %v797_v1  ;;  %v10056_v14 = vadd.f32 %v16026_v28, %v10015_v2  ;;  %v13497_v19 = vcombine.low %v789_v62, %v797_v1  ;;  %v477_v61 = vld [vmem:[%s15389_s29 + $0x158] sm:$0xff]  ;;  %v13193_v1 = vcombine.low %v485_v50, %v493_v21 }
 0x299   : > { %10329 = vmatpush2.bf16.msra.mxu0 %v14359_v8  ;;  %10370 = vmatpush2.bf16.msra.mxu1 %v14615_v9  ;;  %v525_v8 = vld [vmem:[%s15389_s29 + $0x2d8] sm:$0xff]  ;;  %v13449_v2 = vcombine.low %v741_v58, %v749_v51 }
 0x29a   : > { %10330 = vmatprep.subr.bf16.mxu0 %v14344_v10  ;;  %10371 = vmatprep.subr.bf16.mxu1 %v14600_v13  ;;  %v773_v10 = vld [vmem:[%s15389_s29 + $0xa98] sm:$0xff]  ;;  %v13225_v42 = vcombine.low %v517_v7, %v525_v8 }
 0x29b   : > { %v781_v13 = vld [vmem:[%s15389_s29 + $0xad8] sm:$0xff] }
 0x29c   : > { %v13482_v28 = vcombine.high %v773_v10, %v781_v13  ;;  %v13481_v52 = vcombine.low %v773_v10, %v781_v13  ;;  %v725_v63 = vld [vmem:[%s15389_s29 + $0x918] sm:$0xff] }
 0x29d   : > { %10331 = vmatpush2.bf16.msra.mxu0 %v14343_v24  ;;  %10372 = vmatpush2.bf16.msra.mxu1 %v14599_v26  ;;  %v13226_v24 = vcombine.high %v517_v7, %v525_v8  ;;  %v733_v62 = vld [vmem:[%s15389_s29 + $0x958] sm:$0xff] }
 0x29e   : > { %10332 = vmatprep.subr.bf16.mxu0 %v14328_v27  ;;  %10373 = vmatprep.subr.bf16.mxu1 %v14584_v29  ;;  %v717_v7 = vld [vmem:[%s15389_s29 + $0x8d8] sm:$0xff] }
 0x2a1   : > { %10333 = vmatpush2.bf16.msra.mxu0 %v14327_v36  ;;  %10374 = vmatpush2.bf16.msra.mxu1 %v14583_v37  ;;  %v757_v36 = vld [vmem:[%s15389_s29 + $0xa18] sm:$0xff] }
 0x2a2   : > { %10334 = vmatprep.subr.bf16.mxu0 %v14312_v38  ;;  %10375 = vmatprep.subr.bf16.mxu1 %v14568_v39  ;;  %v765_v37 = vld [vmem:[%s15389_s29 + $0xa58] sm:$0xff] }
 0x2a5   : > { %10335 = vmatpush2.bf16.msra.mxu0 %v14311_v43  ;;  %10376 = vmatpush2.bf16.msra.mxu1 %v14567_v45  ;;  %v13210_v43 = vcombine.high %v501_v31, %v509_v32 }
 0x2a6   : > { %10336 = vmatprep.subr.bf16.mxu0 %v14296_v46  ;;  %10377 = vmatprep.subr.bf16.mxu1 %v14552_v47  ;;  %v13466_v47 = vcombine.high %v757_v36, %v765_v37 }
 0x2a9   : > { %10337 = vmatpush2.bf16.msra.mxu0 %v14295_v55  ;;  %10378 = vmatpush2.bf16.msra.mxu1 %v14551_v53  ;;  %v13209_v55 = vcombine.low %v501_v31, %v509_v32  ;;  %v13465_v53 = vcombine.low %v757_v36, %v765_v37  ;;  %v661_v36 = vld [vmem:[%s15389_s29 + $0x718] sm:$0xff] }
 0x2aa   : > { %10388 = vmatprep.subr.bf16.mxu0 %v13258_v54  ;;  %10429 = vmatprep.subr.bf16.mxu1 %v13514_v60  ;;  %v13194_v54 = vcombine.high %v485_v50, %v493_v21  ;;  %v469_v60 = vld [vmem:[%s15389_s29 + $0x118] sm:$0xff] }
 0x2ab   : > { %v13177_v8 = vcombine.low %v469_v60, %v477_v61  ;;  %v669_v37 = vld [vmem:[%s15389_s29 + $0x758] sm:$0xff] }
 0x2ac   : > { %v10094_v9 = vpop.f32.mrf.mxu0  ;;  %10339 = vmatmul.mubr.bf16.vlgmr.msra.gmra.mxu0 %v15646_v30  ;;  %v10135_v25 = vpop.f32.mrf.mxu1  ;;  %10380 = vmatmul.mubr.bf16.vlgmr.msra.gmra.mxu1 %v15650_v33  ;;  %v13369_v50 = vcombine.low %v661_v36, %v669_v37 }
 0x2ad   : > { %v10095_v49 = vadd.f32 %v10094_v9, %v10054_v41  ;;  %10389 = vmatpush1.bf16.msra.mxu0 %v13257_v3  ;;  %10430 = vmatpush1.bf16.msra.mxu1 %v13513_v5  ;;  %v13178_v3 = vcombine.high %v469_v60, %v477_v61  ;;  %v13434_v5 = vcombine.high %v725_v63, %v733_v62  ;;  %v461_v41 = vld [vmem:[%s15389_s29 + $0xd8] sm:$0xff] }
 0x2ae   : > { %v10096_v18 = vpop.f32.mrf.mxu0  ;;  %10390 = vmatprep.subr.bf16.mxu0 %v13242_v6  ;;  %v10137_v29 = vpop.f32.mrf.mxu1  ;;  %10431 = vmatprep.subr.bf16.mxu1 %v13498_v17  ;;  %v453_v6 = vld [vmem:[%s15389_s29 + $0x98] sm:$0xff]  ;;  %v13433_v9 = vcombine.low %v725_v63, %v733_v62 }
 0x2af   : > { %v10136_v26 = vadd.f32 %v10135_v25, %v10095_v49  ;;  %v10097_v27 = vadd.f32 %v10096_v18, %v10056_v14  ;;  %10420 = vmatprep.mubr.bf16.mxu0 %v15438_v22  ;;  %10461 = vmatprep.mubr.bf16.mxu1 %v15440_v23  ;;  %v709_v17 = vld [vmem:[%s15389_s29 + $0x898] sm:$0xff]  ;;  %v13162_v10 = vcombine.high %v453_v6, %v461_v41 }
 0x2b0   : > { %v10098_v35 = vpop.f32.mrf.mxu0  ;;  %v10139_v40 = vpop.f32.mrf.mxu1  ;;  %v13418_v13 = vcombine.high %v709_v17, %v717_v7  ;;  %v437_v14 = vld [vmem:[%s15389_s29 + $0x18] sm:$0xff]  ;;  %v13417_v18 = vcombine.low %v709_v17, %v717_v7 }
 0x2b1   : > { %v11620_v38 = vadd.f32 %v10136_v26, %v420_v20  ;;  %v10138_v39 = vadd.f32 %v10137_v29, %v10097_v27  ;;  %10391 = vmatpush1.bf16.msra.mxu0 %v13241_v16  ;;  %10432 = vmatpush1.bf16.msra.mxu1 %v13497_v19  ;;  %v445_v49 = vld [vmem:[%s15389_s29 + $0x58] sm:$0xff]  ;;  %v13161_v20 = vcombine.low %v453_v6, %v461_v41 }
 0x2b2   : > { %v10099_v11 = vpop.f32.mrf.mxu0  ;;  %10392 = vmatprep.subr.bf16.mxu0 %v13226_v24  ;;  %v10140_v46 = vpop.f32.mrf.mxu1  ;;  %10433 = vmatprep.subr.bf16.mxu1 %v13482_v28  ;;  %v693_v25 = vld [vmem:[%s15389_s29 + $0x818] sm:$0xff]  ;;  %v13146_v19 = vcombine.high %v437_v14, %v445_v49  ;;  %v13145_v31 = vcombine.low %v437_v14, %v445_v49 }
 0x2b3   : > { %11636 = vst [vmem:[#allocation2 + $0x58] sm:$0xff] %v11620_v38  ;;  %v11621_v45 = vadd.f32 %v10138_v39, %v421_v34  ;;  %v701_v16 = vld [vmem:[%s15389_s29 + $0x858] sm:$0xff]  ;;  %v13370_v11 = vcombine.high %v661_v36, %v669_v37 }
 0x2b4   : > { %v13402_v24 = vcombine.high %v693_v25, %v701_v16  ;;  %v677_v26 = vld [vmem:[%s15389_s29 + $0x798] sm:$0xff]  ;;  %v13401_v32 = vcombine.low %v693_v25, %v701_v16 }
 0x2b5   : > { %11637 = vst [vmem:[#allocation2 + $0x18] sm:$0xff] %v11621_v45  ;;  %10393 = vmatpush1.bf16.msra.mxu0 %v13225_v42  ;;  %10434 = vmatpush1.bf16.msra.mxu1 %v13481_v52  ;;  %v685_v27 = vld [vmem:[%s15389_s29 + $0x7d8] sm:$0xff] }
 0x2b6   : > { %10394 = vmatprep.subr.bf16.mxu0 %v13210_v43  ;;  %10435 = vmatprep.subr.bf16.mxu1 %v13466_v47  ;;  %v933_v29 = vld [vmem:[%s15389_s29 + $0xf98] sm:$0xff]  ;;  %v13386_v34 = vcombine.high %v677_v26, %v685_v27  ;;  %v13385_v40 = vcombine.low %v677_v26, %v685_v27 }
 0x2b7   : > { %v941_v28 = vld [vmem:[%s15389_s29 + $0xfd8] sm:$0xff] }
 0x2b8   : > { %v13642_v35 = vcombine.high %v933_v29, %v941_v28  ;;  %v917_v38 = vld [vmem:[%s15389_s29 + $0xf18] sm:$0xff]  ;;  %v13641_v42 = vcombine.low %v933_v29, %v941_v28 }
 0x2b9   : > { %10395 = vmatpush1.bf16.msra.mxu0 %v13209_v55  ;;  %10436 = vmatpush1.bf16.msra.mxu1 %v13465_v53  ;;  %v925_v39 = vld [vmem:[%s15389_s29 + $0xf58] sm:$0xff] }
 0x2ba   : > { %10396 = vmatprep.subr.bf16.mxu0 %v13194_v54  ;;  %10437 = vmatprep.subr.bf16.mxu1 %v13450_v57  ;;  %v13626_v52 = vcombine.high %v917_v38, %v925_v39  ;;  %v645_v43 = vld [vmem:[%s15389_s29 + $0x698] sm:$0xff]  ;;  %v13625_v21 = vcombine.low %v917_v38, %v925_v39 }
 0x2bb   : > { %v653_v45 = vld [vmem:[%s15389_s29 + $0x6d8] sm:$0xff] }
 0x2bc   : > { %v901_v46 = vld [vmem:[%s15389_s29 + $0xe98] sm:$0xff]  ;;  %v13354_v58 = vcombine.high %v645_v43, %v653_v45  ;;  %v13353_v60 = vcombine.low %v645_v43, %v653_v45 }
 0x2bd   : > { %10397 = vmatpush1.bf16.msra.mxu0 %v13193_v1  ;;  %10438 = vmatpush1.bf16.msra.mxu1 %v13449_v2  ;;  %v909_v47 = vld [vmem:[%s15389_s29 + $0xed8] sm:$0xff] }
 0x2be   : > { %10398 = vmatprep.subr.bf16.mxu0 %v13178_v3  ;;  %10439 = vmatprep.subr.bf16.mxu1 %v13434_v5  ;;  %v13610_v51 = vcombine.high %v901_v46, %v909_v47  ;;  %v629_v55 = vld [vmem:[%s15389_s29 + $0x618] sm:$0xff]  ;;  %v13609_v61 = vcombine.low %v901_v46, %v909_v47 }
 0x2bf   : > { %v637_v53 = vld [vmem:[%s15389_s29 + $0x658] sm:$0xff] }
 0x2c0   : > { %v885_v54 = vld [vmem:[%s15389_s29 + $0xe18] sm:$0xff]  ;;  %v13338_v63 = vcombine.high %v629_v55, %v637_v53  ;;  %v13337_v6 = vcombine.low %v629_v55, %v637_v53 }
 0x2c1   : > { %10399 = vmatpush1.bf16.msra.mxu0 %v13177_v8  ;;  %10440 = vmatpush1.bf16.msra.mxu1 %v13433_v9  ;;  %v893_v57 = vld [vmem:[%s15389_s29 + $0xe58] sm:$0xff] }
 0x2c2   : > { %10400 = vmatprep.subr.bf16.mxu0 %v13162_v10  ;;  %10441 = vmatprep.subr.bf16.mxu1 %v13418_v13  ;;  %v13594_v62 = vcombine.high %v885_v54, %v893_v57  ;;  %v613_v1 = vld [vmem:[%s15389_s29 + $0x598] sm:$0xff]  ;;  %v13593_v41 = vcombine.low %v885_v54, %v893_v57 }
 0x2c3   : > { %v621_v2 = vld [vmem:[%s15389_s29 + $0x5d8] sm:$0xff] }
 0x2c4   : > { %v869_v3 = vld [vmem:[%s15389_s29 + $0xd98] sm:$0xff]  ;;  %v13322_v17 = vcombine.high %v613_v1, %v621_v2  ;;  %v13321_v14 = vcombine.low %v613_v1, %v621_v2 }
 0x2c5   : > { %10401 = vmatpush1.bf16.msra.mxu0 %v13161_v20  ;;  %10442 = vmatpush1.bf16.msra.mxu1 %v13417_v18  ;;  %v877_v5 = vld [vmem:[%s15389_s29 + $0xdd8] sm:$0xff] }
 0x2c6   : > { %10402 = vmatprep.subr.bf16.mxu0 %v13146_v19  ;;  %10443 = vmatprep.subr.bf16.mxu1 %v13402_v24  ;;  %v13578_v7 = vcombine.high %v869_v3, %v877_v5  ;;  %v597_v8 = vld [vmem:[%s15389_s29 + $0x518] sm:$0xff]  ;;  %v13577_v49 = vcombine.low %v869_v3, %v877_v5 }
 0x2c7   : > { %v605_v9 = vld [vmem:[%s15389_s29 + $0x558] sm:$0xff] }
 0x2c8   : > { %v853_v10 = vld [vmem:[%s15389_s29 + $0xd18] sm:$0xff]  ;;  %v13306_v25 = vcombine.high %v597_v8, %v605_v9  ;;  %v13305_v26 = vcombine.low %v597_v8, %v605_v9 }
 0x2c9   : > { %10403 = vmatpush1.bf16.msra.mxu0 %v13145_v31  ;;  %10444 = vmatpush1.bf16.msra.mxu1 %v13401_v32  ;;  %v861_v13 = vld [vmem:[%s15389_s29 + $0xd58] sm:$0xff] }
 0x2ca   : > { %10404 = vmatprep.subr.bf16.mxu0 %v13386_v34  ;;  %10445 = vmatprep.subr.bf16.mxu1 %v13642_v35  ;;  %v13562_v16 = vcombine.high %v853_v10, %v861_v13  ;;  %v581_v20 = vld [vmem:[%s15389_s29 + $0x498] sm:$0xff]  ;;  %v13561_v27 = vcombine.low %v853_v10, %v861_v13 }
 0x2cb   : > { %v589_v18 = vld [vmem:[%s15389_s29 + $0x4d8] sm:$0xff] }
 0x2cc   : > { %v837_v19 = vld [vmem:[%s15389_s29 + $0xc98] sm:$0xff]  ;;  %v13290_v29 = vcombine.high %v581_v20, %v589_v18  ;;  %v13289_v36 = vcombine.low %v581_v20, %v589_v18 }
 0x2cd   : > { %10405 = vmatpush2.bf16.msra.mxu0 %v13385_v40  ;;  %10446 = vmatpush2.bf16.msra.mxu1 %v13641_v42  ;;  %v845_v24 = vld [vmem:[%s15389_s29 + $0xcd8] sm:$0xff] }
 0x2ce   : > { %10406 = vmatprep.subr.bf16.mxu0 %v13370_v11  ;;  %10447 = vmatprep.subr.bf16.mxu1 %v13626_v52  ;;  %v13546_v28 = vcombine.high %v837_v19, %v845_v24  ;;  %v565_v31 = vld [vmem:[%s15389_s29 + $0x418] sm:$0xff]  ;;  %v13545_v37 = vcombine.low %v837_v19, %v845_v24 }
 0x2cf   : > { %v573_v32 = vld [vmem:[%s15389_s29 + $0x458] sm:$0xff] }
 0x2d0   : > { %v821_v34 = vld [vmem:[%s15389_s29 + $0xc18] sm:$0xff]  ;;  %v13274_v38 = vcombine.high %v565_v31, %v573_v32  ;;  %v13273_v43 = vcombine.low %v565_v31, %v573_v32 }
 0x2d1   : > { %10407 = vmatpush2.bf16.msra.mxu0 %v13369_v50  ;;  %10448 = vmatpush2.bf16.msra.mxu1 %v13625_v21  ;;  %v829_v35 = vld [vmem:[%s15389_s29 + $0xc58] sm:$0xff] }
 0x2d2   : > { %10408 = vmatprep.subr.bf16.mxu0 %v13354_v58  ;;  %10449 = vmatprep.subr.bf16.mxu1 %v13610_v51  ;;  %v13530_v39 = vcombine.high %v821_v34, %v829_v35  ;;  %v1061_v40 = vld [vmem:[%s15389_s29 + $0x1398] sm:$0xff]  ;;  %v13529_v45 = vcombine.low %v821_v34, %v829_v35 }
 0x2d3   : > { %v1069_v42 = vld [vmem:[%s15389_s29 + $0x13d8] sm:$0xff] }
 0x2d4   : > { %v1317_v11 = vld [vmem:[%s15389_s29 + $0x1b98] sm:$0xff]  ;;  %v13770_v46 = vcombine.high %v1061_v40, %v1069_v42  ;;  %v13769_v55 = vcombine.low %v1061_v40, %v1069_v42 }
 0x2d5   : > { %10409 = vmatpush2.bf16.msra.mxu0 %v13353_v60  ;;  %10450 = vmatpush2.bf16.msra.mxu1 %v13609_v61  ;;  %v1325_v52 = vld [vmem:[%s15389_s29 + $0x1bd8] sm:$0xff] }
 0x2d6   : > { %10410 = vmatprep.subr.bf16.mxu0 %v13338_v63  ;;  %10451 = vmatprep.subr.bf16.mxu1 %v13594_v62  ;;  %v14026_v47 = vcombine.high %v1317_v11, %v1325_v52  ;;  %v1045_v50 = vld [vmem:[%s15389_s29 + $0x1318] sm:$0xff]  ;;  %v14025_v53 = vcombine.low %v1317_v11, %v1325_v52 }
 0x2d7   : > { %v1053_v21 = vld [vmem:[%s15389_s29 + $0x1358] sm:$0xff] }
 0x2d8   : > { %v1301_v58 = vld [vmem:[%s15389_s29 + $0x1b18] sm:$0xff]  ;;  %v13754_v54 = vcombine.high %v1045_v50, %v1053_v21  ;;  %v13753_v3 = vcombine.low %v1045_v50, %v1053_v21 }
 0x2d9   : > { %10411 = vmatpush2.bf16.msra.mxu0 %v13337_v6  ;;  %10452 = vmatpush2.bf16.msra.mxu1 %v13593_v41  ;;  %v1309_v51 = vld [vmem:[%s15389_s29 + $0x1b58] sm:$0xff] }
 0x2da   : > { %10412 = vmatprep.subr.bf16.mxu0 %v13322_v17  ;;  %10453 = vmatprep.subr.bf16.mxu1 %v13578_v7  ;;  %v14010_v57 = vcombine.high %v1301_v58, %v1309_v51  ;;  %v1029_v60 = vld [vmem:[%s15389_s29 + $0x1298] sm:$0xff]  ;;  %v14009_v41 = vcombine.low %v1301_v58, %v1309_v51 }
 0x2db   : > { %v1037_v61 = vld [vmem:[%s15389_s29 + $0x12d8] sm:$0xff] }
 0x2dc   : > { %v1285_v62 = vld [vmem:[%s15389_s29 + $0x1a98] sm:$0xff]  ;;  %v13738_v17 = vcombine.high %v1029_v60, %v1037_v61  ;;  %v13737_v20 = vcombine.low %v1029_v60, %v1037_v61 }
 0x2dd   : > { %10413 = vmatpush2.bf16.msra.mxu0 %v13321_v14  ;;  %10454 = vmatpush2.bf16.msra.mxu1 %v13577_v49  ;;  %v1293_v1 = vld [vmem:[%s15389_s29 + $0x1ad8] sm:$0xff] }
 0x2de   : > { %10414 = vmatprep.subr.bf16.mxu0 %v13306_v25  ;;  %10455 = vmatprep.subr.bf16.mxu1 %v13562_v16  ;;  %v13994_v8 = vcombine.high %v1285_v62, %v1293_v1  ;;  %v1013_v9 = vld [vmem:[%s15389_s29 + $0x1218] sm:$0xff]  ;;  %v13993_v19 = vcombine.low %v1285_v62, %v1293_v1 }
 0x2df   : > { %v1021_v10 = vld [vmem:[%s15389_s29 + $0x1258] sm:$0xff] }
 0x2e0   : > { %v1269_v49 = vld [vmem:[%s15389_s29 + $0x1a18] sm:$0xff]  ;;  %v13722_v24 = vcombine.high %v1013_v9, %v1021_v10  ;;  %v13721_v34 = vcombine.low %v1013_v9, %v1021_v10 }
 0x2e1   : > { %10415 = vmatpush2.bf16.msra.mxu0 %v13305_v26  ;;  %10456 = vmatpush2.bf16.msra.mxu1 %v13561_v27  ;;  %v1277_v25 = vld [vmem:[%s15389_s29 + $0x1a58] sm:$0xff] }
 0x2e2   : > { %10416 = vmatprep.subr.bf16.mxu0 %v13290_v29  ;;  %10457 = vmatprep.subr.bf16.mxu1 %v13546_v28  ;;  %v13978_v27 = vcombine.high %v1269_v49, %v1277_v25  ;;  %v997_v29 = vld [vmem:[%s15389_s29 + $0x1198] sm:$0xff]  ;;  %v13977_v35 = vcombine.low %v1269_v49, %v1277_v25 }
 0x2e3   : > { %v1005_v28 = vld [vmem:[%s15389_s29 + $0x11d8] sm:$0xff] }
 0x2e4   : > { %v1253_v31 = vld [vmem:[%s15389_s29 + $0x1998] sm:$0xff]  ;;  %v13705_v11 = vcombine.low %v997_v29, %v1005_v28 }
 0x2e5   : > { %10417 = vmatpush2.bf16.msra.mxu0 %v13289_v36  ;;  %10458 = vmatpush2.bf16.msra.mxu1 %v13545_v37  ;;  %v1261_v32 = vld [vmem:[%s15389_s29 + $0x19d8] sm:$0xff]  ;;  %v13706_v36 = vcombine.high %v997_v29, %v1005_v28 }
 0x2e6   : > { %10418 = vmatprep.subr.bf16.mxu0 %v13274_v38  ;;  %10459 = vmatprep.subr.bf16.mxu1 %v13530_v39  ;;  %v13962_v37 = vcombine.high %v1253_v31, %v1261_v32  ;;  %v981_v38 = vld [vmem:[%s15389_s29 + $0x1118] sm:$0xff]  ;;  %v13961_v52 = vcombine.low %v1253_v31, %v1261_v32 }
 0x2e7   : > { %v989_v39 = vld [vmem:[%s15389_s29 + $0x1158] sm:$0xff] }
 0x2e8   : > { %v1237_v40 = vld [vmem:[%s15389_s29 + $0x1918] sm:$0xff]  ;;  %v13689_v58 = vcombine.low %v981_v38, %v989_v39 }
 0x2e9   : > { %10419 = vmatpush2.bf16.msra.mxu0 %v13273_v43  ;;  %10460 = vmatpush2.bf16.msra.mxu1 %v13529_v45  ;;  %v1245_v42 = vld [vmem:[%s15389_s29 + $0x1958] sm:$0xff]  ;;  %v13690_v43 = vcombine.high %v981_v38, %v989_v39 }
 0x2ea   : > { %10470 = vmatprep.subr.bf16.mxu0 %v13770_v46  ;;  %10511 = vmatprep.subr.bf16.mxu1 %v14026_v47  ;;  %v13946_v45 = vcombine.high %v1237_v40, %v1245_v42  ;;  %v965_v46 = vld [vmem:[%s15389_s29 + $0x1098] sm:$0xff]  ;;  %v13945_v51 = vcombine.low %v1237_v40, %v1245_v42 }
 0x2eb   : > { %v973_v47 = vld [vmem:[%s15389_s29 + $0x10d8] sm:$0xff] }
 0x2ec   : > { %v10176_v63 = vpop.f32.mrf.mxu0  ;;  %10421 = vmatmul.mubr.bf16.vlgmr.msra.gmra.mxu0 %v15486_v44  ;;  %v10217_v2 = vpop.f32.mrf.mxu1  ;;  %10462 = vmatmul.mubr.bf16.vlgmr.msra.gmra.mxu1 %v15491_v48  ;;  %v1221_v50 = vld [vmem:[%s15389_s29 + $0x1898] sm:$0xff] }
 0x2ed   : > { %10471 = vmatpush1.bf16.msra.mxu0 %v13769_v55  ;;  %v16170_v5 = vadd.f32 %v10217_v2, %v10176_v63  ;;  %10512 = vmatpush1.bf16.msra.mxu1 %v14025_v53  ;;  %v1229_v21 = vld [vmem:[%s15389_s29 + $0x18d8] sm:$0xff]  ;;  %v13674_v55 = vcombine.high %v965_v46, %v973_v47  ;;  %v13673_v63 = vcombine.low %v965_v46, %v973_v47 }
 0x2ee   : > { %v10178_v6 = vpop.f32.mrf.mxu0  ;;  %10472 = vmatprep.subr.bf16.mxu0 %v13754_v54  ;;  %v10219_v7 = vpop.f32.mrf.mxu1  ;;  %10513 = vmatprep.subr.bf16.mxu1 %v14010_v57  ;;  %v13930_v53 = vcombine.high %v1221_v50, %v1229_v21  ;;  %v949_v54 = vld [vmem:[%s15389_s29 + $0x1018] sm:$0xff]  ;;  %v13929_v62 = vcombine.low %v1221_v50, %v1229_v21 }
 0x2ef   : > { %10502 = vmatprep.mubr.bf16.mxu0 %v15496_v56  ;;  %v16175_v13 = vadd.f32 %v10219_v7, %v10178_v6  ;;  %10543 = vmatprep.mubr.bf16.mxu1 %v15501_v59  ;;  %v957_v57 = vld [vmem:[%s15389_s29 + $0x1058] sm:$0xff] }
 0x2f0   : > { %v10180_v14 = vpop.f32.mrf.mxu0  ;;  %v10221_v16 = vpop.f32.mrf.mxu1  ;;  %v1205_v60 = vld [vmem:[%s15389_s29 + $0x1818] sm:$0xff]  ;;  %v13658_v1 = vcombine.high %v949_v54, %v957_v57  ;;  %v13657_v7 = vcombine.low %v949_v54, %v957_v57 }
 0x2f1   : > { %10473 = vmatpush1.bf16.msra.mxu0 %v13753_v3  ;;  %10514 = vmatpush1.bf16.msra.mxu1 %v14009_v41  ;;  %v1213_v61 = vld [vmem:[%s15389_s29 + $0x1858] sm:$0xff] }
 0x2f2   : > { %v10181_v18 = vpop.f32.mrf.mxu0  ;;  %10474 = vmatprep.subr.bf16.mxu0 %v13738_v17  ;;  %v10222_v26 = vpop.f32.mrf.mxu1  ;;  %10515 = vmatprep.subr.bf16.mxu1 %v13994_v8  ;;  %v13914_v2 = vcombine.high %v1205_v60, %v1213_v61  ;;  %v1189_v3 = vld [vmem:[%s15389_s29 + $0x1798] sm:$0xff]  ;;  %v13913_v8 = vcombine.low %v1205_v60, %v1213_v61 }
 0x2f3   : > { %v1197_v6 = vld [vmem:[%s15389_s29 + $0x17d8] sm:$0xff] }
 0x2f4   : > { %v1445_v41 = vld [vmem:[%s15389_s29 + $0x1f98] sm:$0xff]  ;;  %v13898_v9 = vcombine.high %v1189_v3, %v1197_v6 }
 0x2f5   : > { %10475 = vmatpush1.bf16.msra.mxu0 %v13737_v20  ;;  %10516 = vmatpush1.bf16.msra.mxu1 %v13993_v19  ;;  %v1453_v17 = vld [vmem:[%s15389_s29 + $0x1fd8] sm:$0xff]  ;;  %v13897_v20 = vcombine.low %v1189_v3, %v1197_v6 }
 0x2f6   : > { %10476 = vmatprep.subr.bf16.mxu0 %v13722_v24  ;;  %10517 = vmatprep.subr.bf16.mxu1 %v13978_v27  ;;  %v14154_v10 = vcombine.high %v1445_v41, %v1453_v17  ;;  %v1173_v14 = vld [vmem:[%s15389_s29 + $0x1718] sm:$0xff]  ;;  %v14153_v18 = vcombine.low %v1445_v41, %v1453_v17 }
 0x2f7   : > { %v1181_v49 = vld [vmem:[%s15389_s29 + $0x1758] sm:$0xff] }
 0x2f8   : > { %v1429_v25 = vld [vmem:[%s15389_s29 + $0x1f18] sm:$0xff]  ;;  %v13882_v19 = vcombine.high %v1173_v14, %v1181_v49  ;;  %v13881_v31 = vcombine.low %v1173_v14, %v1181_v49 }
 0x2f9   : > { %10477 = vmatpush1.bf16.msra.mxu0 %v13721_v34  ;;  %10518 = vmatpush1.bf16.msra.mxu1 %v13977_v35  ;;  %v1437_v16 = vld [vmem:[%s15389_s29 + $0x1f58] sm:$0xff] }
 0x2fa   : > { %10478 = vmatprep.subr.bf16.mxu0 %v13706_v36  ;;  %10519 = vmatprep.subr.bf16.mxu1 %v13962_v37  ;;  %v14138_v24 = vcombine.high %v1429_v25, %v1437_v16  ;;  %v1157_v26 = vld [vmem:[%s15389_s29 + $0x1698] sm:$0xff]  ;;  %v14137_v32 = vcombine.low %v1429_v25, %v1437_v16 }
 0x2fb   : > { %v1165_v27 = vld [vmem:[%s15389_s29 + $0x16d8] sm:$0xff] }
 0x2fc   : > { %v1413_v29 = vld [vmem:[%s15389_s29 + $0x1e98] sm:$0xff]  ;;  %v13866_v34 = vcombine.high %v1157_v26, %v1165_v27  ;;  %v13865_v40 = vcombine.low %v1157_v26, %v1165_v27 }
 0x2fd   : > { %10479 = vmatpush1.bf16.msra.mxu0 %v13705_v11  ;;  %10520 = vmatpush1.bf16.msra.mxu1 %v13961_v52  ;;  %v1421_v28 = vld [vmem:[%s15389_s29 + $0x1ed8] sm:$0xff] }
 0x2fe   : > { %10480 = vmatprep.subr.bf16.mxu0 %v13690_v43  ;;  %10521 = vmatprep.subr.bf16.mxu1 %v13946_v45  ;;  %v14122_v35 = vcombine.high %v1413_v29, %v1421_v28  ;;  %v1141_v36 = vld [vmem:[%s15389_s29 + $0x1618] sm:$0xff]  ;;  %v14121_v42 = vcombine.low %v1413_v29, %v1421_v28 }
 0x2ff   : > { %v1149_v37 = vld [vmem:[%s15389_s29 + $0x1658] sm:$0xff] }
 0x300   : > { %v1397_v38 = vld [vmem:[%s15389_s29 + $0x1e18] sm:$0xff]  ;;  %v13850_v11 = vcombine.high %v1141_v36, %v1149_v37  ;;  %v13849_v50 = vcombine.low %v1141_v36, %v1149_v37 }
 0x301   : > { %10481 = vmatpush1.bf16.msra.mxu0 %v13689_v58  ;;  %10522 = vmatpush1.bf16.msra.mxu1 %v13945_v51  ;;  %v1405_v39 = vld [vmem:[%s15389_s29 + $0x1e58] sm:$0xff] }
 0x302   : > { %10482 = vmatprep.subr.bf16.mxu0 %v13674_v55  ;;  %10523 = vmatprep.subr.bf16.mxu1 %v13930_v53  ;;  %v14106_v52 = vcombine.high %v1397_v38, %v1405_v39  ;;  %v1125_v43 = vld [vmem:[%s15389_s29 + $0x1598] sm:$0xff]  ;;  %v14105_v21 = vcombine.low %v1397_v38, %v1405_v39 }
 0x303   : > { %v1133_v45 = vld [vmem:[%s15389_s29 + $0x15d8] sm:$0xff] }
 0x304   : > { %v1381_v46 = vld [vmem:[%s15389_s29 + $0x1d98] sm:$0xff]  ;;  %v13834_v58 = vcombine.high %v1125_v43, %v1133_v45  ;;  %v13833_v60 = vcombine.low %v1125_v43, %v1133_v45 }
 0x305   : > { %10483 = vmatpush1.bf16.msra.mxu0 %v13673_v63  ;;  %10524 = vmatpush1.bf16.msra.mxu1 %v13929_v62  ;;  %v1389_v47 = vld [vmem:[%s15389_s29 + $0x1dd8] sm:$0xff] }
 0x306   : > { %10484 = vmatprep.subr.bf16.mxu0 %v13658_v1  ;;  %10525 = vmatprep.subr.bf16.mxu1 %v13914_v2  ;;  %v14090_v51 = vcombine.high %v1381_v46, %v1389_v47  ;;  %v1109_v55 = vld [vmem:[%s15389_s29 + $0x1518] sm:$0xff]  ;;  %v14089_v61 = vcombine.low %v1381_v46, %v1389_v47 }
 0x307   : > { %v1117_v53 = vld [vmem:[%s15389_s29 + $0x1558] sm:$0xff] }
 0x308   : > { %v1365_v54 = vld [vmem:[%s15389_s29 + $0x1d18] sm:$0xff]  ;;  %v13818_v63 = vcombine.high %v1109_v55, %v1117_v53  ;;  %v13817_v41 = vcombine.low %v1109_v55, %v1117_v53 }
 0x309   : > { %10485 = vmatpush1.bf16.msra.mxu0 %v13657_v7  ;;  %10526 = vmatpush1.bf16.msra.mxu1 %v13913_v8  ;;  %v1373_v57 = vld [vmem:[%s15389_s29 + $0x1d58] sm:$0xff] }
 0x30a   : > { %10486 = vmatprep.subr.bf16.mxu0 %v13898_v9  ;;  %10527 = vmatprep.subr.bf16.mxu1 %v14154_v10  ;;  %v14074_v62 = vcombine.high %v1365_v54, %v1373_v57  ;;  %v1093_v1 = vld [vmem:[%s15389_s29 + $0x1498] sm:$0xff]  ;;  %v14073_v17 = vcombine.low %v1365_v54, %v1373_v57 }
 0x30b   : > { %v1101_v2 = vld [vmem:[%s15389_s29 + $0x14d8] sm:$0xff] }
 0x30c   : > { %v1349_v3 = vld [vmem:[%s15389_s29 + $0x1c98] sm:$0xff]  ;;  %v13802_v7 = vcombine.high %v1093_v1, %v1101_v2  ;;  %v13801_v25 = vcombine.low %v1093_v1, %v1101_v2 }
 0x30d   : > { %10487 = vmatpush2.bf16.msra.mxu0 %v13897_v20  ;;  %10528 = vmatpush2.bf16.msra.mxu1 %v14153_v18  ;;  %v1357_v6 = vld [vmem:[%s15389_s29 + $0x1cd8] sm:$0xff] }
 0x30e   : > { %10488 = vmatprep.subr.bf16.mxu0 %v13882_v19  ;;  %10529 = vmatprep.subr.bf16.mxu1 %v14138_v24  ;;  %v14058_v8 = vcombine.high %v1349_v3, %v1357_v6  ;;  %v1077_v9 = vld [vmem:[%s15389_s29 + $0x1418] sm:$0xff]  ;;  %v14057_v16 = vcombine.low %v1349_v3, %v1357_v6 }
 0x30f   : > { %v1085_v10 = vld [vmem:[%s15389_s29 + $0x1458] sm:$0xff] }
 0x310   : > { %v1333_v14 = vld [vmem:[%s15389_s29 + $0x1c18] sm:$0xff]  ;;  %v13786_v20 = vcombine.high %v1077_v9, %v1085_v10  ;;  %v13785_v29 = vcombine.low %v1077_v9, %v1085_v10 }
 0x311   : > { %10489 = vmatpush2.bf16.msra.mxu0 %v13881_v31  ;;  %10530 = vmatpush2.bf16.msra.mxu1 %v14137_v32  ;;  %v1341_v49 = vld [vmem:[%s15389_s29 + $0x1c58] sm:$0xff] }
 0x312   : > { %10490 = vmatprep.subr.bf16.mxu0 %v13866_v34  ;;  %10531 = vmatprep.subr.bf16.mxu1 %v14122_v35  ;;  %v14042_v18 = vcombine.high %v1333_v14, %v1341_v49  ;;  %v1573_v19 = vld [vmem:[%s15389_s29 + $0x2398] sm:$0xff]  ;;  %v14041_v28 = vcombine.low %v1333_v14, %v1341_v49 }
 0x313   : > { %v1581_v24 = vld [vmem:[%s15389_s29 + $0x23d8] sm:$0xff] }
 0x314   : > { %v1829_v26 = vld [vmem:[%s15389_s29 + $0x2b98] sm:$0xff]  ;;  %v14282_v31 = vcombine.high %v1573_v19, %v1581_v24  ;;  %v14281_v38 = vcombine.low %v1573_v19, %v1581_v24 }
 0x315   : > { %10491 = vmatpush2.bf16.msra.mxu0 %v13865_v40  ;;  %10532 = vmatpush2.bf16.msra.mxu1 %v14121_v42  ;;  %v1837_v27 = vld [vmem:[%s15389_s29 + $0x2bd8] sm:$0xff] }
 0x316   : > { %10492 = vmatprep.subr.bf16.mxu0 %v13850_v11  ;;  %10533 = vmatprep.subr.bf16.mxu1 %v14106_v52  ;;  %v14538_v32 = vcombine.high %v1829_v26, %v1837_v27  ;;  %v1557_v34 = vld [vmem:[%s15389_s29 + $0x2318] sm:$0xff]  ;;  %v14537_v39 = vcombine.low %v1829_v26, %v1837_v27 }
 0x317   : > { %v1565_v35 = vld [vmem:[%s15389_s29 + $0x2358] sm:$0xff] }
 0x318   : > { %v1813_v36 = vld [vmem:[%s15389_s29 + $0x2b18] sm:$0xff]  ;;  %v14266_v40 = vcombine.high %v1557_v34, %v1565_v35 }
 0x319   : > { %10493 = vmatpush2.bf16.msra.mxu0 %v13849_v50  ;;  %10534 = vmatpush2.bf16.msra.mxu1 %v14105_v21  ;;  %v1821_v37 = vld [vmem:[%s15389_s29 + $0x2b58] sm:$0xff]  ;;  %v14265_v50 = vcombine.low %v1557_v34, %v1565_v35 }
 0x31a   : > { %10494 = vmatprep.subr.bf16.mxu0 %v13834_v58  ;;  %10535 = vmatprep.subr.bf16.mxu1 %v14090_v51  ;;  %v14522_v42 = vcombine.high %v1813_v36, %v1821_v37  ;;  %v1541_v11 = vld [vmem:[%s15389_s29 + $0x2298] sm:$0xff]  ;;  %v14521_v58 = vcombine.low %v1813_v36, %v1821_v37 }
 0x31b   : > { %v1549_v52 = vld [vmem:[%s15389_s29 + $0x22d8] sm:$0xff] }
 0x31c   : > { %v1797_v45 = vld [vmem:[%s15389_s29 + $0x2a98] sm:$0xff]  ;;  %v14250_v51 = vcombine.high %v1541_v11, %v1549_v52  ;;  %v14249_v1 = vcombine.low %v1541_v11, %v1549_v52 }
 0x31d   : > { %10495 = vmatpush2.bf16.msra.mxu0 %v13833_v60  ;;  %10536 = vmatpush2.bf16.msra.mxu1 %v14089_v61  ;;  %v1805_v46 = vld [vmem:[%s15389_s29 + $0x2ad8] sm:$0xff] }
 0x31e   : > { %10496 = vmatprep.subr.bf16.mxu0 %v13818_v63  ;;  %10537 = vmatprep.subr.bf16.mxu1 %v14074_v62  ;;  %v14506_v53 = vcombine.high %v1797_v45, %v1805_v46  ;;  %v1525_v54 = vld [vmem:[%s15389_s29 + $0x2218] sm:$0xff]  ;;  %v14505_v3 = vcombine.low %v1797_v45, %v1805_v46 }
 0x31f   : > { %v1533_v57 = vld [vmem:[%s15389_s29 + $0x2258] sm:$0xff] }
 0x320   : > { %v1781_v61 = vld [vmem:[%s15389_s29 + $0x2a18] sm:$0xff]  ;;  %v14234_v6 = vcombine.high %v1525_v54, %v1533_v57  ;;  %v14233_v14 = vcombine.low %v1525_v54, %v1533_v57 }
 0x321   : > { %10497 = vmatpush2.bf16.msra.mxu0 %v13817_v41  ;;  %10538 = vmatpush2.bf16.msra.mxu1 %v14073_v17  ;;  %v1789_v63 = vld [vmem:[%s15389_s29 + $0x2a58] sm:$0xff] }
 0x322   : > { %10498 = vmatprep.subr.bf16.mxu0 %v13802_v7  ;;  %10539 = vmatprep.subr.bf16.mxu1 %v14058_v8  ;;  %v14490_v17 = vcombine.high %v1781_v61, %v1789_v63  ;;  %v1509_v7 = vld [vmem:[%s15389_s29 + $0x2198] sm:$0xff]  ;;  %v14489_v49 = vcombine.low %v1781_v61, %v1789_v63 }
 0x323   : > { %v1517_v8 = vld [vmem:[%s15389_s29 + $0x21d8] sm:$0xff] }
 0x324   : > { %v1765_v9 = vld [vmem:[%s15389_s29 + $0x2998] sm:$0xff]  ;;  %v14217_v26 = vcombine.low %v1509_v7, %v1517_v8 }
 0x325   : > { %10499 = vmatpush2.bf16.msra.mxu0 %v13801_v25  ;;  %10540 = vmatpush2.bf16.msra.mxu1 %v14057_v16  ;;  %v1773_v10 = vld [vmem:[%s15389_s29 + $0x29d8] sm:$0xff]  ;;  %v14218_v25 = vcombine.high %v1509_v7, %v1517_v8 }
 0x326   : > { %10500 = vmatprep.subr.bf16.mxu0 %v13786_v20  ;;  %10541 = vmatprep.subr.bf16.mxu1 %v14042_v18  ;;  %v14474_v16 = vcombine.high %v1765_v9, %v1773_v10  ;;  %v1493_v20 = vld [vmem:[%s15389_s29 + $0x2118] sm:$0xff]  ;;  %v14473_v27 = vcombine.low %v1765_v9, %v1773_v10 }
 0x327   : > { %v1501_v18 = vld [vmem:[%s15389_s29 + $0x2158] sm:$0xff] }
 0x328   : > { %v1749_v19 = vld [vmem:[%s15389_s29 + $0x2918] sm:$0xff]  ;;  %v14201_v36 = vcombine.low %v1493_v20, %v1501_v18 }
 0x329   : > { %10501 = vmatpush2.bf16.msra.mxu0 %v13785_v29  ;;  %10542 = vmatpush2.bf16.msra.mxu1 %v14041_v28  ;;  %v1757_v24 = vld [vmem:[%s15389_s29 + $0x2958] sm:$0xff]  ;;  %v14202_v29 = vcombine.high %v1493_v20, %v1501_v18 }
 0x32a   : > { %10552 = vmatprep.subr.bf16.mxu0 %v14282_v31  ;;  %10593 = vmatprep.subr.bf16.mxu1 %v14538_v32  ;;  %v14458_v28 = vcombine.high %v1749_v19, %v1757_v24  ;;  %v1477_v31 = vld [vmem:[%s15389_s29 + $0x2098] sm:$0xff]  ;;  %v14457_v37 = vcombine.low %v1749_v19, %v1757_v24 }
 0x32b   : > { %v1485_v32 = vld [vmem:[%s15389_s29 + $0x20d8] sm:$0xff] }
 0x32c   : > { %v16238_v43 = vpop.f32.mrf.mxu0  ;;  %10503 = vmatmul.mubr.bf16.vlgmr.msra.gmra.mxu0 %v15566_v0  ;;  %v16243_v47 = vpop.f32.mrf.mxu1  ;;  %10544 = vmatmul.mubr.bf16.vlgmr.msra.gmra.mxu1 %v15571_v4  ;;  %v1733_v34 = vld [vmem:[%s15389_s29 + $0x2898] sm:$0xff]  ;;  %v14185_v45 = vcombine.low %v1477_v31, %v1485_v32 }
 0x32d   : > { %10553 = vmatpush1.bf16.msra.mxu0 %v14281_v38  ;;  %10594 = vmatpush1.bf16.msra.mxu1 %v14537_v39  ;;  %v1741_v35 = vld [vmem:[%s15389_s29 + $0x28d8] sm:$0xff]  ;;  %v14186_v38 = vcombine.high %v1477_v31, %v1485_v32 }
 0x32e   : > { %v16246_v21 = vpop.f32.mrf.mxu0  ;;  %10554 = vmatprep.subr.bf16.mxu0 %v14266_v40  ;;  %v16248_v55 = vpop.f32.mrf.mxu1  ;;  %10595 = vmatprep.subr.bf16.mxu1 %v14522_v42  ;;  %v14442_v39 = vcombine.high %v1733_v34, %v1741_v35  ;;  %v1461_v40 = vld [vmem:[%s15389_s29 + $0x2018] sm:$0xff]  ;;  %v14441_v46 = vcombine.low %v1733_v34, %v1741_v35 }
 0x32f   : > { %10584 = vmatprep.mubr.bf16.mxu0 %v15576_v12  ;;  %10625 = vmatprep.mubr.bf16.mxu1 %v15581_v15  ;;  %v1469_v42 = vld [vmem:[%s15389_s29 + $0x2058] sm:$0xff] }
 0x330   : > { %v10262_v60 = vpop.f32.mrf.mxu0  ;;  %v10303_v62 = vpop.f32.mrf.mxu1  ;;  %v1717_v11 = vld [vmem:[%s15389_s29 + $0x2818] sm:$0xff] }
 0x331   : > { %10555 = vmatpush1.bf16.msra.mxu0 %v14265_v50  ;;  %10596 = vmatpush1.bf16.msra.mxu1 %v14521_v58  ;;  %v1725_v52 = vld [vmem:[%s15389_s29 + $0x2858] sm:$0xff]  ;;  %v14170_v50 = vcombine.high %v1461_v40, %v1469_v42  ;;  %v14169_v60 = vcombine.low %v1461_v40, %v1469_v42 }
 0x332   : > { %v10263_v2 = vpop.f32.mrf.mxu0  ;;  %10556 = vmatprep.subr.bf16.mxu0 %v14250_v51  ;;  %v10304_v41 = vpop.f32.mrf.mxu1  ;;  %10597 = vmatprep.subr.bf16.mxu1 %v14506_v53  ;;  %v14426_v58 = vcombine.high %v1717_v11, %v1725_v52  ;;  %v1701_v51 = vld [vmem:[%s15389_s29 + $0x2798] sm:$0xff]  ;;  %v14425_v61 = vcombine.low %v1717_v11, %v1725_v52 }
 0x333   : > { %v1709_v53 = vld [vmem:[%s15389_s29 + $0x27d8] sm:$0xff] }
 0x334   : > { %v1957_v54 = vld [vmem:[%s15389_s29 + $0x2f98] sm:$0xff]  ;;  %v14410_v63 = vcombine.high %v1701_v51, %v1709_v53  ;;  %v14409_v41 = vcombine.low %v1701_v51, %v1709_v53 }
 0x335   : > { %10557 = vmatpush1.bf16.msra.mxu0 %v14249_v1  ;;  %10598 = vmatpush1.bf16.msra.mxu1 %v14505_v3  ;;  %v1965_v57 = vld [vmem:[%s15389_s29 + $0x2fd8] sm:$0xff] }
 0x336   : > { %10558 = vmatprep.subr.bf16.mxu0 %v14234_v6  ;;  %10599 = vmatprep.subr.bf16.mxu1 %v14490_v17  ;;  %v14666_v62 = vcombine.high %v1957_v54, %v1965_v57  ;;  %v1685_v1 = vld [vmem:[%s15389_s29 + $0x2718] sm:$0xff]  ;;  %v14665_v17 = vcombine.low %v1957_v54, %v1965_v57 }
 0x337   : > { %v1693_v2 = vld [vmem:[%s15389_s29 + $0x2758] sm:$0xff] }
 0x338   : > { %v1941_v3 = vld [vmem:[%s15389_s29 + $0x2f18] sm:$0xff]  ;;  %v14394_v7 = vcombine.high %v1685_v1, %v1693_v2 }
 0x339   : > { %10559 = vmatpush1.bf16.msra.mxu0 %v14233_v14  ;;  %10600 = vmatpush1.bf16.msra.mxu1 %v14489_v49  ;;  %v1949_v6 = vld [vmem:[%s15389_s29 + $0x2f58] sm:$0xff] }
 0x33a   : > { %10560 = vmatprep.subr.bf16.mxu0 %v14218_v25  ;;  %10601 = vmatprep.subr.bf16.mxu1 %v14474_v16  ;;  %v14650_v8 = vcombine.high %v1941_v3, %v1949_v6  ;;  %v1669_v9 = vld [vmem:[%s15389_s29 + $0x2698] sm:$0xff]  ;;  %v14393_v25 = vcombine.low %v1685_v1, %v1693_v2  ;;  %v14649_v16 = vcombine.low %v1941_v3, %v1949_v6 }
 0x33b   : > { %v1677_v10 = vld [vmem:[%s15389_s29 + $0x26d8] sm:$0xff] }
 0x33c   : > { %v1925_v14 = vld [vmem:[%s15389_s29 + $0x2e98] sm:$0xff]  ;;  %v14378_v20 = vcombine.high %v1669_v9, %v1677_v10 }
 0x33d   : > { %10561 = vmatpush1.bf16.msra.mxu0 %v14217_v26  ;;  %10602 = vmatpush1.bf16.msra.mxu1 %v14473_v27  ;;  %v1933_v49 = vld [vmem:[%s15389_s29 + $0x2ed8] sm:$0xff] }
 0x33e   : > { %10562 = vmatprep.subr.bf16.mxu0 %v14202_v29  ;;  %10603 = vmatprep.subr.bf16.mxu1 %v14458_v28  ;;  %v14634_v18 = vcombine.high %v1925_v14, %v1933_v49  ;;  %v1653_v19 = vld [vmem:[%s15389_s29 + $0x2618] sm:$0xff]  ;;  %v14377_v29 = vcombine.low %v1669_v9, %v1677_v10  ;;  %v14633_v28 = vcombine.low %v1925_v14, %v1933_v49  ;;  %v550_v14 = vld [vmem:[%s15389_s29 + $0x3a0] sm:$0xff] }
 0x33f   : > { %v1661_v24 = vld [vmem:[%s15389_s29 + $0x2658] sm:$0xff]  ;;  %v558_v49 = vld [vmem:[%s15389_s29 + $0x3e0] sm:$0xff] }
 0x340   : > { %v1909_v26 = vld [vmem:[%s15389_s29 + $0x2e18] sm:$0xff]  ;;  %v14362_v31 = vcombine.high %v1653_v19, %v1661_v24 }
 0x341   : > { %10563 = vmatpush1.bf16.msra.mxu0 %v14201_v36  ;;  %10604 = vmatpush1.bf16.msra.mxu1 %v14457_v37  ;;  %v1917_v27 = vld [vmem:[%s15389_s29 + $0x2e58] sm:$0xff] }
 0x342   : > { %10564 = vmatprep.subr.bf16.mxu0 %v14186_v38  ;;  %10605 = vmatprep.subr.bf16.mxu1 %v14442_v39  ;;  %v14618_v32 = vcombine.high %v1909_v26, %v1917_v27  ;;  %v1637_v34 = vld [vmem:[%s15389_s29 + $0x2598] sm:$0xff]  ;;  %v14361_v38 = vcombine.low %v1653_v19, %v1661_v24  ;;  %v14617_v39 = vcombine.low %v1909_v26, %v1917_v27  ;;  %v534_v27 = vld [vmem:[%s15389_s29 + $0x320] sm:$0xff] }
 0x343   : > { %v1645_v35 = vld [vmem:[%s15389_s29 + $0x25d8] sm:$0xff]  ;;  %v13260_v19 = vcombine.high %v550_v14, %v558_v49  ;;  %v10259_v24 = vadd.f32 %v16238_v43, %v16170_v5 }
 0x344   : > { %v1893_v36 = vld [vmem:[%s15389_s29 + $0x2d98] sm:$0xff]  ;;  %v14346_v40 = vcombine.high %v1637_v34, %v1645_v35 }
 0x345   : > { %10565 = vmatpush1.bf16.msra.mxu0 %v14185_v45  ;;  %10606 = vmatpush1.bf16.msra.mxu1 %v14441_v46  ;;  %v1901_v37 = vld [vmem:[%s15389_s29 + $0x2dd8] sm:$0xff]  ;;  %v10300_v5 = vadd.f32 %v16243_v47, %v10259_v24  ;;  %v422_v47 = vld [vmem:[#allocation2 + $0x50] sm:$0xff] }
 0x346   : > { %10566 = vmatprep.subr.bf16.mxu0 %v14170_v50  ;;  %10607 = vmatprep.subr.bf16.mxu1 %v14426_v58  ;;  %v14602_v42 = vcombine.high %v1893_v36, %v1901_v37  ;;  %v1621_v11 = vld [vmem:[%s15389_s29 + $0x2518] sm:$0xff]  ;;  %v14345_v50 = vcombine.low %v1637_v34, %v1645_v35  ;;  %v14601_v58 = vcombine.low %v1893_v36, %v1901_v37  ;;  %v518_v37 = vld [vmem:[%s15389_s29 + $0x2a0] sm:$0xff] }
 0x347   : > { %v1629_v52 = vld [vmem:[%s15389_s29 + $0x2558] sm:$0xff]  ;;  %v13259_v34 = vcombine.low %v550_v14, %v558_v49  ;;  %v486_v14 = vld [vmem:[%s15389_s29 + $0x1a0] sm:$0xff] }
 0x348   : > { %v1877_v45 = vld [vmem:[%s15389_s29 + $0x2d18] sm:$0xff]  ;;  %v14330_v51 = vcombine.high %v1621_v11, %v1629_v52  ;;  %v494_v49 = vld [vmem:[%s15389_s29 + $0x1e0] sm:$0xff] }
 0x349   : > { %10567 = vmatpush1.bf16.msra.mxu0 %v14169_v60  ;;  %10608 = vmatpush1.bf16.msra.mxu1 %v14425_v61  ;;  %v1885_v46 = vld [vmem:[%s15389_s29 + $0x2d58] sm:$0xff] }
 0x34a   : > { %10568 = vmatprep.subr.bf16.mxu0 %v14410_v63  ;;  %10609 = vmatprep.subr.bf16.mxu1 %v14666_v62  ;;  %v14586_v53 = vcombine.high %v1877_v45, %v1885_v46  ;;  %v1605_v54 = vld [vmem:[%s15389_s29 + $0x2498] sm:$0xff]  ;;  %v14329_v63 = vcombine.low %v1621_v11, %v1629_v52  ;;  %v14585_v62 = vcombine.low %v1877_v45, %v1885_v46 }
 0x34b   : > { %v1613_v57 = vld [vmem:[%s15389_s29 + $0x24d8] sm:$0xff] }
 0x34c   : > { %v1861_v60 = vld [vmem:[%s15389_s29 + $0x2c98] sm:$0xff]  ;;  %v14314_v1 = vcombine.high %v1605_v54, %v1613_v57 }
 0x34d   : > { %10569 = vmatpush2.bf16.msra.mxu0 %v14409_v41  ;;  %10610 = vmatpush2.bf16.msra.mxu1 %v14665_v17  ;;  %v1869_v61 = vld [vmem:[%s15389_s29 + $0x2cd8] sm:$0xff] }
 0x34e   : > { %10570 = vmatprep.subr.bf16.mxu0 %v14394_v7  ;;  %10611 = vmatprep.subr.bf16.mxu1 %v14650_v8  ;;  %v14570_v2 = vcombine.high %v1861_v60, %v1869_v61  ;;  %v1589_v3 = vld [vmem:[%s15389_s29 + $0x2418] sm:$0xff]  ;;  %v14313_v7 = vcombine.low %v1605_v54, %v1613_v57  ;;  %v14569_v8 = vcombine.low %v1861_v60, %v1869_v61  ;;  %v502_v54 = vld [vmem:[%s15389_s29 + $0x220] sm:$0xff]  ;;  %v423_v60 = vld [vmem:[#allocation2 + $0x68] sm:$0xff] }
 0x34f   : > { %v1597_v6 = vld [vmem:[%s15389_s29 + $0x2458] sm:$0xff]  ;;  %v510_v57 = vld [vmem:[%s15389_s29 + $0x260] sm:$0xff] }
 0x350   : > { %v1845_v41 = vld [vmem:[%s15389_s29 + $0x2c18] sm:$0xff]  ;;  %v14298_v9 = vcombine.high %v1589_v3, %v1597_v6 }
 0x351   : > { %10571 = vmatpush2.bf16.msra.mxu0 %v14393_v25  ;;  %10612 = vmatpush2.bf16.msra.mxu1 %v14649_v16  ;;  %v1853_v17 = vld [vmem:[%s15389_s29 + $0x2c58] sm:$0xff]  ;;  %v806_v25 = vld [vmem:[%s15389_s29 + $0xba0] sm:$0xff] }
 0x352   : > { %10572 = vmatprep.subr.bf16.mxu0 %v14378_v20  ;;  %10613 = vmatprep.subr.bf16.mxu1 %v14634_v18  ;;  %v14554_v10 = vcombine.high %v1845_v41, %v1853_v17  ;;  %v814_v16 = vld [vmem:[%s15389_s29 + $0xbe0] sm:$0xff]  ;;  %v14297_v20 = vcombine.low %v1589_v3, %v1597_v6  ;;  %v14553_v18 = vcombine.low %v1845_v41, %v1853_v17 }
 0x353   : > { %v13516_v26 = vcombine.high %v806_v25, %v814_v16  ;;  %v13515_v35 = vcombine.low %v806_v25, %v814_v16  ;;  %v742_v25 = vld [vmem:[%s15389_s29 + $0x9a0] sm:$0xff] }
 0x354   : > { %v750_v16 = vld [vmem:[%s15389_s29 + $0x9e0] sm:$0xff] }
 0x355   : > { %10573 = vmatpush2.bf16.msra.mxu0 %v14377_v29  ;;  %10614 = vmatpush2.bf16.msra.mxu1 %v14633_v28  ;;  %v542_v29 = vld [vmem:[%s15389_s29 + $0x360] sm:$0xff]  ;;  %v13452_v24 = vcombine.high %v742_v25, %v750_v16 }
 0x356   : > { %10574 = vmatprep.subr.bf16.mxu0 %v14362_v31  ;;  %10615 = vmatprep.subr.bf16.mxu1 %v14618_v32  ;;  %v790_v28 = vld [vmem:[%s15389_s29 + $0xb20] sm:$0xff]  ;;  %v10261_v32 = vadd.f32 %v16246_v21, %v16175_v13  ;;  %v13244_v36 = vcombine.high %v534_v27, %v542_v29  ;;  %v13243_v52 = vcombine.low %v534_v27, %v542_v29 }
 0x357   : > { %v798_v31 = vld [vmem:[%s15389_s29 + $0xb60] sm:$0xff] }
 0x358   : > { %v13500_v43 = vcombine.high %v790_v28, %v798_v31  ;;  %v10302_v11 = vadd.f32 %v16248_v55, %v10261_v32  ;;  %v13499_v46 = vcombine.low %v790_v28, %v798_v31  ;;  %v478_v27 = vld [vmem:[%s15389_s29 + $0x160] sm:$0xff]  ;;  %v13195_v31 = vcombine.low %v486_v14, %v494_v49 }
 0x359   : > { %10575 = vmatpush2.bf16.msra.mxu0 %v14361_v38  ;;  %10616 = vmatpush2.bf16.msra.mxu1 %v14617_v39  ;;  %v526_v38 = vld [vmem:[%s15389_s29 + $0x2e0] sm:$0xff]  ;;  %v13451_v32 = vcombine.low %v742_v25, %v750_v16 }
 0x35a   : > { %10576 = vmatprep.subr.bf16.mxu0 %v14346_v40  ;;  %10617 = vmatprep.subr.bf16.mxu1 %v14602_v42  ;;  %v774_v40 = vld [vmem:[%s15389_s29 + $0xaa0] sm:$0xff]  ;;  %v13227_v6 = vcombine.low %v518_v37, %v526_v38 }
 0x35b   : > { %v782_v42 = vld [vmem:[%s15389_s29 + $0xae0] sm:$0xff] }
 0x35c   : > { %v13484_v55 = vcombine.high %v774_v40, %v782_v42  ;;  %v13483_v17 = vcombine.low %v774_v40, %v782_v42  ;;  %v726_v29 = vld [vmem:[%s15389_s29 + $0x920] sm:$0xff] }
 0x35d   : > { %10577 = vmatpush2.bf16.msra.mxu0 %v14345_v50  ;;  %10618 = vmatpush2.bf16.msra.mxu1 %v14601_v58  ;;  %v13228_v50 = vcombine.high %v518_v37, %v526_v38  ;;  %v734_v28 = vld [vmem:[%s15389_s29 + $0x960] sm:$0xff] }
 0x35e   : > { %10578 = vmatprep.subr.bf16.mxu0 %v14330_v51  ;;  %10619 = vmatprep.subr.bf16.mxu1 %v14586_v53  ;;  %v718_v37 = vld [vmem:[%s15389_s29 + $0x8e0] sm:$0xff] }
 0x361   : > { %10579 = vmatpush2.bf16.msra.mxu0 %v14329_v63  ;;  %10620 = vmatpush2.bf16.msra.mxu1 %v14585_v62  ;;  %v758_v63 = vld [vmem:[%s15389_s29 + $0xa20] sm:$0xff] }
 0x362   : > { %10580 = vmatprep.subr.bf16.mxu0 %v14314_v1  ;;  %10621 = vmatprep.subr.bf16.mxu1 %v14570_v2  ;;  %v766_v62 = vld [vmem:[%s15389_s29 + $0xa60] sm:$0xff] }
 0x365   : > { %10581 = vmatpush2.bf16.msra.mxu0 %v14313_v7  ;;  %10622 = vmatpush2.bf16.msra.mxu1 %v14569_v8  ;;  %v13212_v7 = vcombine.high %v502_v54, %v510_v57 }
 0x366   : > { %10582 = vmatprep.subr.bf16.mxu0 %v14298_v9  ;;  %10623 = vmatprep.subr.bf16.mxu1 %v14554_v10  ;;  %v13468_v10 = vcombine.high %v758_v63, %v766_v62 }
 0x369   : > { %10583 = vmatpush2.bf16.msra.mxu0 %v14297_v20  ;;  %10624 = vmatpush2.bf16.msra.mxu1 %v14553_v18  ;;  %v13211_v20 = vcombine.low %v502_v54, %v510_v57  ;;  %v13467_v18 = vcombine.low %v758_v63, %v766_v62  ;;  %v662_v63 = vld [vmem:[%s15389_s29 + $0x720] sm:$0xff] }
 0x36a   : > { %10634 = vmatprep.subr.bf16.mxu0 %v13260_v19  ;;  %10675 = vmatprep.subr.bf16.mxu1 %v13516_v26  ;;  %v13196_v19 = vcombine.high %v486_v14, %v494_v49  ;;  %v470_v26 = vld [vmem:[%s15389_s29 + $0x120] sm:$0xff] }
 0x36b   : > { %v13179_v38 = vcombine.low %v470_v26, %v478_v27  ;;  %v670_v62 = vld [vmem:[%s15389_s29 + $0x760] sm:$0xff] }
 0x36c   : > { %v10340_v39 = vpop.f32.mrf.mxu0  ;;  %10585 = vmatmul.mubr.bf16.vlgmr.msra.gmra.mxu0 %v15646_v30  ;;  %v10381_v21 = vpop.f32.mrf.mxu1  ;;  %10626 = vmatmul.mubr.bf16.vlgmr.msra.gmra.mxu1 %v15650_v33  ;;  %v13371_v14 = vcombine.low %v662_v63, %v670_v62 }
 0x36d   : > { %v10341_v13 = vadd.f32 %v10340_v39, %v10300_v5  ;;  %10635 = vmatpush1.bf16.msra.mxu0 %v13259_v34  ;;  %10676 = vmatpush1.bf16.msra.mxu1 %v13515_v35  ;;  %v13180_v34 = vcombine.high %v470_v26, %v478_v27  ;;  %v13436_v35 = vcombine.high %v726_v29, %v734_v28  ;;  %v462_v5 = vld [vmem:[%s15389_s29 + $0xe0] sm:$0xff] }
 0x36e   : > { %v10342_v45 = vpop.f32.mrf.mxu0  ;;  %10636 = vmatprep.subr.bf16.mxu0 %v13244_v36  ;;  %v10383_v53 = vpop.f32.mrf.mxu1  ;;  %10677 = vmatprep.subr.bf16.mxu1 %v13500_v43  ;;  %v454_v36 = vld [vmem:[%s15389_s29 + $0xa0] sm:$0xff]  ;;  %v13435_v39 = vcombine.low %v726_v29, %v734_v28 }
 0x36f   : > { %v10382_v58 = vadd.f32 %v10381_v21, %v10341_v13  ;;  %v10343_v51 = vadd.f32 %v10342_v45, %v10302_v11  ;;  %10666 = vmatprep.mubr.bf16.mxu0 %v15438_v22  ;;  %10707 = vmatprep.mubr.bf16.mxu1 %v15440_v23  ;;  %v710_v43 = vld [vmem:[%s15389_s29 + $0x8a0] sm:$0xff]  ;;  %v13164_v40 = vcombine.high %v454_v36, %v462_v5 }
 0x370   : > { %v10344_v61 = vpop.f32.mrf.mxu0  ;;  %v10385_v3 = vpop.f32.mrf.mxu1  ;;  %v13420_v42 = vcombine.high %v710_v43, %v718_v37  ;;  %v438_v11 = vld [vmem:[%s15389_s29 + $0x20] sm:$0xff]  ;;  %v13419_v45 = vcombine.low %v710_v43, %v718_v37 }
 0x371   : > { %v11622_v1 = vadd.f32 %v10382_v58, %v422_v47  ;;  %v10384_v2 = vadd.f32 %v10383_v53, %v10343_v51  ;;  %10637 = vmatpush1.bf16.msra.mxu0 %v13243_v52  ;;  %10678 = vmatpush1.bf16.msra.mxu1 %v13499_v46  ;;  %v446_v13 = vld [vmem:[%s15389_s29 + $0x60] sm:$0xff]  ;;  %v13163_v47 = vcombine.low %v454_v36, %v462_v5 }
 0x372   : > { %v10345_v41 = vpop.f32.mrf.mxu0  ;;  %10638 = vmatprep.subr.bf16.mxu0 %v13228_v50  ;;  %v10386_v9 = vpop.f32.mrf.mxu1  ;;  %10679 = vmatprep.subr.bf16.mxu1 %v13484_v55  ;;  %v694_v21 = vld [vmem:[%s15389_s29 + $0x820] sm:$0xff]  ;;  %v13148_v46 = vcombine.high %v438_v11, %v446_v13  ;;  %v13147_v54 = vcombine.low %v438_v11, %v446_v13 }
 0x373   : > { %11638 = vst [vmem:[#allocation2 + $0x50] sm:$0xff] %v11622_v1  ;;  %v11623_v8 = vadd.f32 %v10384_v2, %v423_v60  ;;  %v702_v52 = vld [vmem:[%s15389_s29 + $0x860] sm:$0xff]  ;;  %v13372_v41 = vcombine.high %v662_v63, %v670_v62 }
 0x374   : > { %v13404_v50 = vcombine.high %v694_v21, %v702_v52  ;;  %v678_v58 = vld [vmem:[%s15389_s29 + $0x7a0] sm:$0xff]  ;;  %v13403_v57 = vcombine.low %v694_v21, %v702_v52 }
 0x375   : > { %11639 = vst [vmem:[#allocation2 + $0x68] sm:$0xff] %v11623_v8  ;;  %10639 = vmatpush1.bf16.msra.mxu0 %v13227_v6  ;;  %10680 = vmatpush1.bf16.msra.mxu1 %v13483_v17  ;;  %v686_v51 = vld [vmem:[%s15389_s29 + $0x7e0] sm:$0xff] }
 0x376   : > { %10640 = vmatprep.subr.bf16.mxu0 %v13212_v7  ;;  %10681 = vmatprep.subr.bf16.mxu1 %v13468_v10  ;;  %v934_v53 = vld [vmem:[%s15389_s29 + $0xfa0] sm:$0xff]  ;;  %v13388_v60 = vcombine.high %v678_v58, %v686_v51  ;;  %v13387_v3 = vcombine.low %v678_v58, %v686_v51 }
 0x377   : > { %v942_v55 = vld [vmem:[%s15389_s29 + $0xfe0] sm:$0xff] }
 0x378   : > { %v13644_v61 = vcombine.high %v934_v53, %v942_v55  ;;  %v918_v1 = vld [vmem:[%s15389_s29 + $0xf20] sm:$0xff]  ;;  %v13643_v6 = vcombine.low %v934_v53, %v942_v55 }
 0x379   : > { %10641 = vmatpush1.bf16.msra.mxu0 %v13211_v20  ;;  %10682 = vmatpush1.bf16.msra.mxu1 %v13467_v18  ;;  %v926_v2 = vld [vmem:[%s15389_s29 + $0xf60] sm:$0xff] }
 0x37a   : > { %10642 = vmatprep.subr.bf16.mxu0 %v13196_v19  ;;  %10683 = vmatprep.subr.bf16.mxu1 %v13452_v24  ;;  %v13628_v17 = vcombine.high %v918_v1, %v926_v2  ;;  %v646_v7 = vld [vmem:[%s15389_s29 + $0x6a0] sm:$0xff]  ;;  %v13627_v49 = vcombine.low %v918_v1, %v926_v2 }
 0x37b   : > { %v654_v8 = vld [vmem:[%s15389_s29 + $0x6e0] sm:$0xff] }
 0x37c   : > { %v902_v9 = vld [vmem:[%s15389_s29 + $0xea0] sm:$0xff]  ;;  %v13356_v25 = vcombine.high %v646_v7, %v654_v8  ;;  %v13355_v26 = vcombine.low %v646_v7, %v654_v8 }
 0x37d   : > { %10643 = vmatpush1.bf16.msra.mxu0 %v13195_v31  ;;  %10684 = vmatpush1.bf16.msra.mxu1 %v13451_v32  ;;  %v910_v10 = vld [vmem:[%s15389_s29 + $0xee0] sm:$0xff] }
 0x37e   : > { %10644 = vmatprep.subr.bf16.mxu0 %v13180_v34  ;;  %10685 = vmatprep.subr.bf16.mxu1 %v13436_v35  ;;  %v13612_v16 = vcombine.high %v902_v9, %v910_v10  ;;  %v630_v20 = vld [vmem:[%s15389_s29 + $0x620] sm:$0xff]  ;;  %v13611_v27 = vcombine.low %v902_v9, %v910_v10 }
 0x37f   : > { %v638_v18 = vld [vmem:[%s15389_s29 + $0x660] sm:$0xff] }
 0x380   : > { %v886_v19 = vld [vmem:[%s15389_s29 + $0xe20] sm:$0xff]  ;;  %v13340_v29 = vcombine.high %v630_v20, %v638_v18  ;;  %v13339_v36 = vcombine.low %v630_v20, %v638_v18 }
 0x381   : > { %10645 = vmatpush1.bf16.msra.mxu0 %v13179_v38  ;;  %10686 = vmatpush1.bf16.msra.mxu1 %v13435_v39  ;;  %v894_v24 = vld [vmem:[%s15389_s29 + $0xe60] sm:$0xff] }
 0x382   : > { %10646 = vmatprep.subr.bf16.mxu0 %v13164_v40  ;;  %10687 = vmatprep.subr.bf16.mxu1 %v13420_v42  ;;  %v13596_v28 = vcombine.high %v886_v19, %v894_v24  ;;  %v614_v31 = vld [vmem:[%s15389_s29 + $0x5a0] sm:$0xff]  ;;  %v13595_v5 = vcombine.low %v886_v19, %v894_v24 }
 0x383   : > { %v622_v32 = vld [vmem:[%s15389_s29 + $0x5e0] sm:$0xff] }
 0x384   : > { %v870_v34 = vld [vmem:[%s15389_s29 + $0xda0] sm:$0xff]  ;;  %v13324_v43 = vcombine.high %v614_v31, %v622_v32  ;;  %v13323_v11 = vcombine.low %v614_v31, %v622_v32 }
 0x385   : > { %10647 = vmatpush1.bf16.msra.mxu0 %v13163_v47  ;;  %10688 = vmatpush1.bf16.msra.mxu1 %v13419_v45  ;;  %v878_v35 = vld [vmem:[%s15389_s29 + $0xde0] sm:$0xff] }
 0x386   : > { %10648 = vmatprep.subr.bf16.mxu0 %v13148_v46  ;;  %10689 = vmatprep.subr.bf16.mxu1 %v13404_v50  ;;  %v13580_v37 = vcombine.high %v870_v34, %v878_v35  ;;  %v598_v38 = vld [vmem:[%s15389_s29 + $0x520] sm:$0xff]  ;;  %v13579_v13 = vcombine.low %v870_v34, %v878_v35 }
 0x387   : > { %v606_v39 = vld [vmem:[%s15389_s29 + $0x560] sm:$0xff] }
 0x388   : > { %v854_v40 = vld [vmem:[%s15389_s29 + $0xd20] sm:$0xff]  ;;  %v13308_v21 = vcombine.high %v598_v38, %v606_v39  ;;  %v13307_v58 = vcombine.low %v598_v38, %v606_v39 }
 0x389   : > { %10649 = vmatpush1.bf16.msra.mxu0 %v13147_v54  ;;  %10690 = vmatpush1.bf16.msra.mxu1 %v13403_v57  ;;  %v862_v42 = vld [vmem:[%s15389_s29 + $0xd60] sm:$0xff] }
 0x38a   : > { %10650 = vmatprep.subr.bf16.mxu0 %v13388_v60  ;;  %10691 = vmatprep.subr.bf16.mxu1 %v13644_v61  ;;  %v13564_v52 = vcombine.high %v854_v40, %v862_v42  ;;  %v582_v47 = vld [vmem:[%s15389_s29 + $0x4a0] sm:$0xff]  ;;  %v13563_v51 = vcombine.low %v854_v40, %v862_v42 }
 0x38b   : > { %v590_v45 = vld [vmem:[%s15389_s29 + $0x4e0] sm:$0xff] }
 0x38c   : > { %v838_v46 = vld [vmem:[%s15389_s29 + $0xca0] sm:$0xff]  ;;  %v13292_v53 = vcombine.high %v582_v47, %v590_v45  ;;  %v13291_v63 = vcombine.low %v582_v47, %v590_v45 }
 0x38d   : > { %10651 = vmatpush2.bf16.msra.mxu0 %v13387_v3  ;;  %10692 = vmatpush2.bf16.msra.mxu1 %v13643_v6  ;;  %v846_v50 = vld [vmem:[%s15389_s29 + $0xce0] sm:$0xff] }
 0x38e   : > { %10652 = vmatprep.subr.bf16.mxu0 %v13372_v41  ;;  %10693 = vmatprep.subr.bf16.mxu1 %v13628_v17  ;;  %v13548_v55 = vcombine.high %v838_v46, %v846_v50  ;;  %v566_v54 = vld [vmem:[%s15389_s29 + $0x420] sm:$0xff]  ;;  %v13547_v62 = vcombine.low %v838_v46, %v846_v50 }
 0x38f   : > { %v574_v57 = vld [vmem:[%s15389_s29 + $0x460] sm:$0xff] }
 0x390   : > { %v822_v60 = vld [vmem:[%s15389_s29 + $0xc20] sm:$0xff]  ;;  %v13276_v1 = vcombine.high %v566_v54, %v574_v57  ;;  %v13275_v7 = vcombine.low %v566_v54, %v574_v57 }
 0x391   : > { %10653 = vmatpush2.bf16.msra.mxu0 %v13371_v14  ;;  %10694 = vmatpush2.bf16.msra.mxu1 %v13627_v49  ;;  %v830_v61 = vld [vmem:[%s15389_s29 + $0xc60] sm:$0xff] }
 0x392   : > { %10654 = vmatprep.subr.bf16.mxu0 %v13356_v25  ;;  %10695 = vmatprep.subr.bf16.mxu1 %v13612_v16  ;;  %v13532_v2 = vcombine.high %v822_v60, %v830_v61  ;;  %v1062_v3 = vld [vmem:[%s15389_s29 + $0x13a0] sm:$0xff]  ;;  %v13531_v8 = vcombine.low %v822_v60, %v830_v61 }
 0x393   : > { %v1070_v6 = vld [vmem:[%s15389_s29 + $0x13e0] sm:$0xff] }
 0x394   : > { %v1318_v41 = vld [vmem:[%s15389_s29 + $0x1ba0] sm:$0xff]  ;;  %v13772_v9 = vcombine.high %v1062_v3, %v1070_v6  ;;  %v13771_v20 = vcombine.low %v1062_v3, %v1070_v6 }
 0x395   : > { %10655 = vmatpush2.bf16.msra.mxu0 %v13355_v26  ;;  %10696 = vmatpush2.bf16.msra.mxu1 %v13611_v27  ;;  %v1326_v17 = vld [vmem:[%s15389_s29 + $0x1be0] sm:$0xff] }
 0x396   : > { %10656 = vmatprep.subr.bf16.mxu0 %v13340_v29  ;;  %10697 = vmatprep.subr.bf16.mxu1 %v13596_v28  ;;  %v14028_v10 = vcombine.high %v1318_v41, %v1326_v17  ;;  %v1046_v14 = vld [vmem:[%s15389_s29 + $0x1320] sm:$0xff]  ;;  %v14027_v18 = vcombine.low %v1318_v41, %v1326_v17 }
 0x397   : > { %v1054_v49 = vld [vmem:[%s15389_s29 + $0x1360] sm:$0xff] }
 0x398   : > { %v1302_v25 = vld [vmem:[%s15389_s29 + $0x1b20] sm:$0xff]  ;;  %v13756_v19 = vcombine.high %v1046_v14, %v1054_v49  ;;  %v13755_v34 = vcombine.low %v1046_v14, %v1054_v49 }
 0x399   : > { %10657 = vmatpush2.bf16.msra.mxu0 %v13339_v36  ;;  %10698 = vmatpush2.bf16.msra.mxu1 %v13595_v5  ;;  %v1310_v16 = vld [vmem:[%s15389_s29 + $0x1b60] sm:$0xff] }
 0x39a   : > { %10658 = vmatprep.subr.bf16.mxu0 %v13324_v43  ;;  %10699 = vmatprep.subr.bf16.mxu1 %v13580_v37  ;;  %v14012_v24 = vcombine.high %v1302_v25, %v1310_v16  ;;  %v1030_v26 = vld [vmem:[%s15389_s29 + $0x12a0] sm:$0xff]  ;;  %v14011_v5 = vcombine.low %v1302_v25, %v1310_v16 }
 0x39b   : > { %v1038_v27 = vld [vmem:[%s15389_s29 + $0x12e0] sm:$0xff] }
 0x39c   : > { %v1286_v28 = vld [vmem:[%s15389_s29 + $0x1aa0] sm:$0xff]  ;;  %v13740_v43 = vcombine.high %v1030_v26, %v1038_v27  ;;  %v13739_v47 = vcombine.low %v1030_v26, %v1038_v27 }
 0x39d   : > { %10659 = vmatpush2.bf16.msra.mxu0 %v13323_v11  ;;  %10700 = vmatpush2.bf16.msra.mxu1 %v13579_v13  ;;  %v1294_v31 = vld [vmem:[%s15389_s29 + $0x1ae0] sm:$0xff] }
 0x39e   : > { %10660 = vmatprep.subr.bf16.mxu0 %v13308_v21  ;;  %10701 = vmatprep.subr.bf16.mxu1 %v13564_v52  ;;  %v13996_v38 = vcombine.high %v1286_v28, %v1294_v31  ;;  %v1014_v39 = vld [vmem:[%s15389_s29 + $0x1220] sm:$0xff]  ;;  %v13995_v46 = vcombine.low %v1286_v28, %v1294_v31 }
 0x39f   : > { %v1022_v40 = vld [vmem:[%s15389_s29 + $0x1260] sm:$0xff] }
 0x3a0   : > { %v1270_v13 = vld [vmem:[%s15389_s29 + $0x1a20] sm:$0xff]  ;;  %v13724_v50 = vcombine.high %v1014_v39, %v1022_v40  ;;  %v13723_v60 = vcombine.low %v1014_v39, %v1022_v40 }
 0x3a1   : > { %10661 = vmatpush2.bf16.msra.mxu0 %v13307_v58  ;;  %10702 = vmatpush2.bf16.msra.mxu1 %v13563_v51  ;;  %v1278_v21 = vld [vmem:[%s15389_s29 + $0x1a60] sm:$0xff] }
 0x3a2   : > { %10662 = vmatprep.subr.bf16.mxu0 %v13292_v53  ;;  %10703 = vmatprep.subr.bf16.mxu1 %v13548_v55  ;;  %v13980_v51 = vcombine.high %v1270_v13, %v1278_v21  ;;  %v998_v53 = vld [vmem:[%s15389_s29 + $0x11a0] sm:$0xff]  ;;  %v13979_v61 = vcombine.low %v1270_v13, %v1278_v21 }
 0x3a3   : > { %v1006_v55 = vld [vmem:[%s15389_s29 + $0x11e0] sm:$0xff] }
 0x3a4   : > { %v1254_v54 = vld [vmem:[%s15389_s29 + $0x19a0] sm:$0xff]  ;;  %v13707_v41 = vcombine.low %v998_v53, %v1006_v55 }
 0x3a5   : > { %10663 = vmatpush2.bf16.msra.mxu0 %v13291_v63  ;;  %10704 = vmatpush2.bf16.msra.mxu1 %v13547_v62  ;;  %v1262_v57 = vld [vmem:[%s15389_s29 + $0x19e0] sm:$0xff]  ;;  %v13708_v63 = vcombine.high %v998_v53, %v1006_v55 }
 0x3a6   : > { %10664 = vmatprep.subr.bf16.mxu0 %v13276_v1  ;;  %10705 = vmatprep.subr.bf16.mxu1 %v13532_v2  ;;  %v13964_v62 = vcombine.high %v1254_v54, %v1262_v57  ;;  %v982_v1 = vld [vmem:[%s15389_s29 + $0x1120] sm:$0xff]  ;;  %v13963_v17 = vcombine.low %v1254_v54, %v1262_v57 }
 0x3a7   : > { %v990_v2 = vld [vmem:[%s15389_s29 + $0x1160] sm:$0xff] }
 0x3a8   : > { %v1238_v3 = vld [vmem:[%s15389_s29 + $0x1920] sm:$0xff]  ;;  %v13691_v25 = vcombine.low %v982_v1, %v990_v2 }
 0x3a9   : > { %10665 = vmatpush2.bf16.msra.mxu0 %v13275_v7  ;;  %10706 = vmatpush2.bf16.msra.mxu1 %v13531_v8  ;;  %v1246_v6 = vld [vmem:[%s15389_s29 + $0x1960] sm:$0xff]  ;;  %v13692_v7 = vcombine.high %v982_v1, %v990_v2 }
 0x3aa   : > { %10716 = vmatprep.subr.bf16.mxu0 %v13772_v9  ;;  %10757 = vmatprep.subr.bf16.mxu1 %v14028_v10  ;;  %v13948_v8 = vcombine.high %v1238_v3, %v1246_v6  ;;  %v966_v9 = vld [vmem:[%s15389_s29 + $0x10a0] sm:$0xff]  ;;  %v13947_v16 = vcombine.low %v1238_v3, %v1246_v6 }
 0x3ab   : > { %v974_v10 = vld [vmem:[%s15389_s29 + $0x10e0] sm:$0xff] }
 0x3ac   : > { %v10422_v29 = vpop.f32.mrf.mxu0  ;;  %10667 = vmatmul.mubr.bf16.vlgmr.msra.gmra.mxu0 %v15486_v44  ;;  %v10463_v32 = vpop.f32.mrf.mxu1  ;;  %10708 = vmatmul.mubr.bf16.vlgmr.msra.gmra.mxu1 %v15491_v48  ;;  %v1222_v14 = vld [vmem:[%s15389_s29 + $0x18a0] sm:$0xff] }
 0x3ad   : > { %10717 = vmatpush1.bf16.msra.mxu0 %v13771_v20  ;;  %v16392_v35 = vadd.f32 %v10463_v32, %v10422_v29  ;;  %10758 = vmatpush1.bf16.msra.mxu1 %v14027_v18  ;;  %v1230_v49 = vld [vmem:[%s15389_s29 + $0x18e0] sm:$0xff]  ;;  %v13676_v20 = vcombine.high %v966_v9, %v974_v10  ;;  %v13675_v29 = vcombine.low %v966_v9, %v974_v10 }
 0x3ae   : > { %v10424_v36 = vpop.f32.mrf.mxu0  ;;  %10718 = vmatprep.subr.bf16.mxu0 %v13756_v19  ;;  %v10465_v37 = vpop.f32.mrf.mxu1  ;;  %10759 = vmatprep.subr.bf16.mxu1 %v14012_v24  ;;  %v13932_v18 = vcombine.high %v1222_v14, %v1230_v49  ;;  %v950_v19 = vld [vmem:[%s15389_s29 + $0x1020] sm:$0xff]  ;;  %v13931_v28 = vcombine.low %v1222_v14, %v1230_v49 }
 0x3af   : > { %10748 = vmatprep.mubr.bf16.mxu0 %v15496_v56  ;;  %v16397_v42 = vadd.f32 %v10465_v37, %v10424_v36  ;;  %10789 = vmatprep.mubr.bf16.mxu1 %v15501_v59  ;;  %v958_v24 = vld [vmem:[%s15389_s29 + $0x1060] sm:$0xff] }
 0x3b0   : > { %v10426_v11 = vpop.f32.mrf.mxu0  ;;  %v10467_v52 = vpop.f32.mrf.mxu1  ;;  %v1206_v26 = vld [vmem:[%s15389_s29 + $0x1820] sm:$0xff]  ;;  %v13660_v31 = vcombine.high %v950_v19, %v958_v24  ;;  %v13659_v37 = vcombine.low %v950_v19, %v958_v24 }
 0x3b1   : > { %10719 = vmatpush1.bf16.msra.mxu0 %v13755_v34  ;;  %10760 = vmatpush1.bf16.msra.mxu1 %v14011_v5  ;;  %v1214_v27 = vld [vmem:[%s15389_s29 + $0x1860] sm:$0xff] }
 0x3b2   : > { %v10427_v45 = vpop.f32.mrf.mxu0  ;;  %10720 = vmatprep.subr.bf16.mxu0 %v13740_v43  ;;  %v10468_v58 = vpop.f32.mrf.mxu1  ;;  %10761 = vmatprep.subr.bf16.mxu1 %v13996_v38  ;;  %v13916_v32 = vcombine.high %v1206_v26, %v1214_v27  ;;  %v1190_v34 = vld [vmem:[%s15389_s29 + $0x17a0] sm:$0xff]  ;;  %v13915_v38 = vcombine.low %v1206_v26, %v1214_v27 }
 0x3b3   : > { %v1198_v36 = vld [vmem:[%s15389_s29 + $0x17e0] sm:$0xff] }
 0x3b4   : > { %v1446_v5 = vld [vmem:[%s15389_s29 + $0x1fa0] sm:$0xff]  ;;  %v13900_v39 = vcombine.high %v1190_v34, %v1198_v36 }
 0x3b5   : > { %10721 = vmatpush1.bf16.msra.mxu0 %v13739_v47  ;;  %10762 = vmatpush1.bf16.msra.mxu1 %v13995_v46  ;;  %v1454_v43 = vld [vmem:[%s15389_s29 + $0x1fe0] sm:$0xff]  ;;  %v13899_v47 = vcombine.low %v1190_v34, %v1198_v36 }
 0x3b6   : > { %10722 = vmatprep.subr.bf16.mxu0 %v13724_v50  ;;  %10763 = vmatprep.subr.bf16.mxu1 %v13980_v51  ;;  %v14156_v40 = vcombine.high %v1446_v5, %v1454_v43  ;;  %v1174_v11 = vld [vmem:[%s15389_s29 + $0x1720] sm:$0xff]  ;;  %v14155_v45 = vcombine.low %v1446_v5, %v1454_v43 }
 0x3b7   : > { %v1182_v13 = vld [vmem:[%s15389_s29 + $0x1760] sm:$0xff] }
 0x3b8   : > { %v1430_v21 = vld [vmem:[%s15389_s29 + $0x1f20] sm:$0xff]  ;;  %v13884_v46 = vcombine.high %v1174_v11, %v1182_v13  ;;  %v13883_v54 = vcombine.low %v1174_v11, %v1182_v13 }
 0x3b9   : > { %10723 = vmatpush1.bf16.msra.mxu0 %v13723_v60  ;;  %10764 = vmatpush1.bf16.msra.mxu1 %v13979_v61  ;;  %v1438_v52 = vld [vmem:[%s15389_s29 + $0x1f60] sm:$0xff] }
 0x3ba   : > { %10724 = vmatprep.subr.bf16.mxu0 %v13708_v63  ;;  %10765 = vmatprep.subr.bf16.mxu1 %v13964_v62  ;;  %v14140_v50 = vcombine.high %v1430_v21, %v1438_v52  ;;  %v1158_v58 = vld [vmem:[%s15389_s29 + $0x16a0] sm:$0xff]  ;;  %v14139_v57 = vcombine.low %v1430_v21, %v1438_v52 }
 0x3bb   : > { %v1166_v51 = vld [vmem:[%s15389_s29 + $0x16e0] sm:$0xff] }
 0x3bc   : > { %v1414_v53 = vld [vmem:[%s15389_s29 + $0x1ea0] sm:$0xff]  ;;  %v13868_v60 = vcombine.high %v1158_v58, %v1166_v51  ;;  %v13867_v3 = vcombine.low %v1158_v58, %v1166_v51 }
 0x3bd   : > { %10725 = vmatpush1.bf16.msra.mxu0 %v13707_v41  ;;  %10766 = vmatpush1.bf16.msra.mxu1 %v13963_v17  ;;  %v1422_v55 = vld [vmem:[%s15389_s29 + $0x1ee0] sm:$0xff] }
 0x3be   : > { %10726 = vmatprep.subr.bf16.mxu0 %v13692_v7  ;;  %10767 = vmatprep.subr.bf16.mxu1 %v13948_v8  ;;  %v14124_v61 = vcombine.high %v1414_v53, %v1422_v55  ;;  %v1142_v63 = vld [vmem:[%s15389_s29 + $0x1620] sm:$0xff]  ;;  %v14123_v6 = vcombine.low %v1414_v53, %v1422_v55 }
 0x3bf   : > { %v1150_v62 = vld [vmem:[%s15389_s29 + $0x1660] sm:$0xff] }
 0x3c0   : > { %v1398_v1 = vld [vmem:[%s15389_s29 + $0x1e20] sm:$0xff]  ;;  %v13852_v41 = vcombine.high %v1142_v63, %v1150_v62  ;;  %v13851_v14 = vcombine.low %v1142_v63, %v1150_v62 }
 0x3c1   : > { %10727 = vmatpush1.bf16.msra.mxu0 %v13691_v25  ;;  %10768 = vmatpush1.bf16.msra.mxu1 %v13947_v16  ;;  %v1406_v2 = vld [vmem:[%s15389_s29 + $0x1e60] sm:$0xff] }
 0x3c2   : > { %10728 = vmatprep.subr.bf16.mxu0 %v13676_v20  ;;  %10769 = vmatprep.subr.bf16.mxu1 %v13932_v18  ;;  %v14108_v17 = vcombine.high %v1398_v1, %v1406_v2  ;;  %v1126_v7 = vld [vmem:[%s15389_s29 + $0x15a0] sm:$0xff]  ;;  %v14107_v49 = vcombine.low %v1398_v1, %v1406_v2 }
 0x3c3   : > { %v1134_v8 = vld [vmem:[%s15389_s29 + $0x15e0] sm:$0xff] }
 0x3c4   : > { %v1382_v9 = vld [vmem:[%s15389_s29 + $0x1da0] sm:$0xff]  ;;  %v13836_v25 = vcombine.high %v1126_v7, %v1134_v8  ;;  %v13835_v26 = vcombine.low %v1126_v7, %v1134_v8 }
 0x3c5   : > { %10729 = vmatpush1.bf16.msra.mxu0 %v13675_v29  ;;  %10770 = vmatpush1.bf16.msra.mxu1 %v13931_v28  ;;  %v1390_v10 = vld [vmem:[%s15389_s29 + $0x1de0] sm:$0xff] }
 0x3c6   : > { %10730 = vmatprep.subr.bf16.mxu0 %v13660_v31  ;;  %10771 = vmatprep.subr.bf16.mxu1 %v13916_v32  ;;  %v14092_v16 = vcombine.high %v1382_v9, %v1390_v10  ;;  %v1110_v20 = vld [vmem:[%s15389_s29 + $0x1520] sm:$0xff]  ;;  %v14091_v27 = vcombine.low %v1382_v9, %v1390_v10 }
 0x3c7   : > { %v1118_v18 = vld [vmem:[%s15389_s29 + $0x1560] sm:$0xff] }
 0x3c8   : > { %v1366_v19 = vld [vmem:[%s15389_s29 + $0x1d20] sm:$0xff]  ;;  %v13820_v29 = vcombine.high %v1110_v20, %v1118_v18  ;;  %v13819_v5 = vcombine.low %v1110_v20, %v1118_v18 }
 0x3c9   : > { %10731 = vmatpush1.bf16.msra.mxu0 %v13659_v37  ;;  %10772 = vmatpush1.bf16.msra.mxu1 %v13915_v38  ;;  %v1374_v24 = vld [vmem:[%s15389_s29 + $0x1d60] sm:$0xff] }
 0x3ca   : > { %10732 = vmatprep.subr.bf16.mxu0 %v13900_v39  ;;  %10773 = vmatprep.subr.bf16.mxu1 %v14156_v40  ;;  %v14076_v28 = vcombine.high %v1366_v19, %v1374_v24  ;;  %v1094_v31 = vld [vmem:[%s15389_s29 + $0x14a0] sm:$0xff]  ;;  %v14075_v43 = vcombine.low %v1366_v19, %v1374_v24 }
 0x3cb   : > { %v1102_v32 = vld [vmem:[%s15389_s29 + $0x14e0] sm:$0xff] }
 0x3cc   : > { %v1350_v34 = vld [vmem:[%s15389_s29 + $0x1ca0] sm:$0xff]  ;;  %v13804_v37 = vcombine.high %v1094_v31, %v1102_v32  ;;  %v13803_v21 = vcombine.low %v1094_v31, %v1102_v32 }
 0x3cd   : > { %10733 = vmatpush2.bf16.msra.mxu0 %v13899_v47  ;;  %10774 = vmatpush2.bf16.msra.mxu1 %v14155_v45  ;;  %v1358_v36 = vld [vmem:[%s15389_s29 + $0x1ce0] sm:$0xff] }
 0x3ce   : > { %10734 = vmatprep.subr.bf16.mxu0 %v13884_v46  ;;  %10775 = vmatprep.subr.bf16.mxu1 %v14140_v50  ;;  %v14060_v38 = vcombine.high %v1350_v34, %v1358_v36  ;;  %v1078_v39 = vld [vmem:[%s15389_s29 + $0x1420] sm:$0xff]  ;;  %v14059_v52 = vcombine.low %v1350_v34, %v1358_v36 }
 0x3cf   : > { %v1086_v40 = vld [vmem:[%s15389_s29 + $0x1460] sm:$0xff] }
 0x3d0   : > { %v1334_v11 = vld [vmem:[%s15389_s29 + $0x1c20] sm:$0xff]  ;;  %v13788_v47 = vcombine.high %v1078_v39, %v1086_v40  ;;  %v13787_v53 = vcombine.low %v1078_v39, %v1086_v40 }
 0x3d1   : > { %10735 = vmatpush2.bf16.msra.mxu0 %v13883_v54  ;;  %10776 = vmatpush2.bf16.msra.mxu1 %v14139_v57  ;;  %v1342_v13 = vld [vmem:[%s15389_s29 + $0x1c60] sm:$0xff] }
 0x3d2   : > { %10736 = vmatprep.subr.bf16.mxu0 %v13868_v60  ;;  %10777 = vmatprep.subr.bf16.mxu1 %v14124_v61  ;;  %v14044_v45 = vcombine.high %v1334_v11, %v1342_v13  ;;  %v1574_v46 = vld [vmem:[%s15389_s29 + $0x23a0] sm:$0xff]  ;;  %v14043_v55 = vcombine.low %v1334_v11, %v1342_v13 }
 0x3d3   : > { %v1582_v50 = vld [vmem:[%s15389_s29 + $0x23e0] sm:$0xff] }
 0x3d4   : > { %v1830_v58 = vld [vmem:[%s15389_s29 + $0x2ba0] sm:$0xff]  ;;  %v14284_v54 = vcombine.high %v1574_v46, %v1582_v50  ;;  %v14283_v1 = vcombine.low %v1574_v46, %v1582_v50 }
 0x3d5   : > { %10737 = vmatpush2.bf16.msra.mxu0 %v13867_v3  ;;  %10778 = vmatpush2.bf16.msra.mxu1 %v14123_v6  ;;  %v1838_v51 = vld [vmem:[%s15389_s29 + $0x2be0] sm:$0xff] }
 0x3d6   : > { %10738 = vmatprep.subr.bf16.mxu0 %v13852_v41  ;;  %10779 = vmatprep.subr.bf16.mxu1 %v14108_v17  ;;  %v14540_v57 = vcombine.high %v1830_v58, %v1838_v51  ;;  %v1558_v60 = vld [vmem:[%s15389_s29 + $0x2320] sm:$0xff]  ;;  %v14539_v2 = vcombine.low %v1830_v58, %v1838_v51 }
 0x3d7   : > { %v1566_v61 = vld [vmem:[%s15389_s29 + $0x2360] sm:$0xff] }
 0x3d8   : > { %v1814_v63 = vld [vmem:[%s15389_s29 + $0x2b20] sm:$0xff]  ;;  %v14268_v3 = vcombine.high %v1558_v60, %v1566_v61 }
 0x3d9   : > { %10739 = vmatpush2.bf16.msra.mxu0 %v13851_v14  ;;  %10780 = vmatpush2.bf16.msra.mxu1 %v14107_v49  ;;  %v1822_v62 = vld [vmem:[%s15389_s29 + $0x2b60] sm:$0xff]  ;;  %v14267_v14 = vcombine.low %v1558_v60, %v1566_v61 }
 0x3da   : > { %10740 = vmatprep.subr.bf16.mxu0 %v13836_v25  ;;  %10781 = vmatprep.subr.bf16.mxu1 %v14092_v16  ;;  %v14524_v6 = vcombine.high %v1814_v63, %v1822_v62  ;;  %v1542_v41 = vld [vmem:[%s15389_s29 + $0x22a0] sm:$0xff]  ;;  %v14523_v25 = vcombine.low %v1814_v63, %v1822_v62 }
 0x3db   : > { %v1550_v17 = vld [vmem:[%s15389_s29 + $0x22e0] sm:$0xff] }
 0x3dc   : > { %v1798_v8 = vld [vmem:[%s15389_s29 + $0x2aa0] sm:$0xff]  ;;  %v14252_v16 = vcombine.high %v1542_v41, %v1550_v17  ;;  %v14251_v31 = vcombine.low %v1542_v41, %v1550_v17 }
 0x3dd   : > { %10741 = vmatpush2.bf16.msra.mxu0 %v13835_v26  ;;  %10782 = vmatpush2.bf16.msra.mxu1 %v14091_v27  ;;  %v1806_v9 = vld [vmem:[%s15389_s29 + $0x2ae0] sm:$0xff] }
 0x3de   : > { %10742 = vmatprep.subr.bf16.mxu0 %v13820_v29  ;;  %10783 = vmatprep.subr.bf16.mxu1 %v14076_v28  ;;  %v14508_v18 = vcombine.high %v1798_v8, %v1806_v9  ;;  %v1526_v19 = vld [vmem:[%s15389_s29 + $0x2220] sm:$0xff]  ;;  %v14507_v34 = vcombine.low %v1798_v8, %v1806_v9 }
 0x3df   : > { %v1534_v24 = vld [vmem:[%s15389_s29 + $0x2260] sm:$0xff] }
 0x3e0   : > { %v1782_v27 = vld [vmem:[%s15389_s29 + $0x2a20] sm:$0xff]  ;;  %v14236_v36 = vcombine.high %v1526_v19, %v1534_v24  ;;  %v14235_v11 = vcombine.low %v1526_v19, %v1534_v24 }
 0x3e1   : > { %10743 = vmatpush2.bf16.msra.mxu0 %v13819_v5  ;;  %10784 = vmatpush2.bf16.msra.mxu1 %v14075_v43  ;;  %v1790_v29 = vld [vmem:[%s15389_s29 + $0x2a60] sm:$0xff] }
 0x3e2   : > { %10744 = vmatprep.subr.bf16.mxu0 %v13804_v37  ;;  %10785 = vmatprep.subr.bf16.mxu1 %v14060_v38  ;;  %v14492_v43 = vcombine.high %v1782_v27, %v1790_v29  ;;  %v1510_v37 = vld [vmem:[%s15389_s29 + $0x21a0] sm:$0xff]  ;;  %v14491_v13 = vcombine.low %v1782_v27, %v1790_v29 }
 0x3e3   : > { %v1518_v38 = vld [vmem:[%s15389_s29 + $0x21e0] sm:$0xff] }
 0x3e4   : > { %v1766_v39 = vld [vmem:[%s15389_s29 + $0x29a0] sm:$0xff]  ;;  %v14219_v58 = vcombine.low %v1510_v37, %v1518_v38 }
 0x3e5   : > { %10745 = vmatpush2.bf16.msra.mxu0 %v13803_v21  ;;  %10786 = vmatpush2.bf16.msra.mxu1 %v14059_v52  ;;  %v1774_v40 = vld [vmem:[%s15389_s29 + $0x29e0] sm:$0xff]  ;;  %v14220_v21 = vcombine.high %v1510_v37, %v1518_v38 }
 0x3e6   : > { %10746 = vmatprep.subr.bf16.mxu0 %v13788_v47  ;;  %10787 = vmatprep.subr.bf16.mxu1 %v14044_v45  ;;  %v14476_v52 = vcombine.high %v1766_v39, %v1774_v40  ;;  %v1494_v47 = vld [vmem:[%s15389_s29 + $0x2120] sm:$0xff]  ;;  %v14475_v51 = vcombine.low %v1766_v39, %v1774_v40 }
 0x3e7   : > { %v1502_v45 = vld [vmem:[%s15389_s29 + $0x2160] sm:$0xff] }
 0x3e8   : > { %v1750_v46 = vld [vmem:[%s15389_s29 + $0x2920] sm:$0xff]  ;;  %v14203_v63 = vcombine.low %v1494_v47, %v1502_v45 }
 0x3e9   : > { %10747 = vmatpush2.bf16.msra.mxu0 %v13787_v53  ;;  %10788 = vmatpush2.bf16.msra.mxu1 %v14043_v55  ;;  %v1758_v50 = vld [vmem:[%s15389_s29 + $0x2960] sm:$0xff]  ;;  %v14204_v53 = vcombine.high %v1494_v47, %v1502_v45 }
 0x3ea   : > { %10798 = vmatprep.subr.bf16.mxu0 %v14284_v54  ;;  %10839 = vmatprep.subr.bf16.mxu1 %v14540_v57  ;;  %v14460_v55 = vcombine.high %v1750_v46, %v1758_v50  ;;  %v1478_v54 = vld [vmem:[%s15389_s29 + $0x20a0] sm:$0xff]  ;;  %v14459_v62 = vcombine.low %v1750_v46, %v1758_v50 }
 0x3eb   : > { %v1486_v57 = vld [vmem:[%s15389_s29 + $0x20e0] sm:$0xff] }
 0x3ec   : > { %v16460_v7 = vpop.f32.mrf.mxu0  ;;  %10749 = vmatmul.mubr.bf16.vlgmr.msra.gmra.mxu0 %v15566_v0  ;;  %v16465_v10 = vpop.f32.mrf.mxu1  ;;  %10790 = vmatmul.mubr.bf16.vlgmr.msra.gmra.mxu1 %v15571_v4  ;;  %v1734_v60 = vld [vmem:[%s15389_s29 + $0x28a0] sm:$0xff]  ;;  %v14187_v8 = vcombine.low %v1478_v54, %v1486_v57 }
 0x3ed   : > { %10799 = vmatpush1.bf16.msra.mxu0 %v14283_v1  ;;  %10840 = vmatpush1.bf16.msra.mxu1 %v14539_v2  ;;  %v1742_v61 = vld [vmem:[%s15389_s29 + $0x28e0] sm:$0xff]  ;;  %v14188_v1 = vcombine.high %v1478_v54, %v1486_v57 }
 0x3ee   : > { %v16468_v49 = vpop.f32.mrf.mxu0  ;;  %10800 = vmatprep.subr.bf16.mxu0 %v14268_v3  ;;  %v16470_v20 = vpop.f32.mrf.mxu1  ;;  %10841 = vmatprep.subr.bf16.mxu1 %v14524_v6  ;;  %v14444_v2 = vcombine.high %v1734_v60, %v1742_v61  ;;  %v1462_v3 = vld [vmem:[%s15389_s29 + $0x2020] sm:$0xff]  ;;  %v14443_v9 = vcombine.low %v1734_v60, %v1742_v61 }
 0x3ef   : > { %10830 = vmatprep.mubr.bf16.mxu0 %v15576_v12  ;;  %10871 = vmatprep.mubr.bf16.mxu1 %v15581_v15  ;;  %v1470_v6 = vld [vmem:[%s15389_s29 + $0x2060] sm:$0xff] }
 0x3f0   : > { %v10508_v26 = vpop.f32.mrf.mxu0  ;;  %v10549_v28 = vpop.f32.mrf.mxu1  ;;  %v1718_v41 = vld [vmem:[%s15389_s29 + $0x2820] sm:$0xff] }
 0x3f1   : > { %10801 = vmatpush1.bf16.msra.mxu0 %v14267_v14  ;;  %10842 = vmatpush1.bf16.msra.mxu1 %v14523_v25  ;;  %v1726_v17 = vld [vmem:[%s15389_s29 + $0x2860] sm:$0xff]  ;;  %v14172_v14 = vcombine.high %v1462_v3, %v1470_v6  ;;  %v14171_v26 = vcombine.low %v1462_v3, %v1470_v6 }
 0x3f2   : > { %v10509_v32 = vpop.f32.mrf.mxu0  ;;  %10802 = vmatprep.subr.bf16.mxu0 %v14252_v16  ;;  %v10550_v5 = vpop.f32.mrf.mxu1  ;;  %10843 = vmatprep.subr.bf16.mxu1 %v14508_v18  ;;  %v14428_v25 = vcombine.high %v1718_v41, %v1726_v17  ;;  %v1702_v16 = vld [vmem:[%s15389_s29 + $0x27a0] sm:$0xff]  ;;  %v14427_v27 = vcombine.low %v1718_v41, %v1726_v17 }
 0x3f3   : > { %v1710_v18 = vld [vmem:[%s15389_s29 + $0x27e0] sm:$0xff] }
 0x3f4   : > { %v1958_v19 = vld [vmem:[%s15389_s29 + $0x2fa0] sm:$0xff]  ;;  %v14412_v29 = vcombine.high %v1702_v16, %v1710_v18  ;;  %v14411_v5 = vcombine.low %v1702_v16, %v1710_v18 }
 0x3f5   : > { %10803 = vmatpush1.bf16.msra.mxu0 %v14251_v31  ;;  %10844 = vmatpush1.bf16.msra.mxu1 %v14507_v34  ;;  %v1966_v24 = vld [vmem:[%s15389_s29 + $0x2fe0] sm:$0xff] }
 0x3f6   : > { %10804 = vmatprep.subr.bf16.mxu0 %v14236_v36  ;;  %10845 = vmatprep.subr.bf16.mxu1 %v14492_v43  ;;  %v14668_v28 = vcombine.high %v1958_v19, %v1966_v24  ;;  %v1686_v31 = vld [vmem:[%s15389_s29 + $0x2720] sm:$0xff]  ;;  %v14667_v43 = vcombine.low %v1958_v19, %v1966_v24 }
 0x3f7   : > { %v1694_v32 = vld [vmem:[%s15389_s29 + $0x2760] sm:$0xff] }
 0x3f8   : > { %v1942_v34 = vld [vmem:[%s15389_s29 + $0x2f20] sm:$0xff]  ;;  %v14396_v37 = vcombine.high %v1686_v31, %v1694_v32 }
 0x3f9   : > { %10805 = vmatpush1.bf16.msra.mxu0 %v14235_v11  ;;  %10846 = vmatpush1.bf16.msra.mxu1 %v14491_v13  ;;  %v1950_v36 = vld [vmem:[%s15389_s29 + $0x2f60] sm:$0xff] }
 0x3fa   : > { %10806 = vmatprep.subr.bf16.mxu0 %v14220_v21  ;;  %10847 = vmatprep.subr.bf16.mxu1 %v14476_v52  ;;  %v14652_v38 = vcombine.high %v1942_v34, %v1950_v36  ;;  %v1670_v39 = vld [vmem:[%s15389_s29 + $0x26a0] sm:$0xff]  ;;  %v14395_v21 = vcombine.low %v1686_v31, %v1694_v32  ;;  %v14651_v52 = vcombine.low %v1942_v34, %v1950_v36 }
 0x3fb   : > { %v1678_v40 = vld [vmem:[%s15389_s29 + $0x26e0] sm:$0xff] }
 0x3fc   : > { %v1926_v11 = vld [vmem:[%s15389_s29 + $0x2ea0] sm:$0xff]  ;;  %v14380_v47 = vcombine.high %v1670_v39, %v1678_v40 }
 0x3fd   : > { %10807 = vmatpush1.bf16.msra.mxu0 %v14219_v58  ;;  %10848 = vmatpush1.bf16.msra.mxu1 %v14475_v51  ;;  %v1934_v13 = vld [vmem:[%s15389_s29 + $0x2ee0] sm:$0xff] }
 0x3fe   : > { %10808 = vmatprep.subr.bf16.mxu0 %v14204_v53  ;;  %10849 = vmatprep.subr.bf16.mxu1 %v14460_v55  ;;  %v14636_v45 = vcombine.high %v1926_v11, %v1934_v13  ;;  %v1654_v46 = vld [vmem:[%s15389_s29 + $0x2620] sm:$0xff]  ;;  %v14379_v53 = vcombine.low %v1670_v39, %v1678_v40  ;;  %v14635_v55 = vcombine.low %v1926_v11, %v1934_v13  ;;  %v551_v11 = vld [vmem:[%s15389_s29 + $0x3a8] sm:$0xff] }
 0x3ff   : > { %v1662_v50 = vld [vmem:[%s15389_s29 + $0x2660] sm:$0xff]  ;;  %v559_v13 = vld [vmem:[%s15389_s29 + $0x3e8] sm:$0xff] }
 0x400   : > { %v1910_v58 = vld [vmem:[%s15389_s29 + $0x2e20] sm:$0xff]  ;;  %v14364_v54 = vcombine.high %v1654_v46, %v1662_v50 }
 0x401   : > { %10809 = vmatpush1.bf16.msra.mxu0 %v14203_v63  ;;  %10850 = vmatpush1.bf16.msra.mxu1 %v14459_v62  ;;  %v1918_v51 = vld [vmem:[%s15389_s29 + $0x2e60] sm:$0xff] }
 0x402   : > { %10810 = vmatprep.subr.bf16.mxu0 %v14188_v1  ;;  %10851 = vmatprep.subr.bf16.mxu1 %v14444_v2  ;;  %v14620_v57 = vcombine.high %v1910_v58, %v1918_v51  ;;  %v1638_v60 = vld [vmem:[%s15389_s29 + $0x25a0] sm:$0xff]  ;;  %v14363_v1 = vcombine.low %v1654_v46, %v1662_v50  ;;  %v14619_v2 = vcombine.low %v1910_v58, %v1918_v51  ;;  %v535_v51 = vld [vmem:[%s15389_s29 + $0x328] sm:$0xff] }
 0x403   : > { %v1646_v61 = vld [vmem:[%s15389_s29 + $0x25e0] sm:$0xff]  ;;  %v13262_v46 = vcombine.high %v551_v11, %v559_v13  ;;  %v10505_v50 = vadd.f32 %v16460_v7, %v16392_v35 }
 0x404   : > { %v1894_v63 = vld [vmem:[%s15389_s29 + $0x2da0] sm:$0xff]  ;;  %v14348_v3 = vcombine.high %v1638_v60, %v1646_v61 }
 0x405   : > { %10811 = vmatpush1.bf16.msra.mxu0 %v14187_v8  ;;  %10852 = vmatpush1.bf16.msra.mxu1 %v14443_v9  ;;  %v1902_v62 = vld [vmem:[%s15389_s29 + $0x2de0] sm:$0xff]  ;;  %v10546_v35 = vadd.f32 %v16465_v10, %v10505_v50  ;;  %v424_v10 = vld [vmem:[#allocation2 + $0x8] sm:$0xff] }
 0x406   : > { %10812 = vmatprep.subr.bf16.mxu0 %v14172_v14  ;;  %10853 = vmatprep.subr.bf16.mxu1 %v14428_v25  ;;  %v14604_v6 = vcombine.high %v1894_v63, %v1902_v62  ;;  %v1622_v41 = vld [vmem:[%s15389_s29 + $0x2520] sm:$0xff]  ;;  %v14347_v14 = vcombine.low %v1638_v60, %v1646_v61  ;;  %v14603_v25 = vcombine.low %v1894_v63, %v1902_v62  ;;  %v519_v62 = vld [vmem:[%s15389_s29 + $0x2a8] sm:$0xff] }
 0x407   : > { %v1630_v17 = vld [vmem:[%s15389_s29 + $0x2560] sm:$0xff]  ;;  %v13261_v60 = vcombine.low %v551_v11, %v559_v13  ;;  %v487_v11 = vld [vmem:[%s15389_s29 + $0x1a8] sm:$0xff] }
 0x408   : > { %v1878_v8 = vld [vmem:[%s15389_s29 + $0x2d20] sm:$0xff]  ;;  %v14332_v16 = vcombine.high %v1622_v41, %v1630_v17  ;;  %v495_v13 = vld [vmem:[%s15389_s29 + $0x1e8] sm:$0xff] }
 0x409   : > { %10813 = vmatpush1.bf16.msra.mxu0 %v14171_v26  ;;  %10854 = vmatpush1.bf16.msra.mxu1 %v14427_v27  ;;  %v1886_v9 = vld [vmem:[%s15389_s29 + $0x2d60] sm:$0xff] }
 0x40a   : > { %10814 = vmatprep.subr.bf16.mxu0 %v14412_v29  ;;  %10855 = vmatprep.subr.bf16.mxu1 %v14668_v28  ;;  %v14588_v18 = vcombine.high %v1878_v8, %v1886_v9  ;;  %v1606_v19 = vld [vmem:[%s15389_s29 + $0x24a0] sm:$0xff]  ;;  %v14331_v29 = vcombine.low %v1622_v41, %v1630_v17  ;;  %v14587_v28 = vcombine.low %v1878_v8, %v1886_v9 }
 0x40b   : > { %v1614_v24 = vld [vmem:[%s15389_s29 + $0x24e0] sm:$0xff] }
 0x40c   : > { %v1862_v26 = vld [vmem:[%s15389_s29 + $0x2ca0] sm:$0xff]  ;;  %v14316_v31 = vcombine.high %v1606_v19, %v1614_v24 }
 0x40d   : > { %10815 = vmatpush2.bf16.msra.mxu0 %v14411_v5  ;;  %10856 = vmatpush2.bf16.msra.mxu1 %v14667_v43  ;;  %v1870_v27 = vld [vmem:[%s15389_s29 + $0x2ce0] sm:$0xff] }
 0x40e   : > { %10816 = vmatprep.subr.bf16.mxu0 %v14396_v37  ;;  %10857 = vmatprep.subr.bf16.mxu1 %v14652_v38  ;;  %v14572_v32 = vcombine.high %v1862_v26, %v1870_v27  ;;  %v1590_v34 = vld [vmem:[%s15389_s29 + $0x2420] sm:$0xff]  ;;  %v14315_v37 = vcombine.low %v1606_v19, %v1614_v24  ;;  %v14571_v38 = vcombine.low %v1862_v26, %v1870_v27  ;;  %v503_v19 = vld [vmem:[%s15389_s29 + $0x228] sm:$0xff] }
 0x40f   : > { %v1598_v36 = vld [vmem:[%s15389_s29 + $0x2460] sm:$0xff]  ;;  %v511_v24 = vld [vmem:[%s15389_s29 + $0x268] sm:$0xff] }
 0x410   : > { %v1846_v5 = vld [vmem:[%s15389_s29 + $0x2c20] sm:$0xff]  ;;  %v14300_v39 = vcombine.high %v1590_v34, %v1598_v36  ;;  %v425_v26 = vld [vmem:[#allocation2 + $0x48] sm:$0xff] }
 0x411   : > { %10817 = vmatpush2.bf16.msra.mxu0 %v14395_v21  ;;  %10858 = vmatpush2.bf16.msra.mxu1 %v14651_v52  ;;  %v1854_v43 = vld [vmem:[%s15389_s29 + $0x2c60] sm:$0xff]  ;;  %v807_v21 = vld [vmem:[%s15389_s29 + $0xba8] sm:$0xff] }
 0x412   : > { %10818 = vmatprep.subr.bf16.mxu0 %v14380_v47  ;;  %10859 = vmatprep.subr.bf16.mxu1 %v14636_v45  ;;  %v14556_v40 = vcombine.high %v1846_v5, %v1854_v43  ;;  %v815_v52 = vld [vmem:[%s15389_s29 + $0xbe8] sm:$0xff]  ;;  %v14299_v47 = vcombine.low %v1590_v34, %v1598_v36  ;;  %v14555_v45 = vcombine.low %v1846_v5, %v1854_v43 }
 0x413   : > { %v13518_v58 = vcombine.high %v807_v21, %v815_v52  ;;  %v13517_v61 = vcombine.low %v807_v21, %v815_v52  ;;  %v743_v21 = vld [vmem:[%s15389_s29 + $0x9a8] sm:$0xff] }
 0x414   : > { %v751_v52 = vld [vmem:[%s15389_s29 + $0x9e8] sm:$0xff] }
 0x415   : > { %10819 = vmatpush2.bf16.msra.mxu0 %v14379_v53  ;;  %10860 = vmatpush2.bf16.msra.mxu1 %v14635_v55  ;;  %v543_v53 = vld [vmem:[%s15389_s29 + $0x368] sm:$0xff]  ;;  %v13454_v50 = vcombine.high %v743_v21, %v751_v52 }
 0x416   : > { %10820 = vmatprep.subr.bf16.mxu0 %v14364_v54  ;;  %10861 = vmatprep.subr.bf16.mxu1 %v14620_v57  ;;  %v791_v55 = vld [vmem:[%s15389_s29 + $0xb28] sm:$0xff]  ;;  %v10507_v57 = vadd.f32 %v16468_v49, %v16397_v42  ;;  %v13246_v63 = vcombine.high %v535_v51, %v543_v53  ;;  %v13245_v17 = vcombine.low %v535_v51, %v543_v53 }
 0x417   : > { %v799_v54 = vld [vmem:[%s15389_s29 + $0xb68] sm:$0xff] }
 0x418   : > { %v13502_v7 = vcombine.high %v791_v55, %v799_v54  ;;  %v10548_v41 = vadd.f32 %v16470_v20, %v10507_v57  ;;  %v13501_v9 = vcombine.low %v791_v55, %v799_v54  ;;  %v479_v51 = vld [vmem:[%s15389_s29 + $0x168] sm:$0xff]  ;;  %v13197_v54 = vcombine.low %v487_v11, %v495_v13 }
 0x419   : > { %10821 = vmatpush2.bf16.msra.mxu0 %v14363_v1  ;;  %10862 = vmatpush2.bf16.msra.mxu1 %v14619_v2  ;;  %v527_v1 = vld [vmem:[%s15389_s29 + $0x2e8] sm:$0xff]  ;;  %v13453_v57 = vcombine.low %v743_v21, %v751_v52 }
 0x41a   : > { %10822 = vmatprep.subr.bf16.mxu0 %v14348_v3  ;;  %10863 = vmatprep.subr.bf16.mxu1 %v14604_v6  ;;  %v775_v3 = vld [vmem:[%s15389_s29 + $0xaa8] sm:$0xff]  ;;  %v13229_v36 = vcombine.low %v519_v62, %v527_v1 }
 0x41b   : > { %v783_v6 = vld [vmem:[%s15389_s29 + $0xae8] sm:$0xff] }
 0x41c   : > { %v13486_v20 = vcombine.high %v775_v3, %v783_v6  ;;  %v13485_v43 = vcombine.low %v775_v3, %v783_v6  ;;  %v727_v53 = vld [vmem:[%s15389_s29 + $0x928] sm:$0xff] }
 0x41d   : > { %10823 = vmatpush2.bf16.msra.mxu0 %v14347_v14  ;;  %10864 = vmatpush2.bf16.msra.mxu1 %v14603_v25  ;;  %v13230_v14 = vcombine.high %v519_v62, %v527_v1  ;;  %v735_v55 = vld [vmem:[%s15389_s29 + $0x968] sm:$0xff] }
 0x41e   : > { %10824 = vmatprep.subr.bf16.mxu0 %v14332_v16  ;;  %10865 = vmatprep.subr.bf16.mxu1 %v14588_v18  ;;  %v719_v62 = vld [vmem:[%s15389_s29 + $0x8e8] sm:$0xff] }
 0x421   : > { %10825 = vmatpush2.bf16.msra.mxu0 %v14331_v29  ;;  %10866 = vmatpush2.bf16.msra.mxu1 %v14587_v28  ;;  %v759_v29 = vld [vmem:[%s15389_s29 + $0xa28] sm:$0xff] }
 0x422   : > { %10826 = vmatprep.subr.bf16.mxu0 %v14316_v31  ;;  %10867 = vmatprep.subr.bf16.mxu1 %v14572_v32  ;;  %v767_v28 = vld [vmem:[%s15389_s29 + $0xa68] sm:$0xff] }
 0x425   : > { %10827 = vmatpush2.bf16.msra.mxu0 %v14315_v37  ;;  %10868 = vmatpush2.bf16.msra.mxu1 %v14571_v38  ;;  %v13214_v37 = vcombine.high %v503_v19, %v511_v24 }
 0x426   : > { %10828 = vmatprep.subr.bf16.mxu0 %v14300_v39  ;;  %10869 = vmatprep.subr.bf16.mxu1 %v14556_v40  ;;  %v13470_v40 = vcombine.high %v759_v29, %v767_v28 }
 0x429   : > { %10829 = vmatpush2.bf16.msra.mxu0 %v14299_v47  ;;  %10870 = vmatpush2.bf16.msra.mxu1 %v14555_v45  ;;  %v13213_v47 = vcombine.low %v503_v19, %v511_v24  ;;  %v13469_v45 = vcombine.low %v759_v29, %v767_v28  ;;  %v663_v29 = vld [vmem:[%s15389_s29 + $0x728] sm:$0xff] }
 0x42a   : > { %10880 = vmatprep.subr.bf16.mxu0 %v13262_v46  ;;  %10921 = vmatprep.subr.bf16.mxu1 %v13518_v58  ;;  %v13198_v46 = vcombine.high %v487_v11, %v495_v13  ;;  %v471_v58 = vld [vmem:[%s15389_s29 + $0x128] sm:$0xff] }
 0x42b   : > { %v13181_v1 = vcombine.low %v471_v58, %v479_v51  ;;  %v671_v28 = vld [vmem:[%s15389_s29 + $0x768] sm:$0xff] }
 0x42c   : > { %v10586_v2 = vpop.f32.mrf.mxu0  ;;  %10831 = vmatmul.mubr.bf16.vlgmr.msra.gmra.mxu0 %v15646_v30  ;;  %v10627_v49 = vpop.f32.mrf.mxu1  ;;  %10872 = vmatmul.mubr.bf16.vlgmr.msra.gmra.mxu1 %v15650_v33  ;;  %v13373_v11 = vcombine.low %v663_v29, %v671_v28 }
 0x42d   : > { %v10587_v42 = vadd.f32 %v10586_v2, %v10546_v35  ;;  %10881 = vmatpush1.bf16.msra.mxu0 %v13261_v60  ;;  %10922 = vmatpush1.bf16.msra.mxu1 %v13517_v61  ;;  %v13182_v60 = vcombine.high %v471_v58, %v479_v51  ;;  %v13438_v61 = vcombine.high %v727_v53, %v735_v55  ;;  %v463_v35 = vld [vmem:[%s15389_s29 + $0xe8] sm:$0xff] }
 0x42e   : > { %v10588_v8 = vpop.f32.mrf.mxu0  ;;  %10882 = vmatprep.subr.bf16.mxu0 %v13246_v63  ;;  %v10629_v18 = vpop.f32.mrf.mxu1  ;;  %10923 = vmatprep.subr.bf16.mxu1 %v13502_v7  ;;  %v455_v63 = vld [vmem:[%s15389_s29 + $0xa8] sm:$0xff]  ;;  %v13437_v2 = vcombine.low %v727_v53, %v735_v55 }
 0x42f   : > { %v10628_v25 = vadd.f32 %v10627_v49, %v10587_v42  ;;  %v10589_v16 = vadd.f32 %v10588_v8, %v10548_v41  ;;  %10912 = vmatprep.mubr.bf16.mxu0 %v15438_v22  ;;  %10953 = vmatprep.mubr.bf16.mxu1 %v15440_v23  ;;  %v711_v7 = vld [vmem:[%s15389_s29 + $0x8a8] sm:$0xff]  ;;  %v13166_v3 = vcombine.high %v455_v63, %v463_v35 }
 0x430   : > { %v10590_v27 = vpop.f32.mrf.mxu0  ;;  %v10631_v34 = vpop.f32.mrf.mxu1  ;;  %v13422_v6 = vcombine.high %v711_v7, %v719_v62  ;;  %v439_v41 = vld [vmem:[%s15389_s29 + $0x28] sm:$0xff]  ;;  %v13421_v8 = vcombine.low %v711_v7, %v719_v62 }
 0x431   : > { %v11624_v31 = vadd.f32 %v10628_v25, %v424_v10  ;;  %v10630_v32 = vadd.f32 %v10629_v18, %v10589_v16  ;;  %10883 = vmatpush1.bf16.msra.mxu0 %v13245_v17  ;;  %10924 = vmatpush1.bf16.msra.mxu1 %v13501_v9  ;;  %v447_v42 = vld [vmem:[%s15389_s29 + $0x68] sm:$0xff]  ;;  %v13165_v10 = vcombine.low %v455_v63, %v463_v35 }
 0x432   : > { %v10591_v5 = vpop.f32.mrf.mxu0  ;;  %10884 = vmatprep.subr.bf16.mxu0 %v13230_v14  ;;  %v10632_v39 = vpop.f32.mrf.mxu1  ;;  %10925 = vmatprep.subr.bf16.mxu1 %v13486_v20  ;;  %v695_v49 = vld [vmem:[%s15389_s29 + $0x828] sm:$0xff]  ;;  %v13150_v9 = vcombine.high %v439_v41, %v447_v42  ;;  %v13149_v19 = vcombine.low %v439_v41, %v447_v42 }
 0x433   : > { %11640 = vst [vmem:[#allocation2 + $0x8] sm:$0xff] %v11624_v31  ;;  %v11625_v38 = vadd.f32 %v10630_v32, %v425_v26  ;;  %v703_v17 = vld [vmem:[%s15389_s29 + $0x868] sm:$0xff]  ;;  %v13374_v5 = vcombine.high %v663_v29, %v671_v28 }
 0x434   : > { %v13406_v14 = vcombine.high %v695_v49, %v703_v17  ;;  %v679_v25 = vld [vmem:[%s15389_s29 + $0x7a8] sm:$0xff]  ;;  %v13405_v24 = vcombine.low %v695_v49, %v703_v17 }
 0x435   : > { %11641 = vst [vmem:[#allocation2 + $0x48] sm:$0xff] %v11625_v38  ;;  %10885 = vmatpush1.bf16.msra.mxu0 %v13229_v36  ;;  %10926 = vmatpush1.bf16.msra.mxu1 %v13485_v43  ;;  %v687_v16 = vld [vmem:[%s15389_s29 + $0x7e8] sm:$0xff] }
 0x436   : > { %10886 = vmatprep.subr.bf16.mxu0 %v13214_v37  ;;  %10927 = vmatprep.subr.bf16.mxu1 %v13470_v40  ;;  %v935_v18 = vld [vmem:[%s15389_s29 + $0xfa8] sm:$0xff]  ;;  %v13390_v26 = vcombine.high %v679_v25, %v687_v16  ;;  %v13389_v34 = vcombine.low %v679_v25, %v687_v16 }
 0x437   : > { %v943_v20 = vld [vmem:[%s15389_s29 + $0xfe8] sm:$0xff] }
 0x438   : > { %v13646_v27 = vcombine.high %v935_v18, %v943_v20  ;;  %v919_v31 = vld [vmem:[%s15389_s29 + $0xf28] sm:$0xff]  ;;  %v13645_v36 = vcombine.low %v935_v18, %v943_v20 }
 0x439   : > { %10887 = vmatpush1.bf16.msra.mxu0 %v13213_v47  ;;  %10928 = vmatpush1.bf16.msra.mxu1 %v13469_v45  ;;  %v927_v32 = vld [vmem:[%s15389_s29 + $0xf68] sm:$0xff] }
 0x43a   : > { %10888 = vmatprep.subr.bf16.mxu0 %v13198_v46  ;;  %10929 = vmatprep.subr.bf16.mxu1 %v13454_v50  ;;  %v13630_v43 = vcombine.high %v919_v31, %v927_v32  ;;  %v647_v37 = vld [vmem:[%s15389_s29 + $0x6a8] sm:$0xff]  ;;  %v13629_v13 = vcombine.low %v919_v31, %v927_v32 }
 0x43b   : > { %v655_v38 = vld [vmem:[%s15389_s29 + $0x6e8] sm:$0xff] }
 0x43c   : > { %v903_v39 = vld [vmem:[%s15389_s29 + $0xea8] sm:$0xff]  ;;  %v13358_v21 = vcombine.high %v647_v37, %v655_v38  ;;  %v13357_v58 = vcombine.low %v647_v37, %v655_v38 }
 0x43d   : > { %10889 = vmatpush1.bf16.msra.mxu0 %v13197_v54  ;;  %10930 = vmatpush1.bf16.msra.mxu1 %v13453_v57  ;;  %v911_v40 = vld [vmem:[%s15389_s29 + $0xee8] sm:$0xff] }
 0x43e   : > { %10890 = vmatprep.subr.bf16.mxu0 %v13182_v60  ;;  %10931 = vmatprep.subr.bf16.mxu1 %v13438_v61  ;;  %v13614_v52 = vcombine.high %v903_v39, %v911_v40  ;;  %v631_v47 = vld [vmem:[%s15389_s29 + $0x628] sm:$0xff]  ;;  %v13613_v51 = vcombine.low %v903_v39, %v911_v40 }
 0x43f   : > { %v639_v45 = vld [vmem:[%s15389_s29 + $0x668] sm:$0xff] }
 0x440   : > { %v887_v46 = vld [vmem:[%s15389_s29 + $0xe28] sm:$0xff]  ;;  %v13342_v53 = vcombine.high %v631_v47, %v639_v45  ;;  %v13341_v63 = vcombine.low %v631_v47, %v639_v45 }
 0x441   : > { %10891 = vmatpush1.bf16.msra.mxu0 %v13181_v1  ;;  %10932 = vmatpush1.bf16.msra.mxu1 %v13437_v2  ;;  %v895_v50 = vld [vmem:[%s15389_s29 + $0xe68] sm:$0xff] }
 0x442   : > { %10892 = vmatprep.subr.bf16.mxu0 %v13166_v3  ;;  %10933 = vmatprep.subr.bf16.mxu1 %v13422_v6  ;;  %v13598_v55 = vcombine.high %v887_v46, %v895_v50  ;;  %v615_v54 = vld [vmem:[%s15389_s29 + $0x5a8] sm:$0xff]  ;;  %v13597_v35 = vcombine.low %v887_v46, %v895_v50 }
 0x443   : > { %v623_v57 = vld [vmem:[%s15389_s29 + $0x5e8] sm:$0xff] }
 0x444   : > { %v871_v60 = vld [vmem:[%s15389_s29 + $0xda8] sm:$0xff]  ;;  %v13326_v7 = vcombine.high %v615_v54, %v623_v57  ;;  %v13325_v41 = vcombine.low %v615_v54, %v623_v57 }
 0x445   : > { %10893 = vmatpush1.bf16.msra.mxu0 %v13165_v10  ;;  %10934 = vmatpush1.bf16.msra.mxu1 %v13421_v8  ;;  %v879_v61 = vld [vmem:[%s15389_s29 + $0xde8] sm:$0xff] }
 0x446   : > { %10894 = vmatprep.subr.bf16.mxu0 %v13150_v9  ;;  %10935 = vmatprep.subr.bf16.mxu1 %v13406_v14  ;;  %v13582_v62 = vcombine.high %v871_v60, %v879_v61  ;;  %v599_v1 = vld [vmem:[%s15389_s29 + $0x528] sm:$0xff]  ;;  %v13581_v42 = vcombine.low %v871_v60, %v879_v61 }
 0x447   : > { %v607_v2 = vld [vmem:[%s15389_s29 + $0x568] sm:$0xff] }
 0x448   : > { %v855_v3 = vld [vmem:[%s15389_s29 + $0xd28] sm:$0xff]  ;;  %v13310_v49 = vcombine.high %v599_v1, %v607_v2  ;;  %v13309_v25 = vcombine.low %v599_v1, %v607_v2 }
 0x449   : > { %10895 = vmatpush1.bf16.msra.mxu0 %v13149_v19  ;;  %10936 = vmatpush1.bf16.msra.mxu1 %v13405_v24  ;;  %v863_v6 = vld [vmem:[%s15389_s29 + $0xd68] sm:$0xff] }
 0x44a   : > { %10896 = vmatprep.subr.bf16.mxu0 %v13390_v26  ;;  %10937 = vmatprep.subr.bf16.mxu1 %v13646_v27  ;;  %v13566_v17 = vcombine.high %v855_v3, %v863_v6  ;;  %v583_v10 = vld [vmem:[%s15389_s29 + $0x4a8] sm:$0xff]  ;;  %v13565_v16 = vcombine.low %v855_v3, %v863_v6 }
 0x44b   : > { %v591_v8 = vld [vmem:[%s15389_s29 + $0x4e8] sm:$0xff] }
 0x44c   : > { %v839_v9 = vld [vmem:[%s15389_s29 + $0xca8] sm:$0xff]  ;;  %v13294_v18 = vcombine.high %v583_v10, %v591_v8  ;;  %v13293_v29 = vcombine.low %v583_v10, %v591_v8 }
 0x44d   : > { %10897 = vmatpush2.bf16.msra.mxu0 %v13389_v34  ;;  %10938 = vmatpush2.bf16.msra.mxu1 %v13645_v36  ;;  %v847_v14 = vld [vmem:[%s15389_s29 + $0xce8] sm:$0xff] }
 0x44e   : > { %10898 = vmatprep.subr.bf16.mxu0 %v13374_v5  ;;  %10939 = vmatprep.subr.bf16.mxu1 %v13630_v43  ;;  %v13550_v20 = vcombine.high %v839_v9, %v847_v14  ;;  %v567_v19 = vld [vmem:[%s15389_s29 + $0x428] sm:$0xff]  ;;  %v13549_v28 = vcombine.low %v839_v9, %v847_v14 }
 0x44f   : > { %v575_v24 = vld [vmem:[%s15389_s29 + $0x468] sm:$0xff] }
 0x450   : > { %v823_v26 = vld [vmem:[%s15389_s29 + $0xc28] sm:$0xff]  ;;  %v13278_v31 = vcombine.high %v567_v19, %v575_v24  ;;  %v13277_v37 = vcombine.low %v567_v19, %v575_v24 }
 0x451   : > { %10899 = vmatpush2.bf16.msra.mxu0 %v13373_v11  ;;  %10940 = vmatpush2.bf16.msra.mxu1 %v13629_v13  ;;  %v831_v27 = vld [vmem:[%s15389_s29 + $0xc68] sm:$0xff] }
 0x452   : > { %10900 = vmatprep.subr.bf16.mxu0 %v13358_v21  ;;  %10941 = vmatprep.subr.bf16.mxu1 %v13614_v52  ;;  %v13534_v32 = vcombine.high %v823_v26, %v831_v27  ;;  %v1063_v34 = vld [vmem:[%s15389_s29 + $0x13a8] sm:$0xff]  ;;  %v13533_v38 = vcombine.low %v823_v26, %v831_v27 }
 0x453   : > { %v1071_v36 = vld [vmem:[%s15389_s29 + $0x13e8] sm:$0xff] }
 0x454   : > { %v1319_v5 = vld [vmem:[%s15389_s29 + $0x1ba8] sm:$0xff]  ;;  %v13774_v39 = vcombine.high %v1063_v34, %v1071_v36  ;;  %v13773_v47 = vcombine.low %v1063_v34, %v1071_v36 }
 0x455   : > { %10901 = vmatpush2.bf16.msra.mxu0 %v13357_v58  ;;  %10942 = vmatpush2.bf16.msra.mxu1 %v13613_v51  ;;  %v1327_v43 = vld [vmem:[%s15389_s29 + $0x1be8] sm:$0xff] }
 0x456   : > { %10902 = vmatprep.subr.bf16.mxu0 %v13342_v53  ;;  %10943 = vmatprep.subr.bf16.mxu1 %v13598_v55  ;;  %v14030_v40 = vcombine.high %v1319_v5, %v1327_v43  ;;  %v1047_v11 = vld [vmem:[%s15389_s29 + $0x1328] sm:$0xff]  ;;  %v14029_v45 = vcombine.low %v1319_v5, %v1327_v43 }
 0x457   : > { %v1055_v13 = vld [vmem:[%s15389_s29 + $0x1368] sm:$0xff] }
 0x458   : > { %v1303_v21 = vld [vmem:[%s15389_s29 + $0x1b28] sm:$0xff]  ;;  %v13758_v46 = vcombine.high %v1047_v11, %v1055_v13  ;;  %v13757_v60 = vcombine.low %v1047_v11, %v1055_v13 }
 0x459   : > { %10903 = vmatpush2.bf16.msra.mxu0 %v13341_v63  ;;  %10944 = vmatpush2.bf16.msra.mxu1 %v13597_v35  ;;  %v1311_v52 = vld [vmem:[%s15389_s29 + $0x1b68] sm:$0xff] }
 0x45a   : > { %10904 = vmatprep.subr.bf16.mxu0 %v13326_v7  ;;  %10945 = vmatprep.subr.bf16.mxu1 %v13582_v62  ;;  %v14014_v50 = vcombine.high %v1303_v21, %v1311_v52  ;;  %v1031_v58 = vld [vmem:[%s15389_s29 + $0x12a8] sm:$0xff]  ;;  %v14013_v35 = vcombine.low %v1303_v21, %v1311_v52 }
 0x45b   : > { %v1039_v51 = vld [vmem:[%s15389_s29 + $0x12e8] sm:$0xff] }
 0x45c   : > { %v1287_v55 = vld [vmem:[%s15389_s29 + $0x1aa8] sm:$0xff]  ;;  %v13742_v7 = vcombine.high %v1031_v58, %v1039_v51  ;;  %v13741_v10 = vcombine.low %v1031_v58, %v1039_v51 }
 0x45d   : > { %10905 = vmatpush2.bf16.msra.mxu0 %v13325_v41  ;;  %10946 = vmatpush2.bf16.msra.mxu1 %v13581_v42  ;;  %v1295_v54 = vld [vmem:[%s15389_s29 + $0x1ae8] sm:$0xff] }
 0x45e   : > { %10906 = vmatprep.subr.bf16.mxu0 %v13310_v49  ;;  %10947 = vmatprep.subr.bf16.mxu1 %v13566_v17  ;;  %v13998_v1 = vcombine.high %v1287_v55, %v1295_v54  ;;  %v1015_v2 = vld [vmem:[%s15389_s29 + $0x1228] sm:$0xff]  ;;  %v13997_v9 = vcombine.low %v1287_v55, %v1295_v54 }
 0x45f   : > { %v1023_v3 = vld [vmem:[%s15389_s29 + $0x1268] sm:$0xff] }
 0x460   : > { %v1271_v42 = vld [vmem:[%s15389_s29 + $0x1a28] sm:$0xff]  ;;  %v13726_v14 = vcombine.high %v1015_v2, %v1023_v3  ;;  %v13725_v26 = vcombine.low %v1015_v2, %v1023_v3 }
 0x461   : > { %10907 = vmatpush2.bf16.msra.mxu0 %v13309_v25  ;;  %10948 = vmatpush2.bf16.msra.mxu1 %v13565_v16  ;;  %v1279_v49 = vld [vmem:[%s15389_s29 + $0x1a68] sm:$0xff] }
 0x462   : > { %10908 = vmatprep.subr.bf16.mxu0 %v13294_v18  ;;  %10949 = vmatprep.subr.bf16.mxu1 %v13550_v20  ;;  %v13982_v16 = vcombine.high %v1271_v42, %v1279_v49  ;;  %v999_v18 = vld [vmem:[%s15389_s29 + $0x11a8] sm:$0xff]  ;;  %v13981_v27 = vcombine.low %v1271_v42, %v1279_v49 }
 0x463   : > { %v1007_v20 = vld [vmem:[%s15389_s29 + $0x11e8] sm:$0xff] }
 0x464   : > { %v1255_v19 = vld [vmem:[%s15389_s29 + $0x19a8] sm:$0xff]  ;;  %v13709_v5 = vcombine.low %v999_v18, %v1007_v20 }
 0x465   : > { %10909 = vmatpush2.bf16.msra.mxu0 %v13293_v29  ;;  %10950 = vmatpush2.bf16.msra.mxu1 %v13549_v28  ;;  %v1263_v24 = vld [vmem:[%s15389_s29 + $0x19e8] sm:$0xff]  ;;  %v13710_v29 = vcombine.high %v999_v18, %v1007_v20 }
 0x466   : > { %10910 = vmatprep.subr.bf16.mxu0 %v13278_v31  ;;  %10951 = vmatprep.subr.bf16.mxu1 %v13534_v32  ;;  %v13966_v28 = vcombine.high %v1255_v19, %v1263_v24  ;;  %v983_v31 = vld [vmem:[%s15389_s29 + $0x1128] sm:$0xff]  ;;  %v13965_v43 = vcombine.low %v1255_v19, %v1263_v24 }
 0x467   : > { %v991_v32 = vld [vmem:[%s15389_s29 + $0x1168] sm:$0xff] }
 0x468   : > { %v1239_v34 = vld [vmem:[%s15389_s29 + $0x1928] sm:$0xff]  ;;  %v13693_v21 = vcombine.low %v983_v31, %v991_v32 }
 0x469   : > { %10911 = vmatpush2.bf16.msra.mxu0 %v13277_v37  ;;  %10952 = vmatpush2.bf16.msra.mxu1 %v13533_v38  ;;  %v1247_v36 = vld [vmem:[%s15389_s29 + $0x1968] sm:$0xff]  ;;  %v13694_v37 = vcombine.high %v983_v31, %v991_v32 }
 0x46a   : > { %10962 = vmatprep.subr.bf16.mxu0 %v13774_v39  ;;  %11003 = vmatprep.subr.bf16.mxu1 %v14030_v40  ;;  %v13950_v38 = vcombine.high %v1239_v34, %v1247_v36  ;;  %v967_v39 = vld [vmem:[%s15389_s29 + $0x10a8] sm:$0xff]  ;;  %v13949_v52 = vcombine.low %v1239_v34, %v1247_v36 }
 0x46b   : > { %v975_v40 = vld [vmem:[%s15389_s29 + $0x10e8] sm:$0xff] }
 0x46c   : > { %v10668_v53 = vpop.f32.mrf.mxu0  ;;  %10913 = vmatmul.mubr.bf16.vlgmr.msra.gmra.mxu0 %v15486_v44  ;;  %v10709_v57 = vpop.f32.mrf.mxu1  ;;  %10954 = vmatmul.mubr.bf16.vlgmr.msra.gmra.mxu1 %v15491_v48  ;;  %v1223_v11 = vld [vmem:[%s15389_s29 + $0x18a8] sm:$0xff] }
 0x46d   : > { %10963 = vmatpush1.bf16.msra.mxu0 %v13773_v47  ;;  %v16614_v61 = vadd.f32 %v10709_v57, %v10668_v53  ;;  %11004 = vmatpush1.bf16.msra.mxu1 %v14029_v45  ;;  %v1231_v13 = vld [vmem:[%s15389_s29 + $0x18e8] sm:$0xff]  ;;  %v13678_v47 = vcombine.high %v967_v39, %v975_v40  ;;  %v13677_v53 = vcombine.low %v967_v39, %v975_v40 }
 0x46e   : > { %v10670_v63 = vpop.f32.mrf.mxu0  ;;  %10964 = vmatprep.subr.bf16.mxu0 %v13758_v46  ;;  %v10711_v62 = vpop.f32.mrf.mxu1  ;;  %11005 = vmatprep.subr.bf16.mxu1 %v14014_v50  ;;  %v13934_v45 = vcombine.high %v1223_v11, %v1231_v13  ;;  %v951_v46 = vld [vmem:[%s15389_s29 + $0x1028] sm:$0xff]  ;;  %v13933_v55 = vcombine.low %v1223_v11, %v1231_v13 }
 0x46f   : > { %10994 = vmatprep.mubr.bf16.mxu0 %v15496_v56  ;;  %v16619_v6 = vadd.f32 %v10711_v62, %v10670_v63  ;;  %11035 = vmatprep.mubr.bf16.mxu1 %v15501_v59  ;;  %v959_v50 = vld [vmem:[%s15389_s29 + $0x1068] sm:$0xff] }
 0x470   : > { %v10672_v41 = vpop.f32.mrf.mxu0  ;;  %v10713_v17 = vpop.f32.mrf.mxu1  ;;  %v1207_v58 = vld [vmem:[%s15389_s29 + $0x1828] sm:$0xff]  ;;  %v13662_v54 = vcombine.high %v951_v46, %v959_v50  ;;  %v13661_v62 = vcombine.low %v951_v46, %v959_v50 }
 0x471   : > { %10965 = vmatpush1.bf16.msra.mxu0 %v13757_v60  ;;  %11006 = vmatpush1.bf16.msra.mxu1 %v14013_v35  ;;  %v1215_v51 = vld [vmem:[%s15389_s29 + $0x1868] sm:$0xff] }
 0x472   : > { %v10673_v8 = vpop.f32.mrf.mxu0  ;;  %10966 = vmatprep.subr.bf16.mxu0 %v13742_v7  ;;  %v10714_v25 = vpop.f32.mrf.mxu1  ;;  %11007 = vmatprep.subr.bf16.mxu1 %v13998_v1  ;;  %v13918_v57 = vcombine.high %v1207_v58, %v1215_v51  ;;  %v1191_v60 = vld [vmem:[%s15389_s29 + $0x17a8] sm:$0xff]  ;;  %v13917_v1 = vcombine.low %v1207_v58, %v1215_v51 }
 0x473   : > { %v1199_v63 = vld [vmem:[%s15389_s29 + $0x17e8] sm:$0xff] }
 0x474   : > { %v1447_v35 = vld [vmem:[%s15389_s29 + $0x1fa8] sm:$0xff]  ;;  %v13902_v2 = vcombine.high %v1191_v60, %v1199_v63 }
 0x475   : > { %10967 = vmatpush1.bf16.msra.mxu0 %v13741_v10  ;;  %11008 = vmatpush1.bf16.msra.mxu1 %v13997_v9  ;;  %v1455_v7 = vld [vmem:[%s15389_s29 + $0x1fe8] sm:$0xff]  ;;  %v13901_v10 = vcombine.low %v1191_v60, %v1199_v63 }
 0x476   : > { %10968 = vmatprep.subr.bf16.mxu0 %v13726_v14  ;;  %11009 = vmatprep.subr.bf16.mxu1 %v13982_v16  ;;  %v14158_v3 = vcombine.high %v1447_v35, %v1455_v7  ;;  %v1175_v41 = vld [vmem:[%s15389_s29 + $0x1728] sm:$0xff]  ;;  %v14157_v8 = vcombine.low %v1447_v35, %v1455_v7 }
 0x477   : > { %v1183_v42 = vld [vmem:[%s15389_s29 + $0x1768] sm:$0xff] }
 0x478   : > { %v1431_v49 = vld [vmem:[%s15389_s29 + $0x1f28] sm:$0xff]  ;;  %v13886_v9 = vcombine.high %v1175_v41, %v1183_v42  ;;  %v13885_v19 = vcombine.low %v1175_v41, %v1183_v42 }
 0x479   : > { %10969 = vmatpush1.bf16.msra.mxu0 %v13725_v26  ;;  %11010 = vmatpush1.bf16.msra.mxu1 %v13981_v27  ;;  %v1439_v17 = vld [vmem:[%s15389_s29 + $0x1f68] sm:$0xff] }
 0x47a   : > { %10970 = vmatprep.subr.bf16.mxu0 %v13710_v29  ;;  %11011 = vmatprep.subr.bf16.mxu1 %v13966_v28  ;;  %v14142_v14 = vcombine.high %v1431_v49, %v1439_v17  ;;  %v1159_v25 = vld [vmem:[%s15389_s29 + $0x16a8] sm:$0xff]  ;;  %v14141_v24 = vcombine.low %v1431_v49, %v1439_v17 }
 0x47b   : > { %v1167_v16 = vld [vmem:[%s15389_s29 + $0x16e8] sm:$0xff] }
 0x47c   : > { %v1415_v18 = vld [vmem:[%s15389_s29 + $0x1ea8] sm:$0xff]  ;;  %v13870_v26 = vcombine.high %v1159_v25, %v1167_v16  ;;  %v13869_v34 = vcombine.low %v1159_v25, %v1167_v16 }
 0x47d   : > { %10971 = vmatpush1.bf16.msra.mxu0 %v13709_v5  ;;  %11012 = vmatpush1.bf16.msra.mxu1 %v13965_v43  ;;  %v1423_v20 = vld [vmem:[%s15389_s29 + $0x1ee8] sm:$0xff] }
 0x47e   : > { %10972 = vmatprep.subr.bf16.mxu0 %v13694_v37  ;;  %11013 = vmatprep.subr.bf16.mxu1 %v13950_v38  ;;  %v14126_v27 = vcombine.high %v1415_v18, %v1423_v20  ;;  %v1143_v29 = vld [vmem:[%s15389_s29 + $0x1628] sm:$0xff]  ;;  %v14125_v36 = vcombine.low %v1415_v18, %v1423_v20 }
 0x47f   : > { %v1151_v28 = vld [vmem:[%s15389_s29 + $0x1668] sm:$0xff] }
 0x480   : > { %v1399_v31 = vld [vmem:[%s15389_s29 + $0x1e28] sm:$0xff]  ;;  %v13854_v5 = vcombine.high %v1143_v29, %v1151_v28  ;;  %v13853_v11 = vcombine.low %v1143_v29, %v1151_v28 }
 0x481   : > { %10973 = vmatpush1.bf16.msra.mxu0 %v13693_v21  ;;  %11014 = vmatpush1.bf16.msra.mxu1 %v13949_v52  ;;  %v1407_v32 = vld [vmem:[%s15389_s29 + $0x1e68] sm:$0xff] }
 0x482   : > { %10974 = vmatprep.subr.bf16.mxu0 %v13678_v47  ;;  %11015 = vmatprep.subr.bf16.mxu1 %v13934_v45  ;;  %v14110_v43 = vcombine.high %v1399_v31, %v1407_v32  ;;  %v1127_v37 = vld [vmem:[%s15389_s29 + $0x15a8] sm:$0xff]  ;;  %v14109_v13 = vcombine.low %v1399_v31, %v1407_v32 }
 0x483   : > { %v1135_v38 = vld [vmem:[%s15389_s29 + $0x15e8] sm:$0xff] }
 0x484   : > { %v1383_v39 = vld [vmem:[%s15389_s29 + $0x1da8] sm:$0xff]  ;;  %v13838_v21 = vcombine.high %v1127_v37, %v1135_v38  ;;  %v13837_v58 = vcombine.low %v1127_v37, %v1135_v38 }
 0x485   : > { %10975 = vmatpush1.bf16.msra.mxu0 %v13677_v53  ;;  %11016 = vmatpush1.bf16.msra.mxu1 %v13933_v55  ;;  %v1391_v40 = vld [vmem:[%s15389_s29 + $0x1de8] sm:$0xff] }
 0x486   : > { %10976 = vmatprep.subr.bf16.mxu0 %v13662_v54  ;;  %11017 = vmatprep.subr.bf16.mxu1 %v13918_v57  ;;  %v14094_v52 = vcombine.high %v1383_v39, %v1391_v40  ;;  %v1111_v47 = vld [vmem:[%s15389_s29 + $0x1528] sm:$0xff]  ;;  %v14093_v51 = vcombine.low %v1383_v39, %v1391_v40 }
 0x487   : > { %v1119_v45 = vld [vmem:[%s15389_s29 + $0x1568] sm:$0xff] }
 0x488   : > { %v1367_v46 = vld [vmem:[%s15389_s29 + $0x1d28] sm:$0xff]  ;;  %v13822_v53 = vcombine.high %v1111_v47, %v1119_v45  ;;  %v13821_v35 = vcombine.low %v1111_v47, %v1119_v45 }
 0x489   : > { %10977 = vmatpush1.bf16.msra.mxu0 %v13661_v62  ;;  %11018 = vmatpush1.bf16.msra.mxu1 %v13917_v1  ;;  %v1375_v50 = vld [vmem:[%s15389_s29 + $0x1d68] sm:$0xff] }
 0x48a   : > { %10978 = vmatprep.subr.bf16.mxu0 %v13902_v2  ;;  %11019 = vmatprep.subr.bf16.mxu1 %v14158_v3  ;;  %v14078_v55 = vcombine.high %v1367_v46, %v1375_v50  ;;  %v1095_v54 = vld [vmem:[%s15389_s29 + $0x14a8] sm:$0xff]  ;;  %v14077_v7 = vcombine.low %v1367_v46, %v1375_v50 }
 0x48b   : > { %v1103_v57 = vld [vmem:[%s15389_s29 + $0x14e8] sm:$0xff] }
 0x48c   : > { %v1351_v60 = vld [vmem:[%s15389_s29 + $0x1ca8] sm:$0xff]  ;;  %v13806_v62 = vcombine.high %v1095_v54, %v1103_v57  ;;  %v13805_v49 = vcombine.low %v1095_v54, %v1103_v57 }
 0x48d   : > { %10979 = vmatpush2.bf16.msra.mxu0 %v13901_v10  ;;  %11020 = vmatpush2.bf16.msra.mxu1 %v14157_v8  ;;  %v1359_v63 = vld [vmem:[%s15389_s29 + $0x1ce8] sm:$0xff] }
 0x48e   : > { %10980 = vmatprep.subr.bf16.mxu0 %v13886_v9  ;;  %11021 = vmatprep.subr.bf16.mxu1 %v14142_v14  ;;  %v14062_v1 = vcombine.high %v1351_v60, %v1359_v63  ;;  %v1079_v2 = vld [vmem:[%s15389_s29 + $0x1428] sm:$0xff]  ;;  %v14061_v17 = vcombine.low %v1351_v60, %v1359_v63 }
 0x48f   : > { %v1087_v3 = vld [vmem:[%s15389_s29 + $0x1468] sm:$0xff] }
 0x490   : > { %v1335_v41 = vld [vmem:[%s15389_s29 + $0x1c28] sm:$0xff]  ;;  %v13790_v10 = vcombine.high %v1079_v2, %v1087_v3  ;;  %v13789_v18 = vcombine.low %v1079_v2, %v1087_v3 }
 0x491   : > { %10981 = vmatpush2.bf16.msra.mxu0 %v13885_v19  ;;  %11022 = vmatpush2.bf16.msra.mxu1 %v14141_v24  ;;  %v1343_v42 = vld [vmem:[%s15389_s29 + $0x1c68] sm:$0xff] }
 0x492   : > { %10982 = vmatprep.subr.bf16.mxu0 %v13870_v26  ;;  %11023 = vmatprep.subr.bf16.mxu1 %v14126_v27  ;;  %v14046_v8 = vcombine.high %v1335_v41, %v1343_v42  ;;  %v1575_v9 = vld [vmem:[%s15389_s29 + $0x23a8] sm:$0xff]  ;;  %v14045_v20 = vcombine.low %v1335_v41, %v1343_v42 }
 0x493   : > { %v1583_v14 = vld [vmem:[%s15389_s29 + $0x23e8] sm:$0xff] }
 0x494   : > { %v1831_v25 = vld [vmem:[%s15389_s29 + $0x2ba8] sm:$0xff]  ;;  %v14286_v19 = vcombine.high %v1575_v9, %v1583_v14  ;;  %v14285_v31 = vcombine.low %v1575_v9, %v1583_v14 }
 0x495   : > { %10983 = vmatpush2.bf16.msra.mxu0 %v13869_v34  ;;  %11024 = vmatpush2.bf16.msra.mxu1 %v14125_v36  ;;  %v1839_v16 = vld [vmem:[%s15389_s29 + $0x2be8] sm:$0xff] }
 0x496   : > { %10984 = vmatprep.subr.bf16.mxu0 %v13854_v5  ;;  %11025 = vmatprep.subr.bf16.mxu1 %v14110_v43  ;;  %v14542_v24 = vcombine.high %v1831_v25, %v1839_v16  ;;  %v1559_v26 = vld [vmem:[%s15389_s29 + $0x2328] sm:$0xff]  ;;  %v14541_v32 = vcombine.low %v1831_v25, %v1839_v16 }
 0x497   : > { %v1567_v27 = vld [vmem:[%s15389_s29 + $0x2368] sm:$0xff] }
 0x498   : > { %v1815_v29 = vld [vmem:[%s15389_s29 + $0x2b28] sm:$0xff]  ;;  %v14270_v34 = vcombine.high %v1559_v26, %v1567_v27 }
 0x499   : > { %10985 = vmatpush2.bf16.msra.mxu0 %v13853_v11  ;;  %11026 = vmatpush2.bf16.msra.mxu1 %v14109_v13  ;;  %v1823_v28 = vld [vmem:[%s15389_s29 + $0x2b68] sm:$0xff]  ;;  %v14269_v11 = vcombine.low %v1559_v26, %v1567_v27 }
 0x49a   : > { %10986 = vmatprep.subr.bf16.mxu0 %v13838_v21  ;;  %11027 = vmatprep.subr.bf16.mxu1 %v14094_v52  ;;  %v14526_v36 = vcombine.high %v1815_v29, %v1823_v28  ;;  %v1543_v5 = vld [vmem:[%s15389_s29 + $0x22a8] sm:$0xff]  ;;  %v14525_v21 = vcombine.low %v1815_v29, %v1823_v28 }
 0x49b   : > { %v1551_v43 = vld [vmem:[%s15389_s29 + $0x22e8] sm:$0xff] }
 0x49c   : > { %v1799_v38 = vld [vmem:[%s15389_s29 + $0x2aa8] sm:$0xff]  ;;  %v14254_v52 = vcombine.high %v1543_v5, %v1551_v43  ;;  %v14253_v54 = vcombine.low %v1543_v5, %v1551_v43 }
 0x49d   : > { %10987 = vmatpush2.bf16.msra.mxu0 %v13837_v58  ;;  %11028 = vmatpush2.bf16.msra.mxu1 %v14093_v51  ;;  %v1807_v39 = vld [vmem:[%s15389_s29 + $0x2ae8] sm:$0xff] }
 0x49e   : > { %10988 = vmatprep.subr.bf16.mxu0 %v13822_v53  ;;  %11029 = vmatprep.subr.bf16.mxu1 %v14078_v55  ;;  %v14510_v45 = vcombine.high %v1799_v38, %v1807_v39  ;;  %v1527_v46 = vld [vmem:[%s15389_s29 + $0x2228] sm:$0xff]  ;;  %v14509_v60 = vcombine.low %v1799_v38, %v1807_v39 }
 0x49f   : > { %v1535_v50 = vld [vmem:[%s15389_s29 + $0x2268] sm:$0xff] }
 0x4a0   : > { %v1783_v51 = vld [vmem:[%s15389_s29 + $0x2a28] sm:$0xff]  ;;  %v14238_v63 = vcombine.high %v1527_v46, %v1535_v50  ;;  %v14237_v41 = vcombine.low %v1527_v46, %v1535_v50 }
 0x4a1   : > { %10989 = vmatpush2.bf16.msra.mxu0 %v13821_v35  ;;  %11030 = vmatpush2.bf16.msra.mxu1 %v14077_v7  ;;  %v1791_v53 = vld [vmem:[%s15389_s29 + $0x2a68] sm:$0xff] }
 0x4a2   : > { %10990 = vmatprep.subr.bf16.mxu0 %v13806_v62  ;;  %11031 = vmatprep.subr.bf16.mxu1 %v14062_v1  ;;  %v14494_v7 = vcombine.high %v1783_v51, %v1791_v53  ;;  %v1511_v62 = vld [vmem:[%s15389_s29 + $0x21a8] sm:$0xff]  ;;  %v14493_v42 = vcombine.low %v1783_v51, %v1791_v53 }
 0x4a3   : > { %v1519_v1 = vld [vmem:[%s15389_s29 + $0x21e8] sm:$0xff] }
 0x4a4   : > { %v1767_v2 = vld [vmem:[%s15389_s29 + $0x29a8] sm:$0xff]  ;;  %v14221_v25 = vcombine.low %v1511_v62, %v1519_v1 }
 0x4a5   : > { %10991 = vmatpush2.bf16.msra.mxu0 %v13805_v49  ;;  %11032 = vmatpush2.bf16.msra.mxu1 %v14061_v17  ;;  %v1775_v3 = vld [vmem:[%s15389_s29 + $0x29e8] sm:$0xff]  ;;  %v14222_v49 = vcombine.high %v1511_v62, %v1519_v1 }
 0x4a6   : > { %10992 = vmatprep.subr.bf16.mxu0 %v13790_v10  ;;  %11033 = vmatprep.subr.bf16.mxu1 %v14046_v8  ;;  %v14478_v17 = vcombine.high %v1767_v2, %v1775_v3  ;;  %v1495_v10 = vld [vmem:[%s15389_s29 + $0x2128] sm:$0xff]  ;;  %v14477_v16 = vcombine.low %v1767_v2, %v1775_v3 }
 0x4a7   : > { %v1503_v8 = vld [vmem:[%s15389_s29 + $0x2168] sm:$0xff] }
 0x4a8   : > { %v1751_v9 = vld [vmem:[%s15389_s29 + $0x2928] sm:$0xff]  ;;  %v14205_v29 = vcombine.low %v1495_v10, %v1503_v8 }
 0x4a9   : > { %10993 = vmatpush2.bf16.msra.mxu0 %v13789_v18  ;;  %11034 = vmatpush2.bf16.msra.mxu1 %v14045_v20  ;;  %v1759_v14 = vld [vmem:[%s15389_s29 + $0x2968] sm:$0xff]  ;;  %v14206_v18 = vcombine.high %v1495_v10, %v1503_v8 }
 0x4aa   : > { %11044 = vmatprep.subr.bf16.mxu0 %v14286_v19  ;;  %11085 = vmatprep.subr.bf16.mxu1 %v14542_v24  ;;  %v14462_v20 = vcombine.high %v1751_v9, %v1759_v14  ;;  %v1479_v19 = vld [vmem:[%s15389_s29 + $0x20a8] sm:$0xff]  ;;  %v14461_v28 = vcombine.low %v1751_v9, %v1759_v14 }
 0x4ab   : > { %v1487_v24 = vld [vmem:[%s15389_s29 + $0x20e8] sm:$0xff] }
 0x4ac   : > { %v16682_v37 = vpop.f32.mrf.mxu0  ;;  %10995 = vmatmul.mubr.bf16.vlgmr.msra.gmra.mxu0 %v15566_v0  ;;  %v16687_v40 = vpop.f32.mrf.mxu1  ;;  %11036 = vmatmul.mubr.bf16.vlgmr.msra.gmra.mxu1 %v15571_v4  ;;  %v1735_v26 = vld [vmem:[%s15389_s29 + $0x28a8] sm:$0xff]  ;;  %v14189_v38 = vcombine.low %v1479_v19, %v1487_v24 }
 0x4ad   : > { %11045 = vmatpush1.bf16.msra.mxu0 %v14285_v31  ;;  %11086 = vmatpush1.bf16.msra.mxu1 %v14541_v32  ;;  %v1743_v27 = vld [vmem:[%s15389_s29 + $0x28e8] sm:$0xff]  ;;  %v14190_v31 = vcombine.high %v1479_v19, %v1487_v24 }
 0x4ae   : > { %v16690_v13 = vpop.f32.mrf.mxu0  ;;  %11046 = vmatprep.subr.bf16.mxu0 %v14270_v34  ;;  %v16692_v47 = vpop.f32.mrf.mxu1  ;;  %11087 = vmatprep.subr.bf16.mxu1 %v14526_v36  ;;  %v14446_v32 = vcombine.high %v1735_v26, %v1743_v27  ;;  %v1463_v34 = vld [vmem:[%s15389_s29 + $0x2028] sm:$0xff]  ;;  %v14445_v39 = vcombine.low %v1735_v26, %v1743_v27 }
 0x4af   : > { %11076 = vmatprep.mubr.bf16.mxu0 %v15576_v12  ;;  %11117 = vmatprep.mubr.bf16.mxu1 %v15581_v15  ;;  %v1471_v36 = vld [vmem:[%s15389_s29 + $0x2068] sm:$0xff] }
 0x4b0   : > { %v10754_v58 = vpop.f32.mrf.mxu0  ;;  %v10795_v55 = vpop.f32.mrf.mxu1  ;;  %v1719_v5 = vld [vmem:[%s15389_s29 + $0x2828] sm:$0xff] }
 0x4b1   : > { %11047 = vmatpush1.bf16.msra.mxu0 %v14269_v11  ;;  %11088 = vmatpush1.bf16.msra.mxu1 %v14525_v21  ;;  %v1727_v43 = vld [vmem:[%s15389_s29 + $0x2868] sm:$0xff]  ;;  %v14174_v11 = vcombine.high %v1463_v34, %v1471_v36  ;;  %v14173_v58 = vcombine.low %v1463_v34, %v1471_v36 }
 0x4b2   : > { %v10755_v57 = vpop.f32.mrf.mxu0  ;;  %11048 = vmatprep.subr.bf16.mxu0 %v14254_v52  ;;  %v10796_v35 = vpop.f32.mrf.mxu1  ;;  %11089 = vmatprep.subr.bf16.mxu1 %v14510_v45  ;;  %v14430_v21 = vcombine.high %v1719_v5, %v1727_v43  ;;  %v1703_v52 = vld [vmem:[%s15389_s29 + $0x27a8] sm:$0xff]  ;;  %v14429_v51 = vcombine.low %v1719_v5, %v1727_v43 }
 0x4b3   : > { %v1711_v45 = vld [vmem:[%s15389_s29 + $0x27e8] sm:$0xff] }
 0x4b4   : > { %v1959_v46 = vld [vmem:[%s15389_s29 + $0x2fa8] sm:$0xff]  ;;  %v14414_v53 = vcombine.high %v1703_v52, %v1711_v45  ;;  %v14413_v35 = vcombine.low %v1703_v52, %v1711_v45 }
 0x4b5   : > { %11049 = vmatpush1.bf16.msra.mxu0 %v14253_v54  ;;  %11090 = vmatpush1.bf16.msra.mxu1 %v14509_v60  ;;  %v1967_v50 = vld [vmem:[%s15389_s29 + $0x2fe8] sm:$0xff] }
 0x4b6   : > { %11050 = vmatprep.subr.bf16.mxu0 %v14238_v63  ;;  %11091 = vmatprep.subr.bf16.mxu1 %v14494_v7  ;;  %v14670_v55 = vcombine.high %v1959_v46, %v1967_v50  ;;  %v1687_v54 = vld [vmem:[%s15389_s29 + $0x2728] sm:$0xff]  ;;  %v14669_v7 = vcombine.low %v1959_v46, %v1967_v50 }
 0x4b7   : > { %v1695_v57 = vld [vmem:[%s15389_s29 + $0x2768] sm:$0xff] }
 0x4b8   : > { %v1943_v60 = vld [vmem:[%s15389_s29 + $0x2f28] sm:$0xff]  ;;  %v14398_v62 = vcombine.high %v1687_v54, %v1695_v57 }
 0x4b9   : > { %11051 = vmatpush1.bf16.msra.mxu0 %v14237_v41  ;;  %11092 = vmatpush1.bf16.msra.mxu1 %v14493_v42  ;;  %v1951_v63 = vld [vmem:[%s15389_s29 + $0x2f68] sm:$0xff] }
 0x4ba   : > { %11052 = vmatprep.subr.bf16.mxu0 %v14222_v49  ;;  %11093 = vmatprep.subr.bf16.mxu1 %v14478_v17  ;;  %v14654_v1 = vcombine.high %v1943_v60, %v1951_v63  ;;  %v1671_v2 = vld [vmem:[%s15389_s29 + $0x26a8] sm:$0xff]  ;;  %v14397_v49 = vcombine.low %v1687_v54, %v1695_v57  ;;  %v14653_v17 = vcombine.low %v1943_v60, %v1951_v63 }
 0x4bb   : > { %v1679_v3 = vld [vmem:[%s15389_s29 + $0x26e8] sm:$0xff] }
 0x4bc   : > { %v1927_v41 = vld [vmem:[%s15389_s29 + $0x2ea8] sm:$0xff]  ;;  %v14382_v10 = vcombine.high %v1671_v2, %v1679_v3 }
 0x4bd   : > { %11053 = vmatpush1.bf16.msra.mxu0 %v14221_v25  ;;  %11094 = vmatpush1.bf16.msra.mxu1 %v14477_v16  ;;  %v1935_v42 = vld [vmem:[%s15389_s29 + $0x2ee8] sm:$0xff] }
 0x4be   : > { %11054 = vmatprep.subr.bf16.mxu0 %v14206_v18  ;;  %11095 = vmatprep.subr.bf16.mxu1 %v14462_v20  ;;  %v14638_v8 = vcombine.high %v1927_v41, %v1935_v42  ;;  %v1655_v9 = vld [vmem:[%s15389_s29 + $0x2628] sm:$0xff]  ;;  %v14381_v18 = vcombine.low %v1671_v2, %v1679_v3  ;;  %v14637_v20 = vcombine.low %v1927_v41, %v1935_v42  ;;  %v552_v41 = vld [vmem:[%s15389_s29 + $0x3b0] sm:$0xff] }
 0x4bf   : > { %v1663_v14 = vld [vmem:[%s15389_s29 + $0x2668] sm:$0xff]  ;;  %v560_v42 = vld [vmem:[%s15389_s29 + $0x3f0] sm:$0xff] }
 0x4c0   : > { %v1911_v25 = vld [vmem:[%s15389_s29 + $0x2e28] sm:$0xff]  ;;  %v14366_v19 = vcombine.high %v1655_v9, %v1663_v14 }
 0x4c1   : > { %11055 = vmatpush1.bf16.msra.mxu0 %v14205_v29  ;;  %11096 = vmatpush1.bf16.msra.mxu1 %v14461_v28  ;;  %v1919_v16 = vld [vmem:[%s15389_s29 + $0x2e68] sm:$0xff] }
 0x4c2   : > { %11056 = vmatprep.subr.bf16.mxu0 %v14190_v31  ;;  %11097 = vmatprep.subr.bf16.mxu1 %v14446_v32  ;;  %v14622_v24 = vcombine.high %v1911_v25, %v1919_v16  ;;  %v1639_v26 = vld [vmem:[%s15389_s29 + $0x25a8] sm:$0xff]  ;;  %v14365_v31 = vcombine.low %v1655_v9, %v1663_v14  ;;  %v14621_v32 = vcombine.low %v1911_v25, %v1919_v16  ;;  %v536_v16 = vld [vmem:[%s15389_s29 + $0x330] sm:$0xff] }
 0x4c3   : > { %v1647_v27 = vld [vmem:[%s15389_s29 + $0x25e8] sm:$0xff]  ;;  %v13264_v9 = vcombine.high %v552_v41, %v560_v42  ;;  %v10751_v14 = vadd.f32 %v16682_v37, %v16614_v61 }
 0x4c4   : > { %v1895_v29 = vld [vmem:[%s15389_s29 + $0x2da8] sm:$0xff]  ;;  %v14350_v34 = vcombine.high %v1639_v26, %v1647_v27 }
 0x4c5   : > { %11057 = vmatpush1.bf16.msra.mxu0 %v14189_v38  ;;  %11098 = vmatpush1.bf16.msra.mxu1 %v14445_v39  ;;  %v1903_v28 = vld [vmem:[%s15389_s29 + $0x2de8] sm:$0xff]  ;;  %v10792_v61 = vadd.f32 %v16687_v40, %v10751_v14  ;;  %v426_v40 = vld [vmem:[#allocation2 + $0x40] sm:$0xff] }
 0x4c6   : > { %11058 = vmatprep.subr.bf16.mxu0 %v14174_v11  ;;  %11099 = vmatprep.subr.bf16.mxu1 %v14430_v21  ;;  %v14606_v36 = vcombine.high %v1895_v29, %v1903_v28  ;;  %v1623_v5 = vld [vmem:[%s15389_s29 + $0x2528] sm:$0xff]  ;;  %v14349_v11 = vcombine.low %v1639_v26, %v1647_v27  ;;  %v14605_v21 = vcombine.low %v1895_v29, %v1903_v28  ;;  %v520_v28 = vld [vmem:[%s15389_s29 + $0x2b0] sm:$0xff] }
 0x4c7   : > { %v1631_v43 = vld [vmem:[%s15389_s29 + $0x2568] sm:$0xff]  ;;  %v13263_v26 = vcombine.low %v552_v41, %v560_v42  ;;  %v488_v41 = vld [vmem:[%s15389_s29 + $0x1b0] sm:$0xff] }
 0x4c8   : > { %v1879_v38 = vld [vmem:[%s15389_s29 + $0x2d28] sm:$0xff]  ;;  %v14334_v52 = vcombine.high %v1623_v5, %v1631_v43  ;;  %v496_v42 = vld [vmem:[%s15389_s29 + $0x1f0] sm:$0xff] }
 0x4c9   : > { %11059 = vmatpush1.bf16.msra.mxu0 %v14173_v58  ;;  %11100 = vmatpush1.bf16.msra.mxu1 %v14429_v51  ;;  %v1887_v39 = vld [vmem:[%s15389_s29 + $0x2d68] sm:$0xff] }
 0x4ca   : > { %11060 = vmatprep.subr.bf16.mxu0 %v14414_v53  ;;  %11101 = vmatprep.subr.bf16.mxu1 %v14670_v55  ;;  %v14590_v45 = vcombine.high %v1879_v38, %v1887_v39  ;;  %v1607_v46 = vld [vmem:[%s15389_s29 + $0x24a8] sm:$0xff]  ;;  %v14333_v53 = vcombine.low %v1623_v5, %v1631_v43  ;;  %v14589_v55 = vcombine.low %v1879_v38, %v1887_v39 }
 0x4cb   : > { %v1615_v50 = vld [vmem:[%s15389_s29 + $0x24e8] sm:$0xff] }
 0x4cc   : > { %v1863_v58 = vld [vmem:[%s15389_s29 + $0x2ca8] sm:$0xff]  ;;  %v14318_v54 = vcombine.high %v1607_v46, %v1615_v50 }
 0x4cd   : > { %11061 = vmatpush2.bf16.msra.mxu0 %v14413_v35  ;;  %11102 = vmatpush2.bf16.msra.mxu1 %v14669_v7  ;;  %v1871_v51 = vld [vmem:[%s15389_s29 + $0x2ce8] sm:$0xff] }
 0x4ce   : > { %11062 = vmatprep.subr.bf16.mxu0 %v14398_v62  ;;  %11103 = vmatprep.subr.bf16.mxu1 %v14654_v1  ;;  %v14574_v57 = vcombine.high %v1863_v58, %v1871_v51  ;;  %v1591_v60 = vld [vmem:[%s15389_s29 + $0x2428] sm:$0xff]  ;;  %v14317_v62 = vcombine.low %v1607_v46, %v1615_v50  ;;  %v14573_v1 = vcombine.low %v1863_v58, %v1871_v51  ;;  %v504_v46 = vld [vmem:[%s15389_s29 + $0x230] sm:$0xff]  ;;  %v427_v58 = vld [vmem:[#allocation2 + $0x20] sm:$0xff] }
 0x4cf   : > { %v1599_v63 = vld [vmem:[%s15389_s29 + $0x2468] sm:$0xff]  ;;  %v512_v50 = vld [vmem:[%s15389_s29 + $0x270] sm:$0xff] }
 0x4d0   : > { %v1847_v35 = vld [vmem:[%s15389_s29 + $0x2c28] sm:$0xff]  ;;  %v14302_v2 = vcombine.high %v1591_v60, %v1599_v63 }
 0x4d1   : > { %11063 = vmatpush2.bf16.msra.mxu0 %v14397_v49  ;;  %11104 = vmatpush2.bf16.msra.mxu1 %v14653_v17  ;;  %v1855_v7 = vld [vmem:[%s15389_s29 + $0x2c68] sm:$0xff]  ;;  %v808_v49 = vld [vmem:[%s15389_s29 + $0xbb0] sm:$0xff] }
 0x4d2   : > { %11064 = vmatprep.subr.bf16.mxu0 %v14382_v10  ;;  %11105 = vmatprep.subr.bf16.mxu1 %v14638_v8  ;;  %v14558_v3 = vcombine.high %v1847_v35, %v1855_v7  ;;  %v816_v17 = vld [vmem:[%s15389_s29 + $0xbf0] sm:$0xff]  ;;  %v14301_v10 = vcombine.low %v1591_v60, %v1599_v63  ;;  %v14557_v8 = vcombine.low %v1847_v35, %v1855_v7 }
 0x4d3   : > { %v13520_v25 = vcombine.high %v808_v49, %v816_v17  ;;  %v13519_v27 = vcombine.low %v808_v49, %v816_v17  ;;  %v744_v49 = vld [vmem:[%s15389_s29 + $0x9b0] sm:$0xff] }
 0x4d4   : > { %v752_v17 = vld [vmem:[%s15389_s29 + $0x9f0] sm:$0xff] }
 0x4d5   : > { %11065 = vmatpush2.bf16.msra.mxu0 %v14381_v18  ;;  %11106 = vmatpush2.bf16.msra.mxu1 %v14637_v20  ;;  %v544_v18 = vld [vmem:[%s15389_s29 + $0x370] sm:$0xff]  ;;  %v13456_v14 = vcombine.high %v744_v49, %v752_v17 }
 0x4d6   : > { %11066 = vmatprep.subr.bf16.mxu0 %v14366_v19  ;;  %11107 = vmatprep.subr.bf16.mxu1 %v14622_v24  ;;  %v792_v20 = vld [vmem:[%s15389_s29 + $0xb30] sm:$0xff]  ;;  %v10753_v24 = vadd.f32 %v16690_v13, %v16619_v6  ;;  %v13248_v29 = vcombine.high %v536_v16, %v544_v18  ;;  %v13247_v43 = vcombine.low %v536_v16, %v544_v18 }
 0x4d7   : > { %v800_v19 = vld [vmem:[%s15389_s29 + $0xb70] sm:$0xff] }
 0x4d8   : > { %v13504_v37 = vcombine.high %v792_v20, %v800_v19  ;;  %v10794_v5 = vadd.f32 %v16692_v47, %v10753_v24  ;;  %v13503_v39 = vcombine.low %v792_v20, %v800_v19  ;;  %v480_v16 = vld [vmem:[%s15389_s29 + $0x170] sm:$0xff]  ;;  %v13199_v19 = vcombine.low %v488_v41, %v496_v42 }
 0x4d9   : > { %11067 = vmatpush2.bf16.msra.mxu0 %v14365_v31  ;;  %11108 = vmatpush2.bf16.msra.mxu1 %v14621_v32  ;;  %v528_v31 = vld [vmem:[%s15389_s29 + $0x2f0] sm:$0xff]  ;;  %v13455_v24 = vcombine.low %v744_v49, %v752_v17 }
 0x4da   : > { %11068 = vmatprep.subr.bf16.mxu0 %v14350_v34  ;;  %11109 = vmatprep.subr.bf16.mxu1 %v14606_v36  ;;  %v776_v34 = vld [vmem:[%s15389_s29 + $0xab0] sm:$0xff]  ;;  %v13231_v63 = vcombine.low %v520_v28, %v528_v31 }
 0x4db   : > { %v784_v36 = vld [vmem:[%s15389_s29 + $0xaf0] sm:$0xff] }
 0x4dc   : > { %v13488_v47 = vcombine.high %v776_v34, %v784_v36  ;;  %v13487_v7 = vcombine.low %v776_v34, %v784_v36  ;;  %v728_v18 = vld [vmem:[%s15389_s29 + $0x930] sm:$0xff] }
 0x4dd   : > { %11069 = vmatpush2.bf16.msra.mxu0 %v14349_v11  ;;  %11110 = vmatpush2.bf16.msra.mxu1 %v14605_v21  ;;  %v13232_v11 = vcombine.high %v520_v28, %v528_v31  ;;  %v736_v20 = vld [vmem:[%s15389_s29 + $0x970] sm:$0xff] }
 0x4de   : > { %11070 = vmatprep.subr.bf16.mxu0 %v14334_v52  ;;  %11111 = vmatprep.subr.bf16.mxu1 %v14590_v45  ;;  %v720_v28 = vld [vmem:[%s15389_s29 + $0x8f0] sm:$0xff] }
 0x4e1   : > { %11071 = vmatpush2.bf16.msra.mxu0 %v14333_v53  ;;  %11112 = vmatpush2.bf16.msra.mxu1 %v14589_v55  ;;  %v760_v53 = vld [vmem:[%s15389_s29 + $0xa30] sm:$0xff] }
 0x4e2   : > { %11072 = vmatprep.subr.bf16.mxu0 %v14318_v54  ;;  %11113 = vmatprep.subr.bf16.mxu1 %v14574_v57  ;;  %v768_v55 = vld [vmem:[%s15389_s29 + $0xa70] sm:$0xff] }
 0x4e5   : > { %11073 = vmatpush2.bf16.msra.mxu0 %v14317_v62  ;;  %11114 = vmatpush2.bf16.msra.mxu1 %v14573_v1  ;;  %v13216_v62 = vcombine.high %v504_v46, %v512_v50 }
 0x4e6   : > { %11074 = vmatprep.subr.bf16.mxu0 %v14302_v2  ;;  %11115 = vmatprep.subr.bf16.mxu1 %v14558_v3  ;;  %v13472_v3 = vcombine.high %v760_v53, %v768_v55 }
 0x4e9   : > { %11075 = vmatpush2.bf16.msra.mxu0 %v14301_v10  ;;  %11116 = vmatpush2.bf16.msra.mxu1 %v14557_v8  ;;  %v13215_v10 = vcombine.low %v504_v46, %v512_v50  ;;  %v13471_v8 = vcombine.low %v760_v53, %v768_v55  ;;  %v664_v53 = vld [vmem:[%s15389_s29 + $0x730] sm:$0xff] }
 0x4ea   : > { %11126 = vmatprep.subr.bf16.mxu0 %v13264_v9  ;;  %11167 = vmatprep.subr.bf16.mxu1 %v13520_v25  ;;  %v13200_v9 = vcombine.high %v488_v41, %v496_v42  ;;  %v472_v25 = vld [vmem:[%s15389_s29 + $0x130] sm:$0xff] }
 0x4eb   : > { %v13183_v31 = vcombine.low %v472_v25, %v480_v16  ;;  %v672_v55 = vld [vmem:[%s15389_s29 + $0x770] sm:$0xff] }
 0x4ec   : > { %v10832_v32 = vpop.f32.mrf.mxu0  ;;  %11077 = vmatmul.mubr.bf16.vlgmr.msra.gmra.mxu0 %v15646_v30  ;;  %v10873_v13 = vpop.f32.mrf.mxu1  ;;  %11118 = vmatmul.mubr.bf16.vlgmr.msra.gmra.mxu1 %v15650_v33  ;;  %v13375_v41 = vcombine.low %v664_v53, %v672_v55 }
 0x4ed   : > { %v10833_v6 = vadd.f32 %v10832_v32, %v10792_v61  ;;  %11127 = vmatpush1.bf16.msra.mxu0 %v13263_v26  ;;  %11168 = vmatpush1.bf16.msra.mxu1 %v13519_v27  ;;  %v13184_v26 = vcombine.high %v472_v25, %v480_v16  ;;  %v13440_v27 = vcombine.high %v728_v18, %v736_v20  ;;  %v464_v61 = vld [vmem:[%s15389_s29 + $0xf0] sm:$0xff] }
 0x4ee   : > { %v10834_v38 = vpop.f32.mrf.mxu0  ;;  %11128 = vmatprep.subr.bf16.mxu0 %v13248_v29  ;;  %v10875_v45 = vpop.f32.mrf.mxu1  ;;  %11169 = vmatprep.subr.bf16.mxu1 %v13504_v37  ;;  %v456_v29 = vld [vmem:[%s15389_s29 + $0xb0] sm:$0xff]  ;;  %v13439_v32 = vcombine.low %v728_v18, %v736_v20 }
 0x4ef   : > { %v10874_v21 = vadd.f32 %v10873_v13, %v10833_v6  ;;  %v10835_v52 = vadd.f32 %v10834_v38, %v10794_v5  ;;  %11158 = vmatprep.mubr.bf16.mxu0 %v15438_v22  ;;  %11199 = vmatprep.mubr.bf16.mxu1 %v15440_v23  ;;  %v712_v37 = vld [vmem:[%s15389_s29 + $0x8b0] sm:$0xff]  ;;  %v13168_v34 = vcombine.high %v456_v29, %v464_v61 }
 0x4f0   : > { %v10836_v51 = vpop.f32.mrf.mxu0  ;;  %v10877_v60 = vpop.f32.mrf.mxu1  ;;  %v13424_v36 = vcombine.high %v712_v37, %v720_v28  ;;  %v440_v5 = vld [vmem:[%s15389_s29 + $0x30] sm:$0xff]  ;;  %v13423_v38 = vcombine.low %v712_v37, %v720_v28 }
 0x4f1   : > { %v11626_v54 = vadd.f32 %v10874_v21, %v426_v40  ;;  %v10876_v57 = vadd.f32 %v10875_v45, %v10835_v52  ;;  %11129 = vmatpush1.bf16.msra.mxu0 %v13247_v43  ;;  %11170 = vmatpush1.bf16.msra.mxu1 %v13503_v39  ;;  %v448_v6 = vld [vmem:[%s15389_s29 + $0x70] sm:$0xff]  ;;  %v13167_v40 = vcombine.low %v456_v29, %v464_v61 }
 0x4f2   : > { %v10837_v35 = vpop.f32.mrf.mxu0  ;;  %11130 = vmatprep.subr.bf16.mxu0 %v13232_v11  ;;  %v10878_v2 = vpop.f32.mrf.mxu1  ;;  %11171 = vmatprep.subr.bf16.mxu1 %v13488_v47  ;;  %v696_v13 = vld [vmem:[%s15389_s29 + $0x830] sm:$0xff]  ;;  %v13152_v39 = vcombine.high %v440_v5, %v448_v6  ;;  %v13151_v46 = vcombine.low %v440_v5, %v448_v6 }
 0x4f3   : > { %11642 = vst [vmem:[#allocation2 + $0x40] sm:$0xff] %v11626_v54  ;;  %v11627_v1 = vadd.f32 %v10876_v57, %v427_v58  ;;  %v704_v43 = vld [vmem:[%s15389_s29 + $0x870] sm:$0xff]  ;;  %v13376_v35 = vcombine.high %v664_v53, %v672_v55 }
 0x4f4   : > { %v13408_v11 = vcombine.high %v696_v13, %v704_v43  ;;  %v680_v21 = vld [vmem:[%s15389_s29 + $0x7b0] sm:$0xff]  ;;  %v13407_v50 = vcombine.low %v696_v13, %v704_v43 }
 0x4f5   : > { %11643 = vst [vmem:[#allocation2 + $0x20] sm:$0xff] %v11627_v1  ;;  %11131 = vmatpush1.bf16.msra.mxu0 %v13231_v63  ;;  %11172 = vmatpush1.bf16.msra.mxu1 %v13487_v7  ;;  %v688_v52 = vld [vmem:[%s15389_s29 + $0x7f0] sm:$0xff] }
 0x4f6   : > { %11132 = vmatprep.subr.bf16.mxu0 %v13216_v62  ;;  %11173 = vmatprep.subr.bf16.mxu1 %v13472_v3  ;;  %v936_v45 = vld [vmem:[%s15389_s29 + $0xfb0] sm:$0xff]  ;;  %v13392_v58 = vcombine.high %v680_v21, %v688_v52  ;;  %v13391_v60 = vcombine.low %v680_v21, %v688_v52 }
 0x4f7   : > { %v944_v47 = vld [vmem:[%s15389_s29 + $0xff0] sm:$0xff] }
 0x4f8   : > { %v13648_v51 = vcombine.high %v936_v45, %v944_v47  ;;  %v920_v54 = vld [vmem:[%s15389_s29 + $0xf30] sm:$0xff]  ;;  %v13647_v63 = vcombine.low %v936_v45, %v944_v47 }
 0x4f9   : > { %11133 = vmatpush1.bf16.msra.mxu0 %v13215_v10  ;;  %11174 = vmatpush1.bf16.msra.mxu1 %v13471_v8  ;;  %v928_v57 = vld [vmem:[%s15389_s29 + $0xf70] sm:$0xff] }
 0x4fa   : > { %11134 = vmatprep.subr.bf16.mxu0 %v13200_v9  ;;  %11175 = vmatprep.subr.bf16.mxu1 %v13456_v14  ;;  %v13632_v7 = vcombine.high %v920_v54, %v928_v57  ;;  %v648_v62 = vld [vmem:[%s15389_s29 + $0x6b0] sm:$0xff]  ;;  %v13631_v42 = vcombine.low %v920_v54, %v928_v57 }
 0x4fb   : > { %v656_v1 = vld [vmem:[%s15389_s29 + $0x6f0] sm:$0xff] }
 0x4fc   : > { %v904_v2 = vld [vmem:[%s15389_s29 + $0xeb0] sm:$0xff]  ;;  %v13360_v49 = vcombine.high %v648_v62, %v656_v1  ;;  %v13359_v25 = vcombine.low %v648_v62, %v656_v1 }
 0x4fd   : > { %11135 = vmatpush1.bf16.msra.mxu0 %v13199_v19  ;;  %11176 = vmatpush1.bf16.msra.mxu1 %v13455_v24  ;;  %v912_v3 = vld [vmem:[%s15389_s29 + $0xef0] sm:$0xff] }
 0x4fe   : > { %11136 = vmatprep.subr.bf16.mxu0 %v13184_v26  ;;  %11177 = vmatprep.subr.bf16.mxu1 %v13440_v27  ;;  %v13616_v17 = vcombine.high %v904_v2, %v912_v3  ;;  %v632_v10 = vld [vmem:[%s15389_s29 + $0x630] sm:$0xff]  ;;  %v13615_v16 = vcombine.low %v904_v2, %v912_v3 }
 0x4ff   : > { %v640_v8 = vld [vmem:[%s15389_s29 + $0x670] sm:$0xff] }
 0x500   : > { %v888_v9 = vld [vmem:[%s15389_s29 + $0xe30] sm:$0xff]  ;;  %v13344_v18 = vcombine.high %v632_v10, %v640_v8  ;;  %v13343_v29 = vcombine.low %v632_v10, %v640_v8 }
 0x501   : > { %11137 = vmatpush1.bf16.msra.mxu0 %v13183_v31  ;;  %11178 = vmatpush1.bf16.msra.mxu1 %v13439_v32  ;;  %v896_v14 = vld [vmem:[%s15389_s29 + $0xe70] sm:$0xff] }
 0x502   : > { %11138 = vmatprep.subr.bf16.mxu0 %v13168_v34  ;;  %11179 = vmatprep.subr.bf16.mxu1 %v13424_v36  ;;  %v13600_v20 = vcombine.high %v888_v9, %v896_v14  ;;  %v616_v19 = vld [vmem:[%s15389_s29 + $0x5b0] sm:$0xff]  ;;  %v13599_v61 = vcombine.low %v888_v9, %v896_v14 }
 0x503   : > { %v624_v24 = vld [vmem:[%s15389_s29 + $0x5f0] sm:$0xff] }
 0x504   : > { %v872_v26 = vld [vmem:[%s15389_s29 + $0xdb0] sm:$0xff]  ;;  %v13328_v37 = vcombine.high %v616_v19, %v624_v24  ;;  %v13327_v5 = vcombine.low %v616_v19, %v624_v24 }
 0x505   : > { %11139 = vmatpush1.bf16.msra.mxu0 %v13167_v40  ;;  %11180 = vmatpush1.bf16.msra.mxu1 %v13423_v38  ;;  %v880_v27 = vld [vmem:[%s15389_s29 + $0xdf0] sm:$0xff] }
 0x506   : > { %11140 = vmatprep.subr.bf16.mxu0 %v13152_v39  ;;  %11181 = vmatprep.subr.bf16.mxu1 %v13408_v11  ;;  %v13584_v28 = vcombine.high %v872_v26, %v880_v27  ;;  %v600_v31 = vld [vmem:[%s15389_s29 + $0x530] sm:$0xff]  ;;  %v13583_v6 = vcombine.low %v872_v26, %v880_v27 }
 0x507   : > { %v608_v32 = vld [vmem:[%s15389_s29 + $0x570] sm:$0xff] }
 0x508   : > { %v856_v34 = vld [vmem:[%s15389_s29 + $0xd30] sm:$0xff]  ;;  %v13312_v13 = vcombine.high %v600_v31, %v608_v32  ;;  %v13311_v21 = vcombine.low %v600_v31, %v608_v32 }
 0x509   : > { %11141 = vmatpush1.bf16.msra.mxu0 %v13151_v46  ;;  %11182 = vmatpush1.bf16.msra.mxu1 %v13407_v50  ;;  %v864_v36 = vld [vmem:[%s15389_s29 + $0xd70] sm:$0xff] }
 0x50a   : > { %11142 = vmatprep.subr.bf16.mxu0 %v13392_v58  ;;  %11183 = vmatprep.subr.bf16.mxu1 %v13648_v51  ;;  %v13568_v43 = vcombine.high %v856_v34, %v864_v36  ;;  %v584_v40 = vld [vmem:[%s15389_s29 + $0x4b0] sm:$0xff]  ;;  %v13567_v52 = vcombine.low %v856_v34, %v864_v36 }
 0x50b   : > { %v592_v38 = vld [vmem:[%s15389_s29 + $0x4f0] sm:$0xff] }
 0x50c   : > { %v840_v39 = vld [vmem:[%s15389_s29 + $0xcb0] sm:$0xff]  ;;  %v13296_v45 = vcombine.high %v584_v40, %v592_v38  ;;  %v13295_v53 = vcombine.low %v584_v40, %v592_v38 }
 0x50d   : > { %11143 = vmatpush2.bf16.msra.mxu0 %v13391_v60  ;;  %11184 = vmatpush2.bf16.msra.mxu1 %v13647_v63  ;;  %v848_v11 = vld [vmem:[%s15389_s29 + $0xcf0] sm:$0xff] }
 0x50e   : > { %11144 = vmatprep.subr.bf16.mxu0 %v13376_v35  ;;  %11185 = vmatprep.subr.bf16.mxu1 %v13632_v7  ;;  %v13552_v47 = vcombine.high %v840_v39, %v848_v11  ;;  %v568_v46 = vld [vmem:[%s15389_s29 + $0x430] sm:$0xff]  ;;  %v13551_v55 = vcombine.low %v840_v39, %v848_v11 }
 0x50f   : > { %v576_v50 = vld [vmem:[%s15389_s29 + $0x470] sm:$0xff] }
 0x510   : > { %v824_v58 = vld [vmem:[%s15389_s29 + $0xc30] sm:$0xff]  ;;  %v13280_v54 = vcombine.high %v568_v46, %v576_v50  ;;  %v13279_v62 = vcombine.low %v568_v46, %v576_v50 }
 0x511   : > { %11145 = vmatpush2.bf16.msra.mxu0 %v13375_v41  ;;  %11186 = vmatpush2.bf16.msra.mxu1 %v13631_v42  ;;  %v832_v51 = vld [vmem:[%s15389_s29 + $0xc70] sm:$0xff] }
 0x512   : > { %11146 = vmatprep.subr.bf16.mxu0 %v13360_v49  ;;  %11187 = vmatprep.subr.bf16.mxu1 %v13616_v17  ;;  %v13536_v57 = vcombine.high %v824_v58, %v832_v51  ;;  %v1064_v60 = vld [vmem:[%s15389_s29 + $0x13b0] sm:$0xff]  ;;  %v13535_v1 = vcombine.low %v824_v58, %v832_v51 }
 0x513   : > { %v1072_v63 = vld [vmem:[%s15389_s29 + $0x13f0] sm:$0xff] }
 0x514   : > { %v1320_v35 = vld [vmem:[%s15389_s29 + $0x1bb0] sm:$0xff]  ;;  %v13776_v2 = vcombine.high %v1064_v60, %v1072_v63  ;;  %v13775_v10 = vcombine.low %v1064_v60, %v1072_v63 }
 0x515   : > { %11147 = vmatpush2.bf16.msra.mxu0 %v13359_v25  ;;  %11188 = vmatpush2.bf16.msra.mxu1 %v13615_v16  ;;  %v1328_v7 = vld [vmem:[%s15389_s29 + $0x1bf0] sm:$0xff] }
 0x516   : > { %11148 = vmatprep.subr.bf16.mxu0 %v13344_v18  ;;  %11189 = vmatprep.subr.bf16.mxu1 %v13600_v20  ;;  %v14032_v3 = vcombine.high %v1320_v35, %v1328_v7  ;;  %v1048_v41 = vld [vmem:[%s15389_s29 + $0x1330] sm:$0xff]  ;;  %v14031_v8 = vcombine.low %v1320_v35, %v1328_v7 }
 0x517   : > { %v1056_v42 = vld [vmem:[%s15389_s29 + $0x1370] sm:$0xff] }
 0x518   : > { %v1304_v49 = vld [vmem:[%s15389_s29 + $0x1b30] sm:$0xff]  ;;  %v13760_v9 = vcombine.high %v1048_v41, %v1056_v42  ;;  %v13759_v26 = vcombine.low %v1048_v41, %v1056_v42 }
 0x519   : > { %11149 = vmatpush2.bf16.msra.mxu0 %v13343_v29  ;;  %11190 = vmatpush2.bf16.msra.mxu1 %v13599_v61  ;;  %v1312_v17 = vld [vmem:[%s15389_s29 + $0x1b70] sm:$0xff] }
 0x51a   : > { %11150 = vmatprep.subr.bf16.mxu0 %v13328_v37  ;;  %11191 = vmatprep.subr.bf16.mxu1 %v13584_v28  ;;  %v14016_v14 = vcombine.high %v1304_v49, %v1312_v17  ;;  %v1032_v25 = vld [vmem:[%s15389_s29 + $0x12b0] sm:$0xff]  ;;  %v14015_v61 = vcombine.low %v1304_v49, %v1312_v17 }
 0x51b   : > { %v1040_v16 = vld [vmem:[%s15389_s29 + $0x12f0] sm:$0xff] }
 0x51c   : > { %v1288_v20 = vld [vmem:[%s15389_s29 + $0x1ab0] sm:$0xff]  ;;  %v13744_v37 = vcombine.high %v1032_v25, %v1040_v16  ;;  %v13743_v40 = vcombine.low %v1032_v25, %v1040_v16 }
 0x51d   : > { %11151 = vmatpush2.bf16.msra.mxu0 %v13327_v5  ;;  %11192 = vmatpush2.bf16.msra.mxu1 %v13583_v6  ;;  %v1296_v19 = vld [vmem:[%s15389_s29 + $0x1af0] sm:$0xff] }
 0x51e   : > { %11152 = vmatprep.subr.bf16.mxu0 %v13312_v13  ;;  %11193 = vmatprep.subr.bf16.mxu1 %v13568_v43  ;;  %v14000_v31 = vcombine.high %v1288_v20, %v1296_v19  ;;  %v1016_v32 = vld [vmem:[%s15389_s29 + $0x1230] sm:$0xff]  ;;  %v13999_v39 = vcombine.low %v1288_v20, %v1296_v19 }
 0x51f   : > { %v1024_v34 = vld [vmem:[%s15389_s29 + $0x1270] sm:$0xff] }
 0x520   : > { %v1272_v6 = vld [vmem:[%s15389_s29 + $0x1a30] sm:$0xff]  ;;  %v13728_v11 = vcombine.high %v1016_v32, %v1024_v34  ;;  %v13727_v58 = vcombine.low %v1016_v32, %v1024_v34 }
 0x521   : > { %11153 = vmatpush2.bf16.msra.mxu0 %v13311_v21  ;;  %11194 = vmatpush2.bf16.msra.mxu1 %v13567_v52  ;;  %v1280_v13 = vld [vmem:[%s15389_s29 + $0x1a70] sm:$0xff] }
 0x522   : > { %11154 = vmatprep.subr.bf16.mxu0 %v13296_v45  ;;  %11195 = vmatprep.subr.bf16.mxu1 %v13552_v47  ;;  %v13984_v52 = vcombine.high %v1272_v6, %v1280_v13  ;;  %v1000_v45 = vld [vmem:[%s15389_s29 + $0x11b0] sm:$0xff]  ;;  %v13983_v51 = vcombine.low %v1272_v6, %v1280_v13 }
 0x523   : > { %v1008_v47 = vld [vmem:[%s15389_s29 + $0x11f0] sm:$0xff] }
 0x524   : > { %v1256_v46 = vld [vmem:[%s15389_s29 + $0x19b0] sm:$0xff]  ;;  %v13711_v35 = vcombine.low %v1000_v45, %v1008_v47 }
 0x525   : > { %11155 = vmatpush2.bf16.msra.mxu0 %v13295_v53  ;;  %11196 = vmatpush2.bf16.msra.mxu1 %v13551_v55  ;;  %v1264_v50 = vld [vmem:[%s15389_s29 + $0x19f0] sm:$0xff]  ;;  %v13712_v53 = vcombine.high %v1000_v45, %v1008_v47 }
 0x526   : > { %11156 = vmatprep.subr.bf16.mxu0 %v13280_v54  ;;  %11197 = vmatprep.subr.bf16.mxu1 %v13536_v57  ;;  %v13968_v55 = vcombine.high %v1256_v46, %v1264_v50  ;;  %v984_v54 = vld [vmem:[%s15389_s29 + $0x1130] sm:$0xff]  ;;  %v13967_v7 = vcombine.low %v1256_v46, %v1264_v50 }
 0x527   : > { %v992_v57 = vld [vmem:[%s15389_s29 + $0x1170] sm:$0xff] }
 0x528   : > { %v1240_v60 = vld [vmem:[%s15389_s29 + $0x1930] sm:$0xff]  ;;  %v13695_v49 = vcombine.low %v984_v54, %v992_v57 }
 0x529   : > { %11157 = vmatpush2.bf16.msra.mxu0 %v13279_v62  ;;  %11198 = vmatpush2.bf16.msra.mxu1 %v13535_v1  ;;  %v1248_v63 = vld [vmem:[%s15389_s29 + $0x1970] sm:$0xff]  ;;  %v13696_v62 = vcombine.high %v984_v54, %v992_v57 }
 0x52a   : > { %11208 = vmatprep.subr.bf16.mxu0 %v13776_v2  ;;  %11249 = vmatprep.subr.bf16.mxu1 %v14032_v3  ;;  %v13952_v1 = vcombine.high %v1240_v60, %v1248_v63  ;;  %v968_v2 = vld [vmem:[%s15389_s29 + $0x10b0] sm:$0xff]  ;;  %v13951_v17 = vcombine.low %v1240_v60, %v1248_v63 }
 0x52b   : > { %v976_v3 = vld [vmem:[%s15389_s29 + $0x10f0] sm:$0xff] }
 0x52c   : > { %v10914_v18 = vpop.f32.mrf.mxu0  ;;  %11159 = vmatmul.mubr.bf16.vlgmr.msra.gmra.mxu0 %v15486_v44  ;;  %v10955_v24 = vpop.f32.mrf.mxu1  ;;  %11200 = vmatmul.mubr.bf16.vlgmr.msra.gmra.mxu1 %v15491_v48  ;;  %v1224_v41 = vld [vmem:[%s15389_s29 + $0x18b0] sm:$0xff] }
 0x52d   : > { %11209 = vmatpush1.bf16.msra.mxu0 %v13775_v10  ;;  %v16836_v27 = vadd.f32 %v10955_v24, %v10914_v18  ;;  %11250 = vmatpush1.bf16.msra.mxu1 %v14031_v8  ;;  %v1232_v42 = vld [vmem:[%s15389_s29 + $0x18f0] sm:$0xff]  ;;  %v13680_v10 = vcombine.high %v968_v2, %v976_v3  ;;  %v13679_v18 = vcombine.low %v968_v2, %v976_v3 }
 0x52e   : > { %v10916_v29 = vpop.f32.mrf.mxu0  ;;  %11210 = vmatprep.subr.bf16.mxu0 %v13760_v9  ;;  %v10957_v28 = vpop.f32.mrf.mxu1  ;;  %11251 = vmatprep.subr.bf16.mxu1 %v14016_v14  ;;  %v13936_v8 = vcombine.high %v1224_v41, %v1232_v42  ;;  %v952_v9 = vld [vmem:[%s15389_s29 + $0x1030] sm:$0xff]  ;;  %v13935_v20 = vcombine.low %v1224_v41, %v1232_v42 }
 0x52f   : > { %11240 = vmatprep.mubr.bf16.mxu0 %v15496_v56  ;;  %v16841_v36 = vadd.f32 %v10957_v28, %v10916_v29  ;;  %11281 = vmatprep.mubr.bf16.mxu1 %v15501_v59  ;;  %v960_v14 = vld [vmem:[%s15389_s29 + $0x1070] sm:$0xff] }
 0x530   : > { %v10918_v5 = vpop.f32.mrf.mxu0  ;;  %v10959_v43 = vpop.f32.mrf.mxu1  ;;  %v1208_v25 = vld [vmem:[%s15389_s29 + $0x1830] sm:$0xff]  ;;  %v13664_v19 = vcombine.high %v952_v9, %v960_v14  ;;  %v13663_v28 = vcombine.low %v952_v9, %v960_v14 }
 0x531   : > { %11211 = vmatpush1.bf16.msra.mxu0 %v13759_v26  ;;  %11252 = vmatpush1.bf16.msra.mxu1 %v14015_v61  ;;  %v1216_v16 = vld [vmem:[%s15389_s29 + $0x1870] sm:$0xff] }
 0x532   : > { %v10919_v38 = vpop.f32.mrf.mxu0  ;;  %11212 = vmatprep.subr.bf16.mxu0 %v13744_v37  ;;  %v10960_v21 = vpop.f32.mrf.mxu1  ;;  %11253 = vmatprep.subr.bf16.mxu1 %v14000_v31  ;;  %v13920_v24 = vcombine.high %v1208_v25, %v1216_v16  ;;  %v1192_v26 = vld [vmem:[%s15389_s29 + $0x17b0] sm:$0xff]  ;;  %v13919_v31 = vcombine.low %v1208_v25, %v1216_v16 }
 0x533   : > { %v1200_v29 = vld [vmem:[%s15389_s29 + $0x17f0] sm:$0xff] }
 0x534   : > { %v1448_v61 = vld [vmem:[%s15389_s29 + $0x1fb0] sm:$0xff]  ;;  %v13904_v32 = vcombine.high %v1192_v26, %v1200_v29 }
 0x535   : > { %11213 = vmatpush1.bf16.msra.mxu0 %v13743_v40  ;;  %11254 = vmatpush1.bf16.msra.mxu1 %v13999_v39  ;;  %v1456_v37 = vld [vmem:[%s15389_s29 + $0x1ff0] sm:$0xff]  ;;  %v13903_v40 = vcombine.low %v1192_v26, %v1200_v29 }
 0x536   : > { %11214 = vmatprep.subr.bf16.mxu0 %v13728_v11  ;;  %11255 = vmatprep.subr.bf16.mxu1 %v13984_v52  ;;  %v14160_v34 = vcombine.high %v1448_v61, %v1456_v37  ;;  %v1176_v5 = vld [vmem:[%s15389_s29 + $0x1730] sm:$0xff]  ;;  %v14159_v38 = vcombine.low %v1448_v61, %v1456_v37 }
 0x537   : > { %v1184_v6 = vld [vmem:[%s15389_s29 + $0x1770] sm:$0xff] }
 0x538   : > { %v1432_v13 = vld [vmem:[%s15389_s29 + $0x1f30] sm:$0xff]  ;;  %v13888_v39 = vcombine.high %v1176_v5, %v1184_v6  ;;  %v13887_v46 = vcombine.low %v1176_v5, %v1184_v6 }
 0x539   : > { %11215 = vmatpush1.bf16.msra.mxu0 %v13727_v58  ;;  %11256 = vmatpush1.bf16.msra.mxu1 %v13983_v51  ;;  %v1440_v43 = vld [vmem:[%s15389_s29 + $0x1f70] sm:$0xff] }
 0x53a   : > { %11216 = vmatprep.subr.bf16.mxu0 %v13712_v53  ;;  %11257 = vmatprep.subr.bf16.mxu1 %v13968_v55  ;;  %v14144_v11 = vcombine.high %v1432_v13, %v1440_v43  ;;  %v1160_v21 = vld [vmem:[%s15389_s29 + $0x16b0] sm:$0xff]  ;;  %v14143_v50 = vcombine.low %v1432_v13, %v1440_v43 }
 0x53b   : > { %v1168_v52 = vld [vmem:[%s15389_s29 + $0x16f0] sm:$0xff] }
 0x53c   : > { %v1416_v45 = vld [vmem:[%s15389_s29 + $0x1eb0] sm:$0xff]  ;;  %v13872_v58 = vcombine.high %v1160_v21, %v1168_v52  ;;  %v13871_v60 = vcombine.low %v1160_v21, %v1168_v52 }
 0x53d   : > { %11217 = vmatpush1.bf16.msra.mxu0 %v13711_v35  ;;  %11258 = vmatpush1.bf16.msra.mxu1 %v13967_v7  ;;  %v1424_v47 = vld [vmem:[%s15389_s29 + $0x1ef0] sm:$0xff] }
 0x53e   : > { %11218 = vmatprep.subr.bf16.mxu0 %v13696_v62  ;;  %11259 = vmatprep.subr.bf16.mxu1 %v13952_v1  ;;  %v14128_v51 = vcombine.high %v1416_v45, %v1424_v47  ;;  %v1144_v53 = vld [vmem:[%s15389_s29 + $0x1630] sm:$0xff]  ;;  %v14127_v63 = vcombine.low %v1416_v45, %v1424_v47 }
 0x53f   : > { %v1152_v55 = vld [vmem:[%s15389_s29 + $0x1670] sm:$0xff] }
 0x540   : > { %v1400_v54 = vld [vmem:[%s15389_s29 + $0x1e30] sm:$0xff]  ;;  %v13856_v35 = vcombine.high %v1144_v53, %v1152_v55  ;;  %v13855_v41 = vcombine.low %v1144_v53, %v1152_v55 }
 0x541   : > { %11219 = vmatpush1.bf16.msra.mxu0 %v13695_v49  ;;  %11260 = vmatpush1.bf16.msra.mxu1 %v13951_v17  ;;  %v1408_v57 = vld [vmem:[%s15389_s29 + $0x1e70] sm:$0xff] }
 0x542   : > { %11220 = vmatprep.subr.bf16.mxu0 %v13680_v10  ;;  %11261 = vmatprep.subr.bf16.mxu1 %v13936_v8  ;;  %v14112_v7 = vcombine.high %v1400_v54, %v1408_v57  ;;  %v1128_v62 = vld [vmem:[%s15389_s29 + $0x15b0] sm:$0xff]  ;;  %v14111_v42 = vcombine.low %v1400_v54, %v1408_v57 }
 0x543   : > { %v1136_v1 = vld [vmem:[%s15389_s29 + $0x15f0] sm:$0xff] }
 0x544   : > { %v1384_v2 = vld [vmem:[%s15389_s29 + $0x1db0] sm:$0xff]  ;;  %v13840_v49 = vcombine.high %v1128_v62, %v1136_v1  ;;  %v13839_v25 = vcombine.low %v1128_v62, %v1136_v1 }
 0x545   : > { %11221 = vmatpush1.bf16.msra.mxu0 %v13679_v18  ;;  %11262 = vmatpush1.bf16.msra.mxu1 %v13935_v20  ;;  %v1392_v3 = vld [vmem:[%s15389_s29 + $0x1df0] sm:$0xff] }
 0x546   : > { %11222 = vmatprep.subr.bf16.mxu0 %v13664_v19  ;;  %11263 = vmatprep.subr.bf16.mxu1 %v13920_v24  ;;  %v14096_v17 = vcombine.high %v1384_v2, %v1392_v3  ;;  %v1112_v10 = vld [vmem:[%s15389_s29 + $0x1530] sm:$0xff]  ;;  %v14095_v16 = vcombine.low %v1384_v2, %v1392_v3 }
 0x547   : > { %v1120_v8 = vld [vmem:[%s15389_s29 + $0x1570] sm:$0xff] }
 0x548   : > { %v1368_v9 = vld [vmem:[%s15389_s29 + $0x1d30] sm:$0xff]  ;;  %v13824_v18 = vcombine.high %v1112_v10, %v1120_v8  ;;  %v13823_v61 = vcombine.low %v1112_v10, %v1120_v8 }
 0x549   : > { %11223 = vmatpush1.bf16.msra.mxu0 %v13663_v28  ;;  %11264 = vmatpush1.bf16.msra.mxu1 %v13919_v31  ;;  %v1376_v14 = vld [vmem:[%s15389_s29 + $0x1d70] sm:$0xff] }
 0x54a   : > { %11224 = vmatprep.subr.bf16.mxu0 %v13904_v32  ;;  %11265 = vmatprep.subr.bf16.mxu1 %v14160_v34  ;;  %v14080_v20 = vcombine.high %v1368_v9, %v1376_v14  ;;  %v1096_v19 = vld [vmem:[%s15389_s29 + $0x14b0] sm:$0xff]  ;;  %v14079_v37 = vcombine.low %v1368_v9, %v1376_v14 }
 0x54b   : > { %v1104_v24 = vld [vmem:[%s15389_s29 + $0x14f0] sm:$0xff] }
 0x54c   : > { %v1352_v26 = vld [vmem:[%s15389_s29 + $0x1cb0] sm:$0xff]  ;;  %v13808_v28 = vcombine.high %v1096_v19, %v1104_v24  ;;  %v13807_v13 = vcombine.low %v1096_v19, %v1104_v24 }
 0x54d   : > { %11225 = vmatpush2.bf16.msra.mxu0 %v13903_v40  ;;  %11266 = vmatpush2.bf16.msra.mxu1 %v14159_v38  ;;  %v1360_v29 = vld [vmem:[%s15389_s29 + $0x1cf0] sm:$0xff] }
 0x54e   : > { %11226 = vmatprep.subr.bf16.mxu0 %v13888_v39  ;;  %11267 = vmatprep.subr.bf16.mxu1 %v14144_v11  ;;  %v14064_v31 = vcombine.high %v1352_v26, %v1360_v29  ;;  %v1080_v32 = vld [vmem:[%s15389_s29 + $0x1430] sm:$0xff]  ;;  %v14063_v43 = vcombine.low %v1352_v26, %v1360_v29 }
 0x54f   : > { %v1088_v34 = vld [vmem:[%s15389_s29 + $0x1470] sm:$0xff] }
 0x550   : > { %v1336_v5 = vld [vmem:[%s15389_s29 + $0x1c30] sm:$0xff]  ;;  %v13792_v40 = vcombine.high %v1080_v32, %v1088_v34  ;;  %v13791_v45 = vcombine.low %v1080_v32, %v1088_v34 }
 0x551   : > { %11227 = vmatpush2.bf16.msra.mxu0 %v13887_v46  ;;  %11268 = vmatpush2.bf16.msra.mxu1 %v14143_v50  ;;  %v1344_v6 = vld [vmem:[%s15389_s29 + $0x1c70] sm:$0xff] }
 0x552   : > { %11228 = vmatprep.subr.bf16.mxu0 %v13872_v58  ;;  %11269 = vmatprep.subr.bf16.mxu1 %v14128_v51  ;;  %v14048_v38 = vcombine.high %v1336_v5, %v1344_v6  ;;  %v1576_v39 = vld [vmem:[%s15389_s29 + $0x23b0] sm:$0xff]  ;;  %v14047_v47 = vcombine.low %v1336_v5, %v1344_v6 }
 0x553   : > { %v1584_v11 = vld [vmem:[%s15389_s29 + $0x23f0] sm:$0xff] }
 0x554   : > { %v1832_v21 = vld [vmem:[%s15389_s29 + $0x2bb0] sm:$0xff]  ;;  %v14288_v46 = vcombine.high %v1576_v39, %v1584_v11  ;;  %v14287_v54 = vcombine.low %v1576_v39, %v1584_v11 }
 0x555   : > { %11229 = vmatpush2.bf16.msra.mxu0 %v13871_v60  ;;  %11270 = vmatpush2.bf16.msra.mxu1 %v14127_v63  ;;  %v1840_v52 = vld [vmem:[%s15389_s29 + $0x2bf0] sm:$0xff] }
 0x556   : > { %11230 = vmatprep.subr.bf16.mxu0 %v13856_v35  ;;  %11271 = vmatprep.subr.bf16.mxu1 %v14112_v7  ;;  %v14544_v50 = vcombine.high %v1832_v21, %v1840_v52  ;;  %v1560_v58 = vld [vmem:[%s15389_s29 + $0x2330] sm:$0xff]  ;;  %v14543_v57 = vcombine.low %v1832_v21, %v1840_v52 }
 0x557   : > { %v1568_v51 = vld [vmem:[%s15389_s29 + $0x2370] sm:$0xff] }
 0x558   : > { %v1816_v53 = vld [vmem:[%s15389_s29 + $0x2b30] sm:$0xff]  ;;  %v14272_v60 = vcombine.high %v1560_v58, %v1568_v51 }
 0x559   : > { %11231 = vmatpush2.bf16.msra.mxu0 %v13855_v41  ;;  %11272 = vmatpush2.bf16.msra.mxu1 %v14111_v42  ;;  %v1824_v55 = vld [vmem:[%s15389_s29 + $0x2b70] sm:$0xff]  ;;  %v14271_v41 = vcombine.low %v1560_v58, %v1568_v51 }
 0x55a   : > { %11232 = vmatprep.subr.bf16.mxu0 %v13840_v49  ;;  %11273 = vmatprep.subr.bf16.mxu1 %v14096_v17  ;;  %v14528_v63 = vcombine.high %v1816_v53, %v1824_v55  ;;  %v1544_v35 = vld [vmem:[%s15389_s29 + $0x22b0] sm:$0xff]  ;;  %v14527_v49 = vcombine.low %v1816_v53, %v1824_v55 }
 0x55b   : > { %v1552_v7 = vld [vmem:[%s15389_s29 + $0x22f0] sm:$0xff] }
 0x55c   : > { %v1800_v1 = vld [vmem:[%s15389_s29 + $0x2ab0] sm:$0xff]  ;;  %v14256_v17 = vcombine.high %v1544_v35, %v1552_v7  ;;  %v14255_v19 = vcombine.low %v1544_v35, %v1552_v7 }
 0x55d   : > { %11233 = vmatpush2.bf16.msra.mxu0 %v13839_v25  ;;  %11274 = vmatpush2.bf16.msra.mxu1 %v14095_v16  ;;  %v1808_v2 = vld [vmem:[%s15389_s29 + $0x2af0] sm:$0xff] }
 0x55e   : > { %11234 = vmatprep.subr.bf16.mxu0 %v13824_v18  ;;  %11275 = vmatprep.subr.bf16.mxu1 %v14080_v20  ;;  %v14512_v8 = vcombine.high %v1800_v1, %v1808_v2  ;;  %v1528_v9 = vld [vmem:[%s15389_s29 + $0x2230] sm:$0xff]  ;;  %v14511_v26 = vcombine.low %v1800_v1, %v1808_v2 }
 0x55f   : > { %v1536_v14 = vld [vmem:[%s15389_s29 + $0x2270] sm:$0xff] }
 0x560   : > { %v1784_v16 = vld [vmem:[%s15389_s29 + $0x2a30] sm:$0xff]  ;;  %v14240_v29 = vcombine.high %v1528_v9, %v1536_v14  ;;  %v14239_v5 = vcombine.low %v1528_v9, %v1536_v14 }
 0x561   : > { %11235 = vmatpush2.bf16.msra.mxu0 %v13823_v61  ;;  %11276 = vmatpush2.bf16.msra.mxu1 %v14079_v37  ;;  %v1792_v18 = vld [vmem:[%s15389_s29 + $0x2a70] sm:$0xff] }
 0x562   : > { %11236 = vmatprep.subr.bf16.mxu0 %v13808_v28  ;;  %11277 = vmatprep.subr.bf16.mxu1 %v14064_v31  ;;  %v14496_v37 = vcombine.high %v1784_v16, %v1792_v18  ;;  %v1512_v28 = vld [vmem:[%s15389_s29 + $0x21b0] sm:$0xff]  ;;  %v14495_v6 = vcombine.low %v1784_v16, %v1792_v18 }
 0x563   : > { %v1520_v31 = vld [vmem:[%s15389_s29 + $0x21f0] sm:$0xff] }
 0x564   : > { %v1768_v32 = vld [vmem:[%s15389_s29 + $0x29b0] sm:$0xff]  ;;  %v14223_v21 = vcombine.low %v1512_v28, %v1520_v31 }
 0x565   : > { %11237 = vmatpush2.bf16.msra.mxu0 %v13807_v13  ;;  %11278 = vmatpush2.bf16.msra.mxu1 %v14063_v43  ;;  %v1776_v34 = vld [vmem:[%s15389_s29 + $0x29f0] sm:$0xff]  ;;  %v14224_v13 = vcombine.high %v1512_v28, %v1520_v31 }
 0x566   : > { %11238 = vmatprep.subr.bf16.mxu0 %v13792_v40  ;;  %11279 = vmatprep.subr.bf16.mxu1 %v14048_v38  ;;  %v14480_v43 = vcombine.high %v1768_v32, %v1776_v34  ;;  %v1496_v40 = vld [vmem:[%s15389_s29 + $0x2130] sm:$0xff]  ;;  %v14479_v52 = vcombine.low %v1768_v32, %v1776_v34 }
 0x567   : > { %v1504_v38 = vld [vmem:[%s15389_s29 + $0x2170] sm:$0xff] }
 0x568   : > { %v1752_v39 = vld [vmem:[%s15389_s29 + $0x2930] sm:$0xff]  ;;  %v14207_v53 = vcombine.low %v1496_v40, %v1504_v38 }
 0x569   : > { %11239 = vmatpush2.bf16.msra.mxu0 %v13791_v45  ;;  %11280 = vmatpush2.bf16.msra.mxu1 %v14047_v47  ;;  %v1760_v11 = vld [vmem:[%s15389_s29 + $0x2970] sm:$0xff]  ;;  %v14208_v45 = vcombine.high %v1496_v40, %v1504_v38 }
 0x56a   : > { %11290 = vmatprep.subr.bf16.mxu0 %v14288_v46  ;;  %11331 = vmatprep.subr.bf16.mxu1 %v14544_v50  ;;  %v14464_v47 = vcombine.high %v1752_v39, %v1760_v11  ;;  %v1480_v46 = vld [vmem:[%s15389_s29 + $0x20b0] sm:$0xff]  ;;  %v14463_v55 = vcombine.low %v1752_v39, %v1760_v11 }
 0x56b   : > { %v1488_v50 = vld [vmem:[%s15389_s29 + $0x20f0] sm:$0xff] }
 0x56c   : > { %v16904_v62 = vpop.f32.mrf.mxu0  ;;  %11241 = vmatmul.mubr.bf16.vlgmr.msra.gmra.mxu0 %v15566_v0  ;;  %v16909_v3 = vpop.f32.mrf.mxu1  ;;  %11282 = vmatmul.mubr.bf16.vlgmr.msra.gmra.mxu1 %v15571_v4  ;;  %v1736_v58 = vld [vmem:[%s15389_s29 + $0x28b0] sm:$0xff]  ;;  %v14191_v1 = vcombine.low %v1480_v46, %v1488_v50 }
 0x56d   : > { %11291 = vmatpush1.bf16.msra.mxu0 %v14287_v54  ;;  %11332 = vmatpush1.bf16.msra.mxu1 %v14543_v57  ;;  %v1744_v51 = vld [vmem:[%s15389_s29 + $0x28f0] sm:$0xff]  ;;  %v14192_v54 = vcombine.high %v1480_v46, %v1488_v50 }
 0x56e   : > { %v16912_v42 = vpop.f32.mrf.mxu0  ;;  %11292 = vmatprep.subr.bf16.mxu0 %v14272_v60  ;;  %v16914_v10 = vpop.f32.mrf.mxu1  ;;  %11333 = vmatprep.subr.bf16.mxu1 %v14528_v63  ;;  %v14448_v57 = vcombine.high %v1736_v58, %v1744_v51  ;;  %v1464_v60 = vld [vmem:[%s15389_s29 + $0x2030] sm:$0xff]  ;;  %v14447_v2 = vcombine.low %v1736_v58, %v1744_v51 }
 0x56f   : > { %11322 = vmatprep.mubr.bf16.mxu0 %v15576_v12  ;;  %11363 = vmatprep.mubr.bf16.mxu1 %v15581_v15  ;;  %v1472_v63 = vld [vmem:[%s15389_s29 + $0x2070] sm:$0xff] }
 0x570   : > { %v11000_v25 = vpop.f32.mrf.mxu0  ;;  %v11041_v20 = vpop.f32.mrf.mxu1  ;;  %v1720_v35 = vld [vmem:[%s15389_s29 + $0x2830] sm:$0xff] }
 0x571   : > { %11293 = vmatpush1.bf16.msra.mxu0 %v14271_v41  ;;  %11334 = vmatpush1.bf16.msra.mxu1 %v14527_v49  ;;  %v1728_v7 = vld [vmem:[%s15389_s29 + $0x2870] sm:$0xff]  ;;  %v14176_v41 = vcombine.high %v1464_v60, %v1472_v63  ;;  %v14175_v25 = vcombine.low %v1464_v60, %v1472_v63 }
 0x572   : > { %v11001_v24 = vpop.f32.mrf.mxu0  ;;  %11294 = vmatprep.subr.bf16.mxu0 %v14256_v17  ;;  %v11042_v61 = vpop.f32.mrf.mxu1  ;;  %11335 = vmatprep.subr.bf16.mxu1 %v14512_v8  ;;  %v14432_v49 = vcombine.high %v1720_v35, %v1728_v7  ;;  %v1704_v17 = vld [vmem:[%s15389_s29 + $0x27b0] sm:$0xff]  ;;  %v14431_v16 = vcombine.low %v1720_v35, %v1728_v7 }
 0x573   : > { %v1712_v8 = vld [vmem:[%s15389_s29 + $0x27f0] sm:$0xff] }
 0x574   : > { %v1960_v9 = vld [vmem:[%s15389_s29 + $0x2fb0] sm:$0xff]  ;;  %v14416_v18 = vcombine.high %v1704_v17, %v1712_v8  ;;  %v14415_v61 = vcombine.low %v1704_v17, %v1712_v8 }
 0x575   : > { %11295 = vmatpush1.bf16.msra.mxu0 %v14255_v19  ;;  %11336 = vmatpush1.bf16.msra.mxu1 %v14511_v26  ;;  %v1968_v14 = vld [vmem:[%s15389_s29 + $0x2ff0] sm:$0xff] }
 0x576   : > { %11296 = vmatprep.subr.bf16.mxu0 %v14240_v29  ;;  %11337 = vmatprep.subr.bf16.mxu1 %v14496_v37  ;;  %v14672_v20 = vcombine.high %v1960_v9, %v1968_v14  ;;  %v1688_v19 = vld [vmem:[%s15389_s29 + $0x2730] sm:$0xff]  ;;  %v14671_v37 = vcombine.low %v1960_v9, %v1968_v14 }
 0x577   : > { %v1696_v24 = vld [vmem:[%s15389_s29 + $0x2770] sm:$0xff] }
 0x578   : > { %v1944_v26 = vld [vmem:[%s15389_s29 + $0x2f30] sm:$0xff]  ;;  %v14400_v28 = vcombine.high %v1688_v19, %v1696_v24 }
 0x579   : > { %11297 = vmatpush1.bf16.msra.mxu0 %v14239_v5  ;;  %11338 = vmatpush1.bf16.msra.mxu1 %v14495_v6  ;;  %v1952_v29 = vld [vmem:[%s15389_s29 + $0x2f70] sm:$0xff] }
 0x57a   : > { %11298 = vmatprep.subr.bf16.mxu0 %v14224_v13  ;;  %11339 = vmatprep.subr.bf16.mxu1 %v14480_v43  ;;  %v14656_v31 = vcombine.high %v1944_v26, %v1952_v29  ;;  %v1672_v32 = vld [vmem:[%s15389_s29 + $0x26b0] sm:$0xff]  ;;  %v14399_v13 = vcombine.low %v1688_v19, %v1696_v24  ;;  %v14655_v43 = vcombine.low %v1944_v26, %v1952_v29 }
 0x57b   : > { %v1680_v34 = vld [vmem:[%s15389_s29 + $0x26f0] sm:$0xff] }
 0x57c   : > { %v1928_v5 = vld [vmem:[%s15389_s29 + $0x2eb0] sm:$0xff]  ;;  %v14384_v40 = vcombine.high %v1672_v32, %v1680_v34 }
 0x57d   : > { %11299 = vmatpush1.bf16.msra.mxu0 %v14223_v21  ;;  %11340 = vmatpush1.bf16.msra.mxu1 %v14479_v52  ;;  %v1936_v6 = vld [vmem:[%s15389_s29 + $0x2ef0] sm:$0xff] }
 0x57e   : > { %11300 = vmatprep.subr.bf16.mxu0 %v14208_v45  ;;  %11341 = vmatprep.subr.bf16.mxu1 %v14464_v47  ;;  %v14640_v38 = vcombine.high %v1928_v5, %v1936_v6  ;;  %v1656_v39 = vld [vmem:[%s15389_s29 + $0x2630] sm:$0xff]  ;;  %v14383_v45 = vcombine.low %v1672_v32, %v1680_v34  ;;  %v14639_v47 = vcombine.low %v1928_v5, %v1936_v6  ;;  %v553_v5 = vld [vmem:[%s15389_s29 + $0x3b8] sm:$0xff] }
 0x57f   : > { %v1664_v11 = vld [vmem:[%s15389_s29 + $0x2670] sm:$0xff]  ;;  %v561_v6 = vld [vmem:[%s15389_s29 + $0x3f8] sm:$0xff] }
 0x580   : > { %v1912_v21 = vld [vmem:[%s15389_s29 + $0x2e30] sm:$0xff]  ;;  %v14368_v46 = vcombine.high %v1656_v39, %v1664_v11 }
 0x581   : > { %11301 = vmatpush1.bf16.msra.mxu0 %v14207_v53  ;;  %11342 = vmatpush1.bf16.msra.mxu1 %v14463_v55  ;;  %v1920_v52 = vld [vmem:[%s15389_s29 + $0x2e70] sm:$0xff] }
 0x582   : > { %11302 = vmatprep.subr.bf16.mxu0 %v14192_v54  ;;  %11343 = vmatprep.subr.bf16.mxu1 %v14448_v57  ;;  %v14624_v50 = vcombine.high %v1912_v21, %v1920_v52  ;;  %v1640_v58 = vld [vmem:[%s15389_s29 + $0x25b0] sm:$0xff]  ;;  %v14367_v54 = vcombine.low %v1656_v39, %v1664_v11  ;;  %v14623_v57 = vcombine.low %v1912_v21, %v1920_v52  ;;  %v537_v52 = vld [vmem:[%s15389_s29 + $0x338] sm:$0xff] }
 0x583   : > { %v1648_v51 = vld [vmem:[%s15389_s29 + $0x25f0] sm:$0xff]  ;;  %v13266_v39 = vcombine.high %v553_v5, %v561_v6  ;;  %v10997_v11 = vadd.f32 %v16904_v62, %v16836_v27 }
 0x584   : > { %v1896_v53 = vld [vmem:[%s15389_s29 + $0x2db0] sm:$0xff]  ;;  %v14352_v60 = vcombine.high %v1640_v58, %v1648_v51 }
 0x585   : > { %11303 = vmatpush1.bf16.msra.mxu0 %v14191_v1  ;;  %11344 = vmatpush1.bf16.msra.mxu1 %v14447_v2  ;;  %v1904_v55 = vld [vmem:[%s15389_s29 + $0x2df0] sm:$0xff]  ;;  %v11038_v27 = vadd.f32 %v16909_v3, %v10997_v11  ;;  %v481_v11 = vld [vmem:[%s15389_s29 + $0x178] sm:$0xff] }
 0x586   : > { %11304 = vmatprep.subr.bf16.mxu0 %v14176_v41  ;;  %11345 = vmatprep.subr.bf16.mxu1 %v14432_v49  ;;  %v14608_v63 = vcombine.high %v1896_v53, %v1904_v55  ;;  %v1624_v35 = vld [vmem:[%s15389_s29 + $0x2530] sm:$0xff]  ;;  %v14351_v41 = vcombine.low %v1640_v58, %v1648_v51  ;;  %v14607_v49 = vcombine.low %v1896_v53, %v1904_v55  ;;  %v521_v55 = vld [vmem:[%s15389_s29 + $0x2b8] sm:$0xff] }
 0x587   : > { %v1632_v7 = vld [vmem:[%s15389_s29 + $0x2570] sm:$0xff]  ;;  %v13265_v58 = vcombine.low %v553_v5, %v561_v6  ;;  %v745_v5 = vld [vmem:[%s15389_s29 + $0x9b8] sm:$0xff] }
 0x588   : > { %v1880_v1 = vld [vmem:[%s15389_s29 + $0x2d30] sm:$0xff]  ;;  %v14336_v17 = vcombine.high %v1624_v35, %v1632_v7  ;;  %v753_v6 = vld [vmem:[%s15389_s29 + $0x9f8] sm:$0xff] }
 0x589   : > { %11305 = vmatpush1.bf16.msra.mxu0 %v14175_v25  ;;  %11346 = vmatpush1.bf16.msra.mxu1 %v14431_v16  ;;  %v1888_v2 = vld [vmem:[%s15389_s29 + $0x2d70] sm:$0xff] }
 0x58a   : > { %11306 = vmatprep.subr.bf16.mxu0 %v14416_v18  ;;  %11347 = vmatprep.subr.bf16.mxu1 %v14672_v20  ;;  %v14592_v8 = vcombine.high %v1880_v1, %v1888_v2  ;;  %v1608_v9 = vld [vmem:[%s15389_s29 + $0x24b0] sm:$0xff]  ;;  %v14335_v18 = vcombine.low %v1624_v35, %v1632_v7  ;;  %v14591_v20 = vcombine.low %v1880_v1, %v1888_v2 }
 0x58b   : > { %v1616_v14 = vld [vmem:[%s15389_s29 + $0x24f0] sm:$0xff] }
 0x58c   : > { %v1864_v25 = vld [vmem:[%s15389_s29 + $0x2cb0] sm:$0xff]  ;;  %v14320_v19 = vcombine.high %v1608_v9, %v1616_v14 }
 0x58d   : > { %11307 = vmatpush2.bf16.msra.mxu0 %v14415_v61  ;;  %11348 = vmatpush2.bf16.msra.mxu1 %v14671_v37  ;;  %v1872_v16 = vld [vmem:[%s15389_s29 + $0x2cf0] sm:$0xff] }
 0x58e   : > { %11308 = vmatprep.subr.bf16.mxu0 %v14400_v28  ;;  %11349 = vmatprep.subr.bf16.mxu1 %v14656_v31  ;;  %v14576_v24 = vcombine.high %v1864_v25, %v1872_v16  ;;  %v1592_v26 = vld [vmem:[%s15389_s29 + $0x2430] sm:$0xff]  ;;  %v14319_v28 = vcombine.low %v1608_v9, %v1616_v14  ;;  %v14575_v31 = vcombine.low %v1864_v25, %v1872_v16  ;;  %v505_v9 = vld [vmem:[%s15389_s29 + $0x238] sm:$0xff] }
 0x58f   : > { %v1600_v29 = vld [vmem:[%s15389_s29 + $0x2470] sm:$0xff]  ;;  %v513_v14 = vld [vmem:[%s15389_s29 + $0x278] sm:$0xff] }
 0x590   : > { %v1848_v61 = vld [vmem:[%s15389_s29 + $0x2c30] sm:$0xff]  ;;  %v14304_v32 = vcombine.high %v1592_v26, %v1600_v29  ;;  %v429_v25 = vld [vmem:[#allocation2 + $0x38] sm:$0xff] }
 0x591   : > { %11309 = vmatpush2.bf16.msra.mxu0 %v14399_v13  ;;  %11350 = vmatpush2.bf16.msra.mxu1 %v14655_v43  ;;  %v1856_v37 = vld [vmem:[%s15389_s29 + $0x2c70] sm:$0xff]  ;;  %v809_v13 = vld [vmem:[%s15389_s29 + $0xbb8] sm:$0xff] }
 0x592   : > { %11310 = vmatprep.subr.bf16.mxu0 %v14384_v40  ;;  %11351 = vmatprep.subr.bf16.mxu1 %v14640_v38  ;;  %v14560_v34 = vcombine.high %v1848_v61, %v1856_v37  ;;  %v817_v43 = vld [vmem:[%s15389_s29 + $0xbf8] sm:$0xff]  ;;  %v14303_v40 = vcombine.low %v1592_v26, %v1600_v29  ;;  %v14559_v38 = vcombine.low %v1848_v61, %v1856_v37  ;;  %v428_v3 = vld [vmem:[#allocation2 + $0x10] sm:$0xff] }
 0x593   : > { %v13522_v21 = vcombine.high %v809_v13, %v817_v43  ;;  %v13521_v51 = vcombine.low %v809_v13, %v817_v43  ;;  %v13217_v13 = vcombine.low %v505_v9, %v513_v14 }
 0x595   : > { %11311 = vmatpush2.bf16.msra.mxu0 %v14383_v45  ;;  %11352 = vmatpush2.bf16.msra.mxu1 %v14639_v47  ;;  %v545_v45 = vld [vmem:[%s15389_s29 + $0x378] sm:$0xff] }
 0x596   : > { %11312 = vmatprep.subr.bf16.mxu0 %v14368_v46  ;;  %11353 = vmatprep.subr.bf16.mxu1 %v14624_v50  ;;  %v793_v47 = vld [vmem:[%s15389_s29 + $0xb38] sm:$0xff]  ;;  %v10999_v50 = vadd.f32 %v16912_v42, %v16841_v36  ;;  %v13250_v53 = vcombine.high %v537_v52, %v545_v45  ;;  %v13249_v7 = vcombine.low %v537_v52, %v545_v45 }
 0x597   : > { %v801_v46 = vld [vmem:[%s15389_s29 + $0xb78] sm:$0xff] }
 0x598   : > { %v13506_v62 = vcombine.high %v793_v47, %v801_v46  ;;  %v11040_v35 = vadd.f32 %v16914_v10, %v10999_v50  ;;  %v13505_v2 = vcombine.low %v793_v47, %v801_v46  ;;  %v737_v52 = vld [vmem:[%s15389_s29 + $0x978] sm:$0xff]  ;;  %v13457_v47 = vcombine.low %v745_v5, %v753_v6 }
 0x599   : > { %11313 = vmatpush2.bf16.msra.mxu0 %v14367_v54  ;;  %11354 = vmatpush2.bf16.msra.mxu1 %v14623_v57  ;;  %v529_v54 = vld [vmem:[%s15389_s29 + $0x2f8] sm:$0xff] }
 0x59a   : > { %11314 = vmatprep.subr.bf16.mxu0 %v14352_v60  ;;  %11355 = vmatprep.subr.bf16.mxu1 %v14608_v63  ;;  %v777_v60 = vld [vmem:[%s15389_s29 + $0xab8] sm:$0xff]  ;;  %v13233_v29 = vcombine.low %v521_v55, %v529_v54 }
 0x59b   : > { %v785_v63 = vld [vmem:[%s15389_s29 + $0xaf8] sm:$0xff] }
 0x59c   : > { %v13490_v10 = vcombine.high %v777_v60, %v785_v63  ;;  %v13489_v37 = vcombine.low %v777_v60, %v785_v63  ;;  %v441_v60 = vld [vmem:[%s15389_s29 + $0x38] sm:$0xff] }
 0x59d   : > { %11315 = vmatpush2.bf16.msra.mxu0 %v14351_v41  ;;  %11356 = vmatpush2.bf16.msra.mxu1 %v14607_v49  ;;  %v13234_v41 = vcombine.high %v521_v55, %v529_v54  ;;  %v449_v63 = vld [vmem:[%s15389_s29 + $0x78] sm:$0xff] }
 0x59e   : > { %11316 = vmatprep.subr.bf16.mxu0 %v14336_v17  ;;  %11357 = vmatprep.subr.bf16.mxu1 %v14592_v8 }
 0x5a1   : > { %11317 = vmatpush2.bf16.msra.mxu0 %v14335_v18  ;;  %11358 = vmatpush2.bf16.msra.mxu1 %v14591_v20  ;;  %v761_v18 = vld [vmem:[%s15389_s29 + $0xa38] sm:$0xff] }
 0x5a2   : > { %11318 = vmatprep.subr.bf16.mxu0 %v14320_v19  ;;  %11359 = vmatprep.subr.bf16.mxu1 %v14576_v24  ;;  %v769_v20 = vld [vmem:[%s15389_s29 + $0xa78] sm:$0xff] }
 0x5a3   : > { %v13473_v43 = vcombine.low %v761_v18, %v769_v20 }
 0x5a5   : > { %11319 = vmatpush2.bf16.msra.mxu0 %v14319_v28  ;;  %11360 = vmatpush2.bf16.msra.mxu1 %v14575_v31 }
 0x5a6   : > { %11320 = vmatprep.subr.bf16.mxu0 %v14304_v32  ;;  %11361 = vmatprep.subr.bf16.mxu1 %v14560_v34  ;;  %v489_v32 = vld [vmem:[%s15389_s29 + $0x1b8] sm:$0xff] }
 0x5a7   : > { %v497_v34 = vld [vmem:[%s15389_s29 + $0x1f8] sm:$0xff] }
 0x5a8   : > { %v13201_v45 = vcombine.low %v489_v32, %v497_v34 }
 0x5a9   : > { %11321 = vmatpush2.bf16.msra.mxu0 %v14303_v40  ;;  %11362 = vmatpush2.bf16.msra.mxu1 %v14559_v38  ;;  %v13202_v40 = vcombine.high %v489_v32, %v497_v34  ;;  %v13458_v38 = vcombine.high %v745_v5, %v753_v6  ;;  %v633_v5 = vld [vmem:[%s15389_s29 + $0x638] sm:$0xff] }
 0x5aa   : > { %11372 = vmatprep.subr.bf16.mxu0 %v13266_v39  ;;  %11413 = vmatprep.subr.bf16.mxu1 %v13522_v21  ;;  %v473_v39 = vld [vmem:[%s15389_s29 + $0x138] sm:$0xff] }
 0x5ab   : > { %v729_v21 = vld [vmem:[%s15389_s29 + $0x938] sm:$0xff]  ;;  %v13186_v46 = vcombine.high %v473_v39, %v481_v11 }
 0x5ac   : > { %v11078_v57 = vpop.f32.mrf.mxu0  ;;  %11323 = vmatmul.mubr.bf16.vlgmr.msra.gmra.mxu0 %v15646_v30  ;;  %v11119_v42 = vpop.f32.mrf.mxu1  ;;  %11364 = vmatmul.mubr.bf16.vlgmr.msra.gmra.mxu1 %v15650_v33  ;;  %v13442_v50 = vcombine.high %v729_v21, %v737_v52  ;;  %v13441_v55 = vcombine.low %v729_v21, %v737_v52  ;;  %v641_v6 = vld [vmem:[%s15389_s29 + $0x678] sm:$0xff] }
 0x5ad   : > { %v11079_v36 = vadd.f32 %v11078_v57, %v11038_v27  ;;  %11373 = vmatpush1.bf16.msra.mxu0 %v13265_v58  ;;  %11414 = vmatpush1.bf16.msra.mxu1 %v13521_v51  ;;  %v457_v58 = vld [vmem:[%s15389_s29 + $0xb8] sm:$0xff] }
 0x5ae   : > { %v11080_v1 = vpop.f32.mrf.mxu0  ;;  %11374 = vmatprep.subr.bf16.mxu0 %v13250_v53  ;;  %v11121_v8 = vpop.f32.mrf.mxu1  ;;  %11415 = vmatprep.subr.bf16.mxu1 %v13506_v62  ;;  %v465_v51 = vld [vmem:[%s15389_s29 + $0xf8] sm:$0xff]  ;;  %v13185_v62 = vcombine.low %v473_v39, %v481_v11  ;;  %v13346_v39 = vcombine.high %v633_v5, %v641_v6 }
 0x5af   : > { %v11120_v49 = vadd.f32 %v11119_v42, %v11079_v36  ;;  %v11081_v17 = vadd.f32 %v11080_v1, %v11040_v35  ;;  %11404 = vmatprep.mubr.bf16.mxu0 %v15438_v22  ;;  %11445 = vmatprep.mubr.bf16.mxu1 %v15440_v23  ;;  %v13218_v22 = vcombine.high %v505_v9, %v513_v14  ;;  %v713_v53 = vld [vmem:[%s15389_s29 + $0x8b8] sm:$0xff] }
 0x5b0   : > { %v11082_v16 = vpop.f32.mrf.mxu0  ;;  %v11123_v26 = vpop.f32.mrf.mxu1  ;;  %v13474_v23 = vcombine.high %v761_v18, %v769_v20  ;;  %v721_v27 = vld [vmem:[%s15389_s29 + $0x8f8] sm:$0xff]  ;;  %v13170_v54 = vcombine.high %v457_v58, %v465_v51  ;;  %v13169_v42 = vcombine.low %v457_v58, %v465_v51 }
 0x5b1   : > { %v11628_v19 = vadd.f32 %v11120_v49, %v428_v3  ;;  %v11122_v24 = vadd.f32 %v11121_v8, %v11081_v17  ;;  %11375 = vmatpush1.bf16.msra.mxu0 %v13249_v7  ;;  %11416 = vmatpush1.bf16.msra.mxu1 %v13505_v2  ;;  %v13426_v57 = vcombine.high %v713_v53, %v721_v27  ;;  %v697_v35 = vld [vmem:[%s15389_s29 + $0x838] sm:$0xff] }
 0x5b2   : > { %v11083_v61 = vpop.f32.mrf.mxu0  ;;  %11376 = vmatprep.subr.bf16.mxu0 %v13234_v41  ;;  %v11124_v31 = vpop.f32.mrf.mxu1  ;;  %11417 = vmatprep.subr.bf16.mxu1 %v13490_v10  ;;  %v705_v36 = vld [vmem:[%s15389_s29 + $0x878] sm:$0xff]  ;;  %v13425_v7 = vcombine.low %v713_v53, %v721_v27  ;;  %v13154_v3 = vcombine.high %v441_v60, %v449_v63  ;;  %v13153_v8 = vcombine.low %v441_v60, %v449_v63 }
 0x5b3   : > { %11644 = vst [vmem:[#allocation2 + $0x10] sm:$0xff] %v11628_v19  ;;  %v11629_v28 = vadd.f32 %v11122_v24, %v429_v25  ;;  %v13410_v1 = vcombine.high %v697_v35, %v705_v36  ;;  %v681_v2 = vld [vmem:[%s15389_s29 + $0x7b8] sm:$0xff]  ;;  %v13409_v10 = vcombine.low %v697_v35, %v705_v36 }
 0x5b4   : > { %v689_v41 = vld [vmem:[%s15389_s29 + $0x7f8] sm:$0xff] }
 0x5b5   : > { %11645 = vst [vmem:[#allocation2 + $0x38] sm:$0xff] %v11629_v28  ;;  %11377 = vmatpush1.bf16.msra.mxu0 %v13233_v29  ;;  %11418 = vmatpush1.bf16.msra.mxu1 %v13489_v37  ;;  %v937_v49 = vld [vmem:[%s15389_s29 + $0xfb8] sm:$0xff]  ;;  %v13394_v9 = vcombine.high %v681_v2, %v689_v41  ;;  %v13393_v19 = vcombine.low %v681_v2, %v689_v41 }
 0x5b6   : > { %11378 = vmatprep.subr.bf16.mxu0 %v13218_v22  ;;  %11419 = vmatprep.subr.bf16.mxu1 %v13474_v23  ;;  %v945_v17 = vld [vmem:[%s15389_s29 + $0xff8] sm:$0xff] }
 0x5b7   : > { %v13650_v14 = vcombine.high %v937_v49, %v945_v17  ;;  %v665_v25 = vld [vmem:[%s15389_s29 + $0x738] sm:$0xff]  ;;  %v13649_v24 = vcombine.low %v937_v49, %v945_v17 }
 0x5b8   : > { %v673_v16 = vld [vmem:[%s15389_s29 + $0x778] sm:$0xff] }
 0x5b9   : > { %11379 = vmatpush1.bf16.msra.mxu0 %v13217_v13  ;;  %11420 = vmatpush1.bf16.msra.mxu1 %v13473_v43  ;;  %v921_v18 = vld [vmem:[%s15389_s29 + $0xf38] sm:$0xff]  ;;  %v13378_v26 = vcombine.high %v665_v25, %v673_v16  ;;  %v13377_v31 = vcombine.low %v665_v25, %v673_v16 }
 0x5ba   : > { %11380 = vmatprep.subr.bf16.mxu0 %v13202_v40  ;;  %11421 = vmatprep.subr.bf16.mxu1 %v13458_v38  ;;  %v929_v20 = vld [vmem:[%s15389_s29 + $0xf78] sm:$0xff] }
 0x5bb   : > { %v13634_v29 = vcombine.high %v921_v18, %v929_v20  ;;  %v649_v61 = vld [vmem:[%s15389_s29 + $0x6b8] sm:$0xff]  ;;  %v13633_v23 = vcombine.low %v921_v18, %v929_v20 }
 0x5bc   : > { %v657_v37 = vld [vmem:[%s15389_s29 + $0x6f8] sm:$0xff] }
 0x5bd   : > { %11381 = vmatpush1.bf16.msra.mxu0 %v13201_v45  ;;  %11422 = vmatpush1.bf16.msra.mxu1 %v13457_v47  ;;  %v905_v22 = vld [vmem:[%s15389_s29 + $0xeb8] sm:$0xff]  ;;  %v13362_v32 = vcombine.high %v649_v61, %v657_v37  ;;  %v13361_v40 = vcombine.low %v649_v61, %v657_v37 }
 0x5be   : > { %11382 = vmatprep.subr.bf16.mxu0 %v13186_v46  ;;  %11423 = vmatprep.subr.bf16.mxu1 %v13442_v50  ;;  %v913_v28 = vld [vmem:[%s15389_s29 + $0xef8] sm:$0xff]  ;;  %v13345_v46 = vcombine.low %v633_v5, %v641_v6 }
 0x5bf   : > { %v13618_v34 = vcombine.high %v905_v22, %v913_v28  ;;  %v889_v13 = vld [vmem:[%s15389_s29 + $0xe38] sm:$0xff]  ;;  %v13617_v38 = vcombine.low %v905_v22, %v913_v28 }
 0x5c0   : > { %v897_v43 = vld [vmem:[%s15389_s29 + $0xe78] sm:$0xff] }
 0x5c1   : > { %11383 = vmatpush1.bf16.msra.mxu0 %v13185_v62  ;;  %11424 = vmatpush1.bf16.msra.mxu1 %v13441_v55  ;;  %v13602_v11 = vcombine.high %v889_v13, %v897_v43  ;;  %v617_v21 = vld [vmem:[%s15389_s29 + $0x5b8] sm:$0xff]  ;;  %v13601_v50 = vcombine.low %v889_v13, %v897_v43 }
 0x5c2   : > { %11384 = vmatprep.subr.bf16.mxu0 %v13170_v54  ;;  %11425 = vmatprep.subr.bf16.mxu1 %v13426_v57  ;;  %v625_v52 = vld [vmem:[%s15389_s29 + $0x5f8] sm:$0xff] }
 0x5c3   : > { %v873_v45 = vld [vmem:[%s15389_s29 + $0xdb8] sm:$0xff]  ;;  %v13330_v58 = vcombine.high %v617_v21, %v625_v52  ;;  %v13329_v54 = vcombine.low %v617_v21, %v625_v52 }
 0x5c4   : > { %v881_v47 = vld [vmem:[%s15389_s29 + $0xdf8] sm:$0xff] }
 0x5c5   : > { %11385 = vmatpush1.bf16.msra.mxu0 %v13169_v42  ;;  %11426 = vmatpush1.bf16.msra.mxu1 %v13425_v7  ;;  %v13586_v51 = vcombine.high %v873_v45, %v881_v47  ;;  %v601_v53 = vld [vmem:[%s15389_s29 + $0x538] sm:$0xff]  ;;  %v13585_v57 = vcombine.low %v873_v45, %v881_v47 }
 0x5c6   : > { %11386 = vmatprep.subr.bf16.mxu0 %v13154_v3  ;;  %11427 = vmatprep.subr.bf16.mxu1 %v13410_v1  ;;  %v609_v27 = vld [vmem:[%s15389_s29 + $0x578] sm:$0xff] }
 0x5c7   : > { %v857_v62 = vld [vmem:[%s15389_s29 + $0xd38] sm:$0xff]  ;;  %v13314_v60 = vcombine.high %v601_v53, %v609_v27  ;;  %v13313_v3 = vcombine.low %v601_v53, %v609_v27 }
 0x5c8   : > { %v865_v55 = vld [vmem:[%s15389_s29 + $0xd78] sm:$0xff] }
 0x5c9   : > { %11387 = vmatpush1.bf16.msra.mxu0 %v13153_v8  ;;  %11428 = vmatpush1.bf16.msra.mxu1 %v13409_v10  ;;  %v13570_v63 = vcombine.high %v857_v62, %v865_v55  ;;  %v585_v35 = vld [vmem:[%s15389_s29 + $0x4b8] sm:$0xff]  ;;  %v13569_v1 = vcombine.low %v857_v62, %v865_v55 }
 0x5ca   : > { %11388 = vmatprep.subr.bf16.mxu0 %v13394_v9  ;;  %11429 = vmatprep.subr.bf16.mxu1 %v13650_v14  ;;  %v593_v36 = vld [vmem:[%s15389_s29 + $0x4f8] sm:$0xff] }
 0x5cb   : > { %v841_v42 = vld [vmem:[%s15389_s29 + $0xcb8] sm:$0xff]  ;;  %v13298_v2 = vcombine.high %v585_v35, %v593_v36  ;;  %v13297_v9 = vcombine.low %v585_v35, %v593_v36 }
 0x5cc   : > { %v849_v7 = vld [vmem:[%s15389_s29 + $0xcf8] sm:$0xff] }
 0x5cd   : > { %11389 = vmatpush2.bf16.msra.mxu0 %v13393_v19  ;;  %11430 = vmatpush2.bf16.msra.mxu1 %v13649_v24  ;;  %v13554_v41 = vcombine.high %v841_v42, %v849_v7  ;;  %v569_v49 = vld [vmem:[%s15389_s29 + $0x438] sm:$0xff]  ;;  %v13553_v14 = vcombine.low %v841_v42, %v849_v7 }
 0x5ce   : > { %11390 = vmatprep.subr.bf16.mxu0 %v13378_v26  ;;  %11431 = vmatprep.subr.bf16.mxu1 %v13634_v29  ;;  %v577_v17 = vld [vmem:[%s15389_s29 + $0x478] sm:$0xff] }
 0x5cf   : > { %v825_v8 = vld [vmem:[%s15389_s29 + $0xc38] sm:$0xff]  ;;  %v13282_v25 = vcombine.high %v569_v49, %v577_v17  ;;  %v13281_v26 = vcombine.low %v569_v49, %v577_v17 }
 0x5d0   : > { %v833_v10 = vld [vmem:[%s15389_s29 + $0xc78] sm:$0xff] }
 0x5d1   : > { %11391 = vmatpush2.bf16.msra.mxu0 %v13377_v31  ;;  %11432 = vmatpush2.bf16.msra.mxu1 %v13633_v23  ;;  %v13538_v16 = vcombine.high %v825_v8, %v833_v10  ;;  %v1065_v18 = vld [vmem:[%s15389_s29 + $0x13b8] sm:$0xff]  ;;  %v13537_v29 = vcombine.low %v825_v8, %v833_v10 }
 0x5d2   : > { %11392 = vmatprep.subr.bf16.mxu0 %v13362_v32  ;;  %11433 = vmatprep.subr.bf16.mxu1 %v13618_v34  ;;  %v1073_v20 = vld [vmem:[%s15389_s29 + $0x13f8] sm:$0xff] }
 0x5d3   : > { %v1321_v19 = vld [vmem:[%s15389_s29 + $0x1bb8] sm:$0xff]  ;;  %v13778_v61 = vcombine.high %v1065_v18, %v1073_v20  ;;  %v13777_v32 = vcombine.low %v1065_v18, %v1073_v20 }
 0x5d4   : > { %v1329_v24 = vld [vmem:[%s15389_s29 + $0x1bf8] sm:$0xff] }
 0x5d5   : > { %11393 = vmatpush2.bf16.msra.mxu0 %v13361_v40  ;;  %11434 = vmatpush2.bf16.msra.mxu1 %v13617_v38  ;;  %v14034_v37 = vcombine.high %v1321_v19, %v1329_v24  ;;  %v1049_v22 = vld [vmem:[%s15389_s29 + $0x1338] sm:$0xff]  ;;  %v14033_v34 = vcombine.low %v1321_v19, %v1329_v24 }
 0x5d6   : > { %11394 = vmatprep.subr.bf16.mxu0 %v13346_v39  ;;  %11435 = vmatprep.subr.bf16.mxu1 %v13602_v11  ;;  %v1057_v28 = vld [vmem:[%s15389_s29 + $0x1378] sm:$0xff] }
 0x5d7   : > { %v1305_v31 = vld [vmem:[%s15389_s29 + $0x1b38] sm:$0xff]  ;;  %v13762_v5 = vcombine.high %v1049_v22, %v1057_v28  ;;  %v13761_v21 = vcombine.low %v1049_v22, %v1057_v28 }
 0x5d8   : > { %v1313_v23 = vld [vmem:[%s15389_s29 + $0x1b78] sm:$0xff] }
 0x5d9   : > { %11395 = vmatpush2.bf16.msra.mxu0 %v13345_v46  ;;  %11436 = vmatpush2.bf16.msra.mxu1 %v13601_v50  ;;  %v14018_v6 = vcombine.high %v1305_v31, %v1313_v23  ;;  %v1033_v13 = vld [vmem:[%s15389_s29 + $0x12b8] sm:$0xff]  ;;  %v14017_v47 = vcombine.low %v1305_v31, %v1313_v23 }
 0x5da   : > { %11396 = vmatprep.subr.bf16.mxu0 %v13330_v58  ;;  %11437 = vmatprep.subr.bf16.mxu1 %v13586_v51  ;;  %v1041_v43 = vld [vmem:[%s15389_s29 + $0x12f8] sm:$0xff] }
 0x5db   : > { %v1289_v38 = vld [vmem:[%s15389_s29 + $0x1ab8] sm:$0xff]  ;;  %v13746_v46 = vcombine.high %v1033_v13, %v1041_v43 }
 0x5dc   : > { %v1297_v39 = vld [vmem:[%s15389_s29 + $0x1af8] sm:$0xff] }
 0x5dd   : > { %11397 = vmatpush2.bf16.msra.mxu0 %v13329_v54  ;;  %11438 = vmatpush2.bf16.msra.mxu1 %v13585_v57  ;;  %v1017_v58 = vld [vmem:[%s15389_s29 + $0x1238] sm:$0xff]  ;;  %v13745_v54 = vcombine.low %v1033_v13, %v1041_v43 }
 0x5de   : > { %11398 = vmatprep.subr.bf16.mxu0 %v13314_v60  ;;  %11439 = vmatprep.subr.bf16.mxu1 %v13570_v63  ;;  %v1025_v51 = vld [vmem:[%s15389_s29 + $0x1278] sm:$0xff]  ;;  %v14001_v60 = vcombine.low %v1289_v38, %v1297_v39 }
 0x5df   : > { %v1273_v27 = vld [vmem:[%s15389_s29 + $0x1a38] sm:$0xff]  ;;  %v13730_v63 = vcombine.high %v1017_v58, %v1025_v51 }
 0x5e0   : > { %v1281_v62 = vld [vmem:[%s15389_s29 + $0x1a78] sm:$0xff] }
 0x5e1   : > { %11399 = vmatpush2.bf16.msra.mxu0 %v13313_v3  ;;  %11440 = vmatpush2.bf16.msra.mxu1 %v13569_v1  ;;  %v13986_v35 = vcombine.high %v1273_v27, %v1281_v62  ;;  %v1001_v36 = vld [vmem:[%s15389_s29 + $0x11b8] sm:$0xff]  ;;  %v13985_v1 = vcombine.low %v1273_v27, %v1281_v62 }
 0x5e2   : > { %11400 = vmatprep.subr.bf16.mxu0 %v13298_v2  ;;  %11441 = vmatprep.subr.bf16.mxu1 %v13554_v41  ;;  %v1009_v42 = vld [vmem:[%s15389_s29 + $0x11f8] sm:$0xff] }
 0x5e3   : > { %v1257_v7 = vld [vmem:[%s15389_s29 + $0x19b8] sm:$0xff]  ;;  %v13714_v2 = vcombine.high %v1001_v36, %v1009_v42 }
 0x5e4   : > { %v1265_v3 = vld [vmem:[%s15389_s29 + $0x19f8] sm:$0xff] }
 0x5e5   : > { %11401 = vmatpush2.bf16.msra.mxu0 %v13297_v9  ;;  %11442 = vmatpush2.bf16.msra.mxu1 %v13553_v14  ;;  %v13970_v41 = vcombine.high %v1257_v7, %v1265_v3  ;;  %v985_v49 = vld [vmem:[%s15389_s29 + $0x1138] sm:$0xff]  ;;  %v13713_v9 = vcombine.low %v1001_v36, %v1009_v42  ;;  %v13969_v14 = vcombine.low %v1257_v7, %v1265_v3 }
 0x5e6   : > { %11402 = vmatprep.subr.bf16.mxu0 %v13282_v25  ;;  %11443 = vmatprep.subr.bf16.mxu1 %v13538_v16  ;;  %v993_v17 = vld [vmem:[%s15389_s29 + $0x1178] sm:$0xff] }
 0x5e7   : > { %v1241_v8 = vld [vmem:[%s15389_s29 + $0x1938] sm:$0xff]  ;;  %v13698_v25 = vcombine.high %v985_v49, %v993_v17 }
 0x5e8   : > { %v1249_v10 = vld [vmem:[%s15389_s29 + $0x1978] sm:$0xff] }
 0x5e9   : > { %11403 = vmatpush2.bf16.msra.mxu0 %v13281_v26  ;;  %11444 = vmatpush2.bf16.msra.mxu1 %v13537_v29  ;;  %v13954_v16 = vcombine.high %v1241_v8, %v1249_v10  ;;  %v969_v18 = vld [vmem:[%s15389_s29 + $0x10b8] sm:$0xff]  ;;  %v13697_v26 = vcombine.low %v985_v49, %v993_v17  ;;  %v13953_v29 = vcombine.low %v1241_v8, %v1249_v10 }
 0x5ea   : > { %11454 = vmatprep.subr.bf16.mxu0 %v13778_v61  ;;  %11495 = vmatprep.subr.bf16.mxu1 %v14034_v37  ;;  %v977_v20 = vld [vmem:[%s15389_s29 + $0x10f8] sm:$0xff] }
 0x5eb   : > { %v1225_v19 = vld [vmem:[%s15389_s29 + $0x18b8] sm:$0xff]  ;;  %v13682_v61 = vcombine.high %v969_v18, %v977_v20 }
 0x5ec   : > { %v11160_v40 = vpop.f32.mrf.mxu0  ;;  %11405 = vmatmul.mubr.bf16.vlgmr.msra.gmra.mxu0 %v15486_v44  ;;  %v11201_v11 = vpop.f32.mrf.mxu1  ;;  %11446 = vmatmul.mubr.bf16.vlgmr.msra.gmra.mxu1 %v15491_v48  ;;  %v14002_v44 = vcombine.high %v1289_v38, %v1297_v39  ;;  %v1233_v24 = vld [vmem:[%s15389_s29 + $0x18f8] sm:$0xff] }
 0x5ed   : > { %11455 = vmatpush1.bf16.msra.mxu0 %v13777_v32  ;;  %v17058_v52 = vadd.f32 %v11201_v11, %v11160_v40  ;;  %11496 = vmatpush1.bf16.msra.mxu1 %v14033_v34  ;;  %v13938_v37 = vcombine.high %v1225_v19, %v1233_v24  ;;  %v953_v22 = vld [vmem:[%s15389_s29 + $0x1038] sm:$0xff]  ;;  %v13681_v32 = vcombine.low %v969_v18, %v977_v20 }
 0x5ee   : > { %v11162_v45 = vpop.f32.mrf.mxu0  ;;  %11456 = vmatprep.subr.bf16.mxu0 %v13762_v5  ;;  %v11203_v50 = vpop.f32.mrf.mxu1  ;;  %11497 = vmatprep.subr.bf16.mxu1 %v14018_v6  ;;  %v961_v28 = vld [vmem:[%s15389_s29 + $0x1078] sm:$0xff]  ;;  %v13937_v34 = vcombine.low %v1225_v19, %v1233_v24 }
 0x5ef   : > { %11486 = vmatprep.mubr.bf16.mxu0 %v15496_v56  ;;  %v17063_v53 = vadd.f32 %v11203_v50, %v11162_v45  ;;  %11527 = vmatprep.mubr.bf16.mxu1 %v15501_v59  ;;  %v13729_v59 = vcombine.low %v1017_v58, %v1025_v51  ;;  %v1209_v31 = vld [vmem:[%s15389_s29 + $0x1838] sm:$0xff]  ;;  %v13666_v5 = vcombine.high %v953_v22, %v961_v28 }
 0x5f0   : > { %v11164_v48 = vpop.f32.mrf.mxu0  ;;  %v11205_v55 = vpop.f32.mrf.mxu1  ;;  %v1217_v23 = vld [vmem:[%s15389_s29 + $0x1878] sm:$0xff]  ;;  %v13665_v39 = vcombine.low %v953_v22, %v961_v28 }
 0x5f1   : > { %11457 = vmatpush1.bf16.msra.mxu0 %v13761_v21  ;;  %11498 = vmatpush1.bf16.msra.mxu1 %v14017_v47  ;;  %v13922_v6 = vcombine.high %v1209_v31, %v1217_v23  ;;  %v1193_v13 = vld [vmem:[%s15389_s29 + $0x17b8] sm:$0xff]  ;;  %v13921_v11 = vcombine.low %v1209_v31, %v1217_v23 }
 0x5f2   : > { %v11165_v57 = vpop.f32.mrf.mxu0  ;;  %11458 = vmatprep.subr.bf16.mxu0 %v13746_v46  ;;  %v11206_v56 = vpop.f32.mrf.mxu1  ;;  %11499 = vmatprep.subr.bf16.mxu1 %v14002_v44  ;;  %v1201_v43 = vld [vmem:[%s15389_s29 + $0x17f8] sm:$0xff] }
 0x5f3   : > { %v1449_v40 = vld [vmem:[%s15389_s29 + $0x1fb8] sm:$0xff]  ;;  %v13906_v21 = vcombine.high %v1193_v13, %v1201_v43  ;;  %v13905_v58 = vcombine.low %v1193_v13, %v1201_v43 }
 0x5f4   : > { %v1457_v38 = vld [vmem:[%s15389_s29 + $0x1ff8] sm:$0xff] }
 0x5f5   : > { %11459 = vmatpush1.bf16.msra.mxu0 %v13745_v54  ;;  %11500 = vmatpush1.bf16.msra.mxu1 %v14001_v60  ;;  %v14162_v45 = vcombine.high %v1449_v40, %v1457_v38  ;;  %v1177_v47 = vld [vmem:[%s15389_s29 + $0x1738] sm:$0xff]  ;;  %v14161_v51 = vcombine.low %v1449_v40, %v1457_v38 }
 0x5f6   : > { %11460 = vmatprep.subr.bf16.mxu0 %v13730_v63  ;;  %11501 = vmatprep.subr.bf16.mxu1 %v13986_v35  ;;  %v1185_v46 = vld [vmem:[%s15389_s29 + $0x1778] sm:$0xff] }
 0x5f7   : > { %v1433_v50 = vld [vmem:[%s15389_s29 + $0x1f38] sm:$0xff]  ;;  %v13890_v48 = vcombine.high %v1177_v47, %v1185_v46  ;;  %v13889_v60 = vcombine.low %v1177_v47, %v1185_v46 }
 0x5f8   : > { %v1441_v44 = vld [vmem:[%s15389_s29 + $0x1f78] sm:$0xff] }
 0x5f9   : > { %11461 = vmatpush1.bf16.msra.mxu0 %v13729_v59  ;;  %11502 = vmatpush1.bf16.msra.mxu1 %v13985_v1  ;;  %v14146_v27 = vcombine.high %v1433_v50, %v1441_v44  ;;  %v1161_v62 = vld [vmem:[%s15389_s29 + $0x16b8] sm:$0xff]  ;;  %v14145_v63 = vcombine.low %v1433_v50, %v1441_v44 }
 0x5fa   : > { %11462 = vmatprep.subr.bf16.mxu0 %v13714_v2  ;;  %11503 = vmatprep.subr.bf16.mxu1 %v13970_v41  ;;  %v1169_v55 = vld [vmem:[%s15389_s29 + $0x16f8] sm:$0xff] }
 0x5fb   : > { %v1417_v54 = vld [vmem:[%s15389_s29 + $0x1eb8] sm:$0xff]  ;;  %v13874_v56 = vcombine.high %v1161_v62, %v1169_v55  ;;  %v13873_v59 = vcombine.low %v1161_v62, %v1169_v55 }
 0x5fc   : > { %v1425_v57 = vld [vmem:[%s15389_s29 + $0x1ef8] sm:$0xff] }
 0x5fd   : > { %11463 = vmatpush1.bf16.msra.mxu0 %v13713_v9  ;;  %11504 = vmatpush1.bf16.msra.mxu1 %v13969_v14  ;;  %v14130_v35 = vcombine.high %v1417_v54, %v1425_v57  ;;  %v1145_v36 = vld [vmem:[%s15389_s29 + $0x1638] sm:$0xff]  ;;  %v14129_v1 = vcombine.low %v1417_v54, %v1425_v57 }
 0x5fe   : > { %11464 = vmatprep.subr.bf16.mxu0 %v13698_v25  ;;  %11505 = vmatprep.subr.bf16.mxu1 %v13954_v16  ;;  %v1153_v42 = vld [vmem:[%s15389_s29 + $0x1678] sm:$0xff] }
 0x5ff   : > { %v1401_v7 = vld [vmem:[%s15389_s29 + $0x1e38] sm:$0xff]  ;;  %v13858_v2 = vcombine.high %v1145_v36, %v1153_v42  ;;  %v13857_v9 = vcombine.low %v1145_v36, %v1153_v42 }
 0x600   : > { %v1409_v3 = vld [vmem:[%s15389_s29 + $0x1e78] sm:$0xff] }
 0x601   : > { %11465 = vmatpush1.bf16.msra.mxu0 %v13697_v26  ;;  %11506 = vmatpush1.bf16.msra.mxu1 %v13953_v29  ;;  %v14114_v41 = vcombine.high %v1401_v7, %v1409_v3  ;;  %v1129_v49 = vld [vmem:[%s15389_s29 + $0x15b8] sm:$0xff]  ;;  %v14113_v14 = vcombine.low %v1401_v7, %v1409_v3 }
 0x602   : > { %11466 = vmatprep.subr.bf16.mxu0 %v13682_v61  ;;  %11507 = vmatprep.subr.bf16.mxu1 %v13938_v37  ;;  %v1137_v17 = vld [vmem:[%s15389_s29 + $0x15f8] sm:$0xff] }
 0x603   : > { %v1385_v8 = vld [vmem:[%s15389_s29 + $0x1db8] sm:$0xff]  ;;  %v13842_v25 = vcombine.high %v1129_v49, %v1137_v17  ;;  %v13841_v26 = vcombine.low %v1129_v49, %v1137_v17 }
 0x604   : > { %v1393_v10 = vld [vmem:[%s15389_s29 + $0x1df8] sm:$0xff] }
 0x605   : > { %11467 = vmatpush1.bf16.msra.mxu0 %v13681_v32  ;;  %11508 = vmatpush1.bf16.msra.mxu1 %v13937_v34  ;;  %v14098_v16 = vcombine.high %v1385_v8, %v1393_v10  ;;  %v1113_v18 = vld [vmem:[%s15389_s29 + $0x1538] sm:$0xff]  ;;  %v14097_v29 = vcombine.low %v1385_v8, %v1393_v10 }
 0x606   : > { %11468 = vmatprep.subr.bf16.mxu0 %v13666_v5  ;;  %11509 = vmatprep.subr.bf16.mxu1 %v13922_v6  ;;  %v1121_v20 = vld [vmem:[%s15389_s29 + $0x1578] sm:$0xff] }
 0x607   : > { %v1369_v19 = vld [vmem:[%s15389_s29 + $0x1d38] sm:$0xff]  ;;  %v13826_v61 = vcombine.high %v1113_v18, %v1121_v20  ;;  %v13825_v32 = vcombine.low %v1113_v18, %v1121_v20 }
 0x608   : > { %v1377_v24 = vld [vmem:[%s15389_s29 + $0x1d78] sm:$0xff] }
 0x609   : > { %11469 = vmatpush1.bf16.msra.mxu0 %v13665_v39  ;;  %11510 = vmatpush1.bf16.msra.mxu1 %v13921_v11  ;;  %v14082_v37 = vcombine.high %v1369_v19, %v1377_v24  ;;  %v1097_v22 = vld [vmem:[%s15389_s29 + $0x14b8] sm:$0xff]  ;;  %v14081_v34 = vcombine.low %v1369_v19, %v1377_v24 }
 0x60a   : > { %11470 = vmatprep.subr.bf16.mxu0 %v13906_v21  ;;  %11511 = vmatprep.subr.bf16.mxu1 %v14162_v45  ;;  %v1105_v28 = vld [vmem:[%s15389_s29 + $0x14f8] sm:$0xff] }
 0x60b   : > { %v1353_v31 = vld [vmem:[%s15389_s29 + $0x1cb8] sm:$0xff]  ;;  %v13810_v5 = vcombine.high %v1097_v22, %v1105_v28  ;;  %v13809_v39 = vcombine.low %v1097_v22, %v1105_v28 }
 0x60c   : > { %v1361_v23 = vld [vmem:[%s15389_s29 + $0x1cf8] sm:$0xff] }
 0x60d   : > { %11471 = vmatpush2.bf16.msra.mxu0 %v13905_v58  ;;  %11512 = vmatpush2.bf16.msra.mxu1 %v14161_v51  ;;  %v14066_v6 = vcombine.high %v1353_v31, %v1361_v23  ;;  %v1081_v13 = vld [vmem:[%s15389_s29 + $0x1438] sm:$0xff]  ;;  %v14065_v11 = vcombine.low %v1353_v31, %v1361_v23 }
 0x60e   : > { %11472 = vmatprep.subr.bf16.mxu0 %v13890_v48  ;;  %11513 = vmatprep.subr.bf16.mxu1 %v14146_v27  ;;  %v1089_v43 = vld [vmem:[%s15389_s29 + $0x1478] sm:$0xff] }
 0x60f   : > { %v1337_v40 = vld [vmem:[%s15389_s29 + $0x1c38] sm:$0xff]  ;;  %v13794_v21 = vcombine.high %v1081_v13, %v1089_v43  ;;  %v13793_v58 = vcombine.low %v1081_v13, %v1089_v43 }
 0x610   : > { %v1345_v38 = vld [vmem:[%s15389_s29 + $0x1c78] sm:$0xff] }
 0x611   : > { %11473 = vmatpush2.bf16.msra.mxu0 %v13889_v60  ;;  %11514 = vmatpush2.bf16.msra.mxu1 %v14145_v63  ;;  %v14050_v45 = vcombine.high %v1337_v40, %v1345_v38  ;;  %v1577_v47 = vld [vmem:[%s15389_s29 + $0x23b8] sm:$0xff]  ;;  %v14049_v51 = vcombine.low %v1337_v40, %v1345_v38 }
 0x612   : > { %11474 = vmatprep.subr.bf16.mxu0 %v13874_v56  ;;  %11515 = vmatprep.subr.bf16.mxu1 %v14130_v35  ;;  %v1585_v46 = vld [vmem:[%s15389_s29 + $0x23f8] sm:$0xff] }
 0x613   : > { %v1833_v50 = vld [vmem:[%s15389_s29 + $0x2bb8] sm:$0xff]  ;;  %v14290_v48 = vcombine.high %v1577_v47, %v1585_v46  ;;  %v14289_v60 = vcombine.low %v1577_v47, %v1585_v46 }
 0x614   : > { %v1841_v44 = vld [vmem:[%s15389_s29 + $0x2bf8] sm:$0xff] }
 0x615   : > { %11475 = vmatpush2.bf16.msra.mxu0 %v13873_v59  ;;  %11516 = vmatpush2.bf16.msra.mxu1 %v14129_v1  ;;  %v14546_v27 = vcombine.high %v1833_v50, %v1841_v44  ;;  %v1561_v62 = vld [vmem:[%s15389_s29 + $0x2338] sm:$0xff]  ;;  %v14545_v63 = vcombine.low %v1833_v50, %v1841_v44 }
 0x616   : > { %11476 = vmatprep.subr.bf16.mxu0 %v13858_v2  ;;  %11517 = vmatprep.subr.bf16.mxu1 %v14114_v41  ;;  %v1569_v55 = vld [vmem:[%s15389_s29 + $0x2378] sm:$0xff] }
 0x617   : > { %v1817_v54 = vld [vmem:[%s15389_s29 + $0x2b38] sm:$0xff]  ;;  %v14274_v56 = vcombine.high %v1561_v62, %v1569_v55  ;;  %v14273_v2 = vcombine.low %v1561_v62, %v1569_v55 }
 0x618   : > { %v1825_v57 = vld [vmem:[%s15389_s29 + $0x2b78] sm:$0xff] }
 0x619   : > { %11477 = vmatpush2.bf16.msra.mxu0 %v13857_v9  ;;  %11518 = vmatpush2.bf16.msra.mxu1 %v14113_v14  ;;  %v14530_v35 = vcombine.high %v1817_v54, %v1825_v57  ;;  %v1545_v36 = vld [vmem:[%s15389_s29 + $0x22b8] sm:$0xff]  ;;  %v14529_v49 = vcombine.low %v1817_v54, %v1825_v57 }
 0x61a   : > { %11478 = vmatprep.subr.bf16.mxu0 %v13842_v25  ;;  %11519 = vmatprep.subr.bf16.mxu1 %v14098_v16  ;;  %v1553_v42 = vld [vmem:[%s15389_s29 + $0x22f8] sm:$0xff] }
 0x61b   : > { %v1801_v3 = vld [vmem:[%s15389_s29 + $0x2ab8] sm:$0xff]  ;;  %v14258_v17 = vcombine.high %v1545_v36, %v1553_v42  ;;  %v14257_v18 = vcombine.low %v1545_v36, %v1553_v42 }
 0x61c   : > { %v1809_v59 = vld [vmem:[%s15389_s29 + $0x2af8] sm:$0xff] }
 0x61d   : > { %11479 = vmatpush2.bf16.msra.mxu0 %v13841_v26  ;;  %11520 = vmatpush2.bf16.msra.mxu1 %v14097_v29  ;;  %v1529_v10 = vld [vmem:[%s15389_s29 + $0x2238] sm:$0xff]  ;;  %v14513_v19 = vcombine.low %v1801_v3, %v1809_v59 }
 0x61e   : > { %11480 = vmatprep.subr.bf16.mxu0 %v13826_v61  ;;  %11521 = vmatprep.subr.bf16.mxu1 %v14082_v37  ;;  %v1537_v9 = vld [vmem:[%s15389_s29 + $0x2278] sm:$0xff] }
 0x61f   : > { %v1793_v25 = vld [vmem:[%s15389_s29 + $0x2a78] sm:$0xff]  ;;  %v14242_v24 = vcombine.high %v1529_v10, %v1537_v9 }
 0x620   : > { %v1513_v29 = vld [vmem:[%s15389_s29 + $0x21b8] sm:$0xff] }
 0x621   : > { %11481 = vmatpush2.bf16.msra.mxu0 %v13825_v32  ;;  %11522 = vmatpush2.bf16.msra.mxu1 %v14081_v34  ;;  %v1521_v61 = vld [vmem:[%s15389_s29 + $0x21f8] sm:$0xff] }
 0x622   : > { %11482 = vmatprep.subr.bf16.mxu0 %v13810_v5  ;;  %11523 = vmatprep.subr.bf16.mxu1 %v14066_v6  ;;  %v1769_v37 = vld [vmem:[%s15389_s29 + $0x29b8] sm:$0xff]  ;;  %v14226_v31 = vcombine.high %v1513_v29, %v1521_v61  ;;  %v14225_v13 = vcombine.low %v1513_v29, %v1521_v61 }
 0x623   : > { %v1777_v22 = vld [vmem:[%s15389_s29 + $0x29f8] sm:$0xff] }
 0x624   : > { %v14482_v23 = vcombine.high %v1769_v37, %v1777_v22  ;;  %v1497_v32 = vld [vmem:[%s15389_s29 + $0x2138] sm:$0xff]  ;;  %v14481_v43 = vcombine.low %v1769_v37, %v1777_v22 }
 0x625   : > { %11483 = vmatpush2.bf16.msra.mxu0 %v13809_v39  ;;  %11524 = vmatpush2.bf16.msra.mxu1 %v14065_v11  ;;  %v1505_v34 = vld [vmem:[%s15389_s29 + $0x2178] sm:$0xff] }
 0x626   : > { %11484 = vmatprep.subr.bf16.mxu0 %v13794_v21  ;;  %11525 = vmatprep.subr.bf16.mxu1 %v14050_v45  ;;  %v1753_v5 = vld [vmem:[%s15389_s29 + $0x2938] sm:$0xff]  ;;  %v14210_v40 = vcombine.high %v1497_v32, %v1505_v34  ;;  %v14209_v47 = vcombine.low %v1497_v32, %v1505_v34 }
 0x627   : > { %v1761_v6 = vld [vmem:[%s15389_s29 + $0x2978] sm:$0xff] }
 0x628   : > { %v14466_v38 = vcombine.high %v1753_v5, %v1761_v6  ;;  %v1481_v39 = vld [vmem:[%s15389_s29 + $0x20b8] sm:$0xff]  ;;  %v14465_v46 = vcombine.low %v1753_v5, %v1761_v6 }
 0x629   : > { %11485 = vmatpush2.bf16.msra.mxu0 %v13793_v58  ;;  %11526 = vmatpush2.bf16.msra.mxu1 %v14049_v51  ;;  %v1489_v11 = vld [vmem:[%s15389_s29 + $0x20f8] sm:$0xff] }
 0x62a   : > { %11536 = vmatprep.subr.bf16.mxu0 %v14290_v48  ;;  %11577 = vmatprep.subr.bf16.mxu1 %v14546_v27  ;;  %v1737_v21 = vld [vmem:[%s15389_s29 + $0x28b8] sm:$0xff]  ;;  %v14194_v50 = vcombine.high %v1481_v39, %v1489_v11  ;;  %v14193_v62 = vcombine.low %v1481_v39, %v1489_v11 }
 0x62b   : > { %v1745_v45 = vld [vmem:[%s15389_s29 + $0x28f8] sm:$0xff] }
 0x62c   : > { %v17126_v7 = vpop.f32.mrf.mxu0  ;;  %11487 = vmatmul.mubr.bf16.vlgmr.msra.gmra.mxu0 %v15566_v0  ;;  %v17131_v1 = vpop.f32.mrf.mxu1  ;;  %11528 = vmatmul.mubr.bf16.vlgmr.msra.gmra.mxu1 %v15571_v4  ;;  %v14514_v0 = vcombine.high %v1801_v3, %v1809_v59  ;;  %v1785_v4 = vld [vmem:[%s15389_s29 + $0x2a38] sm:$0xff]  ;;  %v14450_v44 = vcombine.high %v1737_v21, %v1745_v45  ;;  %v14449_v55 = vcombine.low %v1737_v21, %v1745_v45 }
 0x62d   : > { %11537 = vmatpush1.bf16.msra.mxu0 %v14289_v60  ;;  %11578 = vmatpush1.bf16.msra.mxu1 %v14545_v63  ;;  %v14497_v28 = vcombine.low %v1785_v4, %v1793_v25  ;;  %v1465_v58 = vld [vmem:[%s15389_s29 + $0x2038] sm:$0xff] }
 0x62e   : > { %v17134_v41 = vpop.f32.mrf.mxu0  ;;  %11538 = vmatprep.subr.bf16.mxu0 %v14274_v56  ;;  %v17136_v8 = vpop.f32.mrf.mxu1  ;;  %11579 = vmatprep.subr.bf16.mxu1 %v14530_v35  ;;  %v1473_v51 = vld [vmem:[%s15389_s29 + $0x2078] sm:$0xff] }
 0x62f   : > { %11568 = vmatprep.mubr.bf16.mxu0 %v15576_v12  ;;  %11609 = vmatprep.mubr.bf16.mxu1 %v15581_v15  ;;  %v14498_v12 = vcombine.high %v1785_v4, %v1793_v25  ;;  %v14241_v15 = vcombine.low %v1529_v10, %v1537_v9  ;;  %v1721_v48 = vld [vmem:[%s15389_s29 + $0x2838] sm:$0xff]  ;;  %v14178_v54 = vcombine.high %v1465_v58, %v1473_v51 }
 0x630   : > { %v11246_v14 = vpop.f32.mrf.mxu0  ;;  %v11287_v16 = vpop.f32.mrf.mxu1  ;;  %v1729_v27 = vld [vmem:[%s15389_s29 + $0x2878] sm:$0xff]  ;;  %v14177_v36 = vcombine.low %v1465_v58, %v1473_v51 }
 0x631   : > { %11539 = vmatpush1.bf16.msra.mxu0 %v14273_v2  ;;  %11580 = vmatpush1.bf16.msra.mxu1 %v14529_v49  ;;  %v14434_v57 = vcombine.high %v1721_v48, %v1729_v27  ;;  %v1705_v60 = vld [vmem:[%s15389_s29 + $0x27b8] sm:$0xff]  ;;  %v14433_v42 = vcombine.low %v1721_v48, %v1729_v27 }
 0x632   : > { %v11247_v20 = vpop.f32.mrf.mxu0  ;;  %11540 = vmatprep.subr.bf16.mxu0 %v14258_v17  ;;  %v11288_v26 = vpop.f32.mrf.mxu1  ;;  %11581 = vmatprep.subr.bf16.mxu1 %v14514_v0  ;;  %v1713_v63 = vld [vmem:[%s15389_s29 + $0x27f8] sm:$0xff] }
 0x633   : > { %v1961_v56 = vld [vmem:[%s15389_s29 + $0x2fb8] sm:$0xff]  ;;  %v14418_v3 = vcombine.high %v1705_v60, %v1713_v63  ;;  %v14417_v10 = vcombine.low %v1705_v60, %v1713_v63 }
 0x634   : > { %v1969_v35 = vld [vmem:[%s15389_s29 + $0x2ff8] sm:$0xff] }
 0x635   : > { %11541 = vmatpush1.bf16.msra.mxu0 %v14257_v18  ;;  %11582 = vmatpush1.bf16.msra.mxu1 %v14513_v19  ;;  %v14674_v59 = vcombine.high %v1961_v56, %v1969_v35  ;;  %v1689_v2 = vld [vmem:[%s15389_s29 + $0x2738] sm:$0xff]  ;;  %v14673_v9 = vcombine.low %v1961_v56, %v1969_v35 }
 0x636   : > { %11542 = vmatprep.subr.bf16.mxu0 %v14242_v24  ;;  %11583 = vmatprep.subr.bf16.mxu1 %v14498_v12  ;;  %v1697_v49 = vld [vmem:[%s15389_s29 + $0x2778] sm:$0xff] }
 0x637   : > { %v1945_v17 = vld [vmem:[%s15389_s29 + $0x2f38] sm:$0xff]  ;;  %v14402_v14 = vcombine.high %v1689_v2, %v1697_v49  ;;  %v14401_v19 = vcombine.low %v1689_v2, %v1697_v49 }
 0x638   : > { %v1953_v0 = vld [vmem:[%s15389_s29 + $0x2f78] sm:$0xff] }
 0x639   : > { %11543 = vmatpush1.bf16.msra.mxu0 %v14241_v15  ;;  %11584 = vmatpush1.bf16.msra.mxu1 %v14497_v28  ;;  %v14658_v4 = vcombine.high %v1945_v17, %v1953_v0  ;;  %v1673_v25 = vld [vmem:[%s15389_s29 + $0x26b8] sm:$0xff]  ;;  %v14657_v24 = vcombine.low %v1945_v17, %v1953_v0  ;;  %v11243_v17 = vadd.f32 %v17126_v7, %v17058_v52 }
 0x63a   : > { %11544 = vmatprep.subr.bf16.mxu0 %v14226_v31  ;;  %11585 = vmatprep.subr.bf16.mxu1 %v14482_v23  ;;  %v1681_v16 = vld [vmem:[%s15389_s29 + $0x26f8] sm:$0xff]  ;;  %v11245_v0 = vadd.f32 %v17134_v41, %v17063_v53 }
 0x63b   : > { %v1929_v18 = vld [vmem:[%s15389_s29 + $0x2eb8] sm:$0xff]  ;;  %v14386_v26 = vcombine.high %v1673_v25, %v1681_v16  ;;  %v14385_v15 = vcombine.low %v1673_v25, %v1681_v16  ;;  %v430_v16 = vld [vmem:[#allocation2 + $0x60] sm:$0xff] }
 0x63c   : > { %v1937_v20 = vld [vmem:[%s15389_s29 + $0x2ef8] sm:$0xff] }
 0x63d   : > { %11545 = vmatpush1.bf16.msra.mxu0 %v14225_v13  ;;  %11586 = vmatpush1.bf16.msra.mxu1 %v14481_v43  ;;  %v14642_v12 = vcombine.high %v1929_v18, %v1937_v20  ;;  %v1657_v29 = vld [vmem:[%s15389_s29 + $0x2638] sm:$0xff]  ;;  %v14641_v28 = vcombine.low %v1929_v18, %v1937_v20 }
 0x63e   : > { %11546 = vmatprep.subr.bf16.mxu0 %v14210_v40  ;;  %11587 = vmatprep.subr.bf16.mxu1 %v14466_v38  ;;  %v1665_v61 = vld [vmem:[%s15389_s29 + $0x2678] sm:$0xff] }
 0x63f   : > { %v1913_v37 = vld [vmem:[%s15389_s29 + $0x2e38] sm:$0xff]  ;;  %v14370_v31 = vcombine.high %v1657_v29, %v1665_v61  ;;  %v14369_v13 = vcombine.low %v1657_v29, %v1665_v61 }
 0x640   : > { %v1921_v22 = vld [vmem:[%s15389_s29 + $0x2e78] sm:$0xff] }
 0x641   : > { %11547 = vmatpush1.bf16.msra.mxu0 %v14209_v47  ;;  %11588 = vmatpush1.bf16.msra.mxu1 %v14465_v46  ;;  %v14626_v23 = vcombine.high %v1913_v37, %v1921_v22  ;;  %v1641_v32 = vld [vmem:[%s15389_s29 + $0x25b8] sm:$0xff]  ;;  %v14625_v43 = vcombine.low %v1913_v37, %v1921_v22 }
 0x642   : > { %11548 = vmatprep.subr.bf16.mxu0 %v14194_v50  ;;  %11589 = vmatprep.subr.bf16.mxu1 %v14450_v44  ;;  %v1649_v34 = vld [vmem:[%s15389_s29 + $0x25f8] sm:$0xff] }
 0x643   : > { %v1897_v5 = vld [vmem:[%s15389_s29 + $0x2db8] sm:$0xff]  ;;  %v14354_v40 = vcombine.high %v1641_v32, %v1649_v34  ;;  %v14353_v47 = vcombine.low %v1641_v32, %v1649_v34 }
 0x644   : > { %v1905_v6 = vld [vmem:[%s15389_s29 + $0x2df8] sm:$0xff] }
 0x645   : > { %11549 = vmatpush1.bf16.msra.mxu0 %v14193_v62  ;;  %11590 = vmatpush1.bf16.msra.mxu1 %v14449_v55  ;;  %v14610_v38 = vcombine.high %v1897_v5, %v1905_v6  ;;  %v1625_v39 = vld [vmem:[%s15389_s29 + $0x2538] sm:$0xff]  ;;  %v14609_v46 = vcombine.low %v1897_v5, %v1905_v6 }
 0x646   : > { %11550 = vmatprep.subr.bf16.mxu0 %v14178_v54  ;;  %11591 = vmatprep.subr.bf16.mxu1 %v14434_v57  ;;  %v1633_v11 = vld [vmem:[%s15389_s29 + $0x2578] sm:$0xff] }
 0x647   : > { %v1881_v21 = vld [vmem:[%s15389_s29 + $0x2d38] sm:$0xff]  ;;  %v14338_v50 = vcombine.high %v1625_v39, %v1633_v11  ;;  %v14337_v62 = vcombine.low %v1625_v39, %v1633_v11 }
 0x648   : > { %v1889_v45 = vld [vmem:[%s15389_s29 + $0x2d78] sm:$0xff] }
 0x649   : > { %11551 = vmatpush1.bf16.msra.mxu0 %v14177_v36  ;;  %11592 = vmatpush1.bf16.msra.mxu1 %v14433_v42  ;;  %v14594_v44 = vcombine.high %v1881_v21, %v1889_v45  ;;  %v1609_v58 = vld [vmem:[%s15389_s29 + $0x24b8] sm:$0xff]  ;;  %v14593_v55 = vcombine.low %v1881_v21, %v1889_v45 }
 0x64a   : > { %11552 = vmatprep.subr.bf16.mxu0 %v14418_v3  ;;  %11593 = vmatprep.subr.bf16.mxu1 %v14674_v59  ;;  %v1617_v51 = vld [vmem:[%s15389_s29 + $0x24f8] sm:$0xff] }
 0x64b   : > { %v1865_v48 = vld [vmem:[%s15389_s29 + $0x2cb8] sm:$0xff]  ;;  %v14322_v54 = vcombine.high %v1609_v58, %v1617_v51  ;;  %v14321_v36 = vcombine.low %v1609_v58, %v1617_v51 }
 0x64c   : > { %v1873_v27 = vld [vmem:[%s15389_s29 + $0x2cf8] sm:$0xff] }
 0x64d   : > { %11553 = vmatpush2.bf16.msra.mxu0 %v14417_v10  ;;  %11594 = vmatpush2.bf16.msra.mxu1 %v14673_v9  ;;  %v14578_v57 = vcombine.high %v1865_v48, %v1873_v27  ;;  %v1593_v60 = vld [vmem:[%s15389_s29 + $0x2438] sm:$0xff]  ;;  %v14577_v42 = vcombine.low %v1865_v48, %v1873_v27  ;;  %v11284_v10 = vadd.f32 %v17131_v1, %v11243_v17 }
 0x64e   : > { %11554 = vmatprep.subr.bf16.mxu0 %v14402_v14  ;;  %11595 = vmatprep.subr.bf16.mxu1 %v14658_v4  ;;  %v1601_v63 = vld [vmem:[%s15389_s29 + $0x2478] sm:$0xff]  ;;  %v11286_v14 = vadd.f32 %v17136_v8, %v11245_v0 }
 0x64f   : > { %v1849_v56 = vld [vmem:[%s15389_s29 + $0x2c38] sm:$0xff]  ;;  %v14306_v3 = vcombine.high %v1593_v60, %v1601_v63  ;;  %v14305_v2 = vcombine.low %v1593_v60, %v1601_v63 }
 0x650   : > { %v1857_v35 = vld [vmem:[%s15389_s29 + $0x2c78] sm:$0xff] }
 0x651   : > { %11555 = vmatpush2.bf16.msra.mxu0 %v14401_v19  ;;  %11596 = vmatpush2.bf16.msra.mxu1 %v14657_v24  ;;  %v14562_v59 = vcombine.high %v1849_v56, %v1857_v35  ;;  %v14561_v49 = vcombine.low %v1849_v56, %v1857_v35  ;;  %v431_v19 = vld [vmem:[#allocation2 + $0x70] sm:$0xff] }
 0x652   : > { %11556 = vmatprep.subr.bf16.mxu0 %v14386_v26  ;;  %11597 = vmatprep.subr.bf16.mxu1 %v14642_v12 }
 0x655   : > { %11557 = vmatpush2.bf16.msra.mxu0 %v14385_v15  ;;  %11598 = vmatpush2.bf16.msra.mxu1 %v14641_v28 }
 0x656   : > { %11558 = vmatprep.subr.bf16.mxu0 %v14370_v31  ;;  %11599 = vmatprep.subr.bf16.mxu1 %v14626_v23 }
 0x659   : > { %11559 = vmatpush2.bf16.msra.mxu0 %v14369_v13  ;;  %11600 = vmatpush2.bf16.msra.mxu1 %v14625_v43 }
 0x65a   : > { %11560 = vmatprep.subr.bf16.mxu0 %v14354_v40  ;;  %11601 = vmatprep.subr.bf16.mxu1 %v14610_v38 }
 0x65d   : > { %11561 = vmatpush2.bf16.msra.mxu0 %v14353_v47  ;;  %11602 = vmatpush2.bf16.msra.mxu1 %v14609_v46 }
 0x65e   : > { %11562 = vmatprep.subr.bf16.mxu0 %v14338_v50  ;;  %11603 = vmatprep.subr.bf16.mxu1 %v14594_v44  ;;  %v432_v44 = vld [vmem:[#allocation2 + $0x78] sm:$0xff] }
 0x661   : > { %11563 = vmatpush2.bf16.msra.mxu0 %v14337_v62  ;;  %11604 = vmatpush2.bf16.msra.mxu1 %v14593_v55  ;;  %v433_v62 = vld [vmem:[#allocation2 + $0x28] sm:$0xff] }
 0x662   : > { %11564 = vmatprep.subr.bf16.mxu0 %v14322_v54  ;;  %11605 = vmatprep.subr.bf16.mxu1 %v14578_v57 }
 0x665   : > { %11565 = vmatpush2.bf16.msra.mxu0 %v14321_v36  ;;  %11606 = vmatpush2.bf16.msra.mxu1 %v14577_v42 }
 0x666   : > { %11566 = vmatprep.subr.bf16.mxu0 %v14306_v3  ;;  %11607 = vmatprep.subr.bf16.mxu1 %v14562_v59 }
 0x669   : > { %11567 = vmatpush2.bf16.msra.mxu0 %v14305_v2  ;;  %11608 = vmatpush2.bf16.msra.mxu1 %v14561_v49 }
 0x66c   : > { %v11324_v9 = vpop.f32.mrf.mxu0  ;;  %11569 = vmatmul.mubr.bf16.vlgmr.msra.gmra.mxu0 %v15646_v30  ;;  %v11365_v25 = vpop.f32.mrf.mxu1  ;;  %11610 = vmatmul.mubr.bf16.vlgmr.msra.gmra.mxu1 %v15650_v33 }
 0x66d   : > { %v11325_v4 = vadd.f32 %v11324_v9, %v11284_v10 }
 0x66e   : > { %v11326_v18 = vpop.f32.mrf.mxu0  ;;  %v11367_v20 = vpop.f32.mrf.mxu1 }
 0x66f   : > { %v11366_v52 = vadd.f32 %v11365_v25, %v11325_v4  ;;  %v11327_v7 = vadd.f32 %v11326_v18, %v11286_v14 }
 0x670   : > { %v11328_v53 = vpop.f32.mrf.mxu0  ;;  %v11369_v26 = vpop.f32.mrf.mxu1 }
 0x671   : > { %v11630_v41 = vadd.f32 %v11366_v52, %v430_v16  ;;  %v11368_v24 = vadd.f32 %v11367_v20, %v11327_v7 }
 0x672   : > { %v11329_v1 = vpop.f32.mrf.mxu0  ;;  %v11370_v30 = vpop.f32.mrf.mxu1 }
 0x673   : > { %11646 = vst [vmem:[#allocation2 + $0x60] sm:$0xff] %v11630_v41  ;;  %v11631_v12 = vadd.f32 %v11368_v24, %v431_v19 }
 0x675   : > { %11647 = vst [vmem:[#allocation2 + $0x70] sm:$0xff] %v11631_v12 }
 0x6ac   : > { %v11406_v8 = vpop.f32.mrf.mxu0  ;;  %v11447_v29 = vpop.f32.mrf.mxu1 }
 0x6ad   : > { %v11448_v61 = vadd.f32 %v11447_v29, %v11406_v8 }
 0x6ae   : > { %v11408_v37 = vpop.f32.mrf.mxu0  ;;  %v11449_v33 = vpop.f32.mrf.mxu1 }
 0x6af   : > { %v11450_v22 = vadd.f32 %v11449_v33, %v11408_v37 }
 0x6b0   : > { %v11410_v15 = vpop.f32.mrf.mxu0  ;;  %v11451_v28 = vpop.f32.mrf.mxu1 }
 0x6b2   : > { %v11411_v31 = vpop.f32.mrf.mxu0  ;;  %v11452_v23 = vpop.f32.mrf.mxu1 }
 0x6ec   : > { %v11488_v32 = vpop.f32.mrf.mxu0  ;;  %v11529_v34 = vpop.f32.mrf.mxu1 }
 0x6ed   : > { %v11489_v39 = vadd.f32 %v11488_v32, %v11448_v61 }
 0x6ee   : > { %v11490_v5 = vpop.f32.mrf.mxu0  ;;  %v11531_v6 = vpop.f32.mrf.mxu1 }
 0x6ef   : > { %v11491_v11 = vadd.f32 %v11490_v5, %v11450_v22  ;;  %v11530_v21 = vadd.f32 %v11529_v34, %v11489_v39 }
 0x6f0   : > { %v11492_v13 = vpop.f32.mrf.mxu0  ;;  %v11533_v43 = vpop.f32.mrf.mxu1 }
 0x6f1   : > { %v11532_v47 = vadd.f32 %v11531_v6, %v11491_v11 }
 0x6f2   : > { %v11493_v40 = vpop.f32.mrf.mxu0  ;;  %v11534_v38 = vpop.f32.mrf.mxu1 }
 0x72c   : > { %v11570_v45 = vpop.f32.mrf.mxu0  ;;  %v11611_v50 = vpop.f32.mrf.mxu1 }
 0x72d   : > { %v11571_v46 = vadd.f32 %v11570_v45, %v11530_v21 }
 0x72e   : > { %v11572_v58 = vpop.f32.mrf.mxu0  ;;  %v11613_v27 = vpop.f32.mrf.mxu1 }
 0x72f   : > { %v11612_v51 = vadd.f32 %v11611_v50, %v11571_v46  ;;  %v11573_v48 = vadd.f32 %v11572_v58, %v11532_v47 }
 0x730   : > { %v11574_v55 = vpop.f32.mrf.mxu0  ;;  %v11615_v60 = vpop.f32.mrf.mxu1 }
 0x731   : > { %v11632_v54 = vadd.f32 %v11612_v51, %v432_v44  ;;  %v11614_v57 = vadd.f32 %v11613_v27, %v11573_v48  ;;  %11653 = sbr.rel (%p14675_p11) target bundleno = 2226 (0x8b2), region = 56 }
 0x732   : > { %v11575_v63 = vpop.f32.mrf.mxu0  ;;  %v11616_v35 = vpop.f32.mrf.mxu1 }
 0x733   : > { %11648 = vst [vmem:[#allocation2 + $0x78] sm:$0xff] %v11632_v54  ;;  %v11633_v56 = vadd.f32 %v11614_v57, %v433_v62 }
 0x735   : > { %11649 = vst [vmem:[#allocation2 + $0x28] sm:$0xff] %v11633_v56 }
 0x736   : > { %v12226_v36 = vld [vmem:[%s18264_s3 + $0xf8] sm:$0xff]  ;;  %v12225_v2 = vld [vmem:[%s18264_s3 + $0xf0] sm:$0xff]  ;;  %v12224_v10 = vld [vmem:[%s18264_s3 + $0xe8] sm:$0xff]  ;;  %vm13011_vm0 = vcmask 80896  }
 0x737   : > { %v12258_v42 = vld [vmem:[%s18264_s3 + $0x1f8] sm:$0xff]  ;;  %14683 = vmatprep.subr.mxu0 %v12226_v36  ;;  %v12257_v49 = vld [vmem:[%s18264_s3 + $0x1f0] sm:$0xff]  ;;  %v12256_v9 = vld [vmem:[%s18264_s3 + $0x1e8] sm:$0xff] }
 0x738   : > { %v12210_v3 = vld [vmem:[%s18264_s3 + $0x78] sm:$0xff]  ;;  %14718 = vmatprep.subr.mxu1 %v12258_v42  ;;  %v12209_v17 = vld [vmem:[%s18264_s3 + $0x70] sm:$0xff]  ;;  %v12208_v14 = vld [vmem:[%s18264_s3 + $0x68] sm:$0xff] }
 0x739   : > { %v12242_v59 = vld [vmem:[%s18264_s3 + $0x178] sm:$0xff]  ;;  %14684 = vmatpush3.msra.mxu0 %v12210_v3  ;;  %v12241_v0 = vld [vmem:[%s18264_s3 + $0x170] sm:$0xff]  ;;  %v12240_v4 = vld [vmem:[%s18264_s3 + $0x168] sm:$0xff] }
 0x73a   : > { %14719 = vmatpush3.msra.mxu1 %v12242_v59  ;;  %14685 = vmatprep.subr.mxu0 %v12225_v2  ;;  %v12223_v25 = vld [vmem:[%s18264_s3 + $0xe0] sm:$0xff]  ;;  %v12222_v7 = vld [vmem:[%s18264_s3 + $0xd8] sm:$0xff]  ;;  %v12221_v41 = vld [vmem:[%s18264_s3 + $0xd0] sm:$0xff] }
 0x73b   : > { %14720 = vmatprep.subr.mxu1 %v12257_v49  ;;  %14686 = vmatpush3.msra.mxu0 %v12209_v17  ;;  %v12255_v16 = vld [vmem:[%s18264_s3 + $0x1e0] sm:$0xff]  ;;  %v12254_v20 = vld [vmem:[%s18264_s3 + $0x1d8] sm:$0xff]  ;;  %v12253_v24 = vld [vmem:[%s18264_s3 + $0x1d0] sm:$0xff] }
 0x73c   : > { %14721 = vmatpush3.msra.mxu1 %v12241_v0  ;;  %14687 = vmatprep.subr.mxu0 %v12224_v10  ;;  %v12207_v18 = vld [vmem:[%s18264_s3 + $0x60] sm:$0xff]  ;;  %v12206_v19 = vld [vmem:[%s18264_s3 + $0x58] sm:$0xff]  ;;  %v12205_v26 = vld [vmem:[%s18264_s3 + $0x50] sm:$0xff] }
 0x73d   : > { %14722 = vmatprep.subr.mxu1 %v12256_v9  ;;  %v12239_v52 = vld [vmem:[%s18264_s3 + $0x160] sm:$0xff]  ;;  %14688 = vmatpush3.msra.mxu0 %v12208_v14  ;;  %v12238_v53 = vld [vmem:[%s18264_s3 + $0x158] sm:$0xff]  ;;  %v12237_v1 = vld [vmem:[%s18264_s3 + $0x150] sm:$0xff] }
 0x73e   : > { %14723 = vmatpush3.msra.mxu1 %v12240_v4  ;;  %14689 = vmatprep.subr.mxu0 %v12223_v25  ;;  %v12220_v12 = vld [vmem:[%s18264_s3 + $0xc8] sm:$0xff]  ;;  %v12219_v61 = vld [vmem:[%s18264_s3 + $0xc0] sm:$0xff]  ;;  %v12218_v15 = vld [vmem:[%s18264_s3 + $0xb8] sm:$0xff] }
 0x73f   : > { %14724 = vmatprep.subr.mxu1 %v12255_v16  ;;  %14690 = vmatpush3.msra.mxu0 %v12207_v18  ;;  %v12252_v30 = vld [vmem:[%s18264_s3 + $0x1c8] sm:$0xff]  ;;  %v12251_v37 = vld [vmem:[%s18264_s3 + $0x1c0] sm:$0xff]  ;;  %v12250_v28 = vld [vmem:[%s18264_s3 + $0x1b8] sm:$0xff] }
 0x740   : > { %14725 = vmatpush3.msra.mxu1 %v12239_v52  ;;  %14691 = vmatprep.subr.mxu0 %v12222_v7  ;;  %v12204_v8 = vld [vmem:[%s18264_s3 + $0x48] sm:$0xff]  ;;  %v12203_v33 = vld [vmem:[%s18264_s3 + $0x40] sm:$0xff]  ;;  %v12202_v31 = vld [vmem:[%s18264_s3 + $0x38] sm:$0xff] }
 0x741   : > { %14726 = vmatprep.subr.mxu1 %v12254_v20  ;;  %14692 = vmatpush3.msra.mxu0 %v12206_v19  ;;  %v12236_v29 = vld [vmem:[%s18264_s3 + $0x148] sm:$0xff]  ;;  %v12235_v22 = vld [vmem:[%s18264_s3 + $0x140] sm:$0xff]  ;;  %v12234_v23 = vld [vmem:[%s18264_s3 + $0x138] sm:$0xff] }
 0x742   : > { %14727 = vmatpush3.msra.mxu1 %v12238_v53  ;;  %14693 = vmatprep.subr.mxu0 %v12221_v41  ;;  %v12217_v32 = vld [vmem:[%s18264_s3 + $0xb0] sm:$0xff]  ;;  %v12216_v13 = vld [vmem:[%s18264_s3 + $0xa8] sm:$0xff]  ;;  %v12215_v39 = vld [vmem:[%s18264_s3 + $0xa0] sm:$0xff] }
 0x743   : > { %14728 = vmatprep.subr.mxu1 %v12253_v24  ;;  %14694 = vmatpush3.msra.mxu0 %v12205_v26  ;;  %v12249_v34 = vld [vmem:[%s18264_s3 + $0x1b0] sm:$0xff]  ;;  %v12248_v43 = vld [vmem:[%s18264_s3 + $0x1a8] sm:$0xff]  ;;  %v12247_v11 = vld [vmem:[%s18264_s3 + $0x1a0] sm:$0xff] }
 0x744   : > { %14729 = vmatpush3.msra.mxu1 %v12237_v1  ;;  %14695 = vmatprep.subr.mxu0 %v12220_v12  ;;  %v12201_v5 = vld [vmem:[%s18264_s3 + $0x30] sm:$0xff]  ;;  %v12200_v40 = vld [vmem:[%s18264_s3 + $0x28] sm:$0xff]  ;;  %v12199_v21 = vld [vmem:[%s18264_s3 + $0x20] sm:$0xff] }
 0x745   : > { %14730 = vmatprep.subr.mxu1 %v12252_v30  ;;  %14696 = vmatpush3.msra.mxu0 %v12204_v8  ;;  %v12233_v6 = vld [vmem:[%s18264_s3 + $0x130] sm:$0xff]  ;;  %v12232_v38 = vld [vmem:[%s18264_s3 + $0x128] sm:$0xff]  ;;  %v12231_v45 = vld [vmem:[%s18264_s3 + $0x120] sm:$0xff] }
 0x746   : > { %14731 = vmatpush3.msra.mxu1 %v12236_v29  ;;  %14697 = vmatprep.subr.mxu0 %v12219_v61  ;;  %v12214_v47 = vld [vmem:[%s18264_s3 + $0x98] sm:$0xff]  ;;  %v17348_v46 = vld [vmem:[#allocation2] sm:$0xff]  ;;  %v17363_v62 = vld [vmem:[#allocation2 + $0x30] sm:$0xff] }
 0x747   : > { %14732 = vmatprep.subr.mxu1 %v12251_v37  ;;  %14698 = vmatpush3.msra.mxu0 %v12203_v33  ;;  %v12246_v50 = vld [vmem:[%s18264_s3 + $0x198] sm:$0xff]  ;;  %v11676_v58 = vrot.slane %v17348_v46, 4  ;;  %v12213_v54 = vld [vmem:[%s18264_s3 + $0x90] sm:$0xff]  ;;  %v11670_v63 = vrot.slane %v17363_v62, 4  ;;  %v12212_v3 = vld [vmem:[%s18264_s3 + $0x88] sm:$0xff] }
 0x748   : > { %14733 = vmatpush3.msra.mxu1 %v12235_v22  ;;  %14699 = vmatprep.subr.mxu0 %v12218_v15  ;;  %v12198_v44 = vld [vmem:[%s18264_s3 + $0x18] sm:$0xff]  ;;  %v12245_v57 = vld [vmem:[%s18264_s3 + $0x190] sm:$0xff]  ;;  %v12244_v59 = vld [vmem:[%s18264_s3 + $0x188] sm:$0xff] }
 0x749   : > { %14734 = vmatprep.subr.mxu1 %v12250_v28  ;;  %14700 = vmatpush3.msra.mxu0 %v12202_v31  ;;  %v17357_v51 = vld [vmem:[#allocation2 + $0x18] sm:$0xff]  ;;  %v11677_v60 = vadd.f32 %v11676_v58, %v17348_v46  ;;  %v12197_v35 = vld [vmem:[%s18264_s3 + $0x10] sm:$0xff]  ;;  %v11671_v49 = vadd.f32 %v11670_v63, %v17363_v62  ;;  %v12196_v0 = vld [vmem:[%s18264_s3 + $0x8] sm:$0xff]  ;;  %v11981_v58 = vlaneseq }
 0x74a   : > { %14735 = vmatpush3.msra.mxu1 %v12234_v23  ;;  %14701 = vmatprep.subr.mxu0 %v12217_v32  ;;  %v12230_v48 = vld [vmem:[%s18264_s3 + $0x118] sm:$0xff]  ;;  %v11688_v27 = vrot.slane %v17357_v51, 4  ;;  %v12229_v36 = vld [vmem:[%s18264_s3 + $0x110] sm:$0xff]  ;;  %v12228_v10 = vld [vmem:[%s18264_s3 + $0x108] sm:$0xff] }
 0x74b   : > { %14736 = vmatprep.subr.mxu1 %v12249_v34  ;;  %14702 = vmatpush3.msra.mxu0 %v12201_v5  ;;  %v17365_v55 = vld [vmem:[#allocation2 + $0x58] sm:$0xff]  ;;  %v11678_v2 = vrot.slane %v11677_v60, 2  ;;  %v12211_v14 = vld [vmem:[%s18264_s3 + $0x80] sm:$0xff]  ;;  %v11672_v16 = vrot.slane %v11671_v49, 2  ;;  %v11660_v63 = vld [vmem:[#allocation2 + $0x8] sm:$0xff] }
 0x74c   : > { %14737 = vmatpush3.msra.mxu1 %v12233_v6  ;;  %14703 = vmatprep.subr.mxu0 %v12216_v13  ;;  %v11682_v56 = vrot.slane %v17365_v55, 4  ;;  %v11689_v42 = vadd.f32 %v11688_v27, %v17357_v51  ;;  %v12243_v4 = vld [vmem:[%s18264_s3 + $0x180] sm:$0xff]  ;;  %v12290_v53 = vld [vmem:[%s18264_s3 + $0x2f8] sm:$0xff]  ;;  %v11658_v27 = vld [vmem:[#allocation2 + $0x50] sm:$0xff] }
 0x74d   : > { %14738 = vmatprep.subr.mxu1 %v12248_v43  ;;  %14704 = vmatpush3.msra.mxu0 %v12200_v40  ;;  %v11679_v25 = vadd.f32 %v11678_v2, %v11677_v60  ;;  %v12195_v52 = vld [vmem:[%s18264_s3] sm:$0xff]  ;;  %v12322_v41 = vld [vmem:[%s18264_s3 + $0x3f8] sm:$0xff]  ;;  %v11673_v24 = vadd.f32 %v11672_v16, %v11671_v49  ;;  %v11694_v60 = vrot.slane %v11658_v27, 4 }
 0x74e   : > { %14739 = vmatpush3.msra.mxu1 %v12232_v38  ;;  %14705 = vmatprep.subr.mxu0 %v12215_v39  ;;  %v11683_v17 = vadd.f32 %v11682_v56, %v17365_v55  ;;  %v11690_v9 = vrot.slane %v11689_v42, 2  ;;  %v12227_v7 = vld [vmem:[%s18264_s3 + $0x100] sm:$0xff] }
 0x74f   : > { %14740 = vmatprep.subr.mxu1 %v12247_v11  ;;  %14706 = vmatpush3.msra.mxu0 %v12199_v21  ;;  %v11680_v19 = vrot.slane %v11679_v25, 1  ;;  %v11674_v30 = vrot.slane %v11673_v24, 1  ;;  %v11695_v49 = vadd.f32 %v11694_v60, %v11658_v27 }
 0x750   : > { %14741 = vmatpush3.msra.mxu1 %v12231_v45  ;;  %14707 = vmatprep.subr.mxu0 %v12214_v47  ;;  %v11684_v18 = vrot.slane %v11683_v17, 2  ;;  %v11691_v20 = vadd.f32 %v11690_v9, %v11689_v42  ;;  %v11706_v42 = vrot.slane %v11660_v63, 4 }
 0x751   : > { %14742 = vmatprep.subr.mxu1 %v12246_v50  ;;  %14708 = vmatpush3.msra.mxu0 %v12198_v44  ;;  %v11681_v12 = vadd.f32 %v11680_v19, %v11679_v25  ;;  %v11675_v37 = vadd.f32 %v11674_v30, %v11673_v24  ;;  %v11659_v44 = vld [vmem:[#allocation2 + $0x68] sm:$0xff]  ;;  %v11696_v16 = vrot.slane %v11695_v49, 2 }
 0x752   : > { %14743 = vmatpush3.msra.mxu1 %v12230_v48  ;;  %14709 = vmatprep.subr.mxu0 %v12213_v54  ;;  %v11685_v26 = vadd.f32 %v11684_v18, %v11683_v17  ;;  %v11692_v1 = vrot.slane %v11691_v20, 1  ;;  %v11700_v48 = vrot.slane %v11659_v44, 4  ;;  %v11707_v9 = vadd.f32 %v11706_v42, %v11660_v63 }
 0x753   : > { %14744 = vmatprep.subr.mxu1 %v12245_v57  ;;  %14710 = vmatpush3.msra.mxu0 %v12197_v35  ;;  %v11768_v61 = vmul.f32 0.125, %v11681_v12  ;;  %v11767_v28 = vmul.f32 0.125, %v11675_v37  ;;  %v11697_v24 = vadd.f32 %v11696_v16, %v11695_v49 }
 0x754   : > { %14745 = vmatpush3.msra.mxu1 %v12229_v36  ;;  %14711 = vmatprep.subr.mxu0 %v12212_v3  ;;  %v11686_v8 = vrot.slane %v11685_v26, 1  ;;  %v11693_v29 = vadd.f32 %v11692_v1, %v11691_v20  ;;  %v11701_v35 = vadd.f32 %v11700_v48, %v11659_v44  ;;  %v11708_v20 = vrot.slane %v11707_v9, 2 }
 0x755   : > { %14746 = vmatprep.subr.mxu1 %v12244_v59  ;;  %14712 = vmatpush3.msra.mxu0 %v12196_v0  ;;  %v17416_v15 = vsub.f32 %v17348_v46, %v11768_v61  ;;  %v17424_v34 = vsub.f32 %v17363_v62, %v11767_v28  ;;  %v11661_v62 = vld [vmem:[#allocation2 + $0x48] sm:$0xff]  ;;  %v11698_v37 = vrot.slane %v11697_v24, 1 }
 0x756   : > { %14747 = vmatpush3.msra.mxu1 %v12228_v10  ;;  %14713 = vmatprep.subr.mxu0 %v12211_v14  ;;  %v11687_v33 = vadd.f32 %v11686_v8, %v11685_v26  ;;  %v11770_v22 = vmul.f32 0.125, %v11693_v29  ;;  %v11712_v36 = vrot.slane %v11661_v62, 4  ;;  %v11702_v0 = vrot.slane %v11701_v35, 2 }
 0x757   : > { %14748 = vmatprep.subr.mxu1 %v12243_v4  ;;  %14714 = vmatpush3.msra.mxu0 %v12195_v52  ;;  %v11800_v32 = vmul.f32 %v17416_v15, %v17416_v15  ;;  %v11799_v43 = vmul.f32 %v17424_v34, %v17424_v34  ;;  %v11709_v30 = vadd.f32 %v11708_v20, %v11707_v9 }
 0x758   : > { %14749 = vmatpush3.msra.mxu1 %v12227_v7  ;;  %14753 = vmatprep.subr.mxu0 %v12290_v53  ;;  %v11769_v31 = vmul.f32 0.125, %v11687_v33  ;;  %v17419_v23 = vsub.f32 %v17357_v51, %v11770_v22  ;;  %v11713_v10 = vadd.f32 %v11712_v36, %v11661_v62  ;;  %v11703_v52 = vadd.f32 %v11702_v0, %v11701_v35 }
 0x759   : > { %14788 = vmatprep.subr.mxu1 %v12322_v41  ;;  %v11821_v13 = vrot.slane %v11800_v32, 4  ;;  %v11815_v11 = vrot.slane %v11799_v43, 4 }
 0x75a   : > { %v17427_v5 = vsub.f32 %v17365_v55, %v11769_v31  ;;  %v11802_v6 = vmul.f32 %v17419_v23, %v17419_v23  ;;  %v11714_v7 = vrot.slane %v11713_v10, 2  ;;  %v11704_v1 = vrot.slane %v11703_v52, 1 }
 0x75b   : > { %v11822_v39 = vadd.f32 %v11821_v13, %v11800_v32  ;;  %v11816_v46 = vadd.f32 %v11815_v11, %v11799_v43  ;;  %v11710_v31 = vrot.slane %v11709_v30, 1  ;;  %v11699_v13 = vadd.f32 %v11698_v37, %v11697_v24 }
 0x75c   : > { %v11801_v40 = vmul.f32 %v17427_v5, %v17427_v5  ;;  %v11833_v38 = vrot.slane %v11802_v6, 4  ;;  %v11715_v12 = vadd.f32 %v11714_v7, %v11713_v10  ;;  %v11705_v22 = vadd.f32 %v11704_v1, %v11703_v52 }
 0x75d   : > { %v11823_v47 = vrot.slane %v11822_v39, 2  ;;  %v11817_v54 = vrot.slane %v11816_v46, 2  ;;  %v11771_v11 = vmul.f32 0.125, %v11699_v13 }
 0x75e   : > { %v11827_v21 = vrot.slane %v11801_v40, 4  ;;  %v11834_v45 = vadd.f32 %v11833_v38, %v11802_v6  ;;  %v11716_v28 = vrot.slane %v11715_v12, 1  ;;  %v11772_v43 = vmul.f32 0.125, %v11705_v22 }
 0x75f   : > { %v11824_v55 = vadd.f32 %v11823_v47, %v11822_v39  ;;  %v11818_v59 = vadd.f32 %v11817_v54, %v11816_v46  ;;  %v11711_v38 = vadd.f32 %v11710_v31, %v11709_v30  ;;  %v17435_v39 = vshrl.u32 %v11981_v58, 7  ;;  %v17455_v54 = vld [vmem:[#allocation8 + $0x1] ss:$4 sm:$0xff] }
 0x760   : > { %v11828_v50 = vadd.f32 %v11827_v21, %v11801_v40  ;;  %v11835_v51 = vrot.slane %v11834_v45, 2  ;;  %v11717_v40 = vadd.f32 %v11716_v28, %v11715_v12  ;;  %v17437_v21 = vsub.f32 %v11659_v44, %v11772_v43 }
 0x761   : > { %v11825_v3 = vrot.slane %v11824_v55, 1  ;;  %v11819_v4 = vrot.slane %v11818_v59, 1  ;;  %v11773_v47 = vmul.f32 0.125, %v11711_v38  ;;  %v17439_v46 = vsub.f32 %v11658_v27, %v11771_v11 }
 0x762   : > { %v11829_v57 = vrot.slane %v11828_v50, 2  ;;  %v11836_v56 = vadd.f32 %v11835_v51, %v11834_v45  ;;  %v11774_v45 = vmul.f32 0.125, %v11717_v40  ;;  %v17451_v58 = vsub.s32 3, %v17435_v39 }
 0x763   : > { %v11826_v14 = vadd.f32 %v11825_v3, %v11824_v55  ;;  %v11820_v53 = vadd.f32 %v11819_v4, %v11818_v59  ;;  %v17445_v48 = vsub.f32 %v11660_v63, %v11773_v47  ;;  %v17448_v55 = vsub.s32 1, %v17435_v39 }
 0x764   : > { %v11830_v2 = vadd.f32 %v11829_v57, %v11828_v50  ;;  %v11837_v17 = vrot.slane %v11836_v56, 1  ;;  %v11804_v50 = vmul.f32 %v17437_v21, %v17437_v21  ;;  %v17443_v51 = vsub.f32 %v11661_v62, %v11774_v45 }
 0x765   : > { %v11912_v19 = vmul.f32 0.125, %v11826_v14  ;;  %v11911_v29 = vmul.f32 0.125, %v11820_v53  ;;  %v11803_v44 = vmul.f32 %v17439_v46, %v17439_v46  ;;  %v17458_v27 = vsub.s32 0, %v17435_v39 }
 0x766   : > { %v11831_v25 = vrot.slane %v11830_v2, 1  ;;  %v11838_v18 = vadd.f32 %v11837_v17, %v11836_v56  ;;  %v11845_v57 = vrot.slane %v11804_v50, 4  ;;  %v11806_v62 = vmul.f32 %v17443_v51, %v17443_v51  ;;  %v17464_v56 = vld [vmem:[#allocation8 + $0x2] ss:$4 sm:$0xff] }
 0x767   : > { %v11928_v8 = vadd.f32 1e-05, %v11912_v19  ;;  %v11927_v32 = vadd.f32 1e-05, %v11911_v29  ;;  %v11805_v60 = vmul.f32 %v17445_v48, %v17445_v48  ;;  %v11839_v63 = vrot.slane %v11803_v44, 4 }
 0x768   : > { %v11832_v41 = vadd.f32 %v11831_v25, %v11830_v2  ;;  %v11914_v26 = vmul.f32 0.125, %v11838_v18  ;;  %v11846_v35 = vadd.f32 %v11845_v57, %v11804_v50  ;;  %v11857_v36 = vrot.slane %v11806_v62, 4  ;;  %v17481_v18 = vld [vmem:[#allocation2 + $0x20] sm:$0xff] }
 0x769   : > { %15050 = vrsqrt.f32 %v11928_v8  ;;  %v11851_v42 = vrot.slane %v11805_v60, 4  ;;  %v11988_v3 = vrot.slane %v17455_v54, %v17448_v55  ;;  %v11996_v59 = vrot.slane %v17455_v54, %v17451_v58 }
 0x76a   : > { %v11913_v61 = vmul.f32 0.125, %v11832_v41  ;;  %v11930_v33 = vadd.f32 1e-05, %v11914_v26  ;;  %v17471_v2 = vsub.s32 2, %v17435_v39  ;;  %v11840_v49 = vadd.f32 %v11839_v63, %v11803_v44  ;;  %v17493_v63 = vld [vmem:[#allocation2 + $0x40] sm:$0xff] }
 0x76b   : > { %v11984_v17 = vrot.slane %v17455_v54, %v17458_v27  ;;  %v11847_v0 = vrot.slane %v11846_v35, 2  ;;  %v11858_v10 = vadd.f32 %v11857_v36, %v11806_v62  ;;  %v11852_v9 = vadd.f32 %v11851_v42, %v11805_v60 }
 0x76c   : > { %v11929_v6 = vadd.f32 1e-05, %v11913_v61  ;;  %15052 = vrsqrt.f32 %v11930_v33  ;;  %v12090_v14 = vrot.slane %v17464_v56, %v17448_v55  ;;  %v12098_v4 = vrot.slane %v17464_v56, %v17451_v58 }
 0x76d   : > { %15054 = vrsqrt.f32 %v11927_v32  ;;  %v12086_v25 = vrot.slane %v17464_v56, %v17458_v27  ;;  %v11841_v16 = vrot.slane %v11840_v49, 2  ;;  %v11848_v7 = vadd.f32 %v11847_v0, %v11846_v35 }
 0x76e   : > { %15056 = vrsqrt.f32 %v11929_v6  ;;  %v11859_v20 = vrot.slane %v11858_v10, 2  ;;  %v11853_v19 = vrot.slane %v11852_v9, 2  ;;  %v11724_v53 = vrot.slane %v17481_v18, 4 }
 0x76f   : > { %v11992_v26 = vrot.slane %v17455_v54, %v17471_v2  ;;  %v12094_v1 = vrot.slane %v17464_v56, %v17471_v2  ;;  %v11842_v12 = vadd.f32 %v11841_v16, %v11840_v49  ;;  %v11849_v29 = vrot.slane %v11848_v7, 1 }
 0x770   : > { %v11860_v61 = vadd.f32 %v11859_v20, %v11858_v10  ;;  %v11854_v37 = vadd.f32 %v11853_v19, %v11852_v9  ;;  %v17498_v10 = vld [vmem:[#allocation2 + $0x38] sm:$0xff]  ;;  %v11718_v16 = vrot.slane %v17493_v63, 4 }
 0x771   : > { %v11843_v31 = vrot.slane %v11842_v12, 1  ;;  %v11850_v13 = vadd.f32 %v11849_v29, %v11848_v7  ;;  %v12273_v7 = vld [vmem:[%s18264_s3 + $0x270] sm:$0xff]  ;;  %v12304_v29 = vld [vmem:[%s18264_s3 + $0x368] sm:$0xff] }
 0x772   : > { %v11861_v43 = vrot.slane %v11860_v61, 1  ;;  %v11855_v45 = vrot.slane %v11854_v37, 1 }
 0x773   : > { %v11844_v11 = vadd.f32 %v11843_v31, %v11842_v12  ;;  %v11916_v50 = vmul.f32 0.125, %v11850_v13  ;;  %v12320_v12 = vld [vmem:[%s18264_s3 + $0x3e8] sm:$0xff]  ;;  %v12271_v31 = vld [vmem:[%s18264_s3 + $0x260] sm:$0xff]  ;;  %v17550_v13 = vsub.s32 5, %v17435_v39 }
 0x774   : > { %v11862_v44 = vadd.f32 %v11861_v43, %v11860_v61  ;;  %v12287_v61 = vld [vmem:[%s18264_s3 + $0x2e0] sm:$0xff] }
 0x775   : > { %v11915_v60 = vmul.f32 0.125, %v11844_v11  ;;  %v11932_v42 = vadd.f32 1e-05, %v11916_v50  ;;  %v12318_v11 = vld [vmem:[%s18264_s3 + $0x3d8] sm:$0xff] }
 0x776   : > { %v15051_v52 = vpop.eup %15050  ;;  %v12302_v50 = vld [vmem:[%s18264_s3 + $0x358] sm:$0xff] }
 0x777   : > { %v11960_v24 = vmul.f32 %v15051_v52, %v17416_v15  ;;  %v11725_v15 = vadd.f32 %v11724_v53, %v17481_v18  ;;  %v11931_v49 = vadd.f32 1e-05, %v11915_v60  ;;  %15058 = vrsqrt.f32 %v11932_v42  ;;  %v12321_v52 = vld [vmem:[%s18264_s3 + $0x3f0] sm:$0xff] }
 0x778   : > { %v17513_v53 = vld [vmem:[#allocation2 + $0x10] sm:$0xff] }
 0x779   : > { %v15053_v41 = vpop.eup %15052  ;;  %v12062_v22 = vmul.f32 %v11988_v3, %v11960_v24  ;;  %v11918_v3 = vmul.f32 0.125, %v11862_v44  ;;  %v11726_v0 = vrot.slane %v11725_v15, 2  ;;  %15060 = vrsqrt.f32 %v11931_v49  ;;  %v12288_v24 = vld [vmem:[%s18264_s3 + $0x2e8] sm:$0xff]  ;;  %v12285_v44 = vld [vmem:[%s18264_s3 + $0x2d0] sm:$0xff] }
 0x77a   : > { %v15055_v30 = vpop.eup %15054  ;;  %v11962_v8 = vmul.f32 %v15053_v41, %v17419_v23  ;;  %v12305_v41 = vld [vmem:[%s18264_s3 + $0x370] sm:$0xff]  ;;  %v12004_v49 = vrot.slane %v17455_v54, %v17550_v13 }
 0x77b   : > { %v15057_v33 = vpop.eup %15056  ;;  %v11959_v28 = vmul.f32 %v15055_v30, %v17424_v34  ;;  %v12164_v40 = vadd.f32 %v12090_v14, %v12062_v22  ;;  %v11856_v34 = vadd.f32 %v11855_v45, %v11854_v37  ;;  %v12306_v14 = vld [vmem:[%s18264_s3 + $0x378] sm:$0xff]  ;;  %v11727_v19 = vadd.f32 %v11726_v0, %v11725_v15  ;;  %v12272_v30 = vld [vmem:[%s18264_s3 + $0x268] sm:$0xff] }
 0x77c   : > { %v12064_v32 = vmul.f32 %v11996_v59, %v11962_v8  ;;  %v11961_v6 = vmul.f32 %v15057_v33, %v17427_v5  ;;  %v12274_v5 = vld [vmem:[%s18264_s3 + $0x278] sm:$0xff]  ;;  %v11730_v22 = vrot.slane %v17513_v53, 4 }
 0x77d   : > { %v12061_v38 = vmul.f32 %v11984_v17, %v11959_v28  ;;  %v12180_v57 = vmax.f32 %v12164_v40, 0.0  ;;  %v11917_v17 = vmul.f32 0.125, %v11856_v34  ;;  %v11728_v8 = vrot.slane %v11727_v19, 1  ;;  %v12319_v28 = vld [vmem:[%s18264_s3 + $0x3e0] sm:$0xff]  ;;  %v12270_v45 = vld [vmem:[%s18264_s3 + $0x258] sm:$0xff]  ;;  %v12317_v34 = vld [vmem:[%s18264_s3 + $0x3d0] sm:$0xff] }
 0x77e   : > { %v12166_v23 = vadd.f32 %v12098_v4, %v12064_v32  ;;  %v12063_v47 = vmul.f32 %v11992_v26, %v11961_v6  ;;  %v12289_v4 = vld [vmem:[%s18264_s3 + $0x2f0] sm:$0xff]  ;;  %v11719_v26 = vadd.f32 %v11718_v16, %v17493_v63  ;;  %v12303_v32 = vld [vmem:[%s18264_s3 + $0x360] sm:$0xff]  ;;  %v12286_v6 = vld [vmem:[%s18264_s3 + $0x2d8] sm:$0xff] }
 0x77f   : > { %v12163_v62 = vadd.f32 %v12086_v25, %v12061_v38  ;;  %12515 = vmatprep.mubr.f32.mxu0 %v12180_v57  ;;  %v11934_v25 = vadd.f32 1e-05, %v11918_v3  ;;  %v11933_v20 = vadd.f32 1e-05, %v11917_v17  ;;  %v11729_v15 = vadd.f32 %v11728_v8, %v11727_v19  ;;  %v12301_v3 = vld [vmem:[%s18264_s3 + $0x350] sm:$0xff]  ;;  %v12300_v16 = vld [vmem:[%s18264_s3 + $0x348] sm:$0xff] }
 0x780   : > { %v12182_v35 = vmax.f32 %v12166_v23, 0.0  ;;  %v12165_v36 = vadd.f32 %v12094_v1, %v12063_v47  ;;  %v11736_v1 = vrot.slane %v17498_v10, 4  ;;  %v11720_v37 = vrot.slane %v11719_v26, 2 }
 0x781   : > { %v12179_v59 = vmax.f32 %v12163_v62, 0.0  ;;  %15062 = vrsqrt.f32 %v11934_v25  ;;  %v11731_v38 = vadd.f32 %v11730_v22, %v17513_v53  ;;  %v17560_v23 = vsub.s32 4, %v17435_v39 }
 0x782   : > { %12585 = vmatprep.mubr.f32.mxu1 %v12182_v35  ;;  %v12181_v9 = vmax.f32 %v12165_v36, 0.0  ;;  %15064 = vrsqrt.f32 %v11933_v20  ;;  %v11737_v33 = vadd.f32 %v11736_v1, %v17498_v10  ;;  %v11721_v43 = vadd.f32 %v11720_v37, %v11719_v26  ;;  %v12269_v35 = vld [vmem:[%s18264_s3 + $0x250] sm:$0xff]  ;;  %v12315_v26 = vld [vmem:[%s18264_s3 + $0x3c0] sm:$0xff] }
 0x783   : > { %12516 = vmatmul.mubr.f32.vlgmr.msra.gmra.mxu0 %v12179_v59  ;;  %v11776_v47 = vmul.f32 0.125, %v11729_v15  ;;  %v11732_v60 = vrot.slane %v11731_v38, 2  ;;  %v17575_v36 = vsub.s32 7, %v17435_v39  ;;  %v12284_v59 = vld [vmem:[%s18264_s3 + $0x2c8] sm:$0xff]  ;;  %v12267_v1 = vld [vmem:[%s18264_s3 + $0x240] sm:$0xff] }
 0x784   : > { %12586 = vmatmul.mubr.f32.vlgmr.msra.gmra.mxu1 %v12181_v9  ;;  %14754 = vmatpush3.msra.mxu0 %v12274_v5  ;;  %v11738_v40 = vrot.slane %v11737_v33, 2  ;;  %v11722_v57 = vrot.slane %v11721_v43, 1  ;;  %v17578_v5 = vsub.s32 6, %v17435_v39  ;;  %v12268_v9 = vld [vmem:[%s18264_s3 + $0x248] sm:$0xff]  ;;  %v12299_v37 = vld [vmem:[%s18264_s3 + $0x340] sm:$0xff] }
 0x785   : > { %14789 = vmatpush3.msra.mxu1 %v12306_v14  ;;  %14755 = vmatprep.subr.mxu0 %v12289_v4  ;;  %v17581_v42 = vsub.f32 %v17481_v18, %v11776_v47  ;;  %v11733_v39 = vadd.f32 %v11732_v60, %v11731_v38  ;;  %v12316_v18 = vld [vmem:[%s18264_s3 + $0x3c8] sm:$0xff]  ;;  %v12106_v14 = vrot.slane %v17464_v56, %v17550_v13  ;;  %v12281_v47 = vld [vmem:[%s18264_s3 + $0x2b0] sm:$0xff] }
 0x786   : > { %14790 = vmatprep.subr.mxu1 %v12321_v52  ;;  %14756 = vmatpush3.msra.mxu0 %v12273_v7  ;;  %v11739_v62 = vadd.f32 %v11738_v40, %v11737_v33  ;;  %v11723_v17 = vadd.f32 %v11722_v57, %v11721_v43  ;;  %v12000_v4 = vrot.slane %v17455_v54, %v17560_v23  ;;  %v12283_v52 = vld [vmem:[%s18264_s3 + $0x2c0] sm:$0xff]  ;;  %v12282_v33 = vld [vmem:[%s18264_s3 + $0x2b8] sm:$0xff]  ;;  %v12313_v60 = vld [vmem:[%s18264_s3 + $0x3b0] sm:$0xff] }
 0x787   : > { %14791 = vmatpush3.msra.mxu1 %v12305_v41  ;;  %14757 = vmatprep.subr.mxu0 %v12288_v24  ;;  %v11808_v25 = vmul.f32 %v17581_v42, %v17581_v42  ;;  %v12102_v7 = vrot.slane %v17464_v56, %v17560_v23  ;;  %v11734_v41 = vrot.slane %v11733_v39, 1  ;;  %v15059_v24 = vpop.eup %15058  ;;  %v12008_v8 = vrot.slane %v17455_v54, %v17578_v5  ;;  %v12266_v43 = vld [vmem:[%s18264_s3 + $0x238] sm:$0xff] }
 0x788   : > { %14792 = vmatprep.subr.mxu1 %v12320_v12  ;;  %14758 = vmatpush3.msra.mxu0 %v12272_v30  ;;  %v11740_v0 = vrot.slane %v11739_v62, 1  ;;  %v11775_v20 = vmul.f32 0.125, %v11723_v17  ;;  %v12012_v12 = vrot.slane %v17455_v54, %v17575_v36  ;;  %v12114_v30 = vrot.slane %v17464_v56, %v17575_v36  ;;  %v17633_v54 = vld [vmem:[#allocation2 + $0x70] sm:$0xff]  ;;  %v12280_v17 = vld [vmem:[%s18264_s3 + $0x2a8] sm:$0xff] }
 0x789   : > { %14793 = vmatpush3.msra.mxu1 %v12304_v29  ;;  %14759 = vmatprep.subr.mxu0 %v12287_v61  ;;  %v11869_v29 = vrot.slane %v11808_v25, 4  ;;  %v15061_v61 = vpop.eup %15060  ;;  %v11964_v22 = vmul.f32 %v15059_v24, %v17437_v21  ;;  %v11735_v15 = vadd.f32 %v11734_v41, %v11733_v39  ;;  %v11748_v38 = vrot.slane %v17633_v54, 4  ;;  %v12263_v41 = vld [vmem:[%s18264_s3 + $0x220] sm:$0xff] }
 0x78a   : > { %14794 = vmatprep.subr.mxu1 %v12319_v28  ;;  %14760 = vmatpush3.msra.mxu0 %v12271_v31  ;;  %v11741_v19 = vadd.f32 %v11740_v0, %v11739_v62  ;;  %v17631_v28 = vsub.f32 %v17493_v63, %v11775_v20  ;;  %v11963_v21 = vmul.f32 %v15061_v61, %v17439_v46  ;;  %v17654_v62 = vld [vmem:[#allocation2 + $0x28] sm:$0xff]  ;;  %v12278_v61 = vld [vmem:[%s18264_s3 + $0x298] sm:$0xff] }
 0x78b   : > { %14795 = vmatpush3.msra.mxu1 %v12303_v32  ;;  %14761 = vmatprep.subr.mxu0 %v12286_v6  ;;  %v12314_v6 = vld [vmem:[%s18264_s3 + $0x3b8] sm:$0xff]  ;;  %v12110_v63 = vrot.slane %v17464_v56, %v17578_v5  ;;  %v11870_v40 = vadd.f32 %v11869_v29, %v11808_v25  ;;  %v11777_v57 = vmul.f32 0.125, %v11735_v15  ;;  %v12295_v29 = vld [vmem:[%s18264_s3 + $0x320] sm:$0xff] }
 0x78c   : > { %14796 = vmatprep.subr.mxu1 %v12318_v11  ;;  %14762 = vmatpush3.msra.mxu0 %v12270_v45  ;;  %v11778_v31 = vmul.f32 0.125, %v11741_v19  ;;  %v12298_v45 = vld [vmem:[%s18264_s3 + $0x338] sm:$0xff] }
 0x78d   : > { %14797 = vmatpush3.msra.mxu1 %v12302_v50  ;;  %14763 = vmatprep.subr.mxu0 %v12285_v44  ;;  %v12066_v50 = vmul.f32 %v12004_v49, %v11964_v22  ;;  %v11807_v44 = vmul.f32 %v17631_v28, %v17631_v28  ;;  %v12297_v49 = vld [vmem:[%s18264_s3 + $0x330] sm:$0xff]  ;;  %v11749_v22 = vadd.f32 %v11748_v38, %v17633_v54  ;;  %v12310_v15 = vld [vmem:[%s18264_s3 + $0x398] sm:$0xff] }
 0x78e   : > { %14798 = vmatprep.subr.mxu1 %v12317_v34  ;;  %14764 = vmatpush3.msra.mxu0 %v12269_v35  ;;  %v15063_v32 = vpop.eup %15062  ;;  %v12265_v34 = vld [vmem:[%s18264_s3 + $0x230] sm:$0xff]  ;;  %v12065_v35 = vmul.f32 %v12000_v4, %v11963_v21  ;;  %v12294_v38 = vld [vmem:[%s18264_s3 + $0x318] sm:$0xff] }
 0x78f   : > { %14799 = vmatpush3.msra.mxu1 %v12301_v3  ;;  %14765 = vmatprep.subr.mxu0 %v12284_v59  ;;  %v15065_v11 = vpop.eup %15064  ;;  %v11966_v46 = vmul.f32 %v15063_v32, %v17443_v51  ;;  %v11871_v51 = vrot.slane %v11870_v40, 2  ;;  %v17664_v59 = vsub.f32 %v17498_v10, %v11778_v31  ;;  %v17672_v0 = vadd.f32 %v12106_v14, %v12066_v50  ;;  %v12312_v10 = vld [vmem:[%s18264_s3 + $0x3a8] sm:$0xff]  ;;  %v17718_v31 = vld [vmem:[#allocation2 + $0x78] sm:$0xff] }
 0x790   : > { %14800 = vmatprep.subr.mxu1 %v12316_v18  ;;  %14766 = vmatpush3.msra.mxu0 %v12268_v9  ;;  %v11965_v3 = vmul.f32 %v15065_v11, %v17445_v48  ;;  %v11863_v18 = vrot.slane %v11807_v44, 4  ;;  %v17675_v48 = vsub.f32 %v17513_v53, %v11777_v57  ;;  %v12264_v9 = vld [vmem:[%s18264_s3 + $0x228] sm:$0xff]  ;;  %v17683_v4 = vadd.f32 %v12102_v7, %v12065_v35  ;;  %v12311_v7 = vld [vmem:[%s18264_s3 + $0x3a0] sm:$0xff]  ;;  %v12262_v32 = vld [vmem:[%s18264_s3 + $0x218] sm:$0xff] }
 0x791   : > { %14801 = vmatpush3.msra.mxu1 %v12300_v16  ;;  %14767 = vmatprep.subr.mxu0 %v12283_v52  ;;  %v12068_v39 = vmul.f32 %v12012_v12, %v11966_v46  ;;  %v11872_v14 = vadd.f32 %v11871_v51, %v11870_v40  ;;  %v11760_v16 = vrot.slane %v17654_v62, 4  ;;  %v12296_v53 = vld [vmem:[%s18264_s3 + $0x328] sm:$0xff]  ;;  %v12279_v52 = vld [vmem:[%s18264_s3 + $0x2a0] sm:$0xff]  ;;  %v11810_v19 = vmul.f32 %v17664_v59, %v17664_v59  ;;  %v12277_v11 = vld [vmem:[%s18264_s3 + $0x290] sm:$0xff] }
 0x792   : > { %14802 = vmatprep.subr.mxu1 %v12315_v26  ;;  %14768 = vmatpush3.msra.mxu0 %v12267_v1  ;;  %v12067_v25 = vmul.f32 %v12008_v8, %v11965_v3  ;;  %v11864_v20 = vadd.f32 %v11863_v18, %v11807_v44  ;;  %v12184_v24 = vmax.f32 %v17672_v0, 0.0  ;;  %v11809_v12 = vmul.f32 %v17675_v48, %v17675_v48  ;;  %v17708_v8 = vld [vmem:[#allocation2 + $0x60] sm:$0xff]  ;;  %v12261_v46 = vld [vmem:[%s18264_s3 + $0x210] sm:$0xff]  ;;  %v12276_v3 = vld [vmem:[%s18264_s3 + $0x288] sm:$0xff] }
 0x793   : > { %14803 = vmatpush3.msra.mxu1 %v12299_v37  ;;  %14769 = vmatprep.subr.mxu0 %v12282_v33  ;;  %v17704_v26 = vadd.f32 %v12114_v30, %v12068_v39  ;;  %v11873_v1 = vrot.slane %v11872_v14, 1  ;;  %v12183_v37 = vmax.f32 %v17683_v4, 0.0  ;;  %v11881_v33 = vrot.slane %v11810_v19, 4  ;;  %v12293_v35 = vld [vmem:[%s18264_s3 + $0x310] sm:$0xff]  ;;  %v12308_v18 = vld [vmem:[%s18264_s3 + $0x388] sm:$0xff] }
 0x794   : > { %14804 = vmatprep.subr.mxu1 %v12314_v6  ;;  %14770 = vmatpush3.msra.mxu0 %v12266_v43  ;;  %v11865_v30 = vrot.slane %v11864_v20, 2  ;;  %v17729_v6 = vadd.f32 %v12110_v63, %v12067_v25  ;;  %v11875_v21 = vrot.slane %v11809_v12, 4  ;;  %v11761_v40 = vadd.f32 %v11760_v16, %v17654_v62  ;;  %v12309_v63 = vld [vmem:[%s18264_s3 + $0x390] sm:$0xff] }
 0x795   : > { %14805 = vmatpush3.msra.mxu1 %v12298_v45  ;;  %14771 = vmatprep.subr.mxu0 %v12281_v47  ;;  %v11874_v43 = vadd.f32 %v11873_v1, %v11872_v14  ;;  %v11882_v47 = vadd.f32 %v11881_v33, %v11810_v19  ;;  %v11750_v50 = vrot.slane %v11749_v22, 2  ;;  %v11742_v56 = vrot.slane %v17708_v8, 4  ;;  %v12307_v1 = vld [vmem:[%s18264_s3 + $0x380] sm:$0xff]  ;;  %v12353_v0 = vld [vmem:[%s18264_s3 + $0x4f0] sm:$0xff] }
 0x796   : > { %14806 = vmatprep.subr.mxu1 %v12313_v60  ;;  %14772 = vmatpush3.msra.mxu0 %v12265_v34  ;;  %v11866_v45 = vadd.f32 %v11865_v30, %v11864_v20  ;;  %v12186_v44 = vmax.f32 %v17704_v26, 0.0  ;;  %v11876_v57 = vadd.f32 %v11875_v21, %v11809_v12  ;;  %v11762_v60 = vrot.slane %v11761_v40, 2  ;;  %v12259_v12 = vld [vmem:[%s18264_s3 + $0x200] sm:$0xff]  ;;  %v12385_v4 = vld [vmem:[%s18264_s3 + $0x5f0] sm:$0xff] }
 0x797   : > { %14807 = vmatpush3.msra.mxu1 %v12297_v49  ;;  %14773 = vmatprep.subr.mxu0 %v12280_v17  ;;  %v11754_v34 = vrot.slane %v17718_v31, 4  ;;  %v11883_v49 = vrot.slane %v11882_v47, 2  ;;  %v11751_v17 = vadd.f32 %v11750_v50, %v11749_v22  ;;  %v11743_v39 = vadd.f32 %v11742_v56, %v17708_v8  ;;  %v12291_v22 = vld [vmem:[%s18264_s3 + $0x300] sm:$0xff]  ;;  %v12337_v26 = vld [vmem:[%s18264_s3 + $0x470] sm:$0xff] }
 0x798   : > { %14808 = vmatprep.subr.mxu1 %v12312_v10  ;;  %14774 = vmatpush3.msra.mxu0 %v12264_v9  ;;  %v11867_v51 = vrot.slane %v11866_v45, 1  ;;  %v12260_v10 = vld [vmem:[%s18264_s3 + $0x208] sm:$0xff]  ;;  %v11920_v9 = vmul.f32 0.125, %v11874_v43  ;;  %v11877_v25 = vrot.slane %v11876_v57, 2  ;;  %v11763_v14 = vadd.f32 %v11762_v60, %v11761_v40 }
 0x799   : > { %14809 = vmatpush3.msra.mxu1 %v12296_v53  ;;  %14775 = vmatprep.subr.mxu0 %v12279_v52  ;;  %v11755_v16 = vadd.f32 %v11754_v34, %v17718_v31  ;;  %v12292_v53 = vld [vmem:[%s18264_s3 + $0x308] sm:$0xff]  ;;  %v12275_v52 = vld [vmem:[%s18264_s3 + $0x280] sm:$0xff]  ;;  %v11884_v19 = vadd.f32 %v11883_v49, %v11882_v47  ;;  %v12386_v47 = vld [vmem:[%s18264_s3 + $0x5f8] sm:$0xff] }
 0x79a   : > { %14810 = vmatprep.subr.mxu1 %v12311_v7  ;;  %14776 = vmatpush3.msra.mxu0 %v12263_v41  ;;  %v11868_v20 = vadd.f32 %v11867_v51, %v11866_v45  ;;  %v11752_v7 = vrot.slane %v11751_v17, 1  ;;  %v11744_v41 = vrot.slane %v11743_v39, 2  ;;  %v11764_v30 = vrot.slane %v11763_v14, 1 }
 0x79b   : > { %14811 = vmatpush3.msra.mxu1 %v12295_v29  ;;  %14777 = vmatprep.subr.mxu0 %v12278_v61  ;;  %v12185_v29 = vmax.f32 %v17729_v6, 0.0  ;;  %v11878_v61 = vadd.f32 %v11877_v25, %v11876_v57  ;;  %v11756_v33 = vrot.slane %v11755_v16, 2  ;;  %v11936_v40 = vadd.f32 1e-05, %v11920_v9  ;;  %v12354_v6 = vld [vmem:[%s18264_s3 + $0x4f8] sm:$0xff]  ;;  %v12336_v25 = vld [vmem:[%s18264_s3 + $0x468] sm:$0xff] }
 0x79c   : > { %14812 = vmatprep.subr.mxu1 %v12310_v15  ;;  %14778 = vmatpush3.msra.mxu0 %v12262_v32  ;;  %v11919_v15 = vmul.f32 0.125, %v11868_v20  ;;  %v11885_v32 = vrot.slane %v11884_v19, 1  ;;  %v11753_v43 = vadd.f32 %v11752_v7, %v11751_v17  ;;  %v11745_v21 = vadd.f32 %v11744_v41, %v11743_v39  ;;  %v12338_v57 = vld [vmem:[%s18264_s3 + $0x478] sm:$0xff]  ;;  %v12352_v39 = vld [vmem:[%s18264_s3 + $0x4e8] sm:$0xff]  ;;  %v12351_v20 = vld [vmem:[%s18264_s3 + $0x4e0] sm:$0xff] }
 0x79d   : > { %14813 = vmatpush3.msra.mxu1 %v12294_v38  ;;  %14779 = vmatprep.subr.mxu0 %v12277_v11  ;;  %v11879_v38 = vrot.slane %v11878_v61, 1  ;;  %v11765_v11 = vadd.f32 %v11764_v30, %v11763_v14  ;;  %v11757_v45 = vadd.f32 %v11756_v33, %v11755_v16  ;;  %15066 = vrsqrt.f32 %v11936_v40  ;;  %v12383_v41 = vld [vmem:[%s18264_s3 + $0x5e0] sm:$0xff] }
 0x79e   : > { %14814 = vmatprep.subr.mxu1 %v12309_v63  ;;  %14780 = vmatpush3.msra.mxu0 %v12261_v46  ;;  %v11935_v50 = vadd.f32 1e-05, %v11919_v15  ;;  %v11886_v56 = vadd.f32 %v11885_v32, %v11884_v19  ;;  %v11780_v63 = vmul.f32 0.125, %v11753_v43  ;;  %v11746_v46 = vrot.slane %v11745_v21, 1  ;;  %v12366_v43 = vld [vmem:[%s18264_s3 + $0x558] sm:$0xff] }
 0x79f   : > { %14815 = vmatpush3.msra.mxu1 %v12293_v35  ;;  %14781 = vmatprep.subr.mxu0 %v12276_v3  ;;  %v11880_v60 = vadd.f32 %v11879_v38, %v11878_v61  ;;  %v11782_v34 = vmul.f32 0.125, %v11765_v11  ;;  %v11758_v35 = vrot.slane %v11757_v45, 1  ;;  %v12370_v3 = vld [vmem:[%s18264_s3 + $0x578] sm:$0xff]  ;;  %v12381_v38 = vld [vmem:[%s18264_s3 + $0x5d0] sm:$0xff] }
 0x7a0   : > { %14816 = vmatprep.subr.mxu1 %v12308_v18  ;;  %14782 = vmatpush3.msra.mxu0 %v12260_v10  ;;  %v17799_v51 = vsub.f32 %v17633_v54, %v11780_v63  ;;  %v11747_v49 = vadd.f32 %v11746_v46, %v11745_v21  ;;  %v12369_v54 = vld [vmem:[%s18264_s3 + $0x570] sm:$0xff]  ;;  %15068 = vrsqrt.f32 %v11935_v50  ;;  %v12350_v61 = vld [vmem:[%s18264_s3 + $0x4d8] sm:$0xff]  ;;  %v12380_v63 = vld [vmem:[%s18264_s3 + $0x5c8] sm:$0xff] }
 0x7a1   : > { %14817 = vmatpush3.msra.mxu1 %v12292_v53  ;;  %14783 = vmatprep.subr.mxu0 %v12275_v52  ;;  %v11759_v17 = vadd.f32 %v11758_v35, %v11757_v45  ;;  %v12368_v52 = vld [vmem:[%s18264_s3 + $0x568] sm:$0xff]  ;;  %v12349_v21 = vld [vmem:[%s18264_s3 + $0x4d0] sm:$0xff]  ;;  %v12347_v35 = vld [vmem:[%s18264_s3 + $0x4c0] sm:$0xff] }
 0x7a2   : > { %14818 = vmatprep.subr.mxu1 %v12307_v1  ;;  %14784 = vmatpush3.msra.mxu0 %v12259_v12  ;;  %v11812_v10 = vmul.f32 %v17799_v51, %v17799_v51  ;;  %v11779_v9 = vmul.f32 0.125, %v11747_v49  ;;  %v12335_v1 = vld [vmem:[%s18264_s3 + $0x460] sm:$0xff]  ;;  %v12333_v11 = vld [vmem:[%s18264_s3 + $0x450] sm:$0xff]  ;;  %v12332_v46 = vld [vmem:[%s18264_s3 + $0x448] sm:$0xff] }
 0x7a3   : > { %12655 = vmatprep.mubr.f32.mxu0 %v12184_v24  ;;  %14819 = vmatpush3.msra.mxu1 %v12291_v22  ;;  %v11922_v24 = vmul.f32 0.125, %v11886_v56  ;;  %v11781_v53 = vmul.f32 0.125, %v11759_v17  ;;  %v12334_v22 = vld [vmem:[%s18264_s3 + $0x458] sm:$0xff] }
 0x7a4   : > { %12656 = vmatmul.mubr.f32.vlgmr.msra.gmra.mxu0 %v12183_v37  ;;  %12725 = vmatprep.mubr.f32.mxu1 %v12186_v44  ;;  %v11921_v37 = vmul.f32 0.125, %v11880_v60  ;;  %v17808_v44 = vsub.f32 %v17654_v62, %v11782_v34  ;;  %v12384_v62 = vld [vmem:[%s18264_s3 + $0x5e8] sm:$0xff]  ;;  %v11893_v19 = vrot.slane %v11812_v10, 4  ;;  %v17833_v7 = vsub.f32 %v17708_v8, %v11779_v9  ;;  %v12367_v8 = vld [vmem:[%s18264_s3 + $0x560] sm:$0xff]  ;;  %v12346_v17 = vld [vmem:[%s18264_s3 + $0x4b8] sm:$0xff] }
 0x7a5   : > { %14823 = vmatprep.subr.mxu0 %v12354_v6  ;;  %14858 = vmatprep.subr.mxu1 %v12386_v47  ;;  %v11938_v18 = vadd.f32 1e-05, %v11922_v24  ;;  %v12365_v6 = vld [vmem:[%s18264_s3 + $0x550] sm:$0xff]  ;;  %v12348_v47 = vld [vmem:[%s18264_s3 + $0x4c8] sm:$0xff]  ;;  %v12331_v24 = vld [vmem:[%s18264_s3 + $0x440] sm:$0xff] }
 0x7a6   : > { %12726 = vmatmul.mubr.f32.vlgmr.msra.gmra.mxu1 %v12185_v29  ;;  %14824 = vmatpush3.msra.mxu0 %v12338_v57  ;;  %v11937_v14 = vadd.f32 1e-05, %v11921_v37  ;;  %v11814_v16 = vmul.f32 %v17808_v44, %v17808_v44  ;;  %v17842_v29 = vsub.f32 %v17718_v31, %v11781_v53  ;;  %v11894_v30 = vadd.f32 %v11893_v19, %v11812_v10  ;;  %v12382_v31 = vld [vmem:[%s18264_s3 + $0x5d8] sm:$0xff]  ;;  %v12364_v34 = vld [vmem:[%s18264_s3 + $0x548] sm:$0xff]  ;;  %v12363_v37 = vld [vmem:[%s18264_s3 + $0x540] sm:$0xff] }
 0x7a7   : > { %14859 = vmatpush3.msra.mxu1 %v12370_v3  ;;  %14825 = vmatprep.subr.mxu0 %v12353_v0  ;;  %15070 = vrsqrt.f32 %v11938_v18  ;;  %v11811_v33 = vmul.f32 %v17833_v7, %v17833_v7  ;;  %v12379_v0 = vld [vmem:[%s18264_s3 + $0x5c0] sm:$0xff]  ;;  %v12378_v18 = vld [vmem:[%s18264_s3 + $0x5b8] sm:$0xff] }
 0x7a8   : > { %14860 = vmatprep.subr.mxu1 %v12385_v4  ;;  %14826 = vmatpush3.msra.mxu0 %v12337_v26  ;;  %15072 = vrsqrt.f32 %v11937_v14  ;;  %v11905_v12 = vrot.slane %v11814_v16, 4  ;;  %v11813_v32 = vmul.f32 %v17842_v29, %v17842_v29  ;;  %v11895_v50 = vrot.slane %v11894_v30, 2  ;;  %v17896_v49 = vld [vmem:[#allocation8 + $0x21] ss:$4 sm:$0xff] }
 0x7a9   : > { %14861 = vmatpush3.msra.mxu1 %v12369_v54  ;;  %14827 = vmatprep.subr.mxu0 %v12352_v39  ;;  %v11887_v40 = vrot.slane %v11811_v33, 4  ;;  %v12330_v10 = vld [vmem:[%s18264_s3 + $0x438] sm:$0xff]  ;;  %v12020_v14 = vrot.slane %v17896_v49, %v17448_v55 }
 0x7aa   : > { %14862 = vmatprep.subr.mxu1 %v12384_v62  ;;  %14828 = vmatpush3.msra.mxu0 %v12336_v25  ;;  %v11906_v15 = vadd.f32 %v11905_v12, %v11814_v16  ;;  %v11899_v45 = vrot.slane %v11813_v32, 4  ;;  %v15067_v26 = vpop.eup %15066  ;;  %v11896_v54 = vadd.f32 %v11895_v50, %v11894_v30  ;;  %v12362_v62 = vld [vmem:[%s18264_s3 + $0x538] sm:$0xff]  ;;  %v12345_v25 = vld [vmem:[%s18264_s3 + $0x4b0] sm:$0xff]  ;;  %v12344_v30 = vld [vmem:[%s18264_s3 + $0x4a8] sm:$0xff] }
 0x7ab   : > { %14863 = vmatpush3.msra.mxu1 %v12368_v52  ;;  %14829 = vmatprep.subr.mxu0 %v12351_v20  ;;  %v11888_v56 = vadd.f32 %v11887_v40, %v11811_v33  ;;  %v12377_v52 = vld [vmem:[%s18264_s3 + $0x5b0] sm:$0xff]  ;;  %v11968_v19 = vmul.f32 %v15067_v26, %v17581_v42 }
 0x7ac   : > { %14864 = vmatprep.subr.mxu1 %v12383_v41  ;;  %14830 = vmatpush3.msra.mxu0 %v12335_v1  ;;  %v11907_v57 = vrot.slane %v11906_v15, 2  ;;  %v11900_v60 = vadd.f32 %v11899_v45, %v11813_v32  ;;  %v12329_v20 = vld [vmem:[%s18264_s3 + $0x430] sm:$0xff]  ;;  %v12016_v1 = vrot.slane %v17896_v49, %v17458_v27  ;;  %v12328_v32 = vld [vmem:[%s18264_s3 + $0x428] sm:$0xff]  ;;  %v12375_v45 = vld [vmem:[%s18264_s3 + $0x5a0] sm:$0xff] }
 0x7ad   : > { %14865 = vmatpush3.msra.mxu1 %v12367_v8  ;;  %14831 = vmatprep.subr.mxu0 %v12350_v61  ;;  %v11889_v3 = vrot.slane %v11888_v56, 2  ;;  %v15069_v39 = vpop.eup %15068  ;;  %v17925_v41 = vld [vmem:[#allocation8 + $0x22] ss:$4 sm:$0xff] }
 0x7ae   : > { %14866 = vmatprep.subr.mxu1 %v12382_v31  ;;  %14832 = vmatpush3.msra.mxu0 %v12334_v22  ;;  %v11901_v4 = vrot.slane %v11900_v60, 2  ;;  %v11908_v9 = vadd.f32 %v11907_v57, %v11906_v15  ;;  %v12361_v61 = vld [vmem:[%s18264_s3 + $0x530] sm:$0xff]  ;;  %v11967_v33 = vmul.f32 %v15069_v39, %v17631_v28  ;;  %v12028_v31 = vrot.slane %v17896_v49, %v17451_v58  ;;  %v12376_v15 = vld [vmem:[%s18264_s3 + $0x5a8] sm:$0xff] }
 0x7af   : > { %14867 = vmatpush3.msra.mxu1 %v12366_v43  ;;  %14833 = vmatprep.subr.mxu0 %v12349_v21  ;;  %v11890_v16 = vadd.f32 %v11889_v3, %v11888_v56  ;;  %v11897_v22 = vrot.slane %v11896_v54, 1  ;;  %v12360_v28 = vld [vmem:[%s18264_s3 + $0x528] sm:$0xff]  ;;  %v12122_v21 = vrot.slane %v17925_v41, %v17448_v55  ;;  %v12118_v55 = vrot.slane %v17925_v41, %v17458_v27  ;;  %v12359_v56 = vld [vmem:[%s18264_s3 + $0x520] sm:$0xff]  ;;  %v12326_v27 = vld [vmem:[%s18264_s3 + $0x418] sm:$0xff] }
 0x7b0   : > { %14868 = vmatprep.subr.mxu1 %v12381_v38  ;;  %14834 = vmatpush3.msra.mxu0 %v12333_v11  ;;  %v11902_v12 = vadd.f32 %v11901_v4, %v11900_v60  ;;  %v11909_v43 = vrot.slane %v11908_v9, 1  ;;  %v12024_v38 = vrot.slane %v17896_v49, %v17471_v2  ;;  %v12341_v3 = vld [vmem:[%s18264_s3 + $0x490] sm:$0xff] }
 0x7b1   : > { %14869 = vmatpush3.msra.mxu1 %v12365_v6  ;;  %14835 = vmatprep.subr.mxu0 %v12348_v47  ;;  %v11891_v11 = vrot.slane %v11890_v16, 1  ;;  %v12327_v6 = vld [vmem:[%s18264_s3 + $0x420] sm:$0xff]  ;;  %v12070_v47 = vmul.f32 %v12020_v14, %v11968_v19  ;;  %v11898_v60 = vadd.f32 %v11897_v22, %v11896_v54  ;;  %v12373_v26 = vld [vmem:[%s18264_s3 + $0x590] sm:$0xff]  ;;  %v12418_v22 = vld [vmem:[%s18264_s3 + $0x6f8] sm:$0xff] }
 0x7b2   : > { %14870 = vmatprep.subr.mxu1 %v12380_v63  ;;  %14836 = vmatpush3.msra.mxu0 %v12332_v46  ;;  %v11903_v50 = vrot.slane %v11902_v12, 1  ;;  %v12342_v63 = vld [vmem:[%s18264_s3 + $0x498] sm:$0xff]  ;;  %v12069_v46 = vmul.f32 %v12016_v1, %v11967_v33  ;;  %v12357_v39 = vld [vmem:[%s18264_s3 + $0x510] sm:$0xff]  ;;  %v12371_v19 = vld [vmem:[%s18264_s3 + $0x580] sm:$0xff] }
 0x7b3   : > { %14871 = vmatpush3.msra.mxu1 %v12364_v34  ;;  %14837 = vmatprep.subr.mxu0 %v12347_v35  ;;  %v11910_v34 = vadd.f32 %v11909_v43, %v11908_v9  ;;  %v12358_v35 = vld [vmem:[%s18264_s3 + $0x518] sm:$0xff]  ;;  %v11892_v4 = vadd.f32 %v11891_v11, %v11890_v16  ;;  %v11924_v9 = vmul.f32 0.125, %v11898_v60  ;;  %v12356_v16 = vld [vmem:[%s18264_s3 + $0x508] sm:$0xff]  ;;  %v12323_v1 = vld [vmem:[%s18264_s3 + $0x400] sm:$0xff] }
 0x7b4   : > { %14872 = vmatprep.subr.mxu1 %v12379_v0  ;;  %14838 = vmatpush3.msra.mxu0 %v12331_v24  ;;  %v15071_v53 = vpop.eup %15070  ;;  %v12126_v24 = vrot.slane %v17925_v41, %v17471_v2  ;;  %v11904_v54 = vadd.f32 %v11903_v50, %v11902_v12  ;;  %v12340_v2 = vld [vmem:[%s18264_s3 + $0x488] sm:$0xff]  ;;  %v12401_v11 = vld [vmem:[%s18264_s3 + $0x670] sm:$0xff]  ;;  %v12415_v50 = vld [vmem:[%s18264_s3 + $0x6e0] sm:$0xff] }
 0x7b5   : > { %14873 = vmatpush3.msra.mxu1 %v12363_v37  ;;  %14839 = vmatprep.subr.mxu0 %v12346_v17  ;;  %v15073_v8 = vpop.eup %15072  ;;  %v11970_v42 = vmul.f32 %v15071_v53, %v17664_v59  ;;  %v12343_v59 = vld [vmem:[%s18264_s3 + $0x4a0] sm:$0xff]  ;;  %v12325_v37 = vld [vmem:[%s18264_s3 + $0x410] sm:$0xff]  ;;  %v12172_v17 = vadd.f32 %v12122_v21, %v12070_v47  ;;  %v11926_v14 = vmul.f32 0.125, %v11910_v34  ;;  %v12434_v21 = vld [vmem:[%s18264_s3 + $0x778] sm:$0xff] }
 0x7b6   : > { %14874 = vmatprep.subr.mxu1 %v12378_v18  ;;  %14840 = vmatpush3.msra.mxu0 %v12330_v10  ;;  %v11969_v40 = vmul.f32 %v15073_v8, %v17675_v48  ;;  %v12130_v48 = vrot.slane %v17925_v41, %v17451_v58  ;;  %v12374_v58 = vld [vmem:[%s18264_s3 + $0x598] sm:$0xff]  ;;  %v12171_v18 = vadd.f32 %v12118_v55, %v12069_v46  ;;  %v12339_v53 = vld [vmem:[%s18264_s3 + $0x480] sm:$0xff]  ;;  %v11925_v8 = vmul.f32 0.125, %v11904_v54  ;;  %v12448_v47 = vld [vmem:[%s18264_s3 + $0x7e8] sm:$0xff] }
 0x7b7   : > { %14875 = vmatpush3.msra.mxu1 %v12362_v62  ;;  %14841 = vmatprep.subr.mxu0 %v12345_v25  ;;  %v12072_v57 = vmul.f32 %v12028_v31, %v11970_v42  ;;  %v12372_v62 = vld [vmem:[%s18264_s3 + $0x588] sm:$0xff]  ;;  %v12188_v12 = vmax.f32 %v12172_v17, 0.0  ;;  %v11940_v42 = vadd.f32 1e-05, %v11924_v9  ;;  %v11942_v31 = vadd.f32 1e-05, %v11926_v14 }
 0x7b8   : > { %14876 = vmatprep.subr.mxu1 %v12377_v52  ;;  %14842 = vmatpush3.msra.mxu0 %v12329_v20  ;;  %v12071_v0 = vmul.f32 %v12024_v38, %v11969_v40  ;;  %v12324_v25 = vld [vmem:[%s18264_s3 + $0x408] sm:$0xff]  ;;  %v11923_v20 = vmul.f32 0.125, %v11892_v4  ;;  %v12417_v40 = vld [vmem:[%s18264_s3 + $0x6f0] sm:$0xff]  ;;  %v12431_v46 = vld [vmem:[%s18264_s3 + $0x760] sm:$0xff] }
 0x7b9   : > { %14877 = vmatpush3.msra.mxu1 %v12361_v61  ;;  %14843 = vmatprep.subr.mxu0 %v12344_v30  ;;  %v12174_v10 = vadd.f32 %v12130_v48, %v12072_v57  ;;  %v12355_v61 = vld [vmem:[%s18264_s3 + $0x500] sm:$0xff]  ;;  %v12187_v30 = vmax.f32 %v12171_v18, 0.0  ;;  %15074 = vrsqrt.f32 %v11940_v42  ;;  %v12449_v38 = vld [vmem:[%s18264_s3 + $0x7f0] sm:$0xff]  ;;  %v12400_v55 = vld [vmem:[%s18264_s3 + $0x668] sm:$0xff]  ;;  %v12032_v42 = vrot.slane %v17896_v49, %v17560_v23 }
 0x7ba   : > { %14878 = vmatprep.subr.mxu1 %v12376_v15  ;;  %14844 = vmatpush3.msra.mxu0 %v12328_v32  ;;  %v12173_v52 = vadd.f32 %v12126_v24, %v12071_v0  ;;  %v12450_v15 = vld [vmem:[%s18264_s3 + $0x7f8] sm:$0xff]  ;;  %v11939_v43 = vadd.f32 1e-05, %v11923_v20  ;;  %15076 = vrsqrt.f32 %v11942_v31  ;;  %v12432_v48 = vld [vmem:[%s18264_s3 + $0x768] sm:$0xff]  ;;  %v12413_v34 = vld [vmem:[%s18264_s3 + $0x6d0] sm:$0xff] }
 0x7bb   : > { %14879 = vmatpush3.msra.mxu1 %v12360_v28  ;;  %14845 = vmatprep.subr.mxu0 %v12343_v59  ;;  %v12190_v33 = vmax.f32 %v12174_v10, 0.0  ;;  %v12402_v28 = vld [vmem:[%s18264_s3 + $0x678] sm:$0xff]  ;;  %v11941_v59 = vadd.f32 1e-05, %v11925_v8  ;;  %v12429_v0 = vld [vmem:[%s18264_s3 + $0x750] sm:$0xff]  ;;  %v12412_v24 = vld [vmem:[%s18264_s3 + $0x6c8] sm:$0xff]  ;;  %v12044_v8 = vrot.slane %v17896_v49, %v17575_v36 }
 0x7bc   : > { %14880 = vmatprep.subr.mxu1 %v12375_v45  ;;  %14846 = vmatpush3.msra.mxu0 %v12327_v6  ;;  %v12189_v32 = vmax.f32 %v12173_v52, 0.0  ;;  %v12433_v45 = vld [vmem:[%s18264_s3 + $0x770] sm:$0xff]  ;;  %v12416_v6 = vld [vmem:[%s18264_s3 + $0x6e8] sm:$0xff]  ;;  %15078 = vrsqrt.f32 %v11939_v43  ;;  %v12414_v57 = vld [vmem:[%s18264_s3 + $0x6d8] sm:$0xff] }
 0x7bd   : > { %14881 = vmatpush3.msra.mxu1 %v12359_v56  ;;  %14847 = vmatprep.subr.mxu0 %v12342_v63  ;;  %15080 = vrsqrt.f32 %v11941_v59  ;;  %v12447_v56 = vld [vmem:[%s18264_s3 + $0x7e0] sm:$0xff]  ;;  %v12446_v60 = vld [vmem:[%s18264_s3 + $0x7d8] sm:$0xff]  ;;  %v12444_v4 = vld [vmem:[%s18264_s3 + $0x7c8] sm:$0xff]  ;;  %v12146_v59 = vrot.slane %v17925_v41, %v17575_v36 }
 0x7be   : > { %14882 = vmatprep.subr.mxu1 %v12374_v58  ;;  %14848 = vmatpush3.msra.mxu0 %v12326_v27  ;;  %v12399_v63 = vld [vmem:[%s18264_s3 + $0x660] sm:$0xff]  ;;  %v12398_v58 = vld [vmem:[%s18264_s3 + $0x658] sm:$0xff]  ;;  %v12409_v52 = vld [vmem:[%s18264_s3 + $0x6b0] sm:$0xff] }
 0x7bf   : > { %14883 = vmatpush3.msra.mxu1 %v12358_v35  ;;  %14849 = vmatprep.subr.mxu0 %v12341_v3  ;;  %v12430_v27 = vld [vmem:[%s18264_s3 + $0x758] sm:$0xff]  ;;  %v12445_v35 = vld [vmem:[%s18264_s3 + $0x7d0] sm:$0xff]  ;;  %v12411_v17 = vld [vmem:[%s18264_s3 + $0x6c0] sm:$0xff] }
 0x7c0   : > { %14884 = vmatprep.subr.mxu1 %v12373_v26  ;;  %14850 = vmatpush3.msra.mxu0 %v12325_v37  ;;  %v12397_v3 = vld [vmem:[%s18264_s3 + $0x650] sm:$0xff]  ;;  %v12396_v26 = vld [vmem:[%s18264_s3 + $0x648] sm:$0xff]  ;;  %v12427_v10 = vld [vmem:[%s18264_s3 + $0x740] sm:$0xff] }
 0x7c1   : > { %14885 = vmatpush3.msra.mxu1 %v12357_v39  ;;  %14851 = vmatprep.subr.mxu0 %v12340_v2  ;;  %v12428_v37 = vld [vmem:[%s18264_s3 + $0x748] sm:$0xff]  ;;  %v12443_v39 = vld [vmem:[%s18264_s3 + $0x7c0] sm:$0xff]  ;;  %v12410_v9 = vld [vmem:[%s18264_s3 + $0x6b8] sm:$0xff] }
 0x7c2   : > { %14886 = vmatprep.subr.mxu1 %v12372_v62  ;;  %14852 = vmatpush3.msra.mxu0 %v12324_v25  ;;  %v12395_v2 = vld [vmem:[%s18264_s3 + $0x640] sm:$0xff]  ;;  %v12442_v25 = vld [vmem:[%s18264_s3 + $0x7b8] sm:$0xff]  ;;  %v12441_v20 = vld [vmem:[%s18264_s3 + $0x7b0] sm:$0xff] }
 0x7c3   : > { %14887 = vmatpush3.msra.mxu1 %v12356_v16  ;;  %14853 = vmatprep.subr.mxu0 %v12339_v53  ;;  %v12394_v14 = vld [vmem:[%s18264_s3 + $0x638] sm:$0xff]  ;;  %v12440_v31 = vld [vmem:[%s18264_s3 + $0x7a8] sm:$0xff]  ;;  %v12439_v43 = vld [vmem:[%s18264_s3 + $0x7a0] sm:$0xff] }
 0x7c4   : > { %14888 = vmatprep.subr.mxu1 %v12371_v19  ;;  %14854 = vmatpush3.msra.mxu0 %v12323_v1  ;;  %v12426_v53 = vld [vmem:[%s18264_s3 + $0x738] sm:$0xff]  ;;  %v12393_v19 = vld [vmem:[%s18264_s3 + $0x630] sm:$0xff] }
 0x7c5   : > { %12795 = vmatprep.mubr.f32.mxu0 %v12188_v12  ;;  %14889 = vmatpush3.msra.mxu1 %v12355_v61  ;;  %v12036_v12 = vrot.slane %v17896_v49, %v17550_v13  ;;  %v12425_v61 = vld [vmem:[%s18264_s3 + $0x730] sm:$0xff]  ;;  %v12390_v36 = vld [vmem:[%s18264_s3 + $0x618] sm:$0xff] }
 0x7c6   : > { %12796 = vmatmul.mubr.f32.vlgmr.msra.gmra.mxu0 %v12187_v30  ;;  %12865 = vmatprep.mubr.f32.mxu1 %v12190_v33  ;;  %v15075_v54 = vpop.eup %15074  ;;  %v12408_v30 = vld [vmem:[%s18264_s3 + $0x6a8] sm:$0xff] }
 0x7c7   : > { %14893 = vmatprep.subr.mxu0 %v12418_v22  ;;  %14928 = vmatprep.subr.mxu1 %v12450_v15  ;;  %v15077_v18 = vpop.eup %15076  ;;  %v11972_v1 = vmul.f32 %v15075_v54, %v17799_v51  ;;  %v12392_v22 = vld [vmem:[%s18264_s3 + $0x628] sm:$0xff] }
 0x7c8   : > { %12866 = vmatmul.mubr.f32.vlgmr.msra.gmra.mxu1 %v12189_v32  ;;  %14894 = vmatpush3.msra.mxu0 %v12402_v28  ;;  %v11974_v33 = vmul.f32 %v15077_v18, %v17808_v44  ;;  %v12040_v44 = vrot.slane %v17896_v49, %v17578_v5  ;;  %v12407_v32 = vld [vmem:[%s18264_s3 + $0x6a0] sm:$0xff]  ;;  %v12138_v28 = vrot.slane %v17925_v41, %v17550_v13  ;;  %v12438_v13 = vld [vmem:[%s18264_s3 + $0x798] sm:$0xff] }
 0x7c9   : > { %14929 = vmatpush3.msra.mxu1 %v12434_v21  ;;  %14895 = vmatprep.subr.mxu0 %v12417_v40  ;;  %v15079_v62 = vpop.eup %15078  ;;  %v12074_v49 = vmul.f32 %v12036_v12, %v11972_v1  ;;  %v12423_v21 = vld [vmem:[%s18264_s3 + $0x720] sm:$0xff]  ;;  %v12406_v40 = vld [vmem:[%s18264_s3 + $0x698] sm:$0xff] }
 0x7ca   : > { %14930 = vmatprep.subr.mxu1 %v12449_v38  ;;  %14896 = vmatpush3.msra.mxu0 %v12401_v11  ;;  %v15081_v16 = vpop.eup %15080  ;;  %v11971_v51 = vmul.f32 %v15079_v62, %v17833_v7  ;;  %v12424_v7 = vld [vmem:[%s18264_s3 + $0x728] sm:$0xff]  ;;  %v12076_v38 = vmul.f32 %v12044_v8, %v11974_v33 }
 0x7cb   : > { %14931 = vmatpush3.msra.mxu1 %v12433_v45  ;;  %14897 = vmatprep.subr.mxu0 %v12416_v6  ;;  %v11973_v15 = vmul.f32 %v15081_v16, %v17842_v29  ;;  %v12391_v29 = vld [vmem:[%s18264_s3 + $0x620] sm:$0xff]  ;;  %v12134_v45 = vrot.slane %v17925_v41, %v17560_v23  ;;  %v12422_v23 = vld [vmem:[%s18264_s3 + $0x718] sm:$0xff] }
 0x7cc   : > { %14932 = vmatprep.subr.mxu1 %v12448_v47  ;;  %14898 = vmatpush3.msra.mxu0 %v12400_v55  ;;  %v12073_v11 = vmul.f32 %v12032_v42, %v11971_v51  ;;  %v12142_v47 = vrot.slane %v17925_v41, %v17578_v5  ;;  %v12405_v55 = vld [vmem:[%s18264_s3 + $0x690] sm:$0xff]  ;;  %v12176_v41 = vadd.f32 %v12138_v28, %v12074_v49 }
 0x7cd   : > { %14933 = vmatpush3.msra.mxu1 %v12432_v48  ;;  %14899 = vmatprep.subr.mxu0 %v12415_v50  ;;  %v12075_v6 = vmul.f32 %v12040_v44, %v11973_v15  ;;  %v12437_v48 = vld [vmem:[%s18264_s3 + $0x790] sm:$0xff] }
 0x7ce   : > { %14934 = vmatprep.subr.mxu1 %v12447_v56  ;;  %14900 = vmatpush3.msra.mxu0 %v12399_v63  ;;  %v12389_v5 = vld [vmem:[%s18264_s3 + $0x610] sm:$0xff]  ;;  %v12404_v56 = vld [vmem:[%s18264_s3 + $0x688] sm:$0xff]  ;;  %v12178_v63 = vadd.f32 %v12146_v59, %v12076_v38 }
 0x7cf   : > { %14935 = vmatpush3.msra.mxu1 %v12431_v46  ;;  %14901 = vmatprep.subr.mxu0 %v12414_v57  ;;  %v12421_v50 = vld [vmem:[%s18264_s3 + $0x710] sm:$0xff]  ;;  %v12175_v46 = vadd.f32 %v12134_v45, %v12073_v11  ;;  %v12436_v57 = vld [vmem:[%s18264_s3 + $0x788] sm:$0xff] }
 0x7d0   : > { %14936 = vmatprep.subr.mxu1 %v12446_v60  ;;  %14902 = vmatpush3.msra.mxu0 %v12398_v58  ;;  %v12388_v60 = vld [vmem:[%s18264_s3 + $0x608] sm:$0xff]  ;;  %v12177_v58 = vadd.f32 %v12142_v47, %v12075_v6 }
 0x7d1   : > { %14937 = vmatpush3.msra.mxu1 %v12430_v27  ;;  %14903 = vmatprep.subr.mxu0 %v12413_v34  ;;  %v12420_v27 = vld [vmem:[%s18264_s3 + $0x708] sm:$0xff]  ;;  %v12403_v34 = vld [vmem:[%s18264_s3 + $0x680] sm:$0xff] }
 0x7d2   : > { %14938 = vmatprep.subr.mxu1 %v12445_v35  ;;  %14904 = vmatpush3.msra.mxu0 %v12397_v3  ;;  %v12435_v35 = vld [vmem:[%s18264_s3 + $0x780] sm:$0xff] }
 0x7d3   : > { %14939 = vmatpush3.msra.mxu1 %v12429_v0  ;;  %14905 = vmatprep.subr.mxu0 %v12412_v24  ;;  %v12387_v3 = vld [vmem:[%s18264_s3 + $0x600] sm:$0xff]  ;;  %v12192_v0 = vmax.f32 %v12176_v41, 0.0 }
 0x7d4   : > { %14940 = vmatprep.subr.mxu1 %v12444_v4  ;;  %14906 = vmatpush3.msra.mxu0 %v12396_v26  ;;  %v12419_v24 = vld [vmem:[%s18264_s3 + $0x700] sm:$0xff]  ;;  %v12194_v4 = vmax.f32 %v12178_v63, 0.0  ;;  %v12191_v26 = vmax.f32 %v12175_v46, 0.0 }
 0x7d5   : > { %14941 = vmatpush3.msra.mxu1 %v12428_v37  ;;  %14907 = vmatprep.subr.mxu0 %v12411_v17  ;;  %v12193_v37 = vmax.f32 %v12177_v58, 0.0 }
 0x7d6   : > { %14942 = vmatprep.subr.mxu1 %v12443_v39  ;;  %14908 = vmatpush3.msra.mxu0 %v12395_v2 }
 0x7d7   : > { %14943 = vmatpush3.msra.mxu1 %v12427_v10  ;;  %14909 = vmatprep.subr.mxu0 %v12410_v9 }
 0x7d8   : > { %14944 = vmatprep.subr.mxu1 %v12442_v25  ;;  %14910 = vmatpush3.msra.mxu0 %v12394_v14 }
 0x7d9   : > { %14945 = vmatpush3.msra.mxu1 %v12426_v53  ;;  %14911 = vmatprep.subr.mxu0 %v12409_v52 }
 0x7da   : > { %14946 = vmatprep.subr.mxu1 %v12441_v20  ;;  %14912 = vmatpush3.msra.mxu0 %v12393_v19 }
 0x7db   : > { %14947 = vmatpush3.msra.mxu1 %v12425_v61  ;;  %14913 = vmatprep.subr.mxu0 %v12408_v30 }
 0x7dc   : > { %14948 = vmatprep.subr.mxu1 %v12440_v31  ;;  %14914 = vmatpush3.msra.mxu0 %v12392_v22 }
 0x7dd   : > { %14949 = vmatpush3.msra.mxu1 %v12424_v7  ;;  %14915 = vmatprep.subr.mxu0 %v12407_v32 }
 0x7de   : > { %14950 = vmatprep.subr.mxu1 %v12439_v43  ;;  %14916 = vmatpush3.msra.mxu0 %v12391_v29 }
 0x7df   : > { %14951 = vmatpush3.msra.mxu1 %v12423_v21  ;;  %14917 = vmatprep.subr.mxu0 %v12406_v40 }
 0x7e0   : > { %14952 = vmatprep.subr.mxu1 %v12438_v13  ;;  %14918 = vmatpush3.msra.mxu0 %v12390_v36 }
 0x7e1   : > { %14953 = vmatpush3.msra.mxu1 %v12422_v23  ;;  %14919 = vmatprep.subr.mxu0 %v12405_v55 }
 0x7e2   : > { %14954 = vmatprep.subr.mxu1 %v12437_v48  ;;  %14920 = vmatpush3.msra.mxu0 %v12389_v5 }
 0x7e3   : > { %14955 = vmatpush3.msra.mxu1 %v12421_v50  ;;  %14921 = vmatprep.subr.mxu0 %v12404_v56 }
 0x7e4   : > { %14956 = vmatprep.subr.mxu1 %v12436_v57  ;;  %14922 = vmatpush3.msra.mxu0 %v12388_v60 }
 0x7e5   : > { %14957 = vmatpush3.msra.mxu1 %v12420_v27  ;;  %14923 = vmatprep.subr.mxu0 %v12403_v34 }
 0x7e6   : > { %14958 = vmatprep.subr.mxu1 %v12435_v35  ;;  %14924 = vmatpush3.msra.mxu0 %v12387_v3 }
 0x7e7   : > { %12935 = vmatprep.mubr.f32.mxu0 %v12192_v0  ;;  %14959 = vmatpush3.msra.mxu1 %v12419_v24 }
 0x7e8   : > { %13005 = vmatprep.mubr.f32.mxu1 %v12194_v4  ;;  %12936 = vmatmul.mubr.f32.vlgmr.msra.gmra.mxu0 %v12191_v26 }
 0x7e9   : > { %13006 = vmatmul.mubr.f32.vlgmr.msra.gmra.mxu1 %v12193_v37 }
 0x843   : > { %v14715_v17 = vpop.f32.mrf.mxu0 }
 0x844   : > { %v14750_v54 = vpop.f32.mrf.mxu1 }
 0x845   : > { %v14716_v39 = vpop.f32.mrf.mxu0 }
 0x846   : > { %v14751_v18 = vpop.f32.mrf.mxu1  ;;  %v14717_v62 = vadd.f32 %v14716_v39, %v14715_v17 }
 0x847   : > { %v14752_v25 = vadd.f32 %v14751_v18, %v14750_v54 }
 0x849   : > { %v12588_v52 = vadd.f32 %v14752_v25, %v14717_v62 }
 0x864   : > { %v14785_v2 = vpop.f32.mrf.mxu0 }
 0x866   : > { %v14820_v10 = vpop.f32.mrf.mxu1  ;;  %v14786_v9 = vpop.f32.mrf.mxu0 }
 0x867   : > { %v14787_v16 = vadd.f32 %v14786_v9, %v14785_v2 }
 0x868   : > { %v14821_v53 = vpop.f32.mrf.mxu1 }
 0x869   : > { %v12658_v1 = vadd.f32 %v14787_v16, %v12588_v52  ;;  %v14822_v12 = vadd.f32 %v14821_v53, %v14820_v10 }
 0x86b   : > { %v12728_v30 = vadd.f32 %v14822_v12, %v12658_v1 }
 0x886   : > { %v14855_v14 = vpop.f32.mrf.mxu0 }
 0x888   : > { %v14890_v20 = vpop.f32.mrf.mxu1  ;;  %v14856_v19 = vpop.f32.mrf.mxu0 }
 0x889   : > { %v14857_v8 = vadd.f32 %v14856_v19, %v14855_v14 }
 0x88a   : > { %v14891_v61 = vpop.f32.mrf.mxu1 }
 0x88b   : > { %v12798_v33 = vadd.f32 %v14857_v8, %v12728_v30  ;;  %v14892_v51 = vadd.f32 %v14891_v61, %v14890_v20 }
 0x88d   : > { %v12868_v15 = vadd.f32 %v14892_v51, %v12798_v33 }
 0x8a8   : > { %v14925_v42 = vpop.f32.mrf.mxu0 }
 0x8a9   : > { %v14960_v31 = vpop.f32.mrf.mxu1 }
 0x8aa   : > { %v14926_v22 = vpop.f32.mrf.mxu0 }
 0x8ab   : > { %v14927_v44 = vadd.f32 %v14926_v22, %v14925_v42  ;;  %v14961_v7 = vpop.f32.mrf.mxu1 }
 0x8ac   : > { %v14962_v43 = vadd.f32 %v14961_v7, %v14960_v31 }
 0x8ad   : > { %v12938_v32 = vadd.f32 %v14927_v44, %v12868_v15 }
 0x8af   : > { %v13008_v29 = vadd.f32 %v14962_v43, %v12938_v32 }
 0x8b1   : > { %13012 = vst.msk [vmem:[#allocation9] sm:$0xff] %vm13011_vm0, %v13008_v29 }
 0x8b2 PF: > { %p14995_p13 = scmp.eq.s32.totalorder %s15310_s21, 1  ;;  %s15255_s27 = smov [#allocation9]  }
 0x8b3   : > { %s13022_s5 = sshll.u32 %s15255_s27, 4  ;;  %s13023_s5 = int_to_ptr.vmem [resolvable:$true] %s13022_s5 }
 0x8b4   : > { %s15162_s6 = scalar_lea.vmem %s13023_s5, 128  ;;  %p15169_p4 = scmp.lt.s32.totalorder %s13023_s5, %s13023_s5 }
 0x8b5   : > { %p15163_p2 = scmp.ne.s32.totalorder %s13023_s5, %s15162_s6  ;;  %p15170_p10 = scmp.lt.s32.totalorder %s15162_s6, %s15162_s6 }
 0x8b7   : > { %p15164_p7 = pnand %p15163_p2, %p14995_p13  ;;  %p15171_p0 = por %p15170_p10, %p15169_p4 }
 0x8b9   : > { %p15165_p9 = pneg %p15164_p7 }
 0x8bb   : > { %p15172_p1 = pnand %p15171_p0, %p15165_p9 }
 0x8bd   : > { %15175 = shalt.err (!%p15172_p1)
}
 0x8be   : > { %14976 = dma.vmem_to_hbm [thread:$0]  (%p14995_p13), %s13023_s5, 128, %s18265_s4, [#allocation5]  }
 0x8bf   : > { %15223 = dma.done.wait (%p14995_p13), [#allocation5], 128  }
 0x8c0   : > { %15225 = vsyncadd (%p14995_p13), [#allocation5], 4294967168 }
 0x8c1 PF: > { %s19_s20 = sadd.s32 1, %s15248_s20   ;;  %s18279_s15 = smov %s15232_s16 }
 0x8c2   : > { %p16_p5 = scmp.ge.s32.totalorder %s19_s20, 4   ;;  %s18280_s16 = smov %s15236_s17 }
 0x8c3   : > { %s18281_s17 = smov %s15375_s30  ;;  %s18282_s18 = smov %s15244_s19 }
 0x8c4   : > { %s18283_s19 = smov %s18285_s12  ;;  %18 = sbr.rel (!%p16_p5) target bundleno = 6 (0x6), region = 101 }
 0x8c9   :  { %13035 = vsyncpa [#allocation4], 1 }
 0x8ca   :  { %13037 = vsyncpa [#allocation4 + $0x1], 1 }
 0x8cb   :  { %13038 = vsyncpa [#allocation7], 1 }
 0x8cc   :  { %13040 = vsyncpa [#allocation7 + $0x1], 1 }
 0x8cd   :  { %13041 = vsyncpa [#allocation5], 1 }
 0x8ce   :  { %13043 = vsyncpa [#allocation5 + $0x1], 1 }

</bundles_post_ra>
